<compile_context>
chip_gen: v7x
topology: tpu7x:2x2x1
jax: 0.10.0
libtpu: 0.0.40
codegen_flags: <defaults>
</compile_context>

<pallas_src>
import functools

import jax
import jax.numpy as jnp
from jax.experimental import pallas as pl
from jax.experimental.pallas import tpu as pltpu


def _round_up(v, m):
    return (v + m - 1) // m * m


# ---------------------------------------------------------------------------
# Pallas kernels:  out = act(x @ w + b)
# ---------------------------------------------------------------------------
def _mm_bias_act_single_kernel(x_ref, w_ref, b_ref, o_ref, *, relu):
    # Whole K in one block: no accumulator scratch needed.
    out = jnp.dot(x_ref[...], w_ref[...], preferred_element_type=jnp.float32)
    out = out + b_ref[...]
    if relu:
        out = jnp.maximum(out, 0.0)
    o_ref[...] = out.astype(o_ref.dtype)


def _mm_bias_act_acc_kernel(x_ref, w_ref, b_ref, o_ref, acc_ref, *, relu):
    k = pl.program_id(2)

    @pl.when(k == 0)
    def _():
        acc_ref[...] = jnp.zeros_like(acc_ref)

    acc_ref[...] += jnp.dot(
        x_ref[...], w_ref[...], preferred_element_type=jnp.float32
    )

    @pl.when(k == pl.num_programs(2) - 1)
    def _():
        out = acc_ref[...] + b_ref[...]
        if relu:
            out = jnp.maximum(out, 0.0)
        o_ref[...] = out.astype(o_ref.dtype)


def matmul_bias_act(x, w, b, *, relu, out_dtype, tm=None, tn=None, tk=None):
    """out = relu?(x @ w + b); x:[M,K], w:[K,N], b:[1,N]; f32 accumulation.

    tm/tn/tk default to the full dimension (a single block along that axis is
    legal even when not 8/128-aligned).  Tile sizes must divide the already
    aligned operand dims -- no padding is done here (hoisted to init/caller).
    """
    M, K = x.shape
    K2, N = w.shape
    assert K == K2 and b.shape == (1, N)
    tm = M if tm is None else tm
    tn = N if tn is None else tn
    tk = K if tk is None else tk
    assert M % tm == 0 and N % tn == 0 and K % tk == 0, (M, N, K, tm, tn, tk)

    grid = (M // tm, N // tn, K // tk)
    single_k = grid[2] == 1
    kernel = functools.partial(
        _mm_bias_act_single_kernel if single_k else _mm_bias_act_acc_kernel,
        relu=relu,
    )
    scratch = [] if single_k else [pltpu.VMEM((tm, tn), jnp.float32)]

    return pl.pallas_call(
        kernel,
        out_shape=jax.ShapeDtypeStruct((M, N), out_dtype),
        grid_spec=pltpu.PrefetchScalarGridSpec(
            num_scalar_prefetch=0,
            grid=grid,
            in_specs=[
                pl.BlockSpec((tm, tk), lambda i, j, k: (i, k)),
                pl.BlockSpec((tk, tn), lambda i, j, k: (k, j)),
                pl.BlockSpec((1, tn), lambda i, j, k: (0, j)),
            ],
            out_specs=pl.BlockSpec((tm, tn), lambda i, j, k: (i, j)),
            scratch_shapes=scratch,
        ),
        compiler_params=pltpu.CompilerParams(
            dimension_semantics=("parallel", "parallel", "arbitrary"),
            vmem_limit_bytes=32 * 1024 * 1024,
        ),
    )(x, w, b)


# ---------------------------------------------------------------------------
# Fused fc2 -> ReLU -> fc3 -> ReLU -> value head (one pallas_call)
# ---------------------------------------------------------------------------
def _head_kernel(x_ref, w2_ref, b2_ref, w3_ref, b3_ref, wv_ref, bv_ref, o_ref):
    h = jnp.dot(x_ref[...], w2_ref[...], preferred_element_type=jnp.float32)
    h = jnp.maximum(h + b2_ref[...], 0.0).astype(jnp.bfloat16)          # fc2+ReLU
    h = jnp.dot(h, w3_ref[...], preferred_element_type=jnp.float32)
    h = jnp.maximum(h + b3_ref[...], 0.0).astype(jnp.bfloat16)          # fc3+ReLU
    v = jnp.dot(h, wv_ref[...], preferred_element_type=jnp.float32)
    o_ref[...] = v + bv_ref[...]                                        # value head


def fused_head(x, p):
    """x:[Mp,512] bf16 -> [Mp,128] f32; only column 0 is the real value
    (the value head's N was zero-padded 1->128 at init for lane-dense I/O)."""
    mp = x.shape[0]
    full = lambda i: (0, 0)
    return pl.pallas_call(
        _head_kernel,
        out_shape=jax.ShapeDtypeStruct((mp, 128), jnp.float32),
        grid=(1,),
        in_specs=[
            pl.BlockSpec((mp, 512), full),
            pl.BlockSpec((512, 256), full),
            pl.BlockSpec((1, 256), full),
            pl.BlockSpec((256, 128), full),
            pl.BlockSpec((1, 128), full),
            pl.BlockSpec((128, 128), full),
            pl.BlockSpec((1, 128), full),
        ],
        out_specs=pl.BlockSpec((mp, 128), full),
        compiler_params=pltpu.CompilerParams(
            dimension_semantics=("arbitrary",),
            vmem_limit_bytes=32 * 1024 * 1024,
        ),
    )(x, p["fc2_w2d"], p["fc2_b2d"], p["fc3_w2d"], p["fc3_b2d"],
      p["val_w2d"], p["val_b2d"])


# ---------------------------------------------------------------------------
# JAX glue: im2col lowering of Conv2d over NHWC activations
# ---------------------------------------------------------------------------
def im2col_nhwc(x, kh, kw, stride):
    B, H, W, C = x.shape
    oh = (H - kh) // stride + 1
    ow = (W - kw) // stride + 1
    patches = []
    for i in range(kh):
        for j in range(kw):
            patches.append(
                x[:, i : i + stride * oh : stride, j : j + stride * ow : stride, :]
            )
    p = jnp.stack(patches, axis=3)  # (B, oh, ow, kh*kw, C): K order = (kh, kw, Cin)
    return p.reshape(B * oh * ow, kh * kw * C), oh, ow


def conv2d_relu(x_nhwc, w2d, b2d, kh, kw, stride):
    """w2d: [kh*kw*Cin, Cout] bf16 (prepared at init). Returns NHWC bf16."""
    B = x_nhwc.shape[0]
    patches, oh, ow = im2col_nhwc(x_nhwc, kh, kw, stride)
    # Full-dimension blocks: grid (1,1,1), no K/N padding, no accumulator.
    y = matmul_bias_act(patches, w2d, b2d, relu=True, out_dtype=jnp.bfloat16)
    return y.reshape(B, oh, ow, w2d.shape[1])


# ---------------------------------------------------------------------------
# Parameters: synthetic init in PyTorch layouts + one-time matmul-layout prep
# ---------------------------------------------------------------------------
def init_params(key):
    """Synthetic weights in PyTorch layouts (conv OIHW; linears stored [in,out])."""
    def lin(key, fan_in, shape):
        bound = 1.0 / jnp.sqrt(fan_in)
        return jax.random.uniform(key, shape, jnp.float32, -bound, bound)

    ks = jax.random.split(key, 14)
    p = {}
    p["conv1_w"] = lin(ks[0], 1 * 8 * 8, (32, 1, 8, 8))
    p["conv1_b"] = lin(ks[1], 1 * 8 * 8, (32,))
    p["conv2_w"] = lin(ks[2], 32 * 4 * 4, (64, 32, 4, 4))
    p["conv2_b"] = lin(ks[3], 32 * 4 * 4, (64,))
    p["conv3_w"] = lin(ks[4], 64 * 3 * 3, (64, 64, 3, 3))
    p["conv3_b"] = lin(ks[5], 64 * 3 * 3, (64,))
    p["fc1_w"] = lin(ks[6], 64 * 10 * 20, (64 * 10 * 20, 512))
    p["fc1_b"] = lin(ks[7], 64 * 10 * 20, (512,))
    p["fc2_w"] = lin(ks[8], 512, (512, 256))
    p["fc2_b"] = lin(ks[9], 512, (256,))
    p["fc3_w"] = lin(ks[10], 256, (256, 128))
    p["fc3_b"] = lin(ks[11], 256, (128,))
    p["val_w"] = lin(ks[12], 128, (128, 1))
    p["val_b"] = lin(ks[13], 128, (1,))
    return p


def prepare_params(p):
    """One-time layout/dtype prep (hoisted out of the forward pass):
      * conv weights -> [kh*kw*Cin, Cout] bf16 matching the NHWC im2col order,
      * fc1 rows permuted from NCHW-flatten (c,h,w) to NHWC-flatten (h,w,c),
      * value head N zero-padded 1 -> 128 (sliced back after the kernel),
      * matmul weights bf16, biases f32 shaped [1, N].
    (Real nn.Linear weights would first be transposed to [in, out].)"""
    q = {}

    def conv_prep(name, w, b):
        cout, cin, kh, kw = w.shape
        w2d = w.transpose(0, 2, 3, 1).reshape(cout, kh * kw * cin).T
        q[name + "_w2d"] = w2d.astype(jnp.bfloat16)
        q[name + "_b2d"] = b.reshape(1, cout).astype(jnp.float32)

    conv_prep("conv1", p["conv1_w"], p["conv1_b"])
    conv_prep("conv2", p["conv2_w"], p["conv2_b"])
    conv_prep("conv3", p["conv3_w"], p["conv3_b"])

    fc1 = p["fc1_w"].reshape(64, 10, 20, 512).transpose(1, 2, 0, 3).reshape(12800, 512)
    q["fc1_w2d"] = fc1.astype(jnp.bfloat16)
    q["fc1_b2d"] = p["fc1_b"].reshape(1, 512).astype(jnp.float32)
    q["fc2_w2d"] = p["fc2_w"].astype(jnp.bfloat16)
    q["fc2_b2d"] = p["fc2_b"].reshape(1, 256).astype(jnp.float32)
    q["fc3_w2d"] = p["fc3_w"].astype(jnp.bfloat16)
    q["fc3_b2d"] = p["fc3_b"].reshape(1, 128).astype(jnp.float32)
    q["val_w2d"] = (
        jnp.zeros((128, 128), jnp.bfloat16).at[:, :1].set(p["val_w"].astype(jnp.bfloat16))
    )
    q["val_b2d"] = jnp.zeros((1, 128), jnp.float32).at[0, :1].set(p["val_b"])
    return q


# ---------------------------------------------------------------------------
# Forward pass
# ---------------------------------------------------------------------------
def value_network_forward(params, x):
    """x: (B, 1, 108, 188) NCHW f32 (PyTorch convention) -> (B, 1) f32."""
    B = x.shape[0]
    # NHWC + bf16 activations throughout; f32 accumulation inside the kernels.
    h = jnp.transpose(x, (0, 2, 3, 1)).astype(jnp.bfloat16)
    h = conv2d_relu(h, params["conv1_w2d"], params["conv1_b2d"], 8, 8, 4)  # (B,26,46,32)
    h = conv2d_relu(h, params["conv2_w2d"], params["conv2_b2d"], 4, 4, 2)  # (B,12,22,64)
    h = conv2d_relu(h, params["conv3_w2d"], params["conv3_b2d"], 3, 3, 1)  # (B,10,20,64)
    h = h.reshape(B, 64 * 10 * 20)   # NHWC flatten; fc1_w rows were permuted to match

    # Pad the tiny batch once to a bf16-friendly sublane multiple; sliced at the end.
    mp = _round_up(B, 16)
    if mp != B:
        h = jnp.zeros((mp, h.shape[1]), h.dtype).at[:B].set(h)

    # fc1: K=12800, N=512 -> grid (1, 2, 4); 1.6 MiB bf16 weight blocks.
    h = matmul_bias_act(h, params["fc1_w2d"], params["fc1_b2d"], relu=True,
                        out_dtype=jnp.bfloat16, tn=256, tk=3200)           # (mp, 512)
    # Dropout(p=0.3) layers are identity in eval-mode forward.
    # TODO(synk): training-mode dropout would use pltpu.prng_seed / prng_random_bits.
    v = fused_head(h, params)                                              # (mp, 128)
    return v[:B, :1]


if __name__ == "__main__":
    key = jax.random.PRNGKey(0)
    pkey, xkey = jax.random.split(key)
    params = prepare_params(init_params(pkey))

    # Input size is fixed by the architecture (fc1 expects 64*10*20 features).
    x = jax.random.normal(xkey, (2, 1, 108, 188), jnp.float32)

    out = jax.jit(value_network_forward)(params, x)
    out = jax.block_until_ready(out)
    assert out.shape == (2, 1), out.shape
    assert jnp.all(jnp.isfinite(out))
    print("KERNEL_OK")
</pallas_src>

<mosaic_0001>
module attributes {stable_mosaic.version = 11 : i64} {
  func.func @_mm_bias_act_single_kernel(%arg0: i32, %arg1: i32, %arg2: i32, %arg3: memref<2392x64xbf16, #tpu.memory_space<vmem>>, %arg4: memref<64x32xbf16, #tpu.memory_space<vmem>>, %arg5: memref<1x32xf32, #tpu.memory_space<vmem>>, %arg6: memref<2392x32xbf16, #tpu.memory_space<vmem>>) attributes {dimension_semantics = [#tpu.dimension_semantics<parallel>, #tpu.dimension_semantics<parallel>, #tpu.dimension_semantics<arbitrary>], iteration_bounds = array<i64: 1, 1, 1>, scalar_prefetch = 0 : i64, scratch_operands = 0 : i64, tpu.core_type = #tpu.core_type<tc>, window_params = [{transform_indices = @transform_0, window_bounds = array<i64: 2392, 64>}, {transform_indices = @transform_1, window_bounds = array<i64: 64, 32>}, {transform_indices = @transform_2, window_bounds = array<i64: 1, 32>}, {transform_indices = @transform_3, window_bounds = array<i64: 2392, 32>}]} {
    %c0 = arith.constant 0 : index
    %c0_0 = arith.constant 0 : index
    %0 = vector.load %arg3[%c0, %c0_0] : memref<2392x64xbf16, #tpu.memory_space<vmem>>, vector<2392x64xbf16>
    %c0_1 = arith.constant 0 : index
    %c0_2 = arith.constant 0 : index
    %1 = vector.load %arg4[%c0_1, %c0_2] : memref<64x32xbf16, #tpu.memory_space<vmem>>, vector<64x32xbf16>
    %cst = arith.constant dense<0.000000e+00> : vector<2392x32xf32>
    %2 = tpu.matmul %0, %1, %cst {dimension_numbers = #tpu.dot_dimension_numbers<[1], [0], [0], [1], [0, 0, 1, 1], [], []>} : vector<2392x64xbf16>, vector<64x32xbf16>, vector<2392x32xf32> -> vector<2392x32xf32>
    %c0_3 = arith.constant 0 : index
    %c0_4 = arith.constant 0 : index
    %3 = vector.load %arg5[%c0_3, %c0_4] : memref<1x32xf32, #tpu.memory_space<vmem>>, vector<1x32xf32>
    %4 = vector.broadcast %3 : vector<1x32xf32> to vector<2392x32xf32>
    %5 = arith.addf %2, %4 : vector<2392x32xf32>
    %cst_5 = arith.constant 0.000000e+00 : f32
    %6 = vector.broadcast %cst_5 : f32 to vector<2392x32xf32>
    %7 = arith.maximumf %5, %6 : vector<2392x32xf32>
    %8 = arith.truncf %7 : vector<2392x32xf32> to vector<2392x32xbf16>
    %c0_6 = arith.constant 0 : index
    %c0_7 = arith.constant 0 : index
    %9 = vector.load %arg6[%c0_6, %c0_7] : memref<2392x32xbf16, #tpu.memory_space<vmem>>, vector<2392x32xbf16>
    tpu.vector_store %arg6[%c0_6, %c0_7], %8 {strides = array<i32>} : memref<2392x32xbf16, #tpu.memory_space<vmem>>, vector<2392x32xbf16>,
    return
  }
  func.func @transform_0(%arg0: i32, %arg1: i32, %arg2: i32) -> (i32, i32) {
    %c0_i32 = arith.constant 0 : i32
    return %arg0, %arg2 : i32, i32
  }
  func.func @transform_1(%arg0: i32, %arg1: i32, %arg2: i32) -> (i32, i32) {
    %c0_i32 = arith.constant 0 : i32
    return %arg2, %arg1 : i32, i32
  }
  func.func @transform_2(%arg0: i32, %arg1: i32, %arg2: i32) -> (i32, i32) {
    %c0_i32 = arith.constant 0 : i32
    %c0_i32_0 = arith.constant 0 : i32
    return %c0_i32, %arg1 : i32, i32
  }
  func.func @transform_3(%arg0: i32, %arg1: i32, %arg2: i32) -> (i32, i32) {
    %c0_i32 = arith.constant 0 : i32
    return %arg0, %arg1 : i32, i32
  }
}

module attributes {stable_mosaic.version = 11 : i64} {
  func.func @_mm_bias_act_single_kernel(%arg0: i32, %arg1: i32, %arg2: i32, %arg3: memref<528x512xbf16, #tpu.memory_space<vmem>>, %arg4: memref<512x64xbf16, #tpu.memory_space<vmem>>, %arg5: memref<1x64xf32, #tpu.memory_space<vmem>>, %arg6: memref<528x64xbf16, #tpu.memory_space<vmem>>) attributes {dimension_semantics = [#tpu.dimension_semantics<parallel>, #tpu.dimension_semantics<parallel>, #tpu.dimension_semantics<arbitrary>], iteration_bounds = array<i64: 1, 1, 1>, scalar_prefetch = 0 : i64, scratch_operands = 0 : i64, tpu.core_type = #tpu.core_type<tc>, window_params = [{transform_indices = @transform_0, window_bounds = array<i64: 528, 512>}, {transform_indices = @transform_1, window_bounds = array<i64: 512, 64>}, {transform_indices = @transform_2, window_bounds = array<i64: 1, 64>}, {transform_indices = @transform_3, window_bounds = array<i64: 528, 64>}]} {
    %c0 = arith.constant 0 : index
    %c0_0 = arith.constant 0 : index
    %0 = vector.load %arg3[%c0, %c0_0] : memref<528x512xbf16, #tpu.memory_space<vmem>>, vector<528x512xbf16>
    %c0_1 = arith.constant 0 : index
    %c0_2 = arith.constant 0 : index
    %1 = vector.load %arg4[%c0_1, %c0_2] : memref<512x64xbf16, #tpu.memory_space<vmem>>, vector<512x64xbf16>
    %cst = arith.constant dense<0.000000e+00> : vector<528x64xf32>
    %2 = tpu.matmul %0, %1, %cst {dimension_numbers = #tpu.dot_dimension_numbers<[1], [0], [0], [1], [0, 0, 1, 1], [], []>} : vector<528x512xbf16>, vector<512x64xbf16>, vector<528x64xf32> -> vector<528x64xf32>
    %c0_3 = arith.constant 0 : index
    %c0_4 = arith.constant 0 : index
    %3 = vector.load %arg5[%c0_3, %c0_4] : memref<1x64xf32, #tpu.memory_space<vmem>>, vector<1x64xf32>
    %4 = vector.broadcast %3 : vector<1x64xf32> to vector<528x64xf32>
    %5 = arith.addf %2, %4 : vector<528x64xf32>
    %cst_5 = arith.constant 0.000000e+00 : f32
    %6 = vector.broadcast %cst_5 : f32 to vector<528x64xf32>
    %7 = arith.maximumf %5, %6 : vector<528x64xf32>
    %8 = arith.truncf %7 : vector<528x64xf32> to vector<528x64xbf16>
    %c0_6 = arith.constant 0 : index
    %c0_7 = arith.constant 0 : index
    %9 = vector.load %arg6[%c0_6, %c0_7] : memref<528x64xbf16, #tpu.memory_space<vmem>>, vector<528x64xbf16>
    tpu.vector_store %arg6[%c0_6, %c0_7], %8 {strides = array<i32>} : memref<528x64xbf16, #tpu.memory_space<vmem>>, vector<528x64xbf16>,
    return
  }
  func.func @transform_0(%arg0: i32, %arg1: i32, %arg2: i32) -> (i32, i32) {
    %c0_i32 = arith.constant 0 : i32
    return %arg0, %arg2 : i32, i32
  }
  func.func @transform_1(%arg0: i32, %arg1: i32, %arg2: i32) -> (i32, i32) {
    %c0_i32 = arith.constant 0 : i32
    return %arg2, %arg1 : i32, i32
  }
  func.func @transform_2(%arg0: i32, %arg1: i32, %arg2: i32) -> (i32, i32) {
    %c0_i32 = arith.constant 0 : i32
    %c0_i32_0 = arith.constant 0 : i32
    return %c0_i32, %arg1 : i32, i32
  }
  func.func @transform_3(%arg0: i32, %arg1: i32, %arg2: i32) -> (i32, i32) {
    %c0_i32 = arith.constant 0 : i32
    return %arg0, %arg1 : i32, i32
  }
}

module attributes {stable_mosaic.version = 11 : i64} {
  func.func @_mm_bias_act_single_kernel(%arg0: i32, %arg1: i32, %arg2: i32, %arg3: memref<400x576xbf16, #tpu.memory_space<vmem>>, %arg4: memref<576x64xbf16, #tpu.memory_space<vmem>>, %arg5: memref<1x64xf32, #tpu.memory_space<vmem>>, %arg6: memref<400x64xbf16, #tpu.memory_space<vmem>>) attributes {dimension_semantics = [#tpu.dimension_semantics<parallel>, #tpu.dimension_semantics<parallel>, #tpu.dimension_semantics<arbitrary>], iteration_bounds = array<i64: 1, 1, 1>, scalar_prefetch = 0 : i64, scratch_operands = 0 : i64, tpu.core_type = #tpu.core_type<tc>, window_params = [{transform_indices = @transform_0, window_bounds = array<i64: 400, 576>}, {transform_indices = @transform_1, window_bounds = array<i64: 576, 64>}, {transform_indices = @transform_2, window_bounds = array<i64: 1, 64>}, {transform_indices = @transform_3, window_bounds = array<i64: 400, 64>}]} {
    %c0 = arith.constant 0 : index
    %c0_0 = arith.constant 0 : index
    %0 = vector.load %arg3[%c0, %c0_0] : memref<400x576xbf16, #tpu.memory_space<vmem>>, vector<400x576xbf16>
    %c0_1 = arith.constant 0 : index
    %c0_2 = arith.constant 0 : index
    %1 = vector.load %arg4[%c0_1, %c0_2] : memref<576x64xbf16, #tpu.memory_space<vmem>>, vector<576x64xbf16>
    %cst = arith.constant dense<0.000000e+00> : vector<400x64xf32>
    %2 = tpu.matmul %0, %1, %cst {dimension_numbers = #tpu.dot_dimension_numbers<[1], [0], [0], [1], [0, 0, 1, 1], [], []>} : vector<400x576xbf16>, vector<576x64xbf16>, vector<400x64xf32> -> vector<400x64xf32>
    %c0_3 = arith.constant 0 : index
    %c0_4 = arith.constant 0 : index
    %3 = vector.load %arg5[%c0_3, %c0_4] : memref<1x64xf32, #tpu.memory_space<vmem>>, vector<1x64xf32>
    %4 = vector.broadcast %3 : vector<1x64xf32> to vector<400x64xf32>
    %5 = arith.addf %2, %4 : vector<400x64xf32>
    %cst_5 = arith.constant 0.000000e+00 : f32
    %6 = vector.broadcast %cst_5 : f32 to vector<400x64xf32>
    %7 = arith.maximumf %5, %6 : vector<400x64xf32>
    %8 = arith.truncf %7 : vector<400x64xf32> to vector<400x64xbf16>
    %c0_6 = arith.constant 0 : index
    %c0_7 = arith.constant 0 : index
    %9 = vector.load %arg6[%c0_6, %c0_7] : memref<400x64xbf16, #tpu.memory_space<vmem>>, vector<400x64xbf16>
    tpu.vector_store %arg6[%c0_6, %c0_7], %8 {strides = array<i32>} : memref<400x64xbf16, #tpu.memory_space<vmem>>, vector<400x64xbf16>,
    return
  }
  func.func @transform_0(%arg0: i32, %arg1: i32, %arg2: i32) -> (i32, i32) {
    %c0_i32 = arith.constant 0 : i32
    return %arg0, %arg2 : i32, i32
  }
  func.func @transform_1(%arg0: i32, %arg1: i32, %arg2: i32) -> (i32, i32) {
    %c0_i32 = arith.constant 0 : i32
    return %arg2, %arg1 : i32, i32
  }
  func.func @transform_2(%arg0: i32, %arg1: i32, %arg2: i32) -> (i32, i32) {
    %c0_i32 = arith.constant 0 : i32
    %c0_i32_0 = arith.constant 0 : i32
    return %c0_i32, %arg1 : i32, i32
  }
  func.func @transform_3(%arg0: i32, %arg1: i32, %arg2: i32) -> (i32, i32) {
    %c0_i32 = arith.constant 0 : i32
    return %arg0, %arg1 : i32, i32
  }
}

module attributes {stable_mosaic.version = 11 : i64} {
  func.func @_mm_bias_act_acc_kernel(%arg0: i32, %arg1: i32, %arg2: i32, %arg3: memref<16x3200xbf16, #tpu.memory_space<vmem>>, %arg4: memref<3200x256xbf16, #tpu.memory_space<vmem>>, %arg5: memref<1x256xf32, #tpu.memory_space<vmem>>, %arg6: memref<16x256xbf16, #tpu.memory_space<vmem>>, %arg7: memref<16x256xf32, #tpu.memory_space<vmem>>) attributes {dimension_semantics = [#tpu.dimension_semantics<parallel>, #tpu.dimension_semantics<parallel>, #tpu.dimension_semantics<arbitrary>], iteration_bounds = array<i64: 1, 2, 4>, scalar_prefetch = 0 : i64, scratch_operands = 1 : i64, tpu.core_type = #tpu.core_type<tc>, window_params = [{transform_indices = @transform_0, window_bounds = array<i64: 16, 3200>}, {transform_indices = @transform_1, window_bounds = array<i64: 3200, 256>}, {transform_indices = @transform_2, window_bounds = array<i64: 1, 256>}, {transform_indices = @transform_3, window_bounds = array<i64: 16, 256>}]} {
    %c0_i32 = arith.constant 0 : i32
    %0 = arith.cmpi eq, %arg2, %c0_i32 : i32
    %1 = arith.extui %0 : i1 to i32
    %c0_i32_0 = arith.constant 0 : i32
    %2 = arith.cmpi ne, %1, %c0_i32_0 : i32
    scf.if %2 {
      %cst_9 = arith.constant 0.000000e+00 : f32
      %12 = vector.broadcast %cst_9 : f32 to vector<16x256xf32>
      %c0_10 = arith.constant 0 : index
      %c0_11 = arith.constant 0 : index
      %13 = vector.load %arg7[%c0_10, %c0_11] : memref<16x256xf32, #tpu.memory_space<vmem>>, vector<16x256xf32>
      tpu.vector_store %arg7[%c0_10, %c0_11], %12 {strides = array<i32>} : memref<16x256xf32, #tpu.memory_space<vmem>>, vector<16x256xf32>,
    } else {
    }
    %c0 = arith.constant 0 : index
    %c0_1 = arith.constant 0 : index
    %3 = vector.load %arg7[%c0, %c0_1] : memref<16x256xf32, #tpu.memory_space<vmem>>, vector<16x256xf32>
    %c0_2 = arith.constant 0 : index
    %c0_3 = arith.constant 0 : index
    %4 = vector.load %arg3[%c0_2, %c0_3] : memref<16x3200xbf16, #tpu.memory_space<vmem>>, vector<16x3200xbf16>
    %c0_4 = arith.constant 0 : index
    %c0_5 = arith.constant 0 : index
    %5 = vector.load %arg4[%c0_4, %c0_5] : memref<3200x256xbf16, #tpu.memory_space<vmem>>, vector<3200x256xbf16>
    %cst = arith.constant dense<0.000000e+00> : vector<16x256xf32>
    %6 = tpu.matmul %4, %5, %cst {dimension_numbers = #tpu.dot_dimension_numbers<[1], [0], [0], [1], [0, 0, 1, 1], [], []>} : vector<16x3200xbf16>, vector<3200x256xbf16>, vector<16x256xf32> -> vector<16x256xf32>
    %7 = arith.addf %3, %6 : vector<16x256xf32>
    %c0_6 = arith.constant 0 : index
    %c0_7 = arith.constant 0 : index
    %8 = vector.load %arg7[%c0_6, %c0_7] : memref<16x256xf32, #tpu.memory_space<vmem>>, vector<16x256xf32>
    tpu.vector_store %arg7[%c0_6, %c0_7], %7 {strides = array<i32>} : memref<16x256xf32, #tpu.memory_space<vmem>>, vector<16x256xf32>,
    %c3_i32 = arith.constant 3 : i32
    %9 = arith.cmpi eq, %arg2, %c3_i32 : i32
    %10 = arith.extui %9 : i1 to i32
    %c0_i32_8 = arith.constant 0 : i32
    %11 = arith.cmpi ne, %10, %c0_i32_8 : i32
    scf.if %11 {
      %c0_9 = arith.constant 0 : index
      %c0_10 = arith.constant 0 : index
      %12 = vector.load %arg7[%c0_9, %c0_10] : memref<16x256xf32, #tpu.memory_space<vmem>>, vector<16x256xf32>
      %c0_11 = arith.constant 0 : index
      %c0_12 = arith.constant 0 : index
      %13 = vector.load %arg5[%c0_11, %c0_12] : memref<1x256xf32, #tpu.memory_space<vmem>>, vector<1x256xf32>
      %14 = vector.broadcast %13 : vector<1x256xf32> to vector<16x256xf32>
      %15 = arith.addf %12, %14 : vector<16x256xf32>
      %cst_13 = arith.constant 0.000000e+00 : f32
      %16 = vector.broadcast %cst_13 : f32 to vector<16x256xf32>
      %17 = arith.maximumf %15, %16 : vector<16x256xf32>
      %18 = arith.truncf %17 : vector<16x256xf32> to vector<16x256xbf16>
      %c0_14 = arith.constant 0 : index
      %c0_15 = arith.constant 0 : index
      %19 = vector.load %arg6[%c0_14, %c0_15] : memref<16x256xbf16, #tpu.memory_space<vmem>>, vector<16x256xbf16>
      tpu.vector_store %arg6[%c0_14, %c0_15], %18 {strides = array<i32>} : memref<16x256xbf16, #tpu.memory_space<vmem>>, vector<16x256xbf16>,
    } else {
    }
    return
  }
  func.func @transform_0(%arg0: i32, %arg1: i32, %arg2: i32) -> (i32, i32) {
    %c0_i32 = arith.constant 0 : i32
    return %arg0, %arg2 : i32, i32
  }
  func.func @transform_1(%arg0: i32, %arg1: i32, %arg2: i32) -> (i32, i32) {
    %c0_i32 = arith.constant 0 : i32
    return %arg2, %arg1 : i32, i32
  }
  func.func @transform_2(%arg0: i32, %arg1: i32, %arg2: i32) -> (i32, i32) {
    %c0_i32 = arith.constant 0 : i32
    %c0_i32_0 = arith.constant 0 : i32
    return %c0_i32, %arg1 : i32, i32
  }
  func.func @transform_3(%arg0: i32, %arg1: i32, %arg2: i32) -> (i32, i32) {
    %c0_i32 = arith.constant 0 : i32
    return %arg0, %arg1 : i32, i32
  }
}

module attributes {stable_mosaic.version = 11 : i64} {
  func.func @_head_kernel(%arg0: i32, %arg1: memref<16x512xbf16, #tpu.memory_space<vmem>>, %arg2: memref<512x256xbf16, #tpu.memory_space<vmem>>, %arg3: memref<1x256xf32, #tpu.memory_space<vmem>>, %arg4: memref<256x128xbf16, #tpu.memory_space<vmem>>, %arg5: memref<1x128xf32, #tpu.memory_space<vmem>>, %arg6: memref<128x128xbf16, #tpu.memory_space<vmem>>, %arg7: memref<1x128xf32, #tpu.memory_space<vmem>>, %arg8: memref<16x128xf32, #tpu.memory_space<vmem>>) attributes {dimension_semantics = [#tpu.dimension_semantics<arbitrary>], iteration_bounds = array<i64: 1>, scalar_prefetch = 0 : i64, scratch_operands = 0 : i64, tpu.core_type = #tpu.core_type<tc>, window_params = [{pipeline_mode = #tpu.pipeline_mode<synchronous>, transform_indices = @transform_0, window_bounds = array<i64: 16, 512>}, {pipeline_mode = #tpu.pipeline_mode<synchronous>, transform_indices = @transform_1, window_bounds = array<i64: 512, 256>}, {pipeline_mode = #tpu.pipeline_mode<synchronous>, transform_indices = @transform_2, window_bounds = array<i64: 1, 256>}, {pipeline_mode = #tpu.pipeline_mode<synchronous>, transform_indices = @transform_3, window_bounds = array<i64: 256, 128>}, {pipeline_mode = #tpu.pipeline_mode<synchronous>, transform_indices = @transform_4, window_bounds = array<i64: 1, 128>}, {pipeline_mode = #tpu.pipeline_mode<synchronous>, transform_indices = @transform_5, window_bounds = array<i64: 128, 128>}, {pipeline_mode = #tpu.pipeline_mode<synchronous>, transform_indices = @transform_6, window_bounds = array<i64: 1, 128>}, {pipeline_mode = #tpu.pipeline_mode<synchronous>, transform_indices = @transform_7, window_bounds = array<i64: 16, 128>}]} {
    %c0 = arith.constant 0 : index
    %c0_0 = arith.constant 0 : index
    %0 = vector.load %arg1[%c0, %c0_0] : memref<16x512xbf16, #tpu.memory_space<vmem>>, vector<16x512xbf16>
    %c0_1 = arith.constant 0 : index
    %c0_2 = arith.constant 0 : index
    %1 = vector.load %arg2[%c0_1, %c0_2] : memref<512x256xbf16, #tpu.memory_space<vmem>>, vector<512x256xbf16>
    %cst = arith.constant dense<0.000000e+00> : vector<16x256xf32>
    %2 = tpu.matmul %0, %1, %cst {dimension_numbers = #tpu.dot_dimension_numbers<[1], [0], [0], [1], [0, 0, 1, 1], [], []>} : vector<16x512xbf16>, vector<512x256xbf16>, vector<16x256xf32> -> vector<16x256xf32>
    %c0_3 = arith.constant 0 : index
    %c0_4 = arith.constant 0 : index
    %3 = vector.load %arg3[%c0_3, %c0_4] : memref<1x256xf32, #tpu.memory_space<vmem>>, vector<1x256xf32>
    %4 = vector.broadcast %3 : vector<1x256xf32> to vector<16x256xf32>
    %5 = arith.addf %2, %4 : vector<16x256xf32>
    %cst_5 = arith.constant 0.000000e+00 : f32
    %6 = vector.broadcast %cst_5 : f32 to vector<16x256xf32>
    %7 = arith.maximumf %5, %6 : vector<16x256xf32>
    %8 = arith.truncf %7 : vector<16x256xf32> to vector<16x256xbf16>
    %c0_6 = arith.constant 0 : index
    %c0_7 = arith.constant 0 : index
    %9 = vector.load %arg4[%c0_6, %c0_7] : memref<256x128xbf16, #tpu.memory_space<vmem>>, vector<256x128xbf16>
    %cst_8 = arith.constant dense<0.000000e+00> : vector<16x128xf32>
    %10 = tpu.matmul %8, %9, %cst_8 {dimension_numbers = #tpu.dot_dimension_numbers<[1], [0], [0], [1], [0, 0, 1, 1], [], []>} : vector<16x256xbf16>, vector<256x128xbf16>, vector<16x128xf32> -> vector<16x128xf32>
    %c0_9 = arith.constant 0 : index
    %c0_10 = arith.constant 0 : index
    %11 = vector.load %arg5[%c0_9, %c0_10] : memref<1x128xf32, #tpu.memory_space<vmem>>, vector<1x128xf32>
    %12 = vector.broadcast %11 : vector<1x128xf32> to vector<16x128xf32>
    %13 = arith.addf %10, %12 : vector<16x128xf32>
    %cst_11 = arith.constant 0.000000e+00 : f32
    %14 = vector.broadcast %cst_11 : f32 to vector<16x128xf32>
    %15 = arith.maximumf %13, %14 : vector<16x128xf32>
    %16 = arith.truncf %15 : vector<16x128xf32> to vector<16x128xbf16>
    %c0_12 = arith.constant 0 : index
    %c0_13 = arith.constant 0 : index
    %17 = vector.load %arg6[%c0_12, %c0_13] : memref<128x128xbf16, #tpu.memory_space<vmem>>, vector<128x128xbf16>
    %cst_14 = arith.constant dense<0.000000e+00> : vector<16x128xf32>
    %18 = tpu.matmul %16, %17, %cst_14 {dimension_numbers = #tpu.dot_dimension_numbers<[1], [0], [0], [1], [0, 0, 1, 1], [], []>} : vector<16x128xbf16>, vector<128x128xbf16>, vector<16x128xf32> -> vector<16x128xf32>
    %c0_15 = arith.constant 0 : index
    %c0_16 = arith.constant 0 : index
    %19 = vector.load %arg7[%c0_15, %c0_16] : memref<1x128xf32, #tpu.memory_space<vmem>>, vector<1x128xf32>
    %20 = vector.broadcast %19 : vector<1x128xf32> to vector<16x128xf32>
    %21 = arith.addf %18, %20 : vector<16x128xf32>
    %c0_17 = arith.constant 0 : index
    %c0_18 = arith.constant 0 : index
    %22 = vector.load %arg8[%c0_17, %c0_18] : memref<16x128xf32, #tpu.memory_space<vmem>>, vector<16x128xf32>
    tpu.vector_store %arg8[%c0_17, %c0_18], %21 {strides = array<i32>} : memref<16x128xf32, #tpu.memory_space<vmem>>, vector<16x128xf32>,
    return
  }
  func.func @transform_0(%arg0: i32) -> (i32, i32) {
    %c0_i32 = arith.constant 0 : i32
    %c0_i32_0 = arith.constant 0 : i32
    %c0_i32_1 = arith.constant 0 : i32
    return %c0_i32, %c0_i32_0 : i32, i32
  }
  func.func @transform_1(%arg0: i32) -> (i32, i32) {
    %c0_i32 = arith.constant 0 : i32
    %c0_i32_0 = arith.constant 0 : i32
    %c0_i32_1 = arith.constant 0 : i32
    return %c0_i32, %c0_i32_0 : i32, i32
  }
  func.func @transform_2(%arg0: i32) -> (i32, i32) {
    %c0_i32 = arith.constant 0 : i32
    %c0_i32_0 = arith.constant 0 : i32
    %c0_i32_1 = arith.constant 0 : i32
    return %c0_i32, %c0_i32_0 : i32, i32
  }
  func.func @transform_3(%arg0: i32) -> (i32, i32) {
    %c0_i32 = arith.constant 0 : i32
    %c0_i32_0 = arith.constant 0 : i32
    %c0_i32_1 = arith.constant 0 : i32
    return %c0_i32, %c0_i32_0 : i32, i32
  }
  func.func @transform_4(%arg0: i32) -> (i32, i32) {
    %c0_i32 = arith.constant 0 : i32
    %c0_i32_0 = arith.constant 0 : i32
    %c0_i32_1 = arith.constant 0 : i32
    return %c0_i32, %c0_i32_0 : i32, i32
  }
  func.func @transform_5(%arg0: i32) -> (i32, i32) {
    %c0_i32 = arith.constant 0 : i32
    %c0_i32_0 = arith.constant 0 : i32
    %c0_i32_1 = arith.constant 0 : i32
    return %c0_i32, %c0_i32_0 : i32, i32
  }
  func.func @transform_6(%arg0: i32) -> (i32, i32) {
    %c0_i32 = arith.constant 0 : i32
    %c0_i32_0 = arith.constant 0 : i32
    %c0_i32_1 = arith.constant 0 : i32
    return %c0_i32, %c0_i32_0 : i32, i32
  }
  func.func @transform_7(%arg0: i32) -> (i32, i32) {
    %c0_i32 = arith.constant 0 : i32
    %c0_i32_0 = arith.constant 0 : i32
    %c0_i32_1 = arith.constant 0 : i32
    return %c0_i32, %c0_i32_0 : i32, i32
  }
}

</mosaic_0001>

<bundles_post_ra>
// kernel: value_network_forward.5
= control target key start
LH: loop header
LB: loop body
LE: loop exit
PB: predicated region body
PF: predicated region fallthrough
CT: control target
= control target key end

     0   :  { %8 = vsyncpa [#allocation3], 0  ;;  %s6156_s12 = smov [#allocation2]   ;;  %s7862_s0 = inlined_call_operand.hbm [shape: bf16[2392,64], index: 0, kind: input, shape index: {}]   ;;  %s7863_s1 = inlined_call_operand.vmem [shape: bf16[64,32], index: 1, kind: input, shape index: {}]   ;;  %s7864_s2 = inlined_call_operand.vmem [shape: f32[1,32], index: 2, kind: input, shape index: {}]   ;;  %s7865_s3 = inlined_call_operand.vmem [shape: bf16[2392,32], index: 3, kind: output, shape index: {}]  }
   0x1   :  { %s14_s13 = sshll.u32 %s6156_s12, 4  ;;  %s6132_s16 = scalar_lea.hbm %s7862_s0, 19136  ;;  %s15_s13 = int_to_ptr.vmem [resolvable:$true] %s14_s13 }
   0x2   :  { %p6133_p0 = scmp.ne.s32.totalorder %s7862_s0, %s6132_s16  ;;  %p6136_p1 = scmp.lt.u32.totalorder %s6132_s16, %s7862_s0 }
   0x4   :  { %p6138_p2 = pnand %p6136_p1, %p6133_p0 }
   0x6   :  { %6141 = shalt.err (!%p6138_p2)
}
   0x7   :  { %s6142_s21 = scalar_lea.vmem %s15_s13, 19136  ;;  %p6147_p4 = scmp.lt.s32.totalorder %s15_s13, %s15_s13 }
   0x8   :  { %p6143_p3 = scmp.ne.s32.totalorder %s15_s13, %s6142_s21  ;;  %p6148_p5 = scmp.lt.s32.totalorder %s6142_s21, %s6142_s21 }
   0xa   :  { %p6149_p6 = por %p6148_p5, %p6147_p4 }
   0xc   :  { %p6150_p7 = pnand %p6149_p6, %p6143_p3 }
   0xe   :  { %6153 = shalt.err (!%p6150_p7)
}
   0xf   :  { %s6157_s22 = smov 64   ;;  %s6158_s23 = smov 4  }
  0x10   :  { %20 = dma.hbm_to_vmem [thread:$0]  %s7862_s0, 19136, %s15_s13, [#allocation3], %s6157_s22, %s6157_s22, %s6158_s23  }
  0x11   :  { %6154 = dma.done.wait [#allocation3], 19136  }
  0x12   :  { %6155 = vsyncadd [#allocation3], 4294948160  ;;  %v5975_v0 = vld [vmem:[%s7863_s1] sm:$0xff]   ;;  %v5976_v1 = vld [vmem:[%s7863_s1 + $0x8] sm:$0xff]   ;;  %vm1115_vm0 = vcmask 523264   ;;  %vm4294_vm1 = vcmask 257024  }
  0x13   :  { %5656 = vmatprep.subr.bf16.mxu0 %v5975_v0  ;;  %5964 = vmatprep.subr.bf16.mxu1 %v5975_v0  ;;  %v5977_v2 = vld [vmem:[%s7863_s1 + $0x10] sm:$0xff]   ;;  %v5978_v5 = vld [vmem:[%s7863_s1 + $0x18] sm:$0xff]   ;;  %v5983_v8 = vld [vmem:[#allocation2 + $0x10] sm:$0xff]  }
  0x14   :  { %5657 = vmatpush3.bf16.msra.mxu0 %v5975_v0  ;;  %5968 = vmatpush3.bf16.msra.mxu1 %v5975_v0  ;;  %v5979_v3 = vld [vmem:[#allocation2] sm:$0xff]   ;;  %v5980_v6 = vld [vmem:[#allocation2 + $0x8] sm:$0xff]   ;;  %v5985_v9 = vld [vmem:[#allocation2 + $0x270] sm:$0xff]  }
  0x15   :  { %5658 = vmatprep.subr.bf16.mxu0 %v5976_v1  ;;  %5965 = vmatprep.subr.bf16.mxu1 %v5976_v1  ;;  %v5981_v4 = vld [vmem:[#allocation2 + $0x260] sm:$0xff]   ;;  %v5982_v7 = vld [vmem:[#allocation2 + $0x268] sm:$0xff]   ;;  %v5984_v10 = vld [vmem:[#allocation2 + $0x18] sm:$0xff]  }
  0x16   :  { %5664 = vmatprep.mubr.msk.bf16.mxu0 %vm1115_vm0, %v5979_v3  ;;  %5816 = vmatprep.mubr.msk.bf16.mxu1 %vm1115_vm0, %v5981_v4  ;;  %v5986_v11 = vld [vmem:[#allocation2 + $0x278] sm:$0xff]   ;;  %v5987_v12 = vld [vmem:[#allocation2 + $0x20] sm:$0xff]   ;;  %v5988_v14 = vld [vmem:[#allocation2 + $0x28] sm:$0xff]  }
  0x17   :  { %v5989_v13 = vld [vmem:[#allocation2 + $0x280] sm:$0xff]   ;;  %v5990_v15 = vld [vmem:[#allocation2 + $0x288] sm:$0xff]   ;;  %v5991_v16 = vld [vmem:[#allocation2 + $0x30] sm:$0xff]  }
  0x18   :  { %5659 = vmatpush3.bf16.msra.mxu0 %v5976_v1  ;;  %5969 = vmatpush3.bf16.msra.mxu1 %v5976_v1  ;;  %v5993_v17 = vld [vmem:[#allocation2 + $0x290] sm:$0xff]   ;;  %v5992_v18 = vld [vmem:[#allocation2 + $0x38] sm:$0xff]   ;;  %v5995_v20 = vld [vmem:[#allocation2 + $0x40] sm:$0xff]  }
  0x19   :  { %5660 = vmatprep.subr.bf16.mxu0 %v5977_v2  ;;  %5966 = vmatprep.subr.bf16.mxu1 %v5977_v2  ;;  %v5994_v19 = vld [vmem:[#allocation2 + $0x298] sm:$0xff]   ;;  %v5997_v21 = vld [vmem:[#allocation2 + $0x2a0] sm:$0xff]   ;;  %v5996_v22 = vld [vmem:[#allocation2 + $0x48] sm:$0xff]  }
  0x1a   :  { %v5998_v23 = vld [vmem:[#allocation2 + $0x2a8] sm:$0xff]   ;;  %v5999_v24 = vld [vmem:[#allocation2 + $0x50] sm:$0xff]   ;;  %v6000_v26 = vld [vmem:[#allocation2 + $0x58] sm:$0xff]  }
  0x1b   :  { %v6001_v25 = vld [vmem:[#allocation2 + $0x2b0] sm:$0xff]   ;;  %v6002_v27 = vld [vmem:[#allocation2 + $0x2b8] sm:$0xff]   ;;  %v6003_v28 = vld [vmem:[#allocation2 + $0x60] sm:$0xff]  }
  0x1c   :  { %5661 = vmatpush3.bf16.msra.mxu0 %v5977_v2  ;;  %5970 = vmatpush3.bf16.msra.mxu1 %v5977_v2  ;;  %v6005_v29 = vld [vmem:[#allocation2 + $0x2c0] sm:$0xff]   ;;  %v6004_v30 = vld [vmem:[#allocation2 + $0x68] sm:$0xff]   ;;  %v6007_v32 = vld [vmem:[#allocation2 + $0x70] sm:$0xff]  }
  0x1d   :  { %5662 = vmatprep.subr.bf16.mxu0 %v5978_v5  ;;  %5967 = vmatprep.subr.bf16.mxu1 %v5978_v5  ;;  %v6006_v31 = vld [vmem:[#allocation2 + $0x2c8] sm:$0xff]   ;;  %v6009_v33 = vld [vmem:[#allocation2 + $0x2d0] sm:$0xff]   ;;  %v6008_v34 = vld [vmem:[#allocation2 + $0x78] sm:$0xff]  }
  0x1e   :  { %v6010_v35 = vld [vmem:[#allocation2 + $0x2d8] sm:$0xff]   ;;  %v6011_v36 = vld [vmem:[#allocation2 + $0x80] sm:$0xff]   ;;  %v6012_v38 = vld [vmem:[#allocation2 + $0x88] sm:$0xff]  }
  0x1f   :  { %v6013_v37 = vld [vmem:[#allocation2 + $0x2e0] sm:$0xff]   ;;  %v6014_v39 = vld [vmem:[#allocation2 + $0x2e8] sm:$0xff]   ;;  %v6015_v40 = vld [vmem:[#allocation2 + $0x90] sm:$0xff]  }
  0x20   :  { %5663 = vmatpush3.bf16.msra.mxu0 %v5978_v5  ;;  %5971 = vmatpush3.bf16.msra.mxu1 %v5978_v5  ;;  %v6017_v41 = vld [vmem:[#allocation2 + $0x2f0] sm:$0xff]   ;;  %v6016_v42 = vld [vmem:[#allocation2 + $0x98] sm:$0xff]   ;;  %v6019_v44 = vld [vmem:[#allocation2 + $0xa0] sm:$0xff]  }
  0x21   :  { %v6018_v43 = vld [vmem:[#allocation2 + $0x2f8] sm:$0xff]   ;;  %v6021_v45 = vld [vmem:[#allocation2 + $0x300] sm:$0xff]   ;;  %v6020_v46 = vld [vmem:[#allocation2 + $0xa8] sm:$0xff]  }
  0x22   :  { %v6022_v47 = vld [vmem:[#allocation2 + $0x308] sm:$0xff]   ;;  %v6023_v48 = vld [vmem:[#allocation2 + $0xb0] sm:$0xff]   ;;  %v6024_v50 = vld [vmem:[#allocation2 + $0xb8] sm:$0xff]  }
  0x23   :  { %5665 = vmatmul.mubr.msk.bf16.vlgmr.msra.gmra.mrb[0].mxu0 %vm1115_vm0, %v5980_v6  ;;  %5817 = vmatmul.mubr.msk.bf16.vlgmr.msra.gmra.mrb[0].mxu1 %vm1115_vm0, %v5982_v7  ;;  %v6025_v49 = vld [vmem:[#allocation2 + $0x310] sm:$0xff]   ;;  %v6026_v51 = vld [vmem:[#allocation2 + $0x318] sm:$0xff]   ;;  %v6027_v52 = vld [vmem:[#allocation2 + $0xc0] sm:$0xff]  }
  0x24   :  { %5668 = vmatprep.mubr.msk.bf16.mxu0 %vm1115_vm0, %v5983_v8  ;;  %5820 = vmatprep.mubr.msk.bf16.mxu1 %vm1115_vm0, %v5985_v9  ;;  %v6029_v53 = vld [vmem:[#allocation2 + $0x320] sm:$0xff]   ;;  %v6028_v54 = vld [vmem:[#allocation2 + $0xc8] sm:$0xff]   ;;  %v6031_v56 = vld [vmem:[#allocation2 + $0xd0] sm:$0xff]  }
  0x25   :  { %v6030_v55 = vld [vmem:[#allocation2 + $0x328] sm:$0xff]   ;;  %v6033_v57 = vld [vmem:[#allocation2 + $0x330] sm:$0xff]   ;;  %v6032_v58 = vld [vmem:[#allocation2 + $0xd8] sm:$0xff]  }
  0x26   :  { %v6034_v59 = vld [vmem:[#allocation2 + $0x338] sm:$0xff]   ;;  %v6035_v60 = vld [vmem:[#allocation2 + $0xe0] sm:$0xff]   ;;  %v6036_v62 = vld [vmem:[#allocation2 + $0xe8] sm:$0xff]  }
  0x27   :  { %v6037_v61 = vld [vmem:[#allocation2 + $0x340] sm:$0xff]   ;;  %v6038_v63 = vld [vmem:[#allocation2 + $0x348] sm:$0xff]   ;;  %v6039_v0 = vld [vmem:[#allocation2 + $0xf0] sm:$0xff]  }
  0x28   :  { %v6041_v1 = vld [vmem:[#allocation2 + $0x350] sm:$0xff]   ;;  %v6040_v2 = vld [vmem:[#allocation2 + $0xf8] sm:$0xff]   ;;  %v6043_v4 = vld [vmem:[#allocation2 + $0x100] sm:$0xff]  }
  0x29   :  { %v6042_v3 = vld [vmem:[#allocation2 + $0x358] sm:$0xff]   ;;  %v6045_v5 = vld [vmem:[#allocation2 + $0x360] sm:$0xff]   ;;  %v6044_v6 = vld [vmem:[#allocation2 + $0x108] sm:$0xff]  }
  0x2a   :  { %v6046_v7 = vld [vmem:[#allocation2 + $0x368] sm:$0xff]   ;;  %v6047_v8 = vld [vmem:[#allocation2 + $0x110] sm:$0xff]  }
  0x2b   :  { %5669 = vmatmul.mubr.msk.bf16.gmra.mrb[4].mxu0 %vm1115_vm0, %v5984_v10  ;;  %5821 = vmatmul.mubr.msk.bf16.gmra.mrb[4].mxu1 %vm1115_vm0, %v5986_v11  ;;  %v6049_v9 = vld [vmem:[#allocation2 + $0x370] sm:$0xff]   ;;  %v6048_v10 = vld [vmem:[#allocation2 + $0x118] sm:$0xff]  }
  0x2c   :  { %5672 = vmatprep.mubr.msk.bf16.mxu0 %vm1115_vm0, %v5987_v12  ;;  %5824 = vmatprep.mubr.msk.bf16.mxu1 %vm1115_vm0, %v5989_v13  ;;  %v6050_v11 = vld [vmem:[#allocation2 + $0x378] sm:$0xff]   ;;  %v6051_v12 = vld [vmem:[#allocation2 + $0x120] sm:$0xff]  }
  0x2d   :  { %v6053_v13 = vld [vmem:[#allocation2 + $0x380] sm:$0xff]  }
  0x33   :  { %5673 = vmatmul.mubr.msk.bf16.gmra.mrb[8].mxu0 %vm1115_vm0, %v5988_v14  ;;  %5825 = vmatmul.mubr.msk.bf16.gmra.mrb[8].mxu1 %vm1115_vm0, %v5990_v15  ;;  %v6052_v14 = vld [vmem:[#allocation2 + $0x128] sm:$0xff]  }
  0x34   :  { %5676 = vmatprep.mubr.msk.bf16.mxu0 %vm1115_vm0, %v5991_v16  ;;  %5828 = vmatprep.mubr.msk.bf16.mxu1 %vm1115_vm0, %v5993_v17  ;;  %v6054_v15 = vld [vmem:[#allocation2 + $0x388] sm:$0xff]   ;;  %v6055_v16 = vld [vmem:[#allocation2 + $0x130] sm:$0xff]  }
  0x35   :  { %v6057_v17 = vld [vmem:[#allocation2 + $0x390] sm:$0xff]  }
  0x3b   :  { %5677 = vmatmul.mubr.msk.bf16.gmra.mrb[12].mxu0 %vm1115_vm0, %v5992_v18  ;;  %5829 = vmatmul.mubr.msk.bf16.gmra.mrb[12].mxu1 %vm1115_vm0, %v5994_v19  ;;  %v6056_v18 = vld [vmem:[#allocation2 + $0x138] sm:$0xff]  }
  0x3c   :  { %5680 = vmatprep.mubr.msk.bf16.mxu0 %vm1115_vm0, %v5995_v20  ;;  %5832 = vmatprep.mubr.msk.bf16.mxu1 %vm1115_vm0, %v5997_v21  ;;  %v6058_v19 = vld [vmem:[#allocation2 + $0x398] sm:$0xff]   ;;  %v6059_v20 = vld [vmem:[#allocation2 + $0x140] sm:$0xff]  }
  0x3d   :  { %v6061_v21 = vld [vmem:[#allocation2 + $0x3a0] sm:$0xff]  }
  0x43   :  { %5681 = vmatmul.mubr.msk.bf16.gmra.mrb[16].mxu0 %vm1115_vm0, %v5996_v22  ;;  %5833 = vmatmul.mubr.msk.bf16.gmra.mrb[16].mxu1 %vm1115_vm0, %v5998_v23  ;;  %v6060_v22 = vld [vmem:[#allocation2 + $0x148] sm:$0xff]  }
  0x44   :  { %5684 = vmatprep.mubr.msk.bf16.mxu0 %vm1115_vm0, %v5999_v24  ;;  %5836 = vmatprep.mubr.msk.bf16.mxu1 %vm1115_vm0, %v6001_v25  ;;  %v6062_v23 = vld [vmem:[#allocation2 + $0x3a8] sm:$0xff]   ;;  %v6063_v24 = vld [vmem:[#allocation2 + $0x150] sm:$0xff]  }
  0x45   :  { %v6065_v25 = vld [vmem:[#allocation2 + $0x3b0] sm:$0xff]  }
  0x4b   :  { %5685 = vmatmul.mubr.msk.bf16.gmra.mrb[20].mxu0 %vm1115_vm0, %v6000_v26  ;;  %5837 = vmatmul.mubr.msk.bf16.gmra.mrb[20].mxu1 %vm1115_vm0, %v6002_v27  ;;  %v6064_v26 = vld [vmem:[#allocation2 + $0x158] sm:$0xff]  }
  0x4c   :  { %5688 = vmatprep.mubr.msk.bf16.mxu0 %vm1115_vm0, %v6003_v28  ;;  %5840 = vmatprep.mubr.msk.bf16.mxu1 %vm1115_vm0, %v6005_v29  ;;  %v6066_v27 = vld [vmem:[#allocation2 + $0x3b8] sm:$0xff]   ;;  %v6067_v28 = vld [vmem:[#allocation2 + $0x160] sm:$0xff]  }
  0x4d   :  { %v6069_v29 = vld [vmem:[#allocation2 + $0x3c0] sm:$0xff]  }
  0x53   :  { %5689 = vmatmul.mubr.msk.bf16.gmra.mrb[24].mxu0 %vm1115_vm0, %v6004_v30  ;;  %5841 = vmatmul.mubr.msk.bf16.gmra.mrb[24].mxu1 %vm1115_vm0, %v6006_v31  ;;  %v6068_v30 = vld [vmem:[#allocation2 + $0x168] sm:$0xff]  }
  0x54   :  { %5692 = vmatprep.mubr.msk.bf16.mxu0 %vm1115_vm0, %v6007_v32  ;;  %5844 = vmatprep.mubr.msk.bf16.mxu1 %vm1115_vm0, %v6009_v33  ;;  %v6070_v31 = vld [vmem:[#allocation2 + $0x3c8] sm:$0xff]   ;;  %v6071_v32 = vld [vmem:[#allocation2 + $0x170] sm:$0xff]  }
  0x55   :  { %v6073_v33 = vld [vmem:[#allocation2 + $0x3d0] sm:$0xff]  }
  0x5b   :  { %5693 = vmatmul.mubr.msk.bf16.gmra.mrb[28].mxu0 %vm1115_vm0, %v6008_v34  ;;  %5845 = vmatmul.mubr.msk.bf16.gmra.mrb[28].mxu1 %vm1115_vm0, %v6010_v35  ;;  %v6072_v34 = vld [vmem:[#allocation2 + $0x178] sm:$0xff]  }
  0x5c   :  { %5696 = vmatprep.mubr.msk.bf16.mxu0 %vm1115_vm0, %v6011_v36  ;;  %5848 = vmatprep.mubr.msk.bf16.mxu1 %vm1115_vm0, %v6013_v37  ;;  %v6074_v35 = vld [vmem:[#allocation2 + $0x3d8] sm:$0xff]   ;;  %v6075_v36 = vld [vmem:[#allocation2 + $0x180] sm:$0xff]  }
  0x5d   :  { %v6077_v37 = vld [vmem:[#allocation2 + $0x3e0] sm:$0xff]  }
  0x63   :  { %5697 = vmatmul.mubr.msk.bf16.gmra.mrb[32].mxu0 %vm1115_vm0, %v6012_v38  ;;  %5849 = vmatmul.mubr.msk.bf16.gmra.mrb[32].mxu1 %vm1115_vm0, %v6014_v39  ;;  %v6076_v38 = vld [vmem:[#allocation2 + $0x188] sm:$0xff]  }
  0x64   :  { %5700 = vmatprep.mubr.msk.bf16.mxu0 %vm1115_vm0, %v6015_v40  ;;  %5852 = vmatprep.mubr.msk.bf16.mxu1 %vm1115_vm0, %v6017_v41  ;;  %v6078_v39 = vld [vmem:[#allocation2 + $0x3e8] sm:$0xff]   ;;  %v6079_v40 = vld [vmem:[#allocation2 + $0x190] sm:$0xff]  }
  0x65   :  { %v6081_v41 = vld [vmem:[#allocation2 + $0x3f0] sm:$0xff]  }
  0x6b   :  { %5701 = vmatmul.mubr.msk.bf16.gmra.mrb[36].mxu0 %vm1115_vm0, %v6016_v42  ;;  %5853 = vmatmul.mubr.msk.bf16.gmra.mrb[36].mxu1 %vm1115_vm0, %v6018_v43  ;;  %v6080_v42 = vld [vmem:[#allocation2 + $0x198] sm:$0xff]  }
  0x6c   :  { %5704 = vmatprep.mubr.msk.bf16.mxu0 %vm1115_vm0, %v6019_v44  ;;  %5856 = vmatprep.mubr.msk.bf16.mxu1 %vm1115_vm0, %v6021_v45  ;;  %v6082_v43 = vld [vmem:[#allocation2 + $0x3f8] sm:$0xff]   ;;  %v6083_v44 = vld [vmem:[#allocation2 + $0x1a0] sm:$0xff]  }
  0x6d   :  { %v6085_v45 = vld [vmem:[#allocation2 + $0x400] sm:$0xff]  }
  0x73   :  { %5705 = vmatmul.mubr.msk.bf16.gmra.mrb[40].mxu0 %vm1115_vm0, %v6020_v46  ;;  %5857 = vmatmul.mubr.msk.bf16.gmra.mrb[40].mxu1 %vm1115_vm0, %v6022_v47  ;;  %v6084_v46 = vld [vmem:[#allocation2 + $0x1a8] sm:$0xff]  }
  0x74   :  { %5708 = vmatprep.mubr.msk.bf16.mxu0 %vm1115_vm0, %v6023_v48  ;;  %5860 = vmatprep.mubr.msk.bf16.mxu1 %vm1115_vm0, %v6025_v49  ;;  %v6086_v47 = vld [vmem:[#allocation2 + $0x408] sm:$0xff]   ;;  %v6087_v48 = vld [vmem:[#allocation2 + $0x1b0] sm:$0xff]  }
  0x75   :  { %v6089_v49 = vld [vmem:[#allocation2 + $0x410] sm:$0xff]  }
  0x7b   :  { %5709 = vmatmul.mubr.msk.bf16.gmra.mrb[44].mxu0 %vm1115_vm0, %v6024_v50  ;;  %5861 = vmatmul.mubr.msk.bf16.gmra.mrb[44].mxu1 %vm1115_vm0, %v6026_v51  ;;  %v6314_v50 = vld [vmem:[%s7864_s2] ss:$0 sm:$0xff] }
  0x7c   :  { %5712 = vmatprep.mubr.msk.bf16.mxu0 %vm1115_vm0, %v6027_v52  ;;  %5864 = vmatprep.mubr.msk.bf16.mxu1 %vm1115_vm0, %v6029_v53 }
  0x83   :  { %5713 = vmatmul.mubr.msk.bf16.gmra.mrb[48].mxu0 %vm1115_vm0, %v6028_v54  ;;  %5865 = vmatmul.mubr.msk.bf16.gmra.mrb[48].mxu1 %vm1115_vm0, %v6030_v55  ;;  %v6088_v55 = vld [vmem:[#allocation2 + $0x1b8] sm:$0xff]  }
  0x84   :  { %5716 = vmatprep.mubr.msk.bf16.mxu0 %vm1115_vm0, %v6031_v56  ;;  %5868 = vmatprep.mubr.msk.bf16.mxu1 %vm1115_vm0, %v6033_v57 }
  0x8b   :  { %5717 = vmatmul.mubr.msk.bf16.gmra.mrb[52].mxu0 %vm1115_vm0, %v6032_v58  ;;  %5869 = vmatmul.mubr.msk.bf16.gmra.mrb[52].mxu1 %vm1115_vm0, %v6034_v59  ;;  %v6090_v58 = vld [vmem:[#allocation2 + $0x418] sm:$0xff]  }
  0x8c   :  { %5720 = vmatprep.mubr.msk.bf16.mxu0 %vm1115_vm0, %v6035_v60  ;;  %5872 = vmatprep.mubr.msk.bf16.mxu1 %vm1115_vm0, %v6037_v61 }
  0x93   :  { %5721 = vmatmul.mubr.msk.bf16.gmra.mrb[56].mxu0 %vm1115_vm0, %v6036_v62  ;;  %5873 = vmatmul.mubr.msk.bf16.gmra.mrb[56].mxu1 %vm1115_vm0, %v6038_v63  ;;  %v6091_v63 = vld [vmem:[#allocation2 + $0x1c0] sm:$0xff]  }
  0x94   :  { %5724 = vmatprep.mubr.msk.bf16.mxu0 %vm1115_vm0, %v6039_v0  ;;  %5876 = vmatprep.mubr.msk.bf16.mxu1 %vm1115_vm0, %v6041_v1  ;;  %v6093_v0 = vld [vmem:[#allocation2 + $0x420] sm:$0xff]  }
  0x9b   :  { %5725 = vmatmul.mubr.msk.bf16.gmra.mrb[60].mxu0 %vm1115_vm0, %v6040_v2  ;;  %5877 = vmatmul.mubr.msk.bf16.gmra.mrb[60].mxu1 %vm1115_vm0, %v6042_v3 }
  0x9c   :  { %5728 = vmatprep.mubr.msk.bf16.mxu0 %vm1115_vm0, %v6043_v4  ;;  %5880 = vmatprep.mubr.msk.bf16.mxu1 %vm1115_vm0, %v6045_v5 }
  0xa3   :  { %5729 = vmatmul.mubr.msk.bf16.gmra.mrb[64].mxu0 %vm1115_vm0, %v6044_v6  ;;  %5881 = vmatmul.mubr.msk.bf16.gmra.mrb[64].mxu1 %vm1115_vm0, %v6046_v7 }
  0xa4   :  { %5732 = vmatprep.mubr.msk.bf16.mxu0 %vm1115_vm0, %v6047_v8  ;;  %5884 = vmatprep.mubr.msk.bf16.mxu1 %vm1115_vm0, %v6049_v9 }
  0xab   :  { %5733 = vmatmul.mubr.msk.bf16.gmra.mrb[68].mxu0 %vm1115_vm0, %v6048_v10  ;;  %5885 = vmatmul.mubr.msk.bf16.gmra.mrb[68].mxu1 %vm1115_vm0, %v6050_v11 }
  0xac   :  { %5736 = vmatprep.mubr.msk.bf16.mxu0 %vm1115_vm0, %v6051_v12  ;;  %5888 = vmatprep.mubr.msk.bf16.mxu1 %vm1115_vm0, %v6053_v13 }
  0xb3   :  { %5737 = vmatmul.mubr.msk.bf16.gmra.mrb[72].mxu0 %vm1115_vm0, %v6052_v14  ;;  %5889 = vmatmul.mubr.msk.bf16.gmra.mrb[72].mxu1 %vm1115_vm0, %v6054_v15 }
  0xb4   :  { %5740 = vmatprep.mubr.msk.bf16.mxu0 %vm1115_vm0, %v6055_v16  ;;  %5892 = vmatprep.mubr.msk.bf16.mxu1 %vm1115_vm0, %v6057_v17 }
  0xbb   :  { %5741 = vmatmul.mubr.msk.bf16.gmra.mrb[76].mxu0 %vm1115_vm0, %v6056_v18  ;;  %5893 = vmatmul.mubr.msk.bf16.gmra.mrb[76].mxu1 %vm1115_vm0, %v6058_v19 }
  0xbc   :  { %5744 = vmatprep.mubr.msk.bf16.mxu0 %vm1115_vm0, %v6059_v20  ;;  %5896 = vmatprep.mubr.msk.bf16.mxu1 %vm1115_vm0, %v6061_v21 }
  0xc3   :  { %5745 = vmatmul.mubr.msk.bf16.gmra.mrb[80].mxu0 %vm1115_vm0, %v6060_v22  ;;  %5897 = vmatmul.mubr.msk.bf16.gmra.mrb[80].mxu1 %vm1115_vm0, %v6062_v23 }
  0xc4   :  { %5748 = vmatprep.mubr.msk.bf16.mxu0 %vm1115_vm0, %v6063_v24  ;;  %5900 = vmatprep.mubr.msk.bf16.mxu1 %vm1115_vm0, %v6065_v25 }
  0xcb   :  { %5749 = vmatmul.mubr.msk.bf16.gmra.mrb[84].mxu0 %vm1115_vm0, %v6064_v26  ;;  %5901 = vmatmul.mubr.msk.bf16.gmra.mrb[84].mxu1 %vm1115_vm0, %v6066_v27  ;;  %v6092_v27 = vld [vmem:[#allocation2 + $0x1c8] sm:$0xff]  }
  0xcc   :  { %5752 = vmatprep.mubr.msk.bf16.mxu0 %vm1115_vm0, %v6067_v28  ;;  %5904 = vmatprep.mubr.msk.bf16.mxu1 %vm1115_vm0, %v6069_v29 }
  0xd3   :  { %5753 = vmatmul.mubr.msk.bf16.gmra.mrb[88].mxu0 %vm1115_vm0, %v6068_v30  ;;  %5905 = vmatmul.mubr.msk.bf16.gmra.mrb[88].mxu1 %vm1115_vm0, %v6070_v31  ;;  %v6094_v30 = vld [vmem:[#allocation2 + $0x428] sm:$0xff]  }
  0xd4   :  { %5756 = vmatprep.mubr.msk.bf16.mxu0 %vm1115_vm0, %v6071_v32  ;;  %5908 = vmatprep.mubr.msk.bf16.mxu1 %vm1115_vm0, %v6073_v33 }
  0xdb   :  { %5757 = vmatmul.mubr.msk.bf16.gmra.mrb[92].mxu0 %vm1115_vm0, %v6072_v34  ;;  %5909 = vmatmul.mubr.msk.bf16.gmra.mrb[92].mxu1 %vm1115_vm0, %v6074_v35  ;;  %v6095_v35 = vld [vmem:[#allocation2 + $0x1d0] sm:$0xff]  }
  0xdc   :  { %5760 = vmatprep.mubr.msk.bf16.mxu0 %vm1115_vm0, %v6075_v36  ;;  %5912 = vmatprep.mubr.msk.bf16.mxu1 %vm1115_vm0, %v6077_v37  ;;  %v6097_v36 = vld [vmem:[#allocation2 + $0x430] sm:$0xff]  }
  0xe3   :  { %5761 = vmatmul.mubr.msk.bf16.gmra.mrb[96].mxu0 %vm1115_vm0, %v6076_v38  ;;  %5913 = vmatmul.mubr.msk.bf16.gmra.mrb[96].mxu1 %vm1115_vm0, %v6078_v39 }
  0xe4   :  { %5764 = vmatprep.mubr.msk.bf16.mxu0 %vm1115_vm0, %v6079_v40  ;;  %5916 = vmatprep.mubr.msk.bf16.mxu1 %vm1115_vm0, %v6081_v41 }
  0xeb   :  { %5765 = vmatmul.mubr.msk.bf16.gmra.mrb[100].mxu0 %vm1115_vm0, %v6080_v42  ;;  %5917 = vmatmul.mubr.msk.bf16.gmra.mrb[100].mxu1 %vm1115_vm0, %v6082_v43 }
  0xec   :  { %5768 = vmatprep.mubr.msk.bf16.mxu0 %vm1115_vm0, %v6083_v44  ;;  %5920 = vmatprep.mubr.msk.bf16.mxu1 %vm1115_vm0, %v6085_v45 }
  0xf3   :  { %5769 = vmatmul.mubr.msk.bf16.gmra.mrb[104].mxu0 %vm1115_vm0, %v6084_v46  ;;  %5921 = vmatmul.mubr.msk.bf16.gmra.mrb[104].mxu1 %vm1115_vm0, %v6086_v47 }
  0xf4   :  { %5772 = vmatprep.mubr.msk.bf16.mxu0 %vm1115_vm0, %v6087_v48  ;;  %5924 = vmatprep.mubr.msk.bf16.mxu1 %vm1115_vm0, %v6089_v49 }
  0xf6   :  { %v5666_v51 = vpop.f32.mrb[0].mxu0  ;;  %v5818_v52 = vpop.f32.mrb[0].mxu1 }
  0xf7   :  { %v1609_v53 = vadd.f32 %v5666_v51, %v6314_v50  ;;  %v1600_v54 = vpop.f32.mrb[1].mxu0  ;;  %v2217_v56 = vadd.f32 %v5818_v52, %v6314_v50  ;;  %v2208_v57 = vpop.f32.mrb[1].mxu1 }
  0xf8   :  { %v1601_v59 = vadd.f32 %v6314_v50, %v1600_v54  ;;  %v5667_v60 = vpop.f32.mrb[2].mxu0  ;;  %v2209_v61 = vadd.f32 %v6314_v50, %v2208_v57  ;;  %v5819_v62 = vpop.f32.mrb[2].mxu1 }
  0xf9   :  { %v2800_v1 = vmax.f32 %v1609_v53, 0.0  ;;  %v1612_v2 = vadd.f32 %v5667_v60, %v6314_v50  ;;  %v1603_v3 = vpop.f32.mrb[3].mxu0  ;;  %v2952_v4 = vmax.f32 %v2217_v56, 0.0  ;;  %v2220_v5 = vadd.f32 %v5819_v62, %v6314_v50  ;;  %v2211_v6 = vpop.f32.mrb[3].mxu1 }
  0xfa   :  { %v2798_v7 = vmax.f32 %v1601_v59, 0.0  ;;  %v1604_v8 = vadd.f32 %v6314_v50, %v1603_v3  ;;  %v2950_v9 = vmax.f32 %v2209_v61, 0.0  ;;  %v2212_v10 = vadd.f32 %v6314_v50, %v2211_v6  ;;  %v6098_v3 = vld [vmem:[#allocation2 + $0x438] sm:$0xff]  }
  0xfb   :  { %v5205_v11 = vpack.c.bf16 %v2800_v1, %v2800_v1  ;;  %v2801_v12 = vmax.f32 %v1612_v2, 0.0  ;;  %5773 = vmatmul.mubr.msk.bf16.gmra.mrb[108].mxu0 %vm1115_vm0, %v6088_v55  ;;  %v5357_v13 = vpack.c.bf16 %v2952_v4, %v2952_v4  ;;  %v2953_v14 = vmax.f32 %v2220_v5, 0.0  ;;  %5925 = vmatmul.mubr.msk.bf16.gmra.mrb[108].mxu1 %vm1115_vm0, %v6090_v58 }
  0xfc   :  { %v5203_v15 = vpack.c.bf16 %v2798_v7, %v2798_v7  ;;  %v2799_v16 = vmax.f32 %v1604_v8, 0.0  ;;  %v5355_v17 = vpack.c.bf16 %v2950_v9, %v2950_v9  ;;  %v2951_v18 = vmax.f32 %v2212_v10, 0.0  ;;  %5776 = vmatprep.mubr.msk.bf16.mxu0 %vm1115_vm0, %v6091_v63  ;;  %5928 = vmatprep.mubr.msk.bf16.mxu1 %vm1115_vm0, %v6093_v0  ;;  %v6096_v0 = vld [vmem:[#allocation2 + $0x1d8] sm:$0xff]   ;;  %v6099_v8 = vld [vmem:[#allocation2 + $0x1e0] sm:$0xff]  }
  0xfd   :  { %4297 = vst.msk [vmem:[%s7865_s3 + $0x8] sm:$0xf] %vm4294_vm1, %v5205_v11  ;;  %v5206_v19 = vpack.c.bf16 %v2801_v12, %v2801_v12  ;;  %4449 = vst.msk [vmem:[%s7865_s3 + $0x268] sm:$0xf] %vm4294_vm1, %v5357_v13  ;;  %v5358_v20 = vpack.c.bf16 %v2953_v14, %v2953_v14  ;;  %v6101_v9 = vld [vmem:[#allocation2 + $0x440] sm:$0xff]  }
  0xfe   :  { %4295 = vst.msk [vmem:[%s7865_s3] sm:$0xf] %vm4294_vm1, %v5203_v15  ;;  %v5204_v21 = vpack.c.bf16 %v2799_v16, %v2799_v16  ;;  %4447 = vst.msk [vmem:[%s7865_s3 + $0x260] sm:$0xf] %vm4294_vm1, %v5355_v17  ;;  %v5670_v22 = vpop.f32.mrb[4].mxu0  ;;  %v5356_v23 = vpack.c.bf16 %v2951_v18, %v2951_v18  ;;  %v5822_v24 = vpop.f32.mrb[4].mxu1 }
  0xff   :  { %4298 = vst.msk [vmem:[%s7865_s3 + $0xc] sm:$0xf] %vm4294_vm1, %v5206_v19  ;;  %4450 = vst.msk [vmem:[%s7865_s3 + $0x26c] sm:$0xf] %vm4294_vm1, %v5358_v20  ;;  %v1625_v25 = vadd.f32 %v5670_v22, %v6314_v50  ;;  %v1616_v26 = vpop.f32.mrb[5].mxu0  ;;  %v2233_v28 = vadd.f32 %v5822_v24, %v6314_v50  ;;  %v2224_v29 = vpop.f32.mrb[5].mxu1 }
 0x100   :  { %4296 = vst.msk [vmem:[%s7865_s3 + $0x4] sm:$0xf] %vm4294_vm1, %v5204_v21  ;;  %4448 = vst.msk [vmem:[%s7865_s3 + $0x264] sm:$0xf] %vm4294_vm1, %v5356_v23  ;;  %v1617_v31 = vadd.f32 %v6314_v50, %v1616_v26  ;;  %v5671_v32 = vpop.f32.mrb[6].mxu0  ;;  %v2225_v33 = vadd.f32 %v6314_v50, %v2224_v29  ;;  %v5823_v34 = vpop.f32.mrb[6].mxu1 }
 0x101   :  { %v2804_v37 = vmax.f32 %v1625_v25, 0.0  ;;  %v1628_v38 = vadd.f32 %v5671_v32, %v6314_v50  ;;  %v1619_v39 = vpop.f32.mrb[7].mxu0  ;;  %v2956_v40 = vmax.f32 %v2233_v28, 0.0  ;;  %v2236_v41 = vadd.f32 %v5823_v34, %v6314_v50  ;;  %v2227_v42 = vpop.f32.mrb[7].mxu1 }
 0x102   :  { %v2802_v43 = vmax.f32 %v1617_v31, 0.0  ;;  %v1620_v44 = vadd.f32 %v6314_v50, %v1619_v39  ;;  %v2954_v45 = vmax.f32 %v2225_v33, 0.0  ;;  %v2228_v46 = vadd.f32 %v6314_v50, %v2227_v42  ;;  %v6102_v39 = vld [vmem:[#allocation2 + $0x448] sm:$0xff]  }
 0x103   :  { %v5209_v47 = vpack.c.bf16 %v2804_v37, %v2804_v37  ;;  %v2805_v48 = vmax.f32 %v1628_v38, 0.0  ;;  %5777 = vmatmul.mubr.msk.bf16.gmra.mrb[112].mxu0 %vm1115_vm0, %v6092_v27  ;;  %v5361_v49 = vpack.c.bf16 %v2956_v40, %v2956_v40  ;;  %v2957_v51 = vmax.f32 %v2236_v41, 0.0  ;;  %5929 = vmatmul.mubr.msk.bf16.gmra.mrb[112].mxu1 %vm1115_vm0, %v6094_v30 }
 0x104   :  { %v5207_v52 = vpack.c.bf16 %v2802_v43, %v2802_v43  ;;  %v2803_v53 = vmax.f32 %v1620_v44, 0.0  ;;  %v5359_v54 = vpack.c.bf16 %v2954_v45, %v2954_v45  ;;  %v2955_v55 = vmax.f32 %v2228_v46, 0.0  ;;  %5780 = vmatprep.mubr.msk.bf16.mxu0 %vm1115_vm0, %v6095_v35  ;;  %5932 = vmatprep.mubr.msk.bf16.mxu1 %vm1115_vm0, %v6097_v36  ;;  %v6100_v36 = vld [vmem:[#allocation2 + $0x1e8] sm:$0xff]   ;;  %v6103_v44 = vld [vmem:[#allocation2 + $0x1f0] sm:$0xff]  }
 0x105   :  { %4301 = vst.msk [vmem:[%s7865_s3 + $0x18] sm:$0xf] %vm4294_vm1, %v5209_v47  ;;  %v5210_v56 = vpack.c.bf16 %v2805_v48, %v2805_v48  ;;  %4453 = vst.msk [vmem:[%s7865_s3 + $0x278] sm:$0xf] %vm4294_vm1, %v5361_v49  ;;  %v5362_v57 = vpack.c.bf16 %v2957_v51, %v2957_v51  ;;  %v6105_v45 = vld [vmem:[#allocation2 + $0x450] sm:$0xff]  }
 0x106   :  { %4299 = vst.msk [vmem:[%s7865_s3 + $0x10] sm:$0xf] %vm4294_vm1, %v5207_v52  ;;  %v5208_v58 = vpack.c.bf16 %v2803_v53, %v2803_v53  ;;  %4451 = vst.msk [vmem:[%s7865_s3 + $0x270] sm:$0xf] %vm4294_vm1, %v5359_v54  ;;  %v5674_v59 = vpop.f32.mrb[8].mxu0  ;;  %v5360_v60 = vpack.c.bf16 %v2955_v55, %v2955_v55  ;;  %v5826_v61 = vpop.f32.mrb[8].mxu1 }
 0x107   :  { %4302 = vst.msk [vmem:[%s7865_s3 + $0x1c] sm:$0xf] %vm4294_vm1, %v5210_v56  ;;  %4454 = vst.msk [vmem:[%s7865_s3 + $0x27c] sm:$0xf] %vm4294_vm1, %v5362_v57  ;;  %v1641_v62 = vadd.f32 %v5674_v59, %v6314_v50  ;;  %v1632_v63 = vpop.f32.mrb[9].mxu0  ;;  %v2249_v1 = vadd.f32 %v5826_v61, %v6314_v50  ;;  %v2240_v2 = vpop.f32.mrb[9].mxu1 }
 0x108   :  { %4300 = vst.msk [vmem:[%s7865_s3 + $0x14] sm:$0xf] %vm4294_vm1, %v5208_v58  ;;  %4452 = vst.msk [vmem:[%s7865_s3 + $0x274] sm:$0xf] %vm4294_vm1, %v5360_v60  ;;  %v1633_v4 = vadd.f32 %v6314_v50, %v1632_v63  ;;  %v5675_v5 = vpop.f32.mrb[10].mxu0  ;;  %v2241_v6 = vadd.f32 %v6314_v50, %v2240_v2  ;;  %v5827_v7 = vpop.f32.mrb[10].mxu1 }
 0x109   :  { %v2808_v10 = vmax.f32 %v1641_v62, 0.0  ;;  %v1644_v11 = vadd.f32 %v5675_v5, %v6314_v50  ;;  %v1635_v12 = vpop.f32.mrb[11].mxu0  ;;  %v2960_v13 = vmax.f32 %v2249_v1, 0.0  ;;  %v2252_v14 = vadd.f32 %v5827_v7, %v6314_v50  ;;  %v2243_v15 = vpop.f32.mrb[11].mxu1 }
 0x10a   :  { %v2806_v16 = vmax.f32 %v1633_v4, 0.0  ;;  %v1636_v17 = vadd.f32 %v6314_v50, %v1635_v12  ;;  %v2958_v18 = vmax.f32 %v2241_v6, 0.0  ;;  %v2244_v19 = vadd.f32 %v6314_v50, %v2243_v15  ;;  %v6106_v12 = vld [vmem:[#allocation2 + $0x458] sm:$0xff]  }
 0x10b   :  { %v5213_v20 = vpack.c.bf16 %v2808_v10, %v2808_v10  ;;  %v2809_v21 = vmax.f32 %v1644_v11, 0.0  ;;  %5781 = vmatmul.mubr.msk.bf16.gmra.mrb[116].mxu0 %vm1115_vm0, %v6096_v0  ;;  %v5365_v22 = vpack.c.bf16 %v2960_v13, %v2960_v13  ;;  %v2961_v23 = vmax.f32 %v2252_v14, 0.0  ;;  %5933 = vmatmul.mubr.msk.bf16.gmra.mrb[116].mxu1 %vm1115_vm0, %v6098_v3 }
 0x10c   :  { %v5211_v24 = vpack.c.bf16 %v2806_v16, %v2806_v16  ;;  %v2807_v25 = vmax.f32 %v1636_v17, 0.0  ;;  %v5363_v26 = vpack.c.bf16 %v2958_v18, %v2958_v18  ;;  %v2959_v27 = vmax.f32 %v2244_v19, 0.0  ;;  %5784 = vmatprep.mubr.msk.bf16.mxu0 %vm1115_vm0, %v6099_v8  ;;  %5936 = vmatprep.mubr.msk.bf16.mxu1 %vm1115_vm0, %v6101_v9  ;;  %v6104_v9 = vld [vmem:[#allocation2 + $0x1f8] sm:$0xff]   ;;  %v6107_v17 = vld [vmem:[#allocation2 + $0x200] sm:$0xff]  }
 0x10d   :  { %4305 = vst.msk [vmem:[%s7865_s3 + $0x28] sm:$0xf] %vm4294_vm1, %v5213_v20  ;;  %v5214_v28 = vpack.c.bf16 %v2809_v21, %v2809_v21  ;;  %4457 = vst.msk [vmem:[%s7865_s3 + $0x288] sm:$0xf] %vm4294_vm1, %v5365_v22  ;;  %v5366_v29 = vpack.c.bf16 %v2961_v23, %v2961_v23  ;;  %v6109_v18 = vld [vmem:[#allocation2 + $0x460] sm:$0xff]  }
 0x10e   :  { %4303 = vst.msk [vmem:[%s7865_s3 + $0x20] sm:$0xf] %vm4294_vm1, %v5211_v24  ;;  %v5212_v30 = vpack.c.bf16 %v2807_v25, %v2807_v25  ;;  %4455 = vst.msk [vmem:[%s7865_s3 + $0x280] sm:$0xf] %vm4294_vm1, %v5363_v26  ;;  %v5678_v31 = vpop.f32.mrb[12].mxu0  ;;  %v5364_v32 = vpack.c.bf16 %v2959_v27, %v2959_v27  ;;  %v5830_v33 = vpop.f32.mrb[12].mxu1 }
 0x10f   :  { %4306 = vst.msk [vmem:[%s7865_s3 + $0x2c] sm:$0xf] %vm4294_vm1, %v5214_v28  ;;  %4458 = vst.msk [vmem:[%s7865_s3 + $0x28c] sm:$0xf] %vm4294_vm1, %v5366_v29  ;;  %v1657_v34 = vadd.f32 %v5678_v31, %v6314_v50  ;;  %v1648_v35 = vpop.f32.mrb[13].mxu0  ;;  %v2265_v37 = vadd.f32 %v5830_v33, %v6314_v50  ;;  %v2256_v38 = vpop.f32.mrb[13].mxu1 }
 0x110   :  { %4304 = vst.msk [vmem:[%s7865_s3 + $0x24] sm:$0xf] %vm4294_vm1, %v5212_v30  ;;  %4456 = vst.msk [vmem:[%s7865_s3 + $0x284] sm:$0xf] %vm4294_vm1, %v5364_v32  ;;  %v1649_v40 = vadd.f32 %v6314_v50, %v1648_v35  ;;  %v5679_v41 = vpop.f32.mrb[14].mxu0  ;;  %v2257_v42 = vadd.f32 %v6314_v50, %v2256_v38  ;;  %v5831_v43 = vpop.f32.mrb[14].mxu1 }
 0x111   :  { %v2812_v46 = vmax.f32 %v1657_v34, 0.0  ;;  %v1660_v47 = vadd.f32 %v5679_v41, %v6314_v50  ;;  %v1651_v48 = vpop.f32.mrb[15].mxu0  ;;  %v2964_v49 = vmax.f32 %v2265_v37, 0.0  ;;  %v2268_v51 = vadd.f32 %v5831_v43, %v6314_v50  ;;  %v2259_v52 = vpop.f32.mrb[15].mxu1 }
 0x112   :  { %v2810_v53 = vmax.f32 %v1649_v40, 0.0  ;;  %v1652_v54 = vadd.f32 %v6314_v50, %v1651_v48  ;;  %v2962_v55 = vmax.f32 %v2257_v42, 0.0  ;;  %v2260_v56 = vadd.f32 %v6314_v50, %v2259_v52  ;;  %v6110_v48 = vld [vmem:[#allocation2 + $0x468] sm:$0xff]  }
 0x113   :  { %v5217_v57 = vpack.c.bf16 %v2812_v46, %v2812_v46  ;;  %v2813_v58 = vmax.f32 %v1660_v47, 0.0  ;;  %5785 = vmatmul.mubr.msk.bf16.gmra.mrb[120].mxu0 %vm1115_vm0, %v6100_v36  ;;  %v5369_v59 = vpack.c.bf16 %v2964_v49, %v2964_v49  ;;  %v2965_v60 = vmax.f32 %v2268_v51, 0.0  ;;  %5937 = vmatmul.mubr.msk.bf16.gmra.mrb[120].mxu1 %vm1115_vm0, %v6102_v39 }
 0x114   :  { %v5215_v61 = vpack.c.bf16 %v2810_v53, %v2810_v53  ;;  %v2811_v62 = vmax.f32 %v1652_v54, 0.0  ;;  %v5367_v63 = vpack.c.bf16 %v2962_v55, %v2962_v55  ;;  %v2963_v0 = vmax.f32 %v2260_v56, 0.0  ;;  %5788 = vmatprep.mubr.msk.bf16.mxu0 %vm1115_vm0, %v6103_v44  ;;  %5940 = vmatprep.mubr.msk.bf16.mxu1 %vm1115_vm0, %v6105_v45  ;;  %v6108_v45 = vld [vmem:[#allocation2 + $0x208] sm:$0xff]   ;;  %v6111_v54 = vld [vmem:[#allocation2 + $0x210] sm:$0xff]  }
 0x115   :  { %4309 = vst.msk [vmem:[%s7865_s3 + $0x38] sm:$0xf] %vm4294_vm1, %v5217_v57  ;;  %v5218_v1 = vpack.c.bf16 %v2813_v58, %v2813_v58  ;;  %4461 = vst.msk [vmem:[%s7865_s3 + $0x298] sm:$0xf] %vm4294_vm1, %v5369_v59  ;;  %v5370_v2 = vpack.c.bf16 %v2965_v60, %v2965_v60  ;;  %v6113_v55 = vld [vmem:[#allocation2 + $0x470] sm:$0xff]  }
 0x116   :  { %4307 = vst.msk [vmem:[%s7865_s3 + $0x30] sm:$0xf] %vm4294_vm1, %v5215_v61  ;;  %v5216_v3 = vpack.c.bf16 %v2811_v62, %v2811_v62  ;;  %4459 = vst.msk [vmem:[%s7865_s3 + $0x290] sm:$0xf] %vm4294_vm1, %v5367_v63  ;;  %v5682_v4 = vpop.f32.mrb[16].mxu0  ;;  %v5368_v5 = vpack.c.bf16 %v2963_v0, %v2963_v0  ;;  %v5834_v6 = vpop.f32.mrb[16].mxu1 }
 0x117   :  { %4310 = vst.msk [vmem:[%s7865_s3 + $0x3c] sm:$0xf] %vm4294_vm1, %v5218_v1  ;;  %4462 = vst.msk [vmem:[%s7865_s3 + $0x29c] sm:$0xf] %vm4294_vm1, %v5370_v2  ;;  %v1673_v7 = vadd.f32 %v5682_v4, %v6314_v50  ;;  %v1664_v8 = vpop.f32.mrb[17].mxu0  ;;  %v2281_v10 = vadd.f32 %v5834_v6, %v6314_v50  ;;  %v2272_v11 = vpop.f32.mrb[17].mxu1 }
 0x118   :  { %4308 = vst.msk [vmem:[%s7865_s3 + $0x34] sm:$0xf] %vm4294_vm1, %v5216_v3  ;;  %4460 = vst.msk [vmem:[%s7865_s3 + $0x294] sm:$0xf] %vm4294_vm1, %v5368_v5  ;;  %v1665_v13 = vadd.f32 %v6314_v50, %v1664_v8  ;;  %v5683_v14 = vpop.f32.mrb[18].mxu0  ;;  %v2273_v15 = vadd.f32 %v6314_v50, %v2272_v11  ;;  %v5835_v16 = vpop.f32.mrb[18].mxu1 }
 0x119   :  { %v2816_v19 = vmax.f32 %v1673_v7, 0.0  ;;  %v1676_v20 = vadd.f32 %v5683_v14, %v6314_v50  ;;  %v1667_v21 = vpop.f32.mrb[19].mxu0  ;;  %v2968_v22 = vmax.f32 %v2281_v10, 0.0  ;;  %v2284_v23 = vadd.f32 %v5835_v16, %v6314_v50  ;;  %v2275_v24 = vpop.f32.mrb[19].mxu1 }
 0x11a   :  { %v2814_v25 = vmax.f32 %v1665_v13, 0.0  ;;  %v1668_v26 = vadd.f32 %v6314_v50, %v1667_v21  ;;  %v2966_v27 = vmax.f32 %v2273_v15, 0.0  ;;  %v2276_v28 = vadd.f32 %v6314_v50, %v2275_v24  ;;  %v6114_v21 = vld [vmem:[#allocation2 + $0x478] sm:$0xff]  }
 0x11b   :  { %v5221_v29 = vpack.c.bf16 %v2816_v19, %v2816_v19  ;;  %v2817_v30 = vmax.f32 %v1676_v20, 0.0  ;;  %5789 = vmatmul.mubr.msk.bf16.gmra.mrb[124].mxu0 %vm1115_vm0, %v6104_v9  ;;  %v5373_v31 = vpack.c.bf16 %v2968_v22, %v2968_v22  ;;  %v2969_v32 = vmax.f32 %v2284_v23, 0.0  ;;  %5941 = vmatmul.mubr.msk.bf16.gmra.mrb[124].mxu1 %vm1115_vm0, %v6106_v12 }
 0x11c   :  { %v5219_v33 = vpack.c.bf16 %v2814_v25, %v2814_v25  ;;  %v2815_v34 = vmax.f32 %v1668_v26, 0.0  ;;  %v5371_v35 = vpack.c.bf16 %v2966_v27, %v2966_v27  ;;  %v2967_v36 = vmax.f32 %v2276_v28, 0.0  ;;  %5792 = vmatprep.mubr.msk.bf16.mxu0 %vm1115_vm0, %v6107_v17  ;;  %5944 = vmatprep.mubr.msk.bf16.mxu1 %vm1115_vm0, %v6109_v18  ;;  %v6112_v18 = vld [vmem:[#allocation2 + $0x218] sm:$0xff]   ;;  %v6115_v26 = vld [vmem:[#allocation2 + $0x220] sm:$0xff]  }
 0x11d   :  { %4313 = vst.msk [vmem:[%s7865_s3 + $0x48] sm:$0xf] %vm4294_vm1, %v5221_v29  ;;  %v5222_v37 = vpack.c.bf16 %v2817_v30, %v2817_v30  ;;  %4465 = vst.msk [vmem:[%s7865_s3 + $0x2a8] sm:$0xf] %vm4294_vm1, %v5373_v31  ;;  %v5374_v38 = vpack.c.bf16 %v2969_v32, %v2969_v32  ;;  %v6117_v27 = vld [vmem:[#allocation2 + $0x480] sm:$0xff]  }
 0x11e   :  { %4311 = vst.msk [vmem:[%s7865_s3 + $0x40] sm:$0xf] %vm4294_vm1, %v5219_v33  ;;  %v5220_v39 = vpack.c.bf16 %v2815_v34, %v2815_v34  ;;  %4463 = vst.msk [vmem:[%s7865_s3 + $0x2a0] sm:$0xf] %vm4294_vm1, %v5371_v35  ;;  %v5686_v40 = vpop.f32.mrb[20].mxu0  ;;  %v5372_v41 = vpack.c.bf16 %v2967_v36, %v2967_v36  ;;  %v5838_v42 = vpop.f32.mrb[20].mxu1 }
 0x11f   :  { %4314 = vst.msk [vmem:[%s7865_s3 + $0x4c] sm:$0xf] %vm4294_vm1, %v5222_v37  ;;  %4466 = vst.msk [vmem:[%s7865_s3 + $0x2ac] sm:$0xf] %vm4294_vm1, %v5374_v38  ;;  %v1689_v43 = vadd.f32 %v5686_v40, %v6314_v50  ;;  %v1680_v44 = vpop.f32.mrb[21].mxu0  ;;  %v2297_v46 = vadd.f32 %v5838_v42, %v6314_v50  ;;  %v2288_v47 = vpop.f32.mrb[21].mxu1 }
 0x120   :  { %4312 = vst.msk [vmem:[%s7865_s3 + $0x44] sm:$0xf] %vm4294_vm1, %v5220_v39  ;;  %4464 = vst.msk [vmem:[%s7865_s3 + $0x2a4] sm:$0xf] %vm4294_vm1, %v5372_v41  ;;  %v1681_v49 = vadd.f32 %v6314_v50, %v1680_v44  ;;  %v5687_v51 = vpop.f32.mrb[22].mxu0  ;;  %v2289_v52 = vadd.f32 %v6314_v50, %v2288_v47  ;;  %v5839_v53 = vpop.f32.mrb[22].mxu1 }
 0x121   :  { %v2820_v56 = vmax.f32 %v1689_v43, 0.0  ;;  %v1692_v57 = vadd.f32 %v5687_v51, %v6314_v50  ;;  %v1683_v58 = vpop.f32.mrb[23].mxu0  ;;  %v2972_v59 = vmax.f32 %v2297_v46, 0.0  ;;  %v2300_v60 = vadd.f32 %v5839_v53, %v6314_v50  ;;  %v2291_v61 = vpop.f32.mrb[23].mxu1 }
 0x122   :  { %v2818_v62 = vmax.f32 %v1681_v49, 0.0  ;;  %v1684_v63 = vadd.f32 %v6314_v50, %v1683_v58  ;;  %v2970_v0 = vmax.f32 %v2289_v52, 0.0  ;;  %v2292_v1 = vadd.f32 %v6314_v50, %v2291_v61  ;;  %v6118_v58 = vld [vmem:[#allocation2 + $0x488] sm:$0xff]  }
 0x123   :  { %v5225_v2 = vpack.c.bf16 %v2820_v56, %v2820_v56  ;;  %v2821_v3 = vmax.f32 %v1692_v57, 0.0  ;;  %5793 = vmatmul.mubr.msk.bf16.gmra.mrb[128].mxu0 %vm1115_vm0, %v6108_v45  ;;  %v5377_v4 = vpack.c.bf16 %v2972_v59, %v2972_v59  ;;  %v2973_v5 = vmax.f32 %v2300_v60, 0.0  ;;  %5945 = vmatmul.mubr.msk.bf16.gmra.mrb[128].mxu1 %vm1115_vm0, %v6110_v48 }
 0x124   :  { %v5223_v6 = vpack.c.bf16 %v2818_v62, %v2818_v62  ;;  %v2819_v7 = vmax.f32 %v1684_v63, 0.0  ;;  %v5375_v8 = vpack.c.bf16 %v2970_v0, %v2970_v0  ;;  %v2971_v9 = vmax.f32 %v2292_v1, 0.0  ;;  %5796 = vmatprep.mubr.msk.bf16.mxu0 %vm1115_vm0, %v6111_v54  ;;  %5948 = vmatprep.mubr.msk.bf16.mxu1 %vm1115_vm0, %v6113_v55  ;;  %v6116_v55 = vld [vmem:[#allocation2 + $0x228] sm:$0xff]   ;;  %v6119_v63 = vld [vmem:[#allocation2 + $0x230] sm:$0xff]  }
 0x125   :  { %4317 = vst.msk [vmem:[%s7865_s3 + $0x58] sm:$0xf] %vm4294_vm1, %v5225_v2  ;;  %v5226_v10 = vpack.c.bf16 %v2821_v3, %v2821_v3  ;;  %4469 = vst.msk [vmem:[%s7865_s3 + $0x2b8] sm:$0xf] %vm4294_vm1, %v5377_v4  ;;  %v5378_v11 = vpack.c.bf16 %v2973_v5, %v2973_v5  ;;  %v6121_v0 = vld [vmem:[#allocation2 + $0x490] sm:$0xff]  }
 0x126   :  { %4315 = vst.msk [vmem:[%s7865_s3 + $0x50] sm:$0xf] %vm4294_vm1, %v5223_v6  ;;  %v5224_v12 = vpack.c.bf16 %v2819_v7, %v2819_v7  ;;  %4467 = vst.msk [vmem:[%s7865_s3 + $0x2b0] sm:$0xf] %vm4294_vm1, %v5375_v8  ;;  %v5690_v13 = vpop.f32.mrb[24].mxu0  ;;  %v5376_v14 = vpack.c.bf16 %v2971_v9, %v2971_v9  ;;  %v5842_v15 = vpop.f32.mrb[24].mxu1 }
 0x127   :  { %4318 = vst.msk [vmem:[%s7865_s3 + $0x5c] sm:$0xf] %vm4294_vm1, %v5226_v10  ;;  %4470 = vst.msk [vmem:[%s7865_s3 + $0x2bc] sm:$0xf] %vm4294_vm1, %v5378_v11  ;;  %v1705_v16 = vadd.f32 %v5690_v13, %v6314_v50  ;;  %v1696_v17 = vpop.f32.mrb[25].mxu0  ;;  %v2313_v19 = vadd.f32 %v5842_v15, %v6314_v50  ;;  %v2304_v20 = vpop.f32.mrb[25].mxu1 }
 0x128   :  { %4316 = vst.msk [vmem:[%s7865_s3 + $0x54] sm:$0xf] %vm4294_vm1, %v5224_v12  ;;  %4468 = vst.msk [vmem:[%s7865_s3 + $0x2b4] sm:$0xf] %vm4294_vm1, %v5376_v14  ;;  %v1697_v22 = vadd.f32 %v6314_v50, %v1696_v17  ;;  %v5691_v23 = vpop.f32.mrb[26].mxu0  ;;  %v2305_v24 = vadd.f32 %v6314_v50, %v2304_v20  ;;  %v5843_v25 = vpop.f32.mrb[26].mxu1 }
 0x129   :  { %v2824_v28 = vmax.f32 %v1705_v16, 0.0  ;;  %v1708_v29 = vadd.f32 %v5691_v23, %v6314_v50  ;;  %v1699_v30 = vpop.f32.mrb[27].mxu0  ;;  %v2976_v31 = vmax.f32 %v2313_v19, 0.0  ;;  %v2316_v32 = vadd.f32 %v5843_v25, %v6314_v50  ;;  %v2307_v33 = vpop.f32.mrb[27].mxu1 }
 0x12a   :  { %v2822_v34 = vmax.f32 %v1697_v22, 0.0  ;;  %v1700_v35 = vadd.f32 %v6314_v50, %v1699_v30  ;;  %v2974_v36 = vmax.f32 %v2305_v24, 0.0  ;;  %v2308_v37 = vadd.f32 %v6314_v50, %v2307_v33  ;;  %v6122_v30 = vld [vmem:[#allocation2 + $0x498] sm:$0xff]  }
 0x12b   :  { %v5229_v38 = vpack.c.bf16 %v2824_v28, %v2824_v28  ;;  %v2825_v39 = vmax.f32 %v1708_v29, 0.0  ;;  %5797 = vmatmul.mubr.msk.bf16.gmra.mrb[132].mxu0 %vm1115_vm0, %v6112_v18  ;;  %v5381_v40 = vpack.c.bf16 %v2976_v31, %v2976_v31  ;;  %v2977_v41 = vmax.f32 %v2316_v32, 0.0  ;;  %5949 = vmatmul.mubr.msk.bf16.gmra.mrb[132].mxu1 %vm1115_vm0, %v6114_v21 }
 0x12c   :  { %v5227_v42 = vpack.c.bf16 %v2822_v34, %v2822_v34  ;;  %v2823_v43 = vmax.f32 %v1700_v35, 0.0  ;;  %v5379_v44 = vpack.c.bf16 %v2974_v36, %v2974_v36  ;;  %v2975_v45 = vmax.f32 %v2308_v37, 0.0  ;;  %5800 = vmatprep.mubr.msk.bf16.mxu0 %vm1115_vm0, %v6115_v26  ;;  %5952 = vmatprep.mubr.msk.bf16.mxu1 %vm1115_vm0, %v6117_v27  ;;  %v6120_v27 = vld [vmem:[#allocation2 + $0x238] sm:$0xff]   ;;  %v6123_v35 = vld [vmem:[#allocation2 + $0x240] sm:$0xff]  }
 0x12d   :  { %4321 = vst.msk [vmem:[%s7865_s3 + $0x68] sm:$0xf] %vm4294_vm1, %v5229_v38  ;;  %v5230_v46 = vpack.c.bf16 %v2825_v39, %v2825_v39  ;;  %4473 = vst.msk [vmem:[%s7865_s3 + $0x2c8] sm:$0xf] %vm4294_vm1, %v5381_v40  ;;  %v5382_v47 = vpack.c.bf16 %v2977_v41, %v2977_v41  ;;  %v6125_v36 = vld [vmem:[#allocation2 + $0x4a0] sm:$0xff]  }
 0x12e   :  { %4319 = vst.msk [vmem:[%s7865_s3 + $0x60] sm:$0xf] %vm4294_vm1, %v5227_v42  ;;  %v5228_v48 = vpack.c.bf16 %v2823_v43, %v2823_v43  ;;  %4471 = vst.msk [vmem:[%s7865_s3 + $0x2c0] sm:$0xf] %vm4294_vm1, %v5379_v44  ;;  %v5694_v49 = vpop.f32.mrb[28].mxu0  ;;  %v5380_v51 = vpack.c.bf16 %v2975_v45, %v2975_v45  ;;  %v5846_v52 = vpop.f32.mrb[28].mxu1 }
 0x12f   :  { %4322 = vst.msk [vmem:[%s7865_s3 + $0x6c] sm:$0xf] %vm4294_vm1, %v5230_v46  ;;  %4474 = vst.msk [vmem:[%s7865_s3 + $0x2cc] sm:$0xf] %vm4294_vm1, %v5382_v47  ;;  %v1721_v53 = vadd.f32 %v5694_v49, %v6314_v50  ;;  %v1712_v54 = vpop.f32.mrb[29].mxu0  ;;  %v2329_v56 = vadd.f32 %v5846_v52, %v6314_v50  ;;  %v2320_v57 = vpop.f32.mrb[29].mxu1 }
 0x130   :  { %4320 = vst.msk [vmem:[%s7865_s3 + $0x64] sm:$0xf] %vm4294_vm1, %v5228_v48  ;;  %4472 = vst.msk [vmem:[%s7865_s3 + $0x2c4] sm:$0xf] %vm4294_vm1, %v5380_v51  ;;  %v1713_v59 = vadd.f32 %v6314_v50, %v1712_v54  ;;  %v5695_v60 = vpop.f32.mrb[30].mxu0  ;;  %v2321_v61 = vadd.f32 %v6314_v50, %v2320_v57  ;;  %v5847_v62 = vpop.f32.mrb[30].mxu1 }
 0x131   :  { %v2828_v1 = vmax.f32 %v1721_v53, 0.0  ;;  %v1724_v2 = vadd.f32 %v5695_v60, %v6314_v50  ;;  %v1715_v3 = vpop.f32.mrb[31].mxu0  ;;  %v2980_v4 = vmax.f32 %v2329_v56, 0.0  ;;  %v2332_v5 = vadd.f32 %v5847_v62, %v6314_v50  ;;  %v2323_v6 = vpop.f32.mrb[31].mxu1 }
 0x132   :  { %v2826_v7 = vmax.f32 %v1713_v59, 0.0  ;;  %v1716_v8 = vadd.f32 %v6314_v50, %v1715_v3  ;;  %v2978_v9 = vmax.f32 %v2321_v61, 0.0  ;;  %v2324_v10 = vadd.f32 %v6314_v50, %v2323_v6  ;;  %v6126_v3 = vld [vmem:[#allocation2 + $0x4a8] ss:$0 sps:$4 sm:$0xff]  }
 0x133   :  { %v5233_v11 = vpack.c.bf16 %v2828_v1, %v2828_v1  ;;  %v2829_v12 = vmax.f32 %v1724_v2, 0.0  ;;  %5801 = vmatmul.mubr.msk.bf16.gmra.mrb[136].mxu0 %vm1115_vm0, %v6116_v55  ;;  %v5385_v13 = vpack.c.bf16 %v2980_v4, %v2980_v4  ;;  %v2981_v14 = vmax.f32 %v2332_v5, 0.0  ;;  %5953 = vmatmul.mubr.msk.bf16.gmra.mrb[136].mxu1 %vm1115_vm0, %v6118_v58 }
 0x134   :  { %v5231_v15 = vpack.c.bf16 %v2826_v7, %v2826_v7  ;;  %v2827_v16 = vmax.f32 %v1716_v8, 0.0  ;;  %v5383_v17 = vpack.c.bf16 %v2978_v9, %v2978_v9  ;;  %v2979_v18 = vmax.f32 %v2324_v10, 0.0  ;;  %5804 = vmatprep.mubr.msk.bf16.mxu0 %vm1115_vm0, %v6119_v63  ;;  %5956 = vmatprep.mubr.msk.bf16.mxu1 %vm1115_vm0, %v6121_v0  ;;  %v6124_v0 = vld [vmem:[#allocation2 + $0x248] sm:$0xff]   ;;  %v6127_v8 = vld [vmem:[#allocation2 + $0x250] sm:$0xff]  }
 0x135   :  { %4325 = vst.msk [vmem:[%s7865_s3 + $0x78] sm:$0xf] %vm4294_vm1, %v5233_v11  ;;  %v5234_v19 = vpack.c.bf16 %v2829_v12, %v2829_v12  ;;  %4477 = vst.msk [vmem:[%s7865_s3 + $0x2d8] sm:$0xf] %vm4294_vm1, %v5385_v13  ;;  %v5386_v20 = vpack.c.bf16 %v2981_v14, %v2981_v14 }
 0x136   :  { %4323 = vst.msk [vmem:[%s7865_s3 + $0x70] sm:$0xf] %vm4294_vm1, %v5231_v15  ;;  %v5232_v21 = vpack.c.bf16 %v2827_v16, %v2827_v16  ;;  %4475 = vst.msk [vmem:[%s7865_s3 + $0x2d0] sm:$0xf] %vm4294_vm1, %v5383_v17  ;;  %v5698_v22 = vpop.f32.mrb[32].mxu0  ;;  %v5384_v23 = vpack.c.bf16 %v2979_v18, %v2979_v18  ;;  %v5850_v24 = vpop.f32.mrb[32].mxu1 }
 0x137   :  { %4326 = vst.msk [vmem:[%s7865_s3 + $0x7c] sm:$0xf] %vm4294_vm1, %v5234_v19  ;;  %4478 = vst.msk [vmem:[%s7865_s3 + $0x2dc] sm:$0xf] %vm4294_vm1, %v5386_v20  ;;  %v1737_v25 = vadd.f32 %v5698_v22, %v6314_v50  ;;  %v1728_v26 = vpop.f32.mrb[33].mxu0  ;;  %v2345_v28 = vadd.f32 %v5850_v24, %v6314_v50  ;;  %v2336_v29 = vpop.f32.mrb[33].mxu1 }
 0x138   :  { %4324 = vst.msk [vmem:[%s7865_s3 + $0x74] sm:$0xf] %vm4294_vm1, %v5232_v21  ;;  %4476 = vst.msk [vmem:[%s7865_s3 + $0x2d4] sm:$0xf] %vm4294_vm1, %v5384_v23  ;;  %v1729_v31 = vadd.f32 %v6314_v50, %v1728_v26  ;;  %v5699_v32 = vpop.f32.mrb[34].mxu0  ;;  %v2337_v33 = vadd.f32 %v6314_v50, %v2336_v29  ;;  %v5851_v34 = vpop.f32.mrb[34].mxu1 }
 0x139   :  { %v2832_v37 = vmax.f32 %v1737_v25, 0.0  ;;  %v1740_v38 = vadd.f32 %v5699_v32, %v6314_v50  ;;  %v1731_v39 = vpop.f32.mrb[35].mxu0  ;;  %v2984_v40 = vmax.f32 %v2345_v28, 0.0  ;;  %v2348_v41 = vadd.f32 %v5851_v34, %v6314_v50  ;;  %v2339_v42 = vpop.f32.mrb[35].mxu1 }
 0x13a   :  { %v2830_v43 = vmax.f32 %v1729_v31, 0.0  ;;  %v1732_v44 = vadd.f32 %v6314_v50, %v1731_v39  ;;  %v2982_v45 = vmax.f32 %v2337_v33, 0.0  ;;  %v2340_v46 = vadd.f32 %v6314_v50, %v2339_v42 }
 0x13b   :  { %v5237_v47 = vpack.c.bf16 %v2832_v37, %v2832_v37  ;;  %v2833_v48 = vmax.f32 %v1740_v38, 0.0  ;;  %5805 = vmatmul.mubr.msk.bf16.gmra.mrb[140].mxu0 %vm1115_vm0, %v6120_v27  ;;  %v5389_v49 = vpack.c.bf16 %v2984_v40, %v2984_v40  ;;  %v2985_v51 = vmax.f32 %v2348_v41, 0.0  ;;  %5957 = vmatmul.mubr.msk.bf16.gmra.mrb[140].mxu1 %vm1115_vm0, %v6122_v30 }
 0x13c   :  { %v5235_v52 = vpack.c.bf16 %v2830_v43, %v2830_v43  ;;  %v2831_v53 = vmax.f32 %v1732_v44, 0.0  ;;  %v5387_v54 = vpack.c.bf16 %v2982_v45, %v2982_v45  ;;  %v2983_v55 = vmax.f32 %v2340_v46, 0.0  ;;  %5808 = vmatprep.mubr.msk.bf16.mxu0 %vm1115_vm0, %v6123_v35  ;;  %5960 = vmatprep.mubr.msk.bf16.mxu1 %vm1115_vm0, %v6125_v36  ;;  %v6128_v35 = vld [vmem:[#allocation2 + $0x258] sm:$0xff]  }
 0x13d   :  { %4329 = vst.msk [vmem:[%s7865_s3 + $0x88] sm:$0xf] %vm4294_vm1, %v5237_v47  ;;  %v5238_v56 = vpack.c.bf16 %v2833_v48, %v2833_v48  ;;  %4481 = vst.msk [vmem:[%s7865_s3 + $0x2e8] sm:$0xf] %vm4294_vm1, %v5389_v49  ;;  %v5390_v57 = vpack.c.bf16 %v2985_v51, %v2985_v51 }
 0x13e   :  { %4327 = vst.msk [vmem:[%s7865_s3 + $0x80] sm:$0xf] %vm4294_vm1, %v5235_v52  ;;  %v5236_v58 = vpack.c.bf16 %v2831_v53, %v2831_v53  ;;  %4479 = vst.msk [vmem:[%s7865_s3 + $0x2e0] sm:$0xf] %vm4294_vm1, %v5387_v54  ;;  %v5702_v59 = vpop.f32.mrb[36].mxu0  ;;  %v5388_v60 = vpack.c.bf16 %v2983_v55, %v2983_v55  ;;  %v5854_v61 = vpop.f32.mrb[36].mxu1 }
 0x13f   :  { %4330 = vst.msk [vmem:[%s7865_s3 + $0x8c] sm:$0xf] %vm4294_vm1, %v5238_v56  ;;  %4482 = vst.msk [vmem:[%s7865_s3 + $0x2ec] sm:$0xf] %vm4294_vm1, %v5390_v57  ;;  %v1753_v62 = vadd.f32 %v5702_v59, %v6314_v50  ;;  %v1744_v63 = vpop.f32.mrb[37].mxu0  ;;  %v2361_v1 = vadd.f32 %v5854_v61, %v6314_v50  ;;  %v2352_v2 = vpop.f32.mrb[37].mxu1 }
 0x140   :  { %4328 = vst.msk [vmem:[%s7865_s3 + $0x84] sm:$0xf] %vm4294_vm1, %v5236_v58  ;;  %4480 = vst.msk [vmem:[%s7865_s3 + $0x2e4] sm:$0xf] %vm4294_vm1, %v5388_v60  ;;  %v1745_v4 = vadd.f32 %v6314_v50, %v1744_v63  ;;  %v5703_v5 = vpop.f32.mrb[38].mxu0  ;;  %v2353_v6 = vadd.f32 %v6314_v50, %v2352_v2  ;;  %v5855_v7 = vpop.f32.mrb[38].mxu1 }
 0x141   :  { %v2836_v9 = vmax.f32 %v1753_v62, 0.0  ;;  %v1756_v10 = vadd.f32 %v5703_v5, %v6314_v50  ;;  %v1747_v11 = vpop.f32.mrb[39].mxu0  ;;  %v2988_v12 = vmax.f32 %v2361_v1, 0.0  ;;  %v2364_v13 = vadd.f32 %v5855_v7, %v6314_v50  ;;  %v2355_v14 = vpop.f32.mrb[39].mxu1  ;;  %v6793_v2 = vld [vmem:[%s7864_s2] ss:$0 sm:$0xff] }
 0x142   :  { %v2834_v15 = vmax.f32 %v1745_v4, 0.0  ;;  %v1748_v16 = vadd.f32 %v6314_v50, %v1747_v11  ;;  %v2986_v17 = vmax.f32 %v2353_v6, 0.0  ;;  %v2356_v18 = vadd.f32 %v6314_v50, %v2355_v14 }
 0x143   :  { %v5241_v19 = vpack.c.bf16 %v2836_v9, %v2836_v9  ;;  %v2837_v20 = vmax.f32 %v1756_v10, 0.0  ;;  %5809 = vmatmul.mubr.msk.bf16.gmra.mrb[144].mxu0 %vm1115_vm0, %v6124_v0  ;;  %v5393_v21 = vpack.c.bf16 %v2988_v12, %v2988_v12  ;;  %v2989_v22 = vmax.f32 %v2364_v13, 0.0  ;;  %5961 = vmatmul.mubr.msk.bf16.gmra.mrb[144].mxu1 %vm1115_vm0, %v6126_v3 }
 0x144   :  { %v5239_v23 = vpack.c.bf16 %v2834_v15, %v2834_v15  ;;  %v2835_v24 = vmax.f32 %v1748_v16, 0.0  ;;  %v5391_v25 = vpack.c.bf16 %v2986_v17, %v2986_v17  ;;  %v2987_v26 = vmax.f32 %v2356_v18, 0.0  ;;  %5812 = vmatprep.mubr.msk.bf16.mxu0 %vm1115_vm0, %v6127_v8 }
 0x145   :  { %4333 = vst.msk [vmem:[%s7865_s3 + $0x98] sm:$0xf] %vm4294_vm1, %v5241_v19  ;;  %v5242_v27 = vpack.c.bf16 %v2837_v20, %v2837_v20  ;;  %4485 = vst.msk [vmem:[%s7865_s3 + $0x2f8] sm:$0xf] %vm4294_vm1, %v5393_v21  ;;  %v5394_v28 = vpack.c.bf16 %v2989_v22, %v2989_v22 }
 0x146   :  { %4331 = vst.msk [vmem:[%s7865_s3 + $0x90] sm:$0xf] %vm4294_vm1, %v5239_v23  ;;  %v5240_v29 = vpack.c.bf16 %v2835_v24, %v2835_v24  ;;  %4483 = vst.msk [vmem:[%s7865_s3 + $0x2f0] sm:$0xf] %vm4294_vm1, %v5391_v25  ;;  %v5706_v30 = vpop.f32.mrb[40].mxu0  ;;  %v5392_v31 = vpack.c.bf16 %v2987_v26, %v2987_v26  ;;  %v5858_v32 = vpop.f32.mrb[40].mxu1 }
 0x147   :  { %4334 = vst.msk [vmem:[%s7865_s3 + $0x9c] sm:$0xf] %vm4294_vm1, %v5242_v27  ;;  %4486 = vst.msk [vmem:[%s7865_s3 + $0x2fc] sm:$0xf] %vm4294_vm1, %v5394_v28  ;;  %v1769_v33 = vadd.f32 %v5706_v30, %v6314_v50  ;;  %v1760_v34 = vpop.f32.mrb[41].mxu0  ;;  %v2377_v36 = vadd.f32 %v5858_v32, %v6314_v50  ;;  %v2368_v37 = vpop.f32.mrb[41].mxu1 }
 0x148   :  { %4332 = vst.msk [vmem:[%s7865_s3 + $0x94] sm:$0xf] %vm4294_vm1, %v5240_v29  ;;  %4484 = vst.msk [vmem:[%s7865_s3 + $0x2f4] sm:$0xf] %vm4294_vm1, %v5392_v31  ;;  %v1761_v38 = vadd.f32 %v6314_v50, %v1760_v34  ;;  %v5707_v39 = vpop.f32.mrb[42].mxu0  ;;  %v2369_v40 = vadd.f32 %v6314_v50, %v2368_v37  ;;  %v5859_v41 = vpop.f32.mrb[42].mxu1 }
 0x149   :  { %v2840_v42 = vmax.f32 %v1769_v33, 0.0  ;;  %v1772_v43 = vadd.f32 %v5707_v39, %v6314_v50  ;;  %v1763_v44 = vpop.f32.mrb[43].mxu0  ;;  %v2992_v45 = vmax.f32 %v2377_v36, 0.0  ;;  %v2380_v46 = vadd.f32 %v5859_v41, %v6314_v50  ;;  %v2371_v47 = vpop.f32.mrb[43].mxu1 }
 0x14a   :  { %v2838_v48 = vmax.f32 %v1761_v38, 0.0  ;;  %v1764_v49 = vadd.f32 %v6314_v50, %v1763_v44  ;;  %v2990_v51 = vmax.f32 %v2369_v40, 0.0  ;;  %v2372_v52 = vadd.f32 %v6314_v50, %v2371_v47 }
 0x14b   :  { %v5245_v53 = vpack.c.bf16 %v2840_v42, %v2840_v42  ;;  %v2841_v54 = vmax.f32 %v1772_v43, 0.0  ;;  %5813 = vmatmul.mubr.msk.bf16.gmra.mrb[148].mxu0 %vm1115_vm0, %v6128_v35  ;;  %v5397_v55 = vpack.c.bf16 %v2992_v45, %v2992_v45  ;;  %v2993_v56 = vmax.f32 %v2380_v46, 0.0 }
 0x14c   :  { %v5243_v57 = vpack.c.bf16 %v2838_v48, %v2838_v48  ;;  %v2839_v58 = vmax.f32 %v1764_v49, 0.0  ;;  %v5395_v59 = vpack.c.bf16 %v2990_v51, %v2990_v51  ;;  %v2991_v60 = vmax.f32 %v2372_v52, 0.0 }
 0x14d   :  { %4337 = vst.msk [vmem:[%s7865_s3 + $0xa8] sm:$0xf] %vm4294_vm1, %v5245_v53  ;;  %v5246_v61 = vpack.c.bf16 %v2841_v54, %v2841_v54  ;;  %4489 = vst.msk [vmem:[%s7865_s3 + $0x308] sm:$0xf] %vm4294_vm1, %v5397_v55  ;;  %v5398_v50 = vpack.c.bf16 %v2993_v56, %v2993_v56 }
 0x14e   :  { %4335 = vst.msk [vmem:[%s7865_s3 + $0xa0] sm:$0xf] %vm4294_vm1, %v5243_v57  ;;  %v5244_v62 = vpack.c.bf16 %v2839_v58, %v2839_v58  ;;  %4487 = vst.msk [vmem:[%s7865_s3 + $0x300] sm:$0xf] %vm4294_vm1, %v5395_v59  ;;  %v5710_v63 = vpop.f32.mrb[44].mxu0  ;;  %v5396_v0 = vpack.c.bf16 %v2991_v60, %v2991_v60  ;;  %v5862_v1 = vpop.f32.mrb[44].mxu1 }
 0x14f   :  { %4338 = vst.msk [vmem:[%s7865_s3 + $0xac] sm:$0xf] %vm4294_vm1, %v5246_v61  ;;  %4490 = vst.msk [vmem:[%s7865_s3 + $0x30c] sm:$0xf] %vm4294_vm1, %v5398_v50  ;;  %v1785_v3 = vadd.f32 %v6793_v2, %v5710_v63  ;;  %v1776_v4 = vpop.f32.mrb[45].mxu0  ;;  %v2393_v5 = vadd.f32 %v6793_v2, %v5862_v1  ;;  %v2384_v6 = vpop.f32.mrb[45].mxu1 }
 0x150   :  { %4336 = vst.msk [vmem:[%s7865_s3 + $0xa4] sm:$0xf] %vm4294_vm1, %v5244_v62  ;;  %4488 = vst.msk [vmem:[%s7865_s3 + $0x304] sm:$0xf] %vm4294_vm1, %v5396_v0  ;;  %v1777_v7 = vadd.f32 %v6793_v2, %v1776_v4  ;;  %v5711_v8 = vpop.f32.mrb[46].mxu0  ;;  %v2385_v9 = vadd.f32 %v6793_v2, %v2384_v6  ;;  %v5863_v10 = vpop.f32.mrb[46].mxu1 }
 0x151   :  { %v2844_v11 = vmax.f32 %v1785_v3, 0.0  ;;  %v1788_v12 = vadd.f32 %v6793_v2, %v5711_v8  ;;  %v1779_v13 = vpop.f32.mrb[47].mxu0  ;;  %v2996_v14 = vmax.f32 %v2393_v5, 0.0  ;;  %v2396_v15 = vadd.f32 %v6793_v2, %v5863_v10  ;;  %v2387_v16 = vpop.f32.mrb[47].mxu1 }
 0x152   :  { %v2842_v17 = vmax.f32 %v1777_v7, 0.0  ;;  %v1780_v18 = vadd.f32 %v6793_v2, %v1779_v13  ;;  %v2994_v19 = vmax.f32 %v2385_v9, 0.0  ;;  %v2388_v20 = vadd.f32 %v6793_v2, %v2387_v16 }
 0x153   :  { %v5249_v21 = vpack.c.bf16 %v2844_v11, %v2844_v11  ;;  %v2845_v22 = vmax.f32 %v1788_v12, 0.0  ;;  %v5401_v23 = vpack.c.bf16 %v2996_v14, %v2996_v14  ;;  %v2997_v24 = vmax.f32 %v2396_v15, 0.0 }
 0x154   :  { %v5247_v25 = vpack.c.bf16 %v2842_v17, %v2842_v17  ;;  %v2843_v26 = vmax.f32 %v1780_v18, 0.0  ;;  %v5399_v27 = vpack.c.bf16 %v2994_v19, %v2994_v19  ;;  %v2995_v28 = vmax.f32 %v2388_v20, 0.0 }
 0x155   :  { %4341 = vst.msk [vmem:[%s7865_s3 + $0xb8] sm:$0xf] %vm4294_vm1, %v5249_v21  ;;  %v5250_v29 = vpack.c.bf16 %v2845_v22, %v2845_v22  ;;  %4493 = vst.msk [vmem:[%s7865_s3 + $0x318] sm:$0xf] %vm4294_vm1, %v5401_v23  ;;  %v5402_v30 = vpack.c.bf16 %v2997_v24, %v2997_v24 }
 0x156   :  { %4339 = vst.msk [vmem:[%s7865_s3 + $0xb0] sm:$0xf] %vm4294_vm1, %v5247_v25  ;;  %v5248_v31 = vpack.c.bf16 %v2843_v26, %v2843_v26  ;;  %4491 = vst.msk [vmem:[%s7865_s3 + $0x310] sm:$0xf] %vm4294_vm1, %v5399_v27  ;;  %v5714_v32 = vpop.f32.mrb[48].mxu0  ;;  %v5400_v33 = vpack.c.bf16 %v2995_v28, %v2995_v28  ;;  %v5866_v34 = vpop.f32.mrb[48].mxu1 }
 0x157   :  { %4342 = vst.msk [vmem:[%s7865_s3 + $0xbc] sm:$0xf] %vm4294_vm1, %v5250_v29  ;;  %4494 = vst.msk [vmem:[%s7865_s3 + $0x31c] sm:$0xf] %vm4294_vm1, %v5402_v30  ;;  %v1801_v35 = vadd.f32 %v6793_v2, %v5714_v32  ;;  %v1792_v36 = vpop.f32.mrb[49].mxu0  ;;  %v2409_v37 = vadd.f32 %v6793_v2, %v5866_v34  ;;  %v2400_v38 = vpop.f32.mrb[49].mxu1 }
 0x158   :  { %4340 = vst.msk [vmem:[%s7865_s3 + $0xb4] sm:$0xf] %vm4294_vm1, %v5248_v31  ;;  %4492 = vst.msk [vmem:[%s7865_s3 + $0x314] sm:$0xf] %vm4294_vm1, %v5400_v33  ;;  %v1793_v39 = vadd.f32 %v6793_v2, %v1792_v36  ;;  %v5715_v40 = vpop.f32.mrb[50].mxu0  ;;  %v2401_v41 = vadd.f32 %v6793_v2, %v2400_v38  ;;  %v5867_v42 = vpop.f32.mrb[50].mxu1 }
 0x159   :  { %v2848_v43 = vmax.f32 %v1801_v35, 0.0  ;;  %v1804_v44 = vadd.f32 %v6793_v2, %v5715_v40  ;;  %v1795_v45 = vpop.f32.mrb[51].mxu0  ;;  %v3000_v46 = vmax.f32 %v2409_v37, 0.0  ;;  %v2412_v47 = vadd.f32 %v6793_v2, %v5867_v42  ;;  %v2403_v48 = vpop.f32.mrb[51].mxu1 }
 0x15a   :  { %v2846_v49 = vmax.f32 %v1793_v39, 0.0  ;;  %v1796_v51 = vadd.f32 %v6793_v2, %v1795_v45  ;;  %v2998_v52 = vmax.f32 %v2401_v41, 0.0  ;;  %v2404_v53 = vadd.f32 %v6793_v2, %v2403_v48 }
 0x15b   :  { %v5253_v54 = vpack.c.bf16 %v2848_v43, %v2848_v43  ;;  %v2849_v55 = vmax.f32 %v1804_v44, 0.0  ;;  %v5405_v56 = vpack.c.bf16 %v3000_v46, %v3000_v46  ;;  %v3001_v57 = vmax.f32 %v2412_v47, 0.0 }
 0x15c   :  { %v5251_v58 = vpack.c.bf16 %v2846_v49, %v2846_v49  ;;  %v2847_v59 = vmax.f32 %v1796_v51, 0.0  ;;  %v5403_v60 = vpack.c.bf16 %v2998_v52, %v2998_v52  ;;  %v2999_v61 = vmax.f32 %v2404_v53, 0.0 }
 0x15d   :  { %4345 = vst.msk [vmem:[%s7865_s3 + $0xc8] sm:$0xf] %vm4294_vm1, %v5253_v54  ;;  %v5254_v50 = vpack.c.bf16 %v2849_v55, %v2849_v55  ;;  %4497 = vst.msk [vmem:[%s7865_s3 + $0x328] sm:$0xf] %vm4294_vm1, %v5405_v56  ;;  %v5406_v62 = vpack.c.bf16 %v3001_v57, %v3001_v57 }
 0x15e   :  { %4343 = vst.msk [vmem:[%s7865_s3 + $0xc0] sm:$0xf] %vm4294_vm1, %v5251_v58  ;;  %v5252_v63 = vpack.c.bf16 %v2847_v59, %v2847_v59  ;;  %4495 = vst.msk [vmem:[%s7865_s3 + $0x320] sm:$0xf] %vm4294_vm1, %v5403_v60  ;;  %v5718_v0 = vpop.f32.mrb[52].mxu0  ;;  %v5404_v1 = vpack.c.bf16 %v2999_v61, %v2999_v61  ;;  %v5870_v3 = vpop.f32.mrb[52].mxu1 }
 0x15f   :  { %4346 = vst.msk [vmem:[%s7865_s3 + $0xcc] sm:$0xf] %vm4294_vm1, %v5254_v50  ;;  %4498 = vst.msk [vmem:[%s7865_s3 + $0x32c] sm:$0xf] %vm4294_vm1, %v5406_v62  ;;  %v1817_v4 = vadd.f32 %v6793_v2, %v5718_v0  ;;  %v1808_v5 = vpop.f32.mrb[53].mxu0  ;;  %v2425_v6 = vadd.f32 %v6793_v2, %v5870_v3  ;;  %v2416_v7 = vpop.f32.mrb[53].mxu1 }
 0x160   :  { %4344 = vst.msk [vmem:[%s7865_s3 + $0xc4] sm:$0xf] %vm4294_vm1, %v5252_v63  ;;  %4496 = vst.msk [vmem:[%s7865_s3 + $0x324] sm:$0xf] %vm4294_vm1, %v5404_v1  ;;  %v1809_v8 = vadd.f32 %v6793_v2, %v1808_v5  ;;  %v5719_v9 = vpop.f32.mrb[54].mxu0  ;;  %v2417_v10 = vadd.f32 %v6793_v2, %v2416_v7  ;;  %v5871_v11 = vpop.f32.mrb[54].mxu1 }
 0x161   :  { %v2852_v12 = vmax.f32 %v1817_v4, 0.0  ;;  %v1820_v13 = vadd.f32 %v6793_v2, %v5719_v9  ;;  %v1811_v14 = vpop.f32.mrb[55].mxu0  ;;  %v3004_v15 = vmax.f32 %v2425_v6, 0.0  ;;  %v2428_v16 = vadd.f32 %v6793_v2, %v5871_v11  ;;  %v2419_v17 = vpop.f32.mrb[55].mxu1 }
 0x162   :  { %v2850_v18 = vmax.f32 %v1809_v8, 0.0  ;;  %v1812_v19 = vadd.f32 %v6793_v2, %v1811_v14  ;;  %v3002_v20 = vmax.f32 %v2417_v10, 0.0  ;;  %v2420_v21 = vadd.f32 %v6793_v2, %v2419_v17 }
 0x163   :  { %v5257_v22 = vpack.c.bf16 %v2852_v12, %v2852_v12  ;;  %v2853_v23 = vmax.f32 %v1820_v13, 0.0  ;;  %v5409_v24 = vpack.c.bf16 %v3004_v15, %v3004_v15  ;;  %v3005_v25 = vmax.f32 %v2428_v16, 0.0 }
 0x164   :  { %v5255_v26 = vpack.c.bf16 %v2850_v18, %v2850_v18  ;;  %v2851_v27 = vmax.f32 %v1812_v19, 0.0  ;;  %v5407_v28 = vpack.c.bf16 %v3002_v20, %v3002_v20  ;;  %v3003_v29 = vmax.f32 %v2420_v21, 0.0 }
 0x165   :  { %4349 = vst.msk [vmem:[%s7865_s3 + $0xd8] sm:$0xf] %vm4294_vm1, %v5257_v22  ;;  %v5258_v30 = vpack.c.bf16 %v2853_v23, %v2853_v23  ;;  %4501 = vst.msk [vmem:[%s7865_s3 + $0x338] sm:$0xf] %vm4294_vm1, %v5409_v24  ;;  %v5410_v31 = vpack.c.bf16 %v3005_v25, %v3005_v25 }
 0x166   :  { %4347 = vst.msk [vmem:[%s7865_s3 + $0xd0] sm:$0xf] %vm4294_vm1, %v5255_v26  ;;  %v5256_v32 = vpack.c.bf16 %v2851_v27, %v2851_v27  ;;  %4499 = vst.msk [vmem:[%s7865_s3 + $0x330] sm:$0xf] %vm4294_vm1, %v5407_v28  ;;  %v5722_v33 = vpop.f32.mrb[56].mxu0  ;;  %v5408_v34 = vpack.c.bf16 %v3003_v29, %v3003_v29  ;;  %v5874_v35 = vpop.f32.mrb[56].mxu1 }
 0x167   :  { %4350 = vst.msk [vmem:[%s7865_s3 + $0xdc] sm:$0xf] %vm4294_vm1, %v5258_v30  ;;  %4502 = vst.msk [vmem:[%s7865_s3 + $0x33c] sm:$0xf] %vm4294_vm1, %v5410_v31  ;;  %v1833_v36 = vadd.f32 %v6793_v2, %v5722_v33  ;;  %v1824_v37 = vpop.f32.mrb[57].mxu0  ;;  %v2441_v38 = vadd.f32 %v6793_v2, %v5874_v35  ;;  %v2432_v39 = vpop.f32.mrb[57].mxu1 }
 0x168   :  { %4348 = vst.msk [vmem:[%s7865_s3 + $0xd4] sm:$0xf] %vm4294_vm1, %v5256_v32  ;;  %4500 = vst.msk [vmem:[%s7865_s3 + $0x334] sm:$0xf] %vm4294_vm1, %v5408_v34  ;;  %v1825_v40 = vadd.f32 %v6793_v2, %v1824_v37  ;;  %v5723_v41 = vpop.f32.mrb[58].mxu0  ;;  %v2433_v42 = vadd.f32 %v6793_v2, %v2432_v39  ;;  %v5875_v43 = vpop.f32.mrb[58].mxu1 }
 0x169   :  { %v2856_v44 = vmax.f32 %v1833_v36, 0.0  ;;  %v1836_v45 = vadd.f32 %v6793_v2, %v5723_v41  ;;  %v1827_v46 = vpop.f32.mrb[59].mxu0  ;;  %v3008_v47 = vmax.f32 %v2441_v38, 0.0  ;;  %v2444_v48 = vadd.f32 %v6793_v2, %v5875_v43  ;;  %v2435_v49 = vpop.f32.mrb[59].mxu1 }
 0x16a   :  { %v2854_v51 = vmax.f32 %v1825_v40, 0.0  ;;  %v1828_v52 = vadd.f32 %v6793_v2, %v1827_v46  ;;  %v3006_v53 = vmax.f32 %v2433_v42, 0.0  ;;  %v2436_v54 = vadd.f32 %v6793_v2, %v2435_v49 }
 0x16b   :  { %v5261_v55 = vpack.c.bf16 %v2856_v44, %v2856_v44  ;;  %v2857_v56 = vmax.f32 %v1836_v45, 0.0  ;;  %v5413_v57 = vpack.c.bf16 %v3008_v47, %v3008_v47  ;;  %v3009_v58 = vmax.f32 %v2444_v48, 0.0 }
 0x16c   :  { %v5259_v59 = vpack.c.bf16 %v2854_v51, %v2854_v51  ;;  %v2855_v60 = vmax.f32 %v1828_v52, 0.0  ;;  %v5411_v61 = vpack.c.bf16 %v3006_v53, %v3006_v53  ;;  %v3007_v50 = vmax.f32 %v2436_v54, 0.0 }
 0x16d   :  { %4353 = vst.msk [vmem:[%s7865_s3 + $0xe8] sm:$0xf] %vm4294_vm1, %v5261_v55  ;;  %v5262_v62 = vpack.c.bf16 %v2857_v56, %v2857_v56  ;;  %4505 = vst.msk [vmem:[%s7865_s3 + $0x348] sm:$0xf] %vm4294_vm1, %v5413_v57  ;;  %v5414_v63 = vpack.c.bf16 %v3009_v58, %v3009_v58 }
 0x16e   :  { %4351 = vst.msk [vmem:[%s7865_s3 + $0xe0] sm:$0xf] %vm4294_vm1, %v5259_v59  ;;  %v5260_v0 = vpack.c.bf16 %v2855_v60, %v2855_v60  ;;  %4503 = vst.msk [vmem:[%s7865_s3 + $0x340] sm:$0xf] %vm4294_vm1, %v5411_v61  ;;  %v5726_v1 = vpop.f32.mrb[60].mxu0  ;;  %v5412_v3 = vpack.c.bf16 %v3007_v50, %v3007_v50  ;;  %v5878_v4 = vpop.f32.mrb[60].mxu1 }
 0x16f   :  { %4354 = vst.msk [vmem:[%s7865_s3 + $0xec] sm:$0xf] %vm4294_vm1, %v5262_v62  ;;  %4506 = vst.msk [vmem:[%s7865_s3 + $0x34c] sm:$0xf] %vm4294_vm1, %v5414_v63  ;;  %v1849_v5 = vadd.f32 %v6793_v2, %v5726_v1  ;;  %v1840_v6 = vpop.f32.mrb[61].mxu0  ;;  %v2457_v7 = vadd.f32 %v6793_v2, %v5878_v4  ;;  %v2448_v8 = vpop.f32.mrb[61].mxu1 }
 0x170   :  { %4352 = vst.msk [vmem:[%s7865_s3 + $0xe4] sm:$0xf] %vm4294_vm1, %v5260_v0  ;;  %4504 = vst.msk [vmem:[%s7865_s3 + $0x344] sm:$0xf] %vm4294_vm1, %v5412_v3  ;;  %v1841_v9 = vadd.f32 %v6793_v2, %v1840_v6  ;;  %v5727_v10 = vpop.f32.mrb[62].mxu0  ;;  %v2449_v11 = vadd.f32 %v6793_v2, %v2448_v8  ;;  %v5879_v12 = vpop.f32.mrb[62].mxu1 }
 0x171   :  { %v2860_v13 = vmax.f32 %v1849_v5, 0.0  ;;  %v1852_v14 = vadd.f32 %v6793_v2, %v5727_v10  ;;  %v1843_v15 = vpop.f32.mrb[63].mxu0  ;;  %v3012_v16 = vmax.f32 %v2457_v7, 0.0  ;;  %v2460_v17 = vadd.f32 %v6793_v2, %v5879_v12  ;;  %v2451_v18 = vpop.f32.mrb[63].mxu1 }
 0x172   :  { %v2858_v19 = vmax.f32 %v1841_v9, 0.0  ;;  %v1844_v20 = vadd.f32 %v6793_v2, %v1843_v15  ;;  %v3010_v21 = vmax.f32 %v2449_v11, 0.0  ;;  %v2452_v22 = vadd.f32 %v6793_v2, %v2451_v18 }
 0x173   :  { %v5265_v23 = vpack.c.bf16 %v2860_v13, %v2860_v13  ;;  %v2861_v24 = vmax.f32 %v1852_v14, 0.0  ;;  %v5417_v25 = vpack.c.bf16 %v3012_v16, %v3012_v16  ;;  %v3013_v26 = vmax.f32 %v2460_v17, 0.0 }
 0x174   :  { %v5263_v27 = vpack.c.bf16 %v2858_v19, %v2858_v19  ;;  %v2859_v28 = vmax.f32 %v1844_v20, 0.0  ;;  %v5415_v29 = vpack.c.bf16 %v3010_v21, %v3010_v21  ;;  %v3011_v30 = vmax.f32 %v2452_v22, 0.0 }
 0x175   :  { %4357 = vst.msk [vmem:[%s7865_s3 + $0xf8] sm:$0xf] %vm4294_vm1, %v5265_v23  ;;  %v5266_v31 = vpack.c.bf16 %v2861_v24, %v2861_v24  ;;  %4509 = vst.msk [vmem:[%s7865_s3 + $0x358] sm:$0xf] %vm4294_vm1, %v5417_v25  ;;  %v5418_v32 = vpack.c.bf16 %v3013_v26, %v3013_v26 }
 0x176   :  { %4355 = vst.msk [vmem:[%s7865_s3 + $0xf0] sm:$0xf] %vm4294_vm1, %v5263_v27  ;;  %v5264_v33 = vpack.c.bf16 %v2859_v28, %v2859_v28  ;;  %4507 = vst.msk [vmem:[%s7865_s3 + $0x350] sm:$0xf] %vm4294_vm1, %v5415_v29  ;;  %v5730_v34 = vpop.f32.mrb[64].mxu0  ;;  %v5416_v35 = vpack.c.bf16 %v3011_v30, %v3011_v30  ;;  %v5882_v36 = vpop.f32.mrb[64].mxu1 }
 0x177   :  { %4358 = vst.msk [vmem:[%s7865_s3 + $0xfc] sm:$0xf] %vm4294_vm1, %v5266_v31  ;;  %4510 = vst.msk [vmem:[%s7865_s3 + $0x35c] sm:$0xf] %vm4294_vm1, %v5418_v32  ;;  %v1865_v37 = vadd.f32 %v6793_v2, %v5730_v34  ;;  %v1856_v38 = vpop.f32.mrb[65].mxu0  ;;  %v2473_v39 = vadd.f32 %v6793_v2, %v5882_v36  ;;  %v2464_v40 = vpop.f32.mrb[65].mxu1 }
 0x178   :  { %4356 = vst.msk [vmem:[%s7865_s3 + $0xf4] sm:$0xf] %vm4294_vm1, %v5264_v33  ;;  %4508 = vst.msk [vmem:[%s7865_s3 + $0x354] sm:$0xf] %vm4294_vm1, %v5416_v35  ;;  %v1857_v41 = vadd.f32 %v6793_v2, %v1856_v38  ;;  %v5731_v42 = vpop.f32.mrb[66].mxu0  ;;  %v2465_v43 = vadd.f32 %v6793_v2, %v2464_v40  ;;  %v5883_v44 = vpop.f32.mrb[66].mxu1 }
 0x179   :  { %v2864_v45 = vmax.f32 %v1865_v37, 0.0  ;;  %v1868_v46 = vadd.f32 %v6793_v2, %v5731_v42  ;;  %v1859_v47 = vpop.f32.mrb[67].mxu0  ;;  %v3016_v48 = vmax.f32 %v2473_v39, 0.0  ;;  %v2476_v49 = vadd.f32 %v6793_v2, %v5883_v44  ;;  %v2467_v51 = vpop.f32.mrb[67].mxu1 }
 0x17a   :  { %v2862_v52 = vmax.f32 %v1857_v41, 0.0  ;;  %v1860_v53 = vadd.f32 %v6793_v2, %v1859_v47  ;;  %v3014_v54 = vmax.f32 %v2465_v43, 0.0  ;;  %v2468_v55 = vadd.f32 %v6793_v2, %v2467_v51 }
 0x17b   :  { %v5269_v56 = vpack.c.bf16 %v2864_v45, %v2864_v45  ;;  %v2865_v57 = vmax.f32 %v1868_v46, 0.0  ;;  %v5421_v58 = vpack.c.bf16 %v3016_v48, %v3016_v48  ;;  %v3017_v59 = vmax.f32 %v2476_v49, 0.0 }
 0x17c   :  { %v5267_v60 = vpack.c.bf16 %v2862_v52, %v2862_v52  ;;  %v2863_v61 = vmax.f32 %v1860_v53, 0.0  ;;  %v5419_v50 = vpack.c.bf16 %v3014_v54, %v3014_v54  ;;  %v3015_v62 = vmax.f32 %v2468_v55, 0.0 }
 0x17d   :  { %4361 = vst.msk [vmem:[%s7865_s3 + $0x108] sm:$0xf] %vm4294_vm1, %v5269_v56  ;;  %v5270_v63 = vpack.c.bf16 %v2865_v57, %v2865_v57  ;;  %4513 = vst.msk [vmem:[%s7865_s3 + $0x368] sm:$0xf] %vm4294_vm1, %v5421_v58  ;;  %v5422_v0 = vpack.c.bf16 %v3017_v59, %v3017_v59 }
 0x17e   :  { %4359 = vst.msk [vmem:[%s7865_s3 + $0x100] sm:$0xf] %vm4294_vm1, %v5267_v60  ;;  %v5268_v1 = vpack.c.bf16 %v2863_v61, %v2863_v61  ;;  %4511 = vst.msk [vmem:[%s7865_s3 + $0x360] sm:$0xf] %vm4294_vm1, %v5419_v50  ;;  %v5734_v3 = vpop.f32.mrb[68].mxu0  ;;  %v5420_v4 = vpack.c.bf16 %v3015_v62, %v3015_v62  ;;  %v5886_v5 = vpop.f32.mrb[68].mxu1 }
 0x17f   :  { %4362 = vst.msk [vmem:[%s7865_s3 + $0x10c] sm:$0xf] %vm4294_vm1, %v5270_v63  ;;  %4514 = vst.msk [vmem:[%s7865_s3 + $0x36c] sm:$0xf] %vm4294_vm1, %v5422_v0  ;;  %v1881_v6 = vadd.f32 %v6793_v2, %v5734_v3  ;;  %v1872_v7 = vpop.f32.mrb[69].mxu0  ;;  %v2489_v8 = vadd.f32 %v6793_v2, %v5886_v5  ;;  %v2480_v9 = vpop.f32.mrb[69].mxu1 }
 0x180   :  { %4360 = vst.msk [vmem:[%s7865_s3 + $0x104] sm:$0xf] %vm4294_vm1, %v5268_v1  ;;  %4512 = vst.msk [vmem:[%s7865_s3 + $0x364] sm:$0xf] %vm4294_vm1, %v5420_v4  ;;  %v1873_v10 = vadd.f32 %v6793_v2, %v1872_v7  ;;  %v5735_v11 = vpop.f32.mrb[70].mxu0  ;;  %v2481_v12 = vadd.f32 %v6793_v2, %v2480_v9  ;;  %v5887_v13 = vpop.f32.mrb[70].mxu1 }
 0x181   :  { %v2868_v14 = vmax.f32 %v1881_v6, 0.0  ;;  %v1884_v15 = vadd.f32 %v6793_v2, %v5735_v11  ;;  %v1875_v16 = vpop.f32.mrb[71].mxu0  ;;  %v3020_v17 = vmax.f32 %v2489_v8, 0.0  ;;  %v2492_v18 = vadd.f32 %v6793_v2, %v5887_v13  ;;  %v2483_v19 = vpop.f32.mrb[71].mxu1 }
 0x182   :  { %v2866_v20 = vmax.f32 %v1873_v10, 0.0  ;;  %v1876_v21 = vadd.f32 %v6793_v2, %v1875_v16  ;;  %v3018_v22 = vmax.f32 %v2481_v12, 0.0  ;;  %v2484_v23 = vadd.f32 %v6793_v2, %v2483_v19 }
 0x183   :  { %v5273_v24 = vpack.c.bf16 %v2868_v14, %v2868_v14  ;;  %v2869_v25 = vmax.f32 %v1884_v15, 0.0  ;;  %v5425_v26 = vpack.c.bf16 %v3020_v17, %v3020_v17  ;;  %v3021_v27 = vmax.f32 %v2492_v18, 0.0 }
 0x184   :  { %v5271_v28 = vpack.c.bf16 %v2866_v20, %v2866_v20  ;;  %v2867_v29 = vmax.f32 %v1876_v21, 0.0  ;;  %v5423_v30 = vpack.c.bf16 %v3018_v22, %v3018_v22  ;;  %v3019_v31 = vmax.f32 %v2484_v23, 0.0 }
 0x185   :  { %4365 = vst.msk [vmem:[%s7865_s3 + $0x118] sm:$0xf] %vm4294_vm1, %v5273_v24  ;;  %v5274_v32 = vpack.c.bf16 %v2869_v25, %v2869_v25  ;;  %4517 = vst.msk [vmem:[%s7865_s3 + $0x378] sm:$0xf] %vm4294_vm1, %v5425_v26  ;;  %v5426_v33 = vpack.c.bf16 %v3021_v27, %v3021_v27 }
 0x186   :  { %4363 = vst.msk [vmem:[%s7865_s3 + $0x110] sm:$0xf] %vm4294_vm1, %v5271_v28  ;;  %v5272_v34 = vpack.c.bf16 %v2867_v29, %v2867_v29  ;;  %4515 = vst.msk [vmem:[%s7865_s3 + $0x370] sm:$0xf] %vm4294_vm1, %v5423_v30  ;;  %v5738_v35 = vpop.f32.mrb[72].mxu0  ;;  %v5424_v36 = vpack.c.bf16 %v3019_v31, %v3019_v31  ;;  %v5890_v37 = vpop.f32.mrb[72].mxu1 }
 0x187   :  { %4366 = vst.msk [vmem:[%s7865_s3 + $0x11c] sm:$0xf] %vm4294_vm1, %v5274_v32  ;;  %4518 = vst.msk [vmem:[%s7865_s3 + $0x37c] sm:$0xf] %vm4294_vm1, %v5426_v33  ;;  %v1897_v38 = vadd.f32 %v6793_v2, %v5738_v35  ;;  %v1888_v39 = vpop.f32.mrb[73].mxu0  ;;  %v2505_v40 = vadd.f32 %v6793_v2, %v5890_v37  ;;  %v2496_v41 = vpop.f32.mrb[73].mxu1 }
 0x188   :  { %4364 = vst.msk [vmem:[%s7865_s3 + $0x114] sm:$0xf] %vm4294_vm1, %v5272_v34  ;;  %4516 = vst.msk [vmem:[%s7865_s3 + $0x374] sm:$0xf] %vm4294_vm1, %v5424_v36  ;;  %v1889_v42 = vadd.f32 %v6793_v2, %v1888_v39  ;;  %v5739_v43 = vpop.f32.mrb[74].mxu0  ;;  %v2497_v44 = vadd.f32 %v6793_v2, %v2496_v41  ;;  %v5891_v45 = vpop.f32.mrb[74].mxu1 }
 0x189   :  { %v2872_v46 = vmax.f32 %v1897_v38, 0.0  ;;  %v1900_v47 = vadd.f32 %v6793_v2, %v5739_v43  ;;  %v1891_v48 = vpop.f32.mrb[75].mxu0  ;;  %v3024_v49 = vmax.f32 %v2505_v40, 0.0  ;;  %v2508_v51 = vadd.f32 %v6793_v2, %v5891_v45  ;;  %v2499_v52 = vpop.f32.mrb[75].mxu1 }
 0x18a   :  { %v2870_v53 = vmax.f32 %v1889_v42, 0.0  ;;  %v1892_v54 = vadd.f32 %v6793_v2, %v1891_v48  ;;  %v3022_v55 = vmax.f32 %v2497_v44, 0.0  ;;  %v2500_v56 = vadd.f32 %v6793_v2, %v2499_v52 }
 0x18b   :  { %v5277_v57 = vpack.c.bf16 %v2872_v46, %v2872_v46  ;;  %v2873_v58 = vmax.f32 %v1900_v47, 0.0  ;;  %v5429_v59 = vpack.c.bf16 %v3024_v49, %v3024_v49  ;;  %v3025_v60 = vmax.f32 %v2508_v51, 0.0 }
 0x18c   :  { %v5275_v61 = vpack.c.bf16 %v2870_v53, %v2870_v53  ;;  %v2871_v50 = vmax.f32 %v1892_v54, 0.0  ;;  %v5427_v62 = vpack.c.bf16 %v3022_v55, %v3022_v55  ;;  %v3023_v63 = vmax.f32 %v2500_v56, 0.0 }
 0x18d   :  { %4369 = vst.msk [vmem:[%s7865_s3 + $0x128] sm:$0xf] %vm4294_vm1, %v5277_v57  ;;  %v5278_v0 = vpack.c.bf16 %v2873_v58, %v2873_v58  ;;  %4521 = vst.msk [vmem:[%s7865_s3 + $0x388] sm:$0xf] %vm4294_vm1, %v5429_v59  ;;  %v5430_v1 = vpack.c.bf16 %v3025_v60, %v3025_v60 }
 0x18e   :  { %4367 = vst.msk [vmem:[%s7865_s3 + $0x120] sm:$0xf] %vm4294_vm1, %v5275_v61  ;;  %v5276_v3 = vpack.c.bf16 %v2871_v50, %v2871_v50  ;;  %4519 = vst.msk [vmem:[%s7865_s3 + $0x380] sm:$0xf] %vm4294_vm1, %v5427_v62  ;;  %v5742_v4 = vpop.f32.mrb[76].mxu0  ;;  %v5428_v5 = vpack.c.bf16 %v3023_v63, %v3023_v63  ;;  %v5894_v6 = vpop.f32.mrb[76].mxu1 }
 0x18f   :  { %4370 = vst.msk [vmem:[%s7865_s3 + $0x12c] sm:$0xf] %vm4294_vm1, %v5278_v0  ;;  %4522 = vst.msk [vmem:[%s7865_s3 + $0x38c] sm:$0xf] %vm4294_vm1, %v5430_v1  ;;  %v1913_v7 = vadd.f32 %v6793_v2, %v5742_v4  ;;  %v1904_v8 = vpop.f32.mrb[77].mxu0  ;;  %v2521_v9 = vadd.f32 %v6793_v2, %v5894_v6  ;;  %v2512_v10 = vpop.f32.mrb[77].mxu1 }
 0x190   :  { %4368 = vst.msk [vmem:[%s7865_s3 + $0x124] sm:$0xf] %vm4294_vm1, %v5276_v3  ;;  %4520 = vst.msk [vmem:[%s7865_s3 + $0x384] sm:$0xf] %vm4294_vm1, %v5428_v5  ;;  %v1905_v11 = vadd.f32 %v6793_v2, %v1904_v8  ;;  %v5743_v12 = vpop.f32.mrb[78].mxu0  ;;  %v2513_v13 = vadd.f32 %v6793_v2, %v2512_v10  ;;  %v5895_v14 = vpop.f32.mrb[78].mxu1 }
 0x191   :  { %v2876_v15 = vmax.f32 %v1913_v7, 0.0  ;;  %v1916_v16 = vadd.f32 %v6793_v2, %v5743_v12  ;;  %v1907_v17 = vpop.f32.mrb[79].mxu0  ;;  %v3028_v18 = vmax.f32 %v2521_v9, 0.0  ;;  %v2524_v19 = vadd.f32 %v6793_v2, %v5895_v14  ;;  %v2515_v20 = vpop.f32.mrb[79].mxu1 }
 0x192   :  { %v2874_v21 = vmax.f32 %v1905_v11, 0.0  ;;  %v1908_v22 = vadd.f32 %v6793_v2, %v1907_v17  ;;  %v3026_v23 = vmax.f32 %v2513_v13, 0.0  ;;  %v2516_v24 = vadd.f32 %v6793_v2, %v2515_v20 }
 0x193   :  { %v5281_v25 = vpack.c.bf16 %v2876_v15, %v2876_v15  ;;  %v2877_v26 = vmax.f32 %v1916_v16, 0.0  ;;  %v5433_v27 = vpack.c.bf16 %v3028_v18, %v3028_v18  ;;  %v3029_v28 = vmax.f32 %v2524_v19, 0.0 }
 0x194   :  { %v5279_v29 = vpack.c.bf16 %v2874_v21, %v2874_v21  ;;  %v2875_v30 = vmax.f32 %v1908_v22, 0.0  ;;  %v5431_v31 = vpack.c.bf16 %v3026_v23, %v3026_v23  ;;  %v3027_v32 = vmax.f32 %v2516_v24, 0.0 }
 0x195   :  { %4373 = vst.msk [vmem:[%s7865_s3 + $0x138] sm:$0xf] %vm4294_vm1, %v5281_v25  ;;  %v5282_v33 = vpack.c.bf16 %v2877_v26, %v2877_v26  ;;  %4525 = vst.msk [vmem:[%s7865_s3 + $0x398] sm:$0xf] %vm4294_vm1, %v5433_v27  ;;  %v5434_v34 = vpack.c.bf16 %v3029_v28, %v3029_v28 }
 0x196   :  { %4371 = vst.msk [vmem:[%s7865_s3 + $0x130] sm:$0xf] %vm4294_vm1, %v5279_v29  ;;  %v5280_v35 = vpack.c.bf16 %v2875_v30, %v2875_v30  ;;  %4523 = vst.msk [vmem:[%s7865_s3 + $0x390] sm:$0xf] %vm4294_vm1, %v5431_v31  ;;  %v5746_v36 = vpop.f32.mrb[80].mxu0  ;;  %v5432_v37 = vpack.c.bf16 %v3027_v32, %v3027_v32  ;;  %v5898_v38 = vpop.f32.mrb[80].mxu1 }
 0x197   :  { %4374 = vst.msk [vmem:[%s7865_s3 + $0x13c] sm:$0xf] %vm4294_vm1, %v5282_v33  ;;  %4526 = vst.msk [vmem:[%s7865_s3 + $0x39c] sm:$0xf] %vm4294_vm1, %v5434_v34  ;;  %v1929_v39 = vadd.f32 %v6793_v2, %v5746_v36  ;;  %v1920_v40 = vpop.f32.mrb[81].mxu0  ;;  %v2537_v41 = vadd.f32 %v6793_v2, %v5898_v38  ;;  %v2528_v42 = vpop.f32.mrb[81].mxu1 }
 0x198   :  { %4372 = vst.msk [vmem:[%s7865_s3 + $0x134] sm:$0xf] %vm4294_vm1, %v5280_v35  ;;  %4524 = vst.msk [vmem:[%s7865_s3 + $0x394] sm:$0xf] %vm4294_vm1, %v5432_v37  ;;  %v1921_v43 = vadd.f32 %v6793_v2, %v1920_v40  ;;  %v5747_v44 = vpop.f32.mrb[82].mxu0  ;;  %v2529_v45 = vadd.f32 %v6793_v2, %v2528_v42  ;;  %v5899_v46 = vpop.f32.mrb[82].mxu1 }
 0x199   :  { %v2880_v47 = vmax.f32 %v1929_v39, 0.0  ;;  %v1932_v48 = vadd.f32 %v6793_v2, %v5747_v44  ;;  %v1923_v49 = vpop.f32.mrb[83].mxu0  ;;  %v3032_v51 = vmax.f32 %v2537_v41, 0.0  ;;  %v2540_v52 = vadd.f32 %v6793_v2, %v5899_v46  ;;  %v2531_v53 = vpop.f32.mrb[83].mxu1 }
 0x19a   :  { %v2878_v54 = vmax.f32 %v1921_v43, 0.0  ;;  %v1924_v55 = vadd.f32 %v6793_v2, %v1923_v49  ;;  %v3030_v56 = vmax.f32 %v2529_v45, 0.0  ;;  %v2532_v57 = vadd.f32 %v6793_v2, %v2531_v53 }
 0x19b   :  { %v5285_v58 = vpack.c.bf16 %v2880_v47, %v2880_v47  ;;  %v2881_v59 = vmax.f32 %v1932_v48, 0.0  ;;  %v5437_v60 = vpack.c.bf16 %v3032_v51, %v3032_v51  ;;  %v3033_v61 = vmax.f32 %v2540_v52, 0.0 }
 0x19c   :  { %v5283_v50 = vpack.c.bf16 %v2878_v54, %v2878_v54  ;;  %v2879_v62 = vmax.f32 %v1924_v55, 0.0  ;;  %v5435_v63 = vpack.c.bf16 %v3030_v56, %v3030_v56  ;;  %v3031_v0 = vmax.f32 %v2532_v57, 0.0 }
 0x19d   :  { %4377 = vst.msk [vmem:[%s7865_s3 + $0x148] sm:$0xf] %vm4294_vm1, %v5285_v58  ;;  %v5286_v1 = vpack.c.bf16 %v2881_v59, %v2881_v59  ;;  %4529 = vst.msk [vmem:[%s7865_s3 + $0x3a8] sm:$0xf] %vm4294_vm1, %v5437_v60  ;;  %v5438_v3 = vpack.c.bf16 %v3033_v61, %v3033_v61 }
 0x19e   :  { %4375 = vst.msk [vmem:[%s7865_s3 + $0x140] sm:$0xf] %vm4294_vm1, %v5283_v50  ;;  %v5284_v4 = vpack.c.bf16 %v2879_v62, %v2879_v62  ;;  %4527 = vst.msk [vmem:[%s7865_s3 + $0x3a0] sm:$0xf] %vm4294_vm1, %v5435_v63  ;;  %v5750_v5 = vpop.f32.mrb[84].mxu0  ;;  %v5436_v6 = vpack.c.bf16 %v3031_v0, %v3031_v0  ;;  %v5902_v7 = vpop.f32.mrb[84].mxu1 }
 0x19f   :  { %4378 = vst.msk [vmem:[%s7865_s3 + $0x14c] sm:$0xf] %vm4294_vm1, %v5286_v1  ;;  %4530 = vst.msk [vmem:[%s7865_s3 + $0x3ac] sm:$0xf] %vm4294_vm1, %v5438_v3  ;;  %v1945_v8 = vadd.f32 %v6793_v2, %v5750_v5  ;;  %v1936_v9 = vpop.f32.mrb[85].mxu0  ;;  %v2553_v10 = vadd.f32 %v6793_v2, %v5902_v7  ;;  %v2544_v11 = vpop.f32.mrb[85].mxu1 }
 0x1a0   :  { %4376 = vst.msk [vmem:[%s7865_s3 + $0x144] sm:$0xf] %vm4294_vm1, %v5284_v4  ;;  %4528 = vst.msk [vmem:[%s7865_s3 + $0x3a4] sm:$0xf] %vm4294_vm1, %v5436_v6  ;;  %v1937_v12 = vadd.f32 %v6793_v2, %v1936_v9  ;;  %v5751_v13 = vpop.f32.mrb[86].mxu0  ;;  %v2545_v14 = vadd.f32 %v6793_v2, %v2544_v11  ;;  %v5903_v15 = vpop.f32.mrb[86].mxu1 }
 0x1a1   :  { %v2884_v16 = vmax.f32 %v1945_v8, 0.0  ;;  %v1948_v17 = vadd.f32 %v6793_v2, %v5751_v13  ;;  %v1939_v18 = vpop.f32.mrb[87].mxu0  ;;  %v3036_v19 = vmax.f32 %v2553_v10, 0.0  ;;  %v2556_v20 = vadd.f32 %v6793_v2, %v5903_v15  ;;  %v2547_v21 = vpop.f32.mrb[87].mxu1 }
 0x1a2   :  { %v2882_v22 = vmax.f32 %v1937_v12, 0.0  ;;  %v1940_v23 = vadd.f32 %v6793_v2, %v1939_v18  ;;  %v3034_v24 = vmax.f32 %v2545_v14, 0.0  ;;  %v2548_v25 = vadd.f32 %v6793_v2, %v2547_v21 }
 0x1a3   :  { %v5289_v26 = vpack.c.bf16 %v2884_v16, %v2884_v16  ;;  %v2885_v27 = vmax.f32 %v1948_v17, 0.0  ;;  %v5441_v28 = vpack.c.bf16 %v3036_v19, %v3036_v19  ;;  %v3037_v29 = vmax.f32 %v2556_v20, 0.0 }
 0x1a4   :  { %v5287_v30 = vpack.c.bf16 %v2882_v22, %v2882_v22  ;;  %v2883_v31 = vmax.f32 %v1940_v23, 0.0  ;;  %v5439_v32 = vpack.c.bf16 %v3034_v24, %v3034_v24  ;;  %v3035_v33 = vmax.f32 %v2548_v25, 0.0 }
 0x1a5   :  { %4381 = vst.msk [vmem:[%s7865_s3 + $0x158] sm:$0xf] %vm4294_vm1, %v5289_v26  ;;  %v5290_v34 = vpack.c.bf16 %v2885_v27, %v2885_v27  ;;  %4533 = vst.msk [vmem:[%s7865_s3 + $0x3b8] sm:$0xf] %vm4294_vm1, %v5441_v28  ;;  %v5442_v35 = vpack.c.bf16 %v3037_v29, %v3037_v29 }
 0x1a6   :  { %4379 = vst.msk [vmem:[%s7865_s3 + $0x150] sm:$0xf] %vm4294_vm1, %v5287_v30  ;;  %v5288_v36 = vpack.c.bf16 %v2883_v31, %v2883_v31  ;;  %4531 = vst.msk [vmem:[%s7865_s3 + $0x3b0] sm:$0xf] %vm4294_vm1, %v5439_v32  ;;  %v5754_v37 = vpop.f32.mrb[88].mxu0  ;;  %v5440_v38 = vpack.c.bf16 %v3035_v33, %v3035_v33  ;;  %v5906_v39 = vpop.f32.mrb[88].mxu1 }
 0x1a7   :  { %4382 = vst.msk [vmem:[%s7865_s3 + $0x15c] sm:$0xf] %vm4294_vm1, %v5290_v34  ;;  %4534 = vst.msk [vmem:[%s7865_s3 + $0x3bc] sm:$0xf] %vm4294_vm1, %v5442_v35  ;;  %v1961_v40 = vadd.f32 %v6793_v2, %v5754_v37  ;;  %v1952_v41 = vpop.f32.mrb[89].mxu0  ;;  %v2569_v42 = vadd.f32 %v6793_v2, %v5906_v39  ;;  %v2560_v43 = vpop.f32.mrb[89].mxu1 }
 0x1a8   :  { %4380 = vst.msk [vmem:[%s7865_s3 + $0x154] sm:$0xf] %vm4294_vm1, %v5288_v36  ;;  %4532 = vst.msk [vmem:[%s7865_s3 + $0x3b4] sm:$0xf] %vm4294_vm1, %v5440_v38  ;;  %v1953_v44 = vadd.f32 %v6793_v2, %v1952_v41  ;;  %v5755_v45 = vpop.f32.mrb[90].mxu0  ;;  %v2561_v46 = vadd.f32 %v6793_v2, %v2560_v43  ;;  %v5907_v47 = vpop.f32.mrb[90].mxu1 }
 0x1a9   :  { %v2888_v48 = vmax.f32 %v1961_v40, 0.0  ;;  %v1964_v49 = vadd.f32 %v6793_v2, %v5755_v45  ;;  %v1955_v51 = vpop.f32.mrb[91].mxu0  ;;  %v3040_v52 = vmax.f32 %v2569_v42, 0.0  ;;  %v2572_v53 = vadd.f32 %v6793_v2, %v5907_v47  ;;  %v2563_v54 = vpop.f32.mrb[91].mxu1  ;;  %v7318_v40 = vld [vmem:[%s7864_s2] ss:$0 sm:$0xff] }
 0x1aa   :  { %v2886_v55 = vmax.f32 %v1953_v44, 0.0  ;;  %v1956_v56 = vadd.f32 %v6793_v2, %v1955_v51  ;;  %v3038_v57 = vmax.f32 %v2561_v46, 0.0  ;;  %v2564_v58 = vadd.f32 %v6793_v2, %v2563_v54 }
 0x1ab   :  { %v5293_v59 = vpack.c.bf16 %v2888_v48, %v2888_v48  ;;  %v2889_v60 = vmax.f32 %v1964_v49, 0.0  ;;  %v5445_v61 = vpack.c.bf16 %v3040_v52, %v3040_v52  ;;  %v3041_v50 = vmax.f32 %v2572_v53, 0.0 }
 0x1ac   :  { %v5291_v62 = vpack.c.bf16 %v2886_v55, %v2886_v55  ;;  %v2887_v63 = vmax.f32 %v1956_v56, 0.0  ;;  %v5443_v0 = vpack.c.bf16 %v3038_v57, %v3038_v57  ;;  %v3039_v1 = vmax.f32 %v2564_v58, 0.0 }
 0x1ad   :  { %4385 = vst.msk [vmem:[%s7865_s3 + $0x168] sm:$0xf] %vm4294_vm1, %v5293_v59  ;;  %v5294_v3 = vpack.c.bf16 %v2889_v60, %v2889_v60  ;;  %4537 = vst.msk [vmem:[%s7865_s3 + $0x3c8] sm:$0xf] %vm4294_vm1, %v5445_v61  ;;  %v5446_v4 = vpack.c.bf16 %v3041_v50, %v3041_v50 }
 0x1ae   :  { %4383 = vst.msk [vmem:[%s7865_s3 + $0x160] sm:$0xf] %vm4294_vm1, %v5291_v62  ;;  %v5292_v5 = vpack.c.bf16 %v2887_v63, %v2887_v63  ;;  %4535 = vst.msk [vmem:[%s7865_s3 + $0x3c0] sm:$0xf] %vm4294_vm1, %v5443_v0  ;;  %v5758_v6 = vpop.f32.mrb[92].mxu0  ;;  %v5444_v7 = vpack.c.bf16 %v3039_v1, %v3039_v1  ;;  %v5910_v8 = vpop.f32.mrb[92].mxu1 }
 0x1af   :  { %4386 = vst.msk [vmem:[%s7865_s3 + $0x16c] sm:$0xf] %vm4294_vm1, %v5294_v3  ;;  %4538 = vst.msk [vmem:[%s7865_s3 + $0x3cc] sm:$0xf] %vm4294_vm1, %v5446_v4  ;;  %v1977_v9 = vadd.f32 %v6793_v2, %v5758_v6  ;;  %v1968_v10 = vpop.f32.mrb[93].mxu0  ;;  %v2585_v11 = vadd.f32 %v6793_v2, %v5910_v8  ;;  %v2576_v12 = vpop.f32.mrb[93].mxu1 }
 0x1b0   :  { %4384 = vst.msk [vmem:[%s7865_s3 + $0x164] sm:$0xf] %vm4294_vm1, %v5292_v5  ;;  %4536 = vst.msk [vmem:[%s7865_s3 + $0x3c4] sm:$0xf] %vm4294_vm1, %v5444_v7  ;;  %v1969_v13 = vadd.f32 %v6793_v2, %v1968_v10  ;;  %v5759_v14 = vpop.f32.mrb[94].mxu0  ;;  %v2577_v15 = vadd.f32 %v6793_v2, %v2576_v12  ;;  %v5911_v16 = vpop.f32.mrb[94].mxu1 }
 0x1b1   :  { %v2892_v17 = vmax.f32 %v1977_v9, 0.0  ;;  %v1980_v18 = vadd.f32 %v6793_v2, %v5759_v14  ;;  %v1971_v19 = vpop.f32.mrb[95].mxu0  ;;  %v3044_v20 = vmax.f32 %v2585_v11, 0.0  ;;  %v2588_v21 = vadd.f32 %v6793_v2, %v5911_v16  ;;  %v2579_v22 = vpop.f32.mrb[95].mxu1 }
 0x1b2   :  { %v2890_v23 = vmax.f32 %v1969_v13, 0.0  ;;  %v1972_v24 = vadd.f32 %v6793_v2, %v1971_v19  ;;  %v3042_v25 = vmax.f32 %v2577_v15, 0.0  ;;  %v2580_v26 = vadd.f32 %v6793_v2, %v2579_v22 }
 0x1b3   :  { %v5297_v27 = vpack.c.bf16 %v2892_v17, %v2892_v17  ;;  %v2893_v28 = vmax.f32 %v1980_v18, 0.0  ;;  %v5449_v29 = vpack.c.bf16 %v3044_v20, %v3044_v20  ;;  %v3045_v30 = vmax.f32 %v2588_v21, 0.0 }
 0x1b4   :  { %v5295_v31 = vpack.c.bf16 %v2890_v23, %v2890_v23  ;;  %v2891_v32 = vmax.f32 %v1972_v24, 0.0  ;;  %v5447_v33 = vpack.c.bf16 %v3042_v25, %v3042_v25  ;;  %v3043_v34 = vmax.f32 %v2580_v26, 0.0 }
 0x1b5   :  { %4389 = vst.msk [vmem:[%s7865_s3 + $0x178] sm:$0xf] %vm4294_vm1, %v5297_v27  ;;  %v5298_v35 = vpack.c.bf16 %v2893_v28, %v2893_v28  ;;  %4541 = vst.msk [vmem:[%s7865_s3 + $0x3d8] sm:$0xf] %vm4294_vm1, %v5449_v29  ;;  %v5450_v2 = vpack.c.bf16 %v3045_v30, %v3045_v30 }
 0x1b6   :  { %4387 = vst.msk [vmem:[%s7865_s3 + $0x170] sm:$0xf] %vm4294_vm1, %v5295_v31  ;;  %v5296_v36 = vpack.c.bf16 %v2891_v32, %v2891_v32  ;;  %4539 = vst.msk [vmem:[%s7865_s3 + $0x3d0] sm:$0xf] %vm4294_vm1, %v5447_v33  ;;  %v5762_v37 = vpop.f32.mrb[96].mxu0  ;;  %v5448_v38 = vpack.c.bf16 %v3043_v34, %v3043_v34  ;;  %v5914_v39 = vpop.f32.mrb[96].mxu1 }
 0x1b7   :  { %4390 = vst.msk [vmem:[%s7865_s3 + $0x17c] sm:$0xf] %vm4294_vm1, %v5298_v35  ;;  %4542 = vst.msk [vmem:[%s7865_s3 + $0x3dc] sm:$0xf] %vm4294_vm1, %v5450_v2  ;;  %v1993_v41 = vadd.f32 %v7318_v40, %v5762_v37  ;;  %v1984_v42 = vpop.f32.mrb[97].mxu0  ;;  %v2601_v43 = vadd.f32 %v7318_v40, %v5914_v39  ;;  %v2592_v44 = vpop.f32.mrb[97].mxu1 }
 0x1b8   :  { %4388 = vst.msk [vmem:[%s7865_s3 + $0x174] sm:$0xf] %vm4294_vm1, %v5296_v36  ;;  %4540 = vst.msk [vmem:[%s7865_s3 + $0x3d4] sm:$0xf] %vm4294_vm1, %v5448_v38  ;;  %v1985_v45 = vadd.f32 %v7318_v40, %v1984_v42  ;;  %v5763_v46 = vpop.f32.mrb[98].mxu0  ;;  %v2593_v47 = vadd.f32 %v7318_v40, %v2592_v44  ;;  %v5915_v48 = vpop.f32.mrb[98].mxu1 }
 0x1b9   :  { %v2896_v49 = vmax.f32 %v1993_v41, 0.0  ;;  %v1996_v51 = vadd.f32 %v7318_v40, %v5763_v46  ;;  %v1987_v52 = vpop.f32.mrb[99].mxu0  ;;  %v3048_v53 = vmax.f32 %v2601_v43, 0.0  ;;  %v2604_v54 = vadd.f32 %v7318_v40, %v5915_v48  ;;  %v2595_v55 = vpop.f32.mrb[99].mxu1 }
 0x1ba   :  { %v2894_v56 = vmax.f32 %v1985_v45, 0.0  ;;  %v1988_v57 = vadd.f32 %v7318_v40, %v1987_v52  ;;  %v3046_v58 = vmax.f32 %v2593_v47, 0.0  ;;  %v2596_v59 = vadd.f32 %v7318_v40, %v2595_v55 }
 0x1bb   :  { %v5301_v60 = vpack.c.bf16 %v2896_v49, %v2896_v49  ;;  %v2897_v61 = vmax.f32 %v1996_v51, 0.0  ;;  %v5453_v50 = vpack.c.bf16 %v3048_v53, %v3048_v53  ;;  %v3049_v62 = vmax.f32 %v2604_v54, 0.0 }
 0x1bc   :  { %v5299_v63 = vpack.c.bf16 %v2894_v56, %v2894_v56  ;;  %v2895_v0 = vmax.f32 %v1988_v57, 0.0  ;;  %v5451_v1 = vpack.c.bf16 %v3046_v58, %v3046_v58  ;;  %v3047_v3 = vmax.f32 %v2596_v59, 0.0 }
 0x1bd   :  { %4393 = vst.msk [vmem:[%s7865_s3 + $0x188] sm:$0xf] %vm4294_vm1, %v5301_v60  ;;  %v5302_v4 = vpack.c.bf16 %v2897_v61, %v2897_v61  ;;  %4545 = vst.msk [vmem:[%s7865_s3 + $0x3e8] sm:$0xf] %vm4294_vm1, %v5453_v50  ;;  %v5454_v5 = vpack.c.bf16 %v3049_v62, %v3049_v62 }
 0x1be   :  { %4391 = vst.msk [vmem:[%s7865_s3 + $0x180] sm:$0xf] %vm4294_vm1, %v5299_v63  ;;  %v5300_v6 = vpack.c.bf16 %v2895_v0, %v2895_v0  ;;  %4543 = vst.msk [vmem:[%s7865_s3 + $0x3e0] sm:$0xf] %vm4294_vm1, %v5451_v1  ;;  %v5766_v7 = vpop.f32.mrb[100].mxu0  ;;  %v5452_v8 = vpack.c.bf16 %v3047_v3, %v3047_v3  ;;  %v5918_v9 = vpop.f32.mrb[100].mxu1 }
 0x1bf   :  { %4394 = vst.msk [vmem:[%s7865_s3 + $0x18c] sm:$0xf] %vm4294_vm1, %v5302_v4  ;;  %4546 = vst.msk [vmem:[%s7865_s3 + $0x3ec] sm:$0xf] %vm4294_vm1, %v5454_v5  ;;  %v2009_v10 = vadd.f32 %v7318_v40, %v5766_v7  ;;  %v2000_v11 = vpop.f32.mrb[101].mxu0  ;;  %v2617_v12 = vadd.f32 %v7318_v40, %v5918_v9  ;;  %v2608_v13 = vpop.f32.mrb[101].mxu1 }
 0x1c0   :  { %4392 = vst.msk [vmem:[%s7865_s3 + $0x184] sm:$0xf] %vm4294_vm1, %v5300_v6  ;;  %4544 = vst.msk [vmem:[%s7865_s3 + $0x3e4] sm:$0xf] %vm4294_vm1, %v5452_v8  ;;  %v2001_v14 = vadd.f32 %v7318_v40, %v2000_v11  ;;  %v5767_v15 = vpop.f32.mrb[102].mxu0  ;;  %v2609_v16 = vadd.f32 %v7318_v40, %v2608_v13  ;;  %v5919_v17 = vpop.f32.mrb[102].mxu1 }
 0x1c1   :  { %v2900_v18 = vmax.f32 %v2009_v10, 0.0  ;;  %v2012_v19 = vadd.f32 %v7318_v40, %v5767_v15  ;;  %v2003_v20 = vpop.f32.mrb[103].mxu0  ;;  %v3052_v21 = vmax.f32 %v2617_v12, 0.0  ;;  %v2620_v22 = vadd.f32 %v7318_v40, %v5919_v17  ;;  %v2611_v23 = vpop.f32.mrb[103].mxu1 }
 0x1c2   :  { %v2898_v24 = vmax.f32 %v2001_v14, 0.0  ;;  %v2004_v25 = vadd.f32 %v7318_v40, %v2003_v20  ;;  %v3050_v26 = vmax.f32 %v2609_v16, 0.0  ;;  %v2612_v27 = vadd.f32 %v7318_v40, %v2611_v23 }
 0x1c3   :  { %v5305_v28 = vpack.c.bf16 %v2900_v18, %v2900_v18  ;;  %v2901_v29 = vmax.f32 %v2012_v19, 0.0  ;;  %v5457_v30 = vpack.c.bf16 %v3052_v21, %v3052_v21  ;;  %v3053_v31 = vmax.f32 %v2620_v22, 0.0 }
 0x1c4   :  { %v5303_v32 = vpack.c.bf16 %v2898_v24, %v2898_v24  ;;  %v2899_v33 = vmax.f32 %v2004_v25, 0.0  ;;  %v5455_v34 = vpack.c.bf16 %v3050_v26, %v3050_v26  ;;  %v3051_v35 = vmax.f32 %v2612_v27, 0.0 }
 0x1c5   :  { %4397 = vst.msk [vmem:[%s7865_s3 + $0x198] sm:$0xf] %vm4294_vm1, %v5305_v28  ;;  %v5306_v2 = vpack.c.bf16 %v2901_v29, %v2901_v29  ;;  %4549 = vst.msk [vmem:[%s7865_s3 + $0x3f8] sm:$0xf] %vm4294_vm1, %v5457_v30  ;;  %v5458_v36 = vpack.c.bf16 %v3053_v31, %v3053_v31 }
 0x1c6   :  { %4395 = vst.msk [vmem:[%s7865_s3 + $0x190] sm:$0xf] %vm4294_vm1, %v5303_v32  ;;  %v5304_v37 = vpack.c.bf16 %v2899_v33, %v2899_v33  ;;  %4547 = vst.msk [vmem:[%s7865_s3 + $0x3f0] sm:$0xf] %vm4294_vm1, %v5455_v34  ;;  %v5770_v38 = vpop.f32.mrb[104].mxu0  ;;  %v5456_v39 = vpack.c.bf16 %v3051_v35, %v3051_v35  ;;  %v5922_v41 = vpop.f32.mrb[104].mxu1 }
 0x1c7   :  { %4398 = vst.msk [vmem:[%s7865_s3 + $0x19c] sm:$0xf] %vm4294_vm1, %v5306_v2  ;;  %4550 = vst.msk [vmem:[%s7865_s3 + $0x3fc] sm:$0xf] %vm4294_vm1, %v5458_v36  ;;  %v2025_v42 = vadd.f32 %v7318_v40, %v5770_v38  ;;  %v2016_v43 = vpop.f32.mrb[105].mxu0  ;;  %v2633_v44 = vadd.f32 %v7318_v40, %v5922_v41  ;;  %v2624_v45 = vpop.f32.mrb[105].mxu1 }
 0x1c8   :  { %4396 = vst.msk [vmem:[%s7865_s3 + $0x194] sm:$0xf] %vm4294_vm1, %v5304_v37  ;;  %4548 = vst.msk [vmem:[%s7865_s3 + $0x3f4] sm:$0xf] %vm4294_vm1, %v5456_v39  ;;  %v2017_v46 = vadd.f32 %v7318_v40, %v2016_v43  ;;  %v5771_v47 = vpop.f32.mrb[106].mxu0  ;;  %v2625_v48 = vadd.f32 %v7318_v40, %v2624_v45  ;;  %v5923_v49 = vpop.f32.mrb[106].mxu1 }
 0x1c9   :  { %v2904_v51 = vmax.f32 %v2025_v42, 0.0  ;;  %v2028_v52 = vadd.f32 %v7318_v40, %v5771_v47  ;;  %v2019_v53 = vpop.f32.mrb[107].mxu0  ;;  %v3056_v54 = vmax.f32 %v2633_v44, 0.0  ;;  %v2636_v55 = vadd.f32 %v7318_v40, %v5923_v49  ;;  %v2627_v56 = vpop.f32.mrb[107].mxu1 }
 0x1ca   :  { %v2902_v57 = vmax.f32 %v2017_v46, 0.0  ;;  %v2020_v58 = vadd.f32 %v7318_v40, %v2019_v53  ;;  %v3054_v59 = vmax.f32 %v2625_v48, 0.0  ;;  %v2628_v60 = vadd.f32 %v7318_v40, %v2627_v56 }
 0x1cb   :  { %v5309_v61 = vpack.c.bf16 %v2904_v51, %v2904_v51  ;;  %v2905_v50 = vmax.f32 %v2028_v52, 0.0  ;;  %v5461_v62 = vpack.c.bf16 %v3056_v54, %v3056_v54  ;;  %v3057_v63 = vmax.f32 %v2636_v55, 0.0 }
 0x1cc   :  { %v5307_v0 = vpack.c.bf16 %v2902_v57, %v2902_v57  ;;  %v2903_v1 = vmax.f32 %v2020_v58, 0.0  ;;  %v5459_v3 = vpack.c.bf16 %v3054_v59, %v3054_v59  ;;  %v3055_v4 = vmax.f32 %v2628_v60, 0.0 }
 0x1cd   :  { %4401 = vst.msk [vmem:[%s7865_s3 + $0x1a8] sm:$0xf] %vm4294_vm1, %v5309_v61  ;;  %v5310_v5 = vpack.c.bf16 %v2905_v50, %v2905_v50  ;;  %4553 = vst.msk [vmem:[%s7865_s3 + $0x408] sm:$0xf] %vm4294_vm1, %v5461_v62  ;;  %v5462_v6 = vpack.c.bf16 %v3057_v63, %v3057_v63 }
 0x1ce   :  { %4399 = vst.msk [vmem:[%s7865_s3 + $0x1a0] sm:$0xf] %vm4294_vm1, %v5307_v0  ;;  %v5308_v7 = vpack.c.bf16 %v2903_v1, %v2903_v1  ;;  %4551 = vst.msk [vmem:[%s7865_s3 + $0x400] sm:$0xf] %vm4294_vm1, %v5459_v3  ;;  %v5774_v8 = vpop.f32.mrb[108].mxu0  ;;  %v5460_v9 = vpack.c.bf16 %v3055_v4, %v3055_v4  ;;  %v5926_v10 = vpop.f32.mrb[108].mxu1 }
 0x1cf   :  { %4402 = vst.msk [vmem:[%s7865_s3 + $0x1ac] sm:$0xf] %vm4294_vm1, %v5310_v5  ;;  %4554 = vst.msk [vmem:[%s7865_s3 + $0x40c] sm:$0xf] %vm4294_vm1, %v5462_v6  ;;  %v2041_v11 = vadd.f32 %v7318_v40, %v5774_v8  ;;  %v2032_v12 = vpop.f32.mrb[109].mxu0  ;;  %v2649_v13 = vadd.f32 %v7318_v40, %v5926_v10  ;;  %v2640_v14 = vpop.f32.mrb[109].mxu1 }
 0x1d0   :  { %4400 = vst.msk [vmem:[%s7865_s3 + $0x1a4] sm:$0xf] %vm4294_vm1, %v5308_v7  ;;  %4552 = vst.msk [vmem:[%s7865_s3 + $0x404] sm:$0xf] %vm4294_vm1, %v5460_v9  ;;  %v2033_v15 = vadd.f32 %v7318_v40, %v2032_v12  ;;  %v5775_v16 = vpop.f32.mrb[110].mxu0  ;;  %v2641_v17 = vadd.f32 %v7318_v40, %v2640_v14  ;;  %v5927_v18 = vpop.f32.mrb[110].mxu1 }
 0x1d1   :  { %v2908_v19 = vmax.f32 %v2041_v11, 0.0  ;;  %v2044_v20 = vadd.f32 %v7318_v40, %v5775_v16  ;;  %v2035_v21 = vpop.f32.mrb[111].mxu0  ;;  %v3060_v22 = vmax.f32 %v2649_v13, 0.0  ;;  %v2652_v23 = vadd.f32 %v7318_v40, %v5927_v18  ;;  %v2643_v24 = vpop.f32.mrb[111].mxu1 }
 0x1d2   :  { %v2906_v25 = vmax.f32 %v2033_v15, 0.0  ;;  %v2036_v26 = vadd.f32 %v7318_v40, %v2035_v21  ;;  %v3058_v27 = vmax.f32 %v2641_v17, 0.0  ;;  %v2644_v28 = vadd.f32 %v7318_v40, %v2643_v24 }
 0x1d3   :  { %v5313_v29 = vpack.c.bf16 %v2908_v19, %v2908_v19  ;;  %v2909_v30 = vmax.f32 %v2044_v20, 0.0  ;;  %v5465_v31 = vpack.c.bf16 %v3060_v22, %v3060_v22  ;;  %v3061_v32 = vmax.f32 %v2652_v23, 0.0 }
 0x1d4   :  { %v5311_v33 = vpack.c.bf16 %v2906_v25, %v2906_v25  ;;  %v2907_v34 = vmax.f32 %v2036_v26, 0.0  ;;  %v5463_v35 = vpack.c.bf16 %v3058_v27, %v3058_v27  ;;  %v3059_v2 = vmax.f32 %v2644_v28, 0.0 }
 0x1d5   :  { %4405 = vst.msk [vmem:[%s7865_s3 + $0x1b8] sm:$0xf] %vm4294_vm1, %v5313_v29  ;;  %v5314_v36 = vpack.c.bf16 %v2909_v30, %v2909_v30  ;;  %4557 = vst.msk [vmem:[%s7865_s3 + $0x418] sm:$0xf] %vm4294_vm1, %v5465_v31  ;;  %v5466_v37 = vpack.c.bf16 %v3061_v32, %v3061_v32 }
 0x1d6   :  { %4403 = vst.msk [vmem:[%s7865_s3 + $0x1b0] sm:$0xf] %vm4294_vm1, %v5311_v33  ;;  %v5312_v38 = vpack.c.bf16 %v2907_v34, %v2907_v34  ;;  %4555 = vst.msk [vmem:[%s7865_s3 + $0x410] sm:$0xf] %vm4294_vm1, %v5463_v35  ;;  %v5778_v39 = vpop.f32.mrb[112].mxu0  ;;  %v5464_v41 = vpack.c.bf16 %v3059_v2, %v3059_v2  ;;  %v5930_v42 = vpop.f32.mrb[112].mxu1 }
 0x1d7   :  { %4406 = vst.msk [vmem:[%s7865_s3 + $0x1bc] sm:$0xf] %vm4294_vm1, %v5314_v36  ;;  %4558 = vst.msk [vmem:[%s7865_s3 + $0x41c] sm:$0xf] %vm4294_vm1, %v5466_v37  ;;  %v2057_v43 = vadd.f32 %v7318_v40, %v5778_v39  ;;  %v2048_v44 = vpop.f32.mrb[113].mxu0  ;;  %v2665_v45 = vadd.f32 %v7318_v40, %v5930_v42  ;;  %v2656_v46 = vpop.f32.mrb[113].mxu1 }
 0x1d8   :  { %4404 = vst.msk [vmem:[%s7865_s3 + $0x1b4] sm:$0xf] %vm4294_vm1, %v5312_v38  ;;  %4556 = vst.msk [vmem:[%s7865_s3 + $0x414] sm:$0xf] %vm4294_vm1, %v5464_v41  ;;  %v2049_v47 = vadd.f32 %v7318_v40, %v2048_v44  ;;  %v5779_v48 = vpop.f32.mrb[114].mxu0  ;;  %v2657_v49 = vadd.f32 %v7318_v40, %v2656_v46  ;;  %v5931_v51 = vpop.f32.mrb[114].mxu1 }
 0x1d9   :  { %v2912_v52 = vmax.f32 %v2057_v43, 0.0  ;;  %v2060_v53 = vadd.f32 %v7318_v40, %v5779_v48  ;;  %v2051_v54 = vpop.f32.mrb[115].mxu0  ;;  %v3064_v55 = vmax.f32 %v2665_v45, 0.0  ;;  %v2668_v56 = vadd.f32 %v7318_v40, %v5931_v51  ;;  %v2659_v57 = vpop.f32.mrb[115].mxu1 }
 0x1da   :  { %v2910_v58 = vmax.f32 %v2049_v47, 0.0  ;;  %v2052_v59 = vadd.f32 %v7318_v40, %v2051_v54  ;;  %v3062_v60 = vmax.f32 %v2657_v49, 0.0  ;;  %v2660_v61 = vadd.f32 %v7318_v40, %v2659_v57 }
 0x1db   :  { %v5317_v50 = vpack.c.bf16 %v2912_v52, %v2912_v52  ;;  %v2913_v62 = vmax.f32 %v2060_v53, 0.0  ;;  %v5469_v63 = vpack.c.bf16 %v3064_v55, %v3064_v55  ;;  %v3065_v0 = vmax.f32 %v2668_v56, 0.0 }
 0x1dc   :  { %v5315_v1 = vpack.c.bf16 %v2910_v58, %v2910_v58  ;;  %v2911_v3 = vmax.f32 %v2052_v59, 0.0  ;;  %v5467_v4 = vpack.c.bf16 %v3062_v60, %v3062_v60  ;;  %v3063_v5 = vmax.f32 %v2660_v61, 0.0 }
 0x1dd   :  { %4409 = vst.msk [vmem:[%s7865_s3 + $0x1c8] sm:$0xf] %vm4294_vm1, %v5317_v50  ;;  %v5318_v6 = vpack.c.bf16 %v2913_v62, %v2913_v62  ;;  %4561 = vst.msk [vmem:[%s7865_s3 + $0x428] sm:$0xf] %vm4294_vm1, %v5469_v63  ;;  %v5470_v7 = vpack.c.bf16 %v3065_v0, %v3065_v0 }
 0x1de   :  { %4407 = vst.msk [vmem:[%s7865_s3 + $0x1c0] sm:$0xf] %vm4294_vm1, %v5315_v1  ;;  %v5316_v8 = vpack.c.bf16 %v2911_v3, %v2911_v3  ;;  %4559 = vst.msk [vmem:[%s7865_s3 + $0x420] sm:$0xf] %vm4294_vm1, %v5467_v4  ;;  %v5782_v9 = vpop.f32.mrb[116].mxu0  ;;  %v5468_v10 = vpack.c.bf16 %v3063_v5, %v3063_v5  ;;  %v5934_v11 = vpop.f32.mrb[116].mxu1 }
 0x1df   :  { %4410 = vst.msk [vmem:[%s7865_s3 + $0x1cc] sm:$0xf] %vm4294_vm1, %v5318_v6  ;;  %4562 = vst.msk [vmem:[%s7865_s3 + $0x42c] sm:$0xf] %vm4294_vm1, %v5470_v7  ;;  %v2073_v12 = vadd.f32 %v7318_v40, %v5782_v9  ;;  %v2064_v13 = vpop.f32.mrb[117].mxu0  ;;  %v2681_v14 = vadd.f32 %v7318_v40, %v5934_v11  ;;  %v2672_v15 = vpop.f32.mrb[117].mxu1 }
 0x1e0   :  { %4408 = vst.msk [vmem:[%s7865_s3 + $0x1c4] sm:$0xf] %vm4294_vm1, %v5316_v8  ;;  %4560 = vst.msk [vmem:[%s7865_s3 + $0x424] sm:$0xf] %vm4294_vm1, %v5468_v10  ;;  %v2065_v16 = vadd.f32 %v7318_v40, %v2064_v13  ;;  %v5783_v17 = vpop.f32.mrb[118].mxu0  ;;  %v2673_v18 = vadd.f32 %v7318_v40, %v2672_v15  ;;  %v5935_v19 = vpop.f32.mrb[118].mxu1 }
 0x1e1   :  { %v2916_v20 = vmax.f32 %v2073_v12, 0.0  ;;  %v2076_v21 = vadd.f32 %v7318_v40, %v5783_v17  ;;  %v2067_v22 = vpop.f32.mrb[119].mxu0  ;;  %v3068_v23 = vmax.f32 %v2681_v14, 0.0  ;;  %v2684_v24 = vadd.f32 %v7318_v40, %v5935_v19  ;;  %v2675_v25 = vpop.f32.mrb[119].mxu1 }
 0x1e2   :  { %v2914_v26 = vmax.f32 %v2065_v16, 0.0  ;;  %v2068_v27 = vadd.f32 %v7318_v40, %v2067_v22  ;;  %v3066_v28 = vmax.f32 %v2673_v18, 0.0  ;;  %v2676_v29 = vadd.f32 %v7318_v40, %v2675_v25 }
 0x1e3   :  { %v5321_v30 = vpack.c.bf16 %v2916_v20, %v2916_v20  ;;  %v2917_v31 = vmax.f32 %v2076_v21, 0.0  ;;  %v5473_v32 = vpack.c.bf16 %v3068_v23, %v3068_v23  ;;  %v3069_v33 = vmax.f32 %v2684_v24, 0.0 }
 0x1e4   :  { %v5319_v34 = vpack.c.bf16 %v2914_v26, %v2914_v26  ;;  %v2915_v35 = vmax.f32 %v2068_v27, 0.0  ;;  %v5471_v2 = vpack.c.bf16 %v3066_v28, %v3066_v28  ;;  %v3067_v36 = vmax.f32 %v2676_v29, 0.0 }
 0x1e5   :  { %4413 = vst.msk [vmem:[%s7865_s3 + $0x1d8] sm:$0xf] %vm4294_vm1, %v5321_v30  ;;  %v5322_v37 = vpack.c.bf16 %v2917_v31, %v2917_v31  ;;  %4565 = vst.msk [vmem:[%s7865_s3 + $0x438] sm:$0xf] %vm4294_vm1, %v5473_v32  ;;  %v5474_v38 = vpack.c.bf16 %v3069_v33, %v3069_v33 }
 0x1e6   :  { %4411 = vst.msk [vmem:[%s7865_s3 + $0x1d0] sm:$0xf] %vm4294_vm1, %v5319_v34  ;;  %v5320_v39 = vpack.c.bf16 %v2915_v35, %v2915_v35  ;;  %4563 = vst.msk [vmem:[%s7865_s3 + $0x430] sm:$0xf] %vm4294_vm1, %v5471_v2  ;;  %v5786_v41 = vpop.f32.mrb[120].mxu0  ;;  %v5472_v42 = vpack.c.bf16 %v3067_v36, %v3067_v36  ;;  %v5938_v43 = vpop.f32.mrb[120].mxu1 }
 0x1e7   :  { %4414 = vst.msk [vmem:[%s7865_s3 + $0x1dc] sm:$0xf] %vm4294_vm1, %v5322_v37  ;;  %4566 = vst.msk [vmem:[%s7865_s3 + $0x43c] sm:$0xf] %vm4294_vm1, %v5474_v38  ;;  %v2089_v44 = vadd.f32 %v7318_v40, %v5786_v41  ;;  %v2080_v45 = vpop.f32.mrb[121].mxu0  ;;  %v2697_v46 = vadd.f32 %v7318_v40, %v5938_v43  ;;  %v2688_v47 = vpop.f32.mrb[121].mxu1 }
 0x1e8   :  { %4412 = vst.msk [vmem:[%s7865_s3 + $0x1d4] sm:$0xf] %vm4294_vm1, %v5320_v39  ;;  %4564 = vst.msk [vmem:[%s7865_s3 + $0x434] sm:$0xf] %vm4294_vm1, %v5472_v42  ;;  %v2081_v48 = vadd.f32 %v7318_v40, %v2080_v45  ;;  %v5787_v49 = vpop.f32.mrb[122].mxu0  ;;  %v2689_v51 = vadd.f32 %v7318_v40, %v2688_v47  ;;  %v5939_v52 = vpop.f32.mrb[122].mxu1 }
 0x1e9   :  { %v2920_v53 = vmax.f32 %v2089_v44, 0.0  ;;  %v2092_v54 = vadd.f32 %v7318_v40, %v5787_v49  ;;  %v2083_v55 = vpop.f32.mrb[123].mxu0  ;;  %v3072_v56 = vmax.f32 %v2697_v46, 0.0  ;;  %v2700_v57 = vadd.f32 %v7318_v40, %v5939_v52  ;;  %v2691_v58 = vpop.f32.mrb[123].mxu1 }
 0x1ea   :  { %v2918_v59 = vmax.f32 %v2081_v48, 0.0  ;;  %v2084_v60 = vadd.f32 %v7318_v40, %v2083_v55  ;;  %v3070_v61 = vmax.f32 %v2689_v51, 0.0  ;;  %v2692_v50 = vadd.f32 %v7318_v40, %v2691_v58 }
 0x1eb   :  { %v5325_v62 = vpack.c.bf16 %v2920_v53, %v2920_v53  ;;  %v2921_v63 = vmax.f32 %v2092_v54, 0.0  ;;  %v5477_v0 = vpack.c.bf16 %v3072_v56, %v3072_v56  ;;  %v3073_v1 = vmax.f32 %v2700_v57, 0.0 }
 0x1ec   :  { %v5323_v3 = vpack.c.bf16 %v2918_v59, %v2918_v59  ;;  %v2919_v4 = vmax.f32 %v2084_v60, 0.0  ;;  %v5475_v5 = vpack.c.bf16 %v3070_v61, %v3070_v61  ;;  %v3071_v6 = vmax.f32 %v2692_v50, 0.0 }
 0x1ed   :  { %4417 = vst.msk [vmem:[%s7865_s3 + $0x1e8] sm:$0xf] %vm4294_vm1, %v5325_v62  ;;  %v5326_v7 = vpack.c.bf16 %v2921_v63, %v2921_v63  ;;  %4569 = vst.msk [vmem:[%s7865_s3 + $0x448] sm:$0xf] %vm4294_vm1, %v5477_v0  ;;  %v5478_v8 = vpack.c.bf16 %v3073_v1, %v3073_v1 }
 0x1ee   :  { %4415 = vst.msk [vmem:[%s7865_s3 + $0x1e0] sm:$0xf] %vm4294_vm1, %v5323_v3  ;;  %v5324_v9 = vpack.c.bf16 %v2919_v4, %v2919_v4  ;;  %4567 = vst.msk [vmem:[%s7865_s3 + $0x440] sm:$0xf] %vm4294_vm1, %v5475_v5  ;;  %v5790_v10 = vpop.f32.mrb[124].mxu0  ;;  %v5476_v11 = vpack.c.bf16 %v3071_v6, %v3071_v6  ;;  %v5942_v12 = vpop.f32.mrb[124].mxu1 }
 0x1ef   :  { %4418 = vst.msk [vmem:[%s7865_s3 + $0x1ec] sm:$0xf] %vm4294_vm1, %v5326_v7  ;;  %4570 = vst.msk [vmem:[%s7865_s3 + $0x44c] sm:$0xf] %vm4294_vm1, %v5478_v8  ;;  %v2105_v13 = vadd.f32 %v7318_v40, %v5790_v10  ;;  %v2096_v14 = vpop.f32.mrb[125].mxu0  ;;  %v2713_v15 = vadd.f32 %v7318_v40, %v5942_v12  ;;  %v2704_v16 = vpop.f32.mrb[125].mxu1 }
 0x1f0   :  { %4416 = vst.msk [vmem:[%s7865_s3 + $0x1e4] sm:$0xf] %vm4294_vm1, %v5324_v9  ;;  %4568 = vst.msk [vmem:[%s7865_s3 + $0x444] sm:$0xf] %vm4294_vm1, %v5476_v11  ;;  %v2097_v17 = vadd.f32 %v7318_v40, %v2096_v14  ;;  %v5791_v18 = vpop.f32.mrb[126].mxu0  ;;  %v2705_v19 = vadd.f32 %v7318_v40, %v2704_v16  ;;  %v5943_v20 = vpop.f32.mrb[126].mxu1 }
 0x1f1   :  { %v2924_v21 = vmax.f32 %v2105_v13, 0.0  ;;  %v2108_v22 = vadd.f32 %v7318_v40, %v5791_v18  ;;  %v2099_v23 = vpop.f32.mrb[127].mxu0  ;;  %v3076_v24 = vmax.f32 %v2713_v15, 0.0  ;;  %v2716_v25 = vadd.f32 %v7318_v40, %v5943_v20  ;;  %v2707_v26 = vpop.f32.mrb[127].mxu1 }
 0x1f2   :  { %v2922_v27 = vmax.f32 %v2097_v17, 0.0  ;;  %v2100_v28 = vadd.f32 %v7318_v40, %v2099_v23  ;;  %v3074_v29 = vmax.f32 %v2705_v19, 0.0  ;;  %v2708_v30 = vadd.f32 %v7318_v40, %v2707_v26 }
 0x1f3   :  { %v5329_v31 = vpack.c.bf16 %v2924_v21, %v2924_v21  ;;  %v2925_v32 = vmax.f32 %v2108_v22, 0.0  ;;  %v5481_v33 = vpack.c.bf16 %v3076_v24, %v3076_v24  ;;  %v3077_v34 = vmax.f32 %v2716_v25, 0.0 }
 0x1f4   :  { %v5327_v35 = vpack.c.bf16 %v2922_v27, %v2922_v27  ;;  %v2923_v2 = vmax.f32 %v2100_v28, 0.0  ;;  %v5479_v36 = vpack.c.bf16 %v3074_v29, %v3074_v29  ;;  %v3075_v37 = vmax.f32 %v2708_v30, 0.0 }
 0x1f5   :  { %4421 = vst.msk [vmem:[%s7865_s3 + $0x1f8] sm:$0xf] %vm4294_vm1, %v5329_v31  ;;  %v5330_v38 = vpack.c.bf16 %v2925_v32, %v2925_v32  ;;  %4573 = vst.msk [vmem:[%s7865_s3 + $0x458] sm:$0xf] %vm4294_vm1, %v5481_v33  ;;  %v5482_v39 = vpack.c.bf16 %v3077_v34, %v3077_v34 }
 0x1f6   :  { %4419 = vst.msk [vmem:[%s7865_s3 + $0x1f0] sm:$0xf] %vm4294_vm1, %v5327_v35  ;;  %v5328_v41 = vpack.c.bf16 %v2923_v2, %v2923_v2  ;;  %4571 = vst.msk [vmem:[%s7865_s3 + $0x450] sm:$0xf] %vm4294_vm1, %v5479_v36  ;;  %v5794_v42 = vpop.f32.mrb[128].mxu0  ;;  %v5480_v43 = vpack.c.bf16 %v3075_v37, %v3075_v37  ;;  %v5946_v44 = vpop.f32.mrb[128].mxu1 }
 0x1f7   :  { %4422 = vst.msk [vmem:[%s7865_s3 + $0x1fc] sm:$0xf] %vm4294_vm1, %v5330_v38  ;;  %4574 = vst.msk [vmem:[%s7865_s3 + $0x45c] sm:$0xf] %vm4294_vm1, %v5482_v39  ;;  %v2121_v45 = vadd.f32 %v7318_v40, %v5794_v42  ;;  %v2112_v46 = vpop.f32.mrb[129].mxu0  ;;  %v2729_v47 = vadd.f32 %v7318_v40, %v5946_v44  ;;  %v2720_v48 = vpop.f32.mrb[129].mxu1 }
 0x1f8   :  { %4420 = vst.msk [vmem:[%s7865_s3 + $0x1f4] sm:$0xf] %vm4294_vm1, %v5328_v41  ;;  %4572 = vst.msk [vmem:[%s7865_s3 + $0x454] sm:$0xf] %vm4294_vm1, %v5480_v43  ;;  %v2113_v49 = vadd.f32 %v7318_v40, %v2112_v46  ;;  %v5795_v51 = vpop.f32.mrb[130].mxu0  ;;  %v2721_v52 = vadd.f32 %v7318_v40, %v2720_v48  ;;  %v5947_v53 = vpop.f32.mrb[130].mxu1 }
 0x1f9   :  { %v2928_v54 = vmax.f32 %v2121_v45, 0.0  ;;  %v2124_v55 = vadd.f32 %v7318_v40, %v5795_v51  ;;  %v2115_v56 = vpop.f32.mrb[131].mxu0  ;;  %v3080_v57 = vmax.f32 %v2729_v47, 0.0  ;;  %v2732_v58 = vadd.f32 %v7318_v40, %v5947_v53  ;;  %v2723_v59 = vpop.f32.mrb[131].mxu1 }
 0x1fa   :  { %v2926_v60 = vmax.f32 %v2113_v49, 0.0  ;;  %v2116_v61 = vadd.f32 %v7318_v40, %v2115_v56  ;;  %v3078_v50 = vmax.f32 %v2721_v52, 0.0  ;;  %v2724_v62 = vadd.f32 %v7318_v40, %v2723_v59 }
 0x1fb   :  { %v5333_v63 = vpack.c.bf16 %v2928_v54, %v2928_v54  ;;  %v2929_v0 = vmax.f32 %v2124_v55, 0.0  ;;  %v5485_v1 = vpack.c.bf16 %v3080_v57, %v3080_v57  ;;  %v3081_v3 = vmax.f32 %v2732_v58, 0.0 }
 0x1fc   :  { %v5331_v4 = vpack.c.bf16 %v2926_v60, %v2926_v60  ;;  %v2927_v5 = vmax.f32 %v2116_v61, 0.0  ;;  %v5483_v6 = vpack.c.bf16 %v3078_v50, %v3078_v50  ;;  %v3079_v7 = vmax.f32 %v2724_v62, 0.0 }
 0x1fd   :  { %4425 = vst.msk [vmem:[%s7865_s3 + $0x208] sm:$0xf] %vm4294_vm1, %v5333_v63  ;;  %v5334_v8 = vpack.c.bf16 %v2929_v0, %v2929_v0  ;;  %4577 = vst.msk [vmem:[%s7865_s3 + $0x468] sm:$0xf] %vm4294_vm1, %v5485_v1  ;;  %v5486_v9 = vpack.c.bf16 %v3081_v3, %v3081_v3 }
 0x1fe   :  { %4423 = vst.msk [vmem:[%s7865_s3 + $0x200] sm:$0xf] %vm4294_vm1, %v5331_v4  ;;  %v5332_v10 = vpack.c.bf16 %v2927_v5, %v2927_v5  ;;  %4575 = vst.msk [vmem:[%s7865_s3 + $0x460] sm:$0xf] %vm4294_vm1, %v5483_v6  ;;  %v5798_v11 = vpop.f32.mrb[132].mxu0  ;;  %v5484_v12 = vpack.c.bf16 %v3079_v7, %v3079_v7  ;;  %v5950_v13 = vpop.f32.mrb[132].mxu1 }
 0x1ff   :  { %4426 = vst.msk [vmem:[%s7865_s3 + $0x20c] sm:$0xf] %vm4294_vm1, %v5334_v8  ;;  %4578 = vst.msk [vmem:[%s7865_s3 + $0x46c] sm:$0xf] %vm4294_vm1, %v5486_v9  ;;  %v2137_v14 = vadd.f32 %v7318_v40, %v5798_v11  ;;  %v2128_v15 = vpop.f32.mrb[133].mxu0  ;;  %v2745_v16 = vadd.f32 %v7318_v40, %v5950_v13  ;;  %v2736_v17 = vpop.f32.mrb[133].mxu1 }
 0x200   :  { %4424 = vst.msk [vmem:[%s7865_s3 + $0x204] sm:$0xf] %vm4294_vm1, %v5332_v10  ;;  %4576 = vst.msk [vmem:[%s7865_s3 + $0x464] sm:$0xf] %vm4294_vm1, %v5484_v12  ;;  %v2129_v18 = vadd.f32 %v7318_v40, %v2128_v15  ;;  %v5799_v19 = vpop.f32.mrb[134].mxu0  ;;  %v2737_v20 = vadd.f32 %v7318_v40, %v2736_v17  ;;  %v5951_v21 = vpop.f32.mrb[134].mxu1 }
 0x201   :  { %v2932_v22 = vmax.f32 %v2137_v14, 0.0  ;;  %v2140_v23 = vadd.f32 %v7318_v40, %v5799_v19  ;;  %v2131_v24 = vpop.f32.mrb[135].mxu0  ;;  %v3084_v25 = vmax.f32 %v2745_v16, 0.0  ;;  %v2748_v26 = vadd.f32 %v7318_v40, %v5951_v21  ;;  %v2739_v27 = vpop.f32.mrb[135].mxu1 }
 0x202   :  { %v2930_v28 = vmax.f32 %v2129_v18, 0.0  ;;  %v2132_v29 = vadd.f32 %v7318_v40, %v2131_v24  ;;  %v3082_v30 = vmax.f32 %v2737_v20, 0.0  ;;  %v2740_v31 = vadd.f32 %v7318_v40, %v2739_v27 }
 0x203   :  { %v5337_v32 = vpack.c.bf16 %v2932_v22, %v2932_v22  ;;  %v2933_v33 = vmax.f32 %v2140_v23, 0.0  ;;  %v5489_v34 = vpack.c.bf16 %v3084_v25, %v3084_v25  ;;  %v3085_v35 = vmax.f32 %v2748_v26, 0.0 }
 0x204   :  { %v5335_v2 = vpack.c.bf16 %v2930_v28, %v2930_v28  ;;  %v2931_v36 = vmax.f32 %v2132_v29, 0.0  ;;  %v5487_v37 = vpack.c.bf16 %v3082_v30, %v3082_v30  ;;  %v3083_v38 = vmax.f32 %v2740_v31, 0.0 }
 0x205   :  { %4429 = vst.msk [vmem:[%s7865_s3 + $0x218] sm:$0xf] %vm4294_vm1, %v5337_v32  ;;  %v5338_v39 = vpack.c.bf16 %v2933_v33, %v2933_v33  ;;  %4581 = vst.msk [vmem:[%s7865_s3 + $0x478] sm:$0xf] %vm4294_vm1, %v5489_v34  ;;  %v5490_v41 = vpack.c.bf16 %v3085_v35, %v3085_v35 }
 0x206   :  { %4427 = vst.msk [vmem:[%s7865_s3 + $0x210] sm:$0xf] %vm4294_vm1, %v5335_v2  ;;  %v5336_v42 = vpack.c.bf16 %v2931_v36, %v2931_v36  ;;  %4579 = vst.msk [vmem:[%s7865_s3 + $0x470] sm:$0xf] %vm4294_vm1, %v5487_v37  ;;  %v5802_v43 = vpop.f32.mrb[136].mxu0  ;;  %v5488_v44 = vpack.c.bf16 %v3083_v38, %v3083_v38  ;;  %v5954_v45 = vpop.f32.mrb[136].mxu1 }
 0x207   :  { %4430 = vst.msk [vmem:[%s7865_s3 + $0x21c] sm:$0xf] %vm4294_vm1, %v5338_v39  ;;  %4582 = vst.msk [vmem:[%s7865_s3 + $0x47c] sm:$0xf] %vm4294_vm1, %v5490_v41  ;;  %v2153_v46 = vadd.f32 %v7318_v40, %v5802_v43  ;;  %v2144_v47 = vpop.f32.mrb[137].mxu0  ;;  %v2761_v48 = vadd.f32 %v7318_v40, %v5954_v45  ;;  %v2752_v49 = vpop.f32.mrb[137].mxu1 }
 0x208   :  { %4428 = vst.msk [vmem:[%s7865_s3 + $0x214] sm:$0xf] %vm4294_vm1, %v5336_v42  ;;  %4580 = vst.msk [vmem:[%s7865_s3 + $0x474] sm:$0xf] %vm4294_vm1, %v5488_v44  ;;  %v2145_v51 = vadd.f32 %v7318_v40, %v2144_v47  ;;  %v5803_v52 = vpop.f32.mrb[138].mxu0  ;;  %v2753_v53 = vadd.f32 %v7318_v40, %v2752_v49  ;;  %v5955_v54 = vpop.f32.mrb[138].mxu1 }
 0x209   :  { %v2936_v55 = vmax.f32 %v2153_v46, 0.0  ;;  %v2156_v56 = vadd.f32 %v7318_v40, %v5803_v52  ;;  %v2147_v57 = vpop.f32.mrb[139].mxu0  ;;  %v3088_v58 = vmax.f32 %v2761_v48, 0.0  ;;  %v2764_v59 = vadd.f32 %v7318_v40, %v5955_v54  ;;  %v2755_v60 = vpop.f32.mrb[139].mxu1 }
 0x20a   :  { %v2934_v61 = vmax.f32 %v2145_v51, 0.0  ;;  %v2148_v50 = vadd.f32 %v7318_v40, %v2147_v57  ;;  %v3086_v62 = vmax.f32 %v2753_v53, 0.0  ;;  %v2756_v63 = vadd.f32 %v7318_v40, %v2755_v60 }
 0x20b   :  { %v5341_v0 = vpack.c.bf16 %v2936_v55, %v2936_v55  ;;  %v2937_v1 = vmax.f32 %v2156_v56, 0.0  ;;  %v5493_v3 = vpack.c.bf16 %v3088_v58, %v3088_v58  ;;  %v3089_v4 = vmax.f32 %v2764_v59, 0.0 }
 0x20c   :  { %v5339_v5 = vpack.c.bf16 %v2934_v61, %v2934_v61  ;;  %v2935_v6 = vmax.f32 %v2148_v50, 0.0  ;;  %v5491_v7 = vpack.c.bf16 %v3086_v62, %v3086_v62  ;;  %v3087_v8 = vmax.f32 %v2756_v63, 0.0 }
 0x20d   :  { %4433 = vst.msk [vmem:[%s7865_s3 + $0x228] sm:$0xf] %vm4294_vm1, %v5341_v0  ;;  %v5342_v9 = vpack.c.bf16 %v2937_v1, %v2937_v1  ;;  %4585 = vst.msk [vmem:[%s7865_s3 + $0x488] sm:$0xf] %vm4294_vm1, %v5493_v3  ;;  %v5494_v10 = vpack.c.bf16 %v3089_v4, %v3089_v4 }
 0x20e   :  { %4431 = vst.msk [vmem:[%s7865_s3 + $0x220] sm:$0xf] %vm4294_vm1, %v5339_v5  ;;  %v5340_v11 = vpack.c.bf16 %v2935_v6, %v2935_v6  ;;  %4583 = vst.msk [vmem:[%s7865_s3 + $0x480] sm:$0xf] %vm4294_vm1, %v5491_v7  ;;  %v5806_v12 = vpop.f32.mrb[140].mxu0  ;;  %v5492_v13 = vpack.c.bf16 %v3087_v8, %v3087_v8  ;;  %v5958_v14 = vpop.f32.mrb[140].mxu1 }
 0x20f   :  { %4434 = vst.msk [vmem:[%s7865_s3 + $0x22c] sm:$0xf] %vm4294_vm1, %v5342_v9  ;;  %4586 = vst.msk [vmem:[%s7865_s3 + $0x48c] sm:$0xf] %vm4294_vm1, %v5494_v10  ;;  %v2169_v15 = vadd.f32 %v7318_v40, %v5806_v12  ;;  %v2160_v16 = vpop.f32.mrb[141].mxu0  ;;  %v2777_v17 = vadd.f32 %v7318_v40, %v5958_v14  ;;  %v2768_v18 = vpop.f32.mrb[141].mxu1 }
 0x210   :  { %4432 = vst.msk [vmem:[%s7865_s3 + $0x224] sm:$0xf] %vm4294_vm1, %v5340_v11  ;;  %4584 = vst.msk [vmem:[%s7865_s3 + $0x484] sm:$0xf] %vm4294_vm1, %v5492_v13  ;;  %v2161_v19 = vadd.f32 %v7318_v40, %v2160_v16  ;;  %v5807_v20 = vpop.f32.mrb[142].mxu0  ;;  %v2769_v21 = vadd.f32 %v7318_v40, %v2768_v18  ;;  %v5959_v22 = vpop.f32.mrb[142].mxu1 }
 0x211   :  { %v2940_v23 = vmax.f32 %v2169_v15, 0.0  ;;  %v2172_v24 = vadd.f32 %v7318_v40, %v5807_v20  ;;  %v2163_v25 = vpop.f32.mrb[143].mxu0  ;;  %v3092_v26 = vmax.f32 %v2777_v17, 0.0  ;;  %v2780_v27 = vadd.f32 %v7318_v40, %v5959_v22  ;;  %v2771_v28 = vpop.f32.mrb[143].mxu1  ;;  %v6131_v11 = vld [vmem:[%s7864_s2] ss:$0 sm:$0xff] }
 0x212   :  { %v2938_v29 = vmax.f32 %v2161_v19, 0.0  ;;  %v2164_v30 = vadd.f32 %v7318_v40, %v2163_v25  ;;  %v3090_v31 = vmax.f32 %v2769_v21, 0.0  ;;  %v2772_v32 = vadd.f32 %v7318_v40, %v2771_v28 }
 0x213   :  { %v5345_v33 = vpack.c.bf16 %v2940_v23, %v2940_v23  ;;  %v2941_v34 = vmax.f32 %v2172_v24, 0.0  ;;  %v5497_v35 = vpack.c.bf16 %v3092_v26, %v3092_v26  ;;  %v3093_v2 = vmax.f32 %v2780_v27, 0.0 }
 0x214   :  { %v5343_v36 = vpack.c.bf16 %v2938_v29, %v2938_v29  ;;  %v2939_v37 = vmax.f32 %v2164_v30, 0.0  ;;  %v5495_v38 = vpack.c.bf16 %v3090_v31, %v3090_v31  ;;  %v3091_v39 = vmax.f32 %v2772_v32, 0.0 }
 0x215   :  { %4437 = vst.msk [vmem:[%s7865_s3 + $0x238] sm:$0xf] %vm4294_vm1, %v5345_v33  ;;  %v5346_v41 = vpack.c.bf16 %v2941_v34, %v2941_v34  ;;  %4589 = vst.msk [vmem:[%s7865_s3 + $0x498] sm:$0xf] %vm4294_vm1, %v5497_v35  ;;  %v5498_v42 = vpack.c.bf16 %v3093_v2, %v3093_v2 }
 0x216   :  { %4435 = vst.msk [vmem:[%s7865_s3 + $0x230] sm:$0xf] %vm4294_vm1, %v5343_v36  ;;  %v5344_v43 = vpack.c.bf16 %v2939_v37, %v2939_v37  ;;  %4587 = vst.msk [vmem:[%s7865_s3 + $0x490] sm:$0xf] %vm4294_vm1, %v5495_v38  ;;  %v5810_v44 = vpop.f32.mrb[144].mxu0  ;;  %v5496_v45 = vpack.c.bf16 %v3091_v39, %v3091_v39  ;;  %v5962_v46 = vpop.f32.mrb[144].mxu1 }
 0x217   :  { %4438 = vst.msk [vmem:[%s7865_s3 + $0x23c] sm:$0xf] %vm4294_vm1, %v5346_v41  ;;  %4590 = vst.msk [vmem:[%s7865_s3 + $0x49c] sm:$0xf] %vm4294_vm1, %v5498_v42  ;;  %v2185_v47 = vadd.f32 %v7318_v40, %v5810_v44  ;;  %v2176_v48 = vpop.f32.mrb[145].mxu0  ;;  %v2793_v49 = vadd.f32 %v7318_v40, %v5962_v46  ;;  %v2784_v51 = vpop.f32.mrb[145].mxu1 }
 0x218   :  { %4436 = vst.msk [vmem:[%s7865_s3 + $0x234] sm:$0xf] %vm4294_vm1, %v5344_v43  ;;  %4588 = vst.msk [vmem:[%s7865_s3 + $0x494] sm:$0xf] %vm4294_vm1, %v5496_v45  ;;  %v2177_v52 = vadd.f32 %v7318_v40, %v2176_v48  ;;  %v5811_v53 = vpop.f32.mrb[146].mxu0  ;;  %v2785_v54 = vadd.f32 %v7318_v40, %v2784_v51  ;;  %v5963_v55 = vpop.f32.mrb[146].mxu1 }
 0x219   :  { %v2944_v56 = vmax.f32 %v2185_v47, 0.0  ;;  %v2188_v57 = vadd.f32 %v7318_v40, %v5811_v53  ;;  %v2179_v58 = vpop.f32.mrb[147].mxu0  ;;  %v3096_v59 = vmax.f32 %v2793_v49, 0.0  ;;  %v2787_v60 = vpop.f32.mrb[147].mxu1 }
 0x21a   :  { %v2942_v61 = vmax.f32 %v2177_v52, 0.0  ;;  %v2180_v50 = vadd.f32 %v7318_v40, %v2179_v58  ;;  %v3094_v62 = vmax.f32 %v2785_v54, 0.0  ;;  %v2788_v63 = vadd.f32 %v7318_v40, %v2787_v60 }
 0x21b   :  { %v5349_v0 = vpack.c.bf16 %v2944_v56, %v2944_v56  ;;  %v2945_v1 = vmax.f32 %v2188_v57, 0.0  ;;  %v5501_v3 = vpack.c.bf16 %v3096_v59, %v3096_v59 }
 0x21c   :  { %v5347_v4 = vpack.c.bf16 %v2942_v61, %v2942_v61  ;;  %v2943_v5 = vmax.f32 %v2180_v50, 0.0  ;;  %v5499_v6 = vpack.c.bf16 %v3094_v62, %v3094_v62  ;;  %v3095_v7 = vmax.f32 %v2788_v63, 0.0 }
 0x21d   :  { %4441 = vst.msk [vmem:[%s7865_s3 + $0x248] sm:$0xf] %vm4294_vm1, %v5349_v0  ;;  %v5350_v8 = vpack.c.bf16 %v2945_v1, %v2945_v1  ;;  %4593 = vst.msk [vmem:[%s7865_s3 + $0x4a8] sm:$0xf] %vm4294_vm1, %v5501_v3 }
 0x21e   :  { %4439 = vst.msk [vmem:[%s7865_s3 + $0x240] sm:$0xf] %vm4294_vm1, %v5347_v4  ;;  %v5348_v40 = vpack.c.bf16 %v2943_v5, %v2943_v5  ;;  %4591 = vst.msk [vmem:[%s7865_s3 + $0x4a0] sm:$0xf] %vm4294_vm1, %v5499_v6  ;;  %v5814_v9 = vpop.f32.mrb[148].mxu0  ;;  %v5500_v10 = vpack.c.bf16 %v3095_v7, %v3095_v7 }
 0x21f   :  { %4442 = vst.msk [vmem:[%s7865_s3 + $0x24c] sm:$0xf] %vm4294_vm1, %v5350_v8  ;;  %v2201_v12 = vadd.f32 %v6131_v11, %v5814_v9  ;;  %v2192_v13 = vpop.f32.mrb[149].mxu0 }
 0x220   :  { %4440 = vst.msk [vmem:[%s7865_s3 + $0x244] sm:$0xf] %vm4294_vm1, %v5348_v40  ;;  %4592 = vst.msk [vmem:[%s7865_s3 + $0x4a4] sm:$0xf] %vm4294_vm1, %v5500_v10  ;;  %v2193_v14 = vadd.f32 %v6131_v11, %v2192_v13  ;;  %v5815_v15 = vpop.f32.mrb[150].mxu0 }
 0x221   :  { %v2948_v16 = vmax.f32 %v2201_v12, 0.0  ;;  %v2204_v17 = vadd.f32 %v6131_v11, %v5815_v15  ;;  %v2195_v18 = vpop.f32.mrb[151].mxu0 }
 0x222   :  { %v2946_v19 = vmax.f32 %v2193_v14, 0.0  ;;  %v2196_v20 = vadd.f32 %v6131_v11, %v2195_v18 }
 0x223   :  { %v5353_v21 = vpack.c.bf16 %v2948_v16, %v2948_v16  ;;  %v2949_v22 = vmax.f32 %v2204_v17, 0.0 }
 0x224   :  { %v5351_v23 = vpack.c.bf16 %v2946_v19, %v2946_v19  ;;  %v2947_v24 = vmax.f32 %v2196_v20, 0.0 }
 0x225   :  { %4445 = vst.msk [vmem:[%s7865_s3 + $0x258] sm:$0xf] %vm4294_vm1, %v5353_v21  ;;  %v5354_v25 = vpack.c.bf16 %v2949_v22, %v2949_v22 }
 0x226   :  { %4443 = vst.msk [vmem:[%s7865_s3 + $0x250] sm:$0xf] %vm4294_vm1, %v5351_v23  ;;  %v5352_v26 = vpack.c.bf16 %v2947_v24, %v2947_v24 }
 0x227   :  { %4446 = vst.msk [vmem:[%s7865_s3 + $0x25c] sm:$0xf] %vm4294_vm1, %v5354_v25 }
 0x228   :  { %4444 = vst.msk [vmem:[%s7865_s3 + $0x254] sm:$0xf] %vm4294_vm1, %v5352_v26 }
 0x229   :  { %4598 = vsyncpa [#allocation3], 1 }

// kernel: value_network_forward.6
= control target key start
LH: loop header
LB: loop body
LE: loop exit
PB: predicated region body
PF: predicated region fallthrough
CT: control target
= control target key end

     0   :  { %v2726_v0 = vmov 0   ;;  %vm1994_vm0 = vcmask 519168   ;;  %s3611_s1 = inlined_call_operand.vmem [shape: bf16[512,64], index: 1, kind: input, shape index: {}]   ;;  %s3612_s0 = inlined_call_operand.vmem [shape: bf16[528,512], index: 0, kind: input, shape index: {}]   ;;  %s3613_s2 = inlined_call_operand.vmem [shape: f32[1,64], index: 2, kind: input, shape index: {}]   ;;  %s3614_s3 = inlined_call_operand.vmem [shape: bf16[528,64], index: 3, kind: output, shape index: {}]  }
   0x1   :  { %1070 = vmatprep.subr.bf16.mxu1 %v2726_v0  ;;  %1367 = vmatprep.subr.bf16.mxu0 %v2726_v0  ;;  %v2495_v1 = vld [vmem:[%s3611_s1] sm:$0xff]   ;;  %v2497_v3 = vld [vmem:[%s3611_s1 + $0x8] sm:$0xff]   ;;  %v2499_v5 = vld [vmem:[%s3611_s1 + $0x10] sm:$0xff]  }
   0x2   :  { %v2496_v2 = vld [vmem:[%s3611_s1 + $0x80] sm:$0xff]   ;;  %1071 = vmatpush1.bf16.msra.mxu1 %v2495_v1  ;;  %v2498_v4 = vld [vmem:[%s3611_s1 + $0x88] sm:$0xff]   ;;  %v2500_v6 = vld [vmem:[%s3611_s1 + $0x90] sm:$0xff]  }
   0x3   :  { %1368 = vmatpush1.bf16.msra.mxu0 %v2496_v2  ;;  %1072 = vmatprep.subr.bf16.mxu1 %v2726_v0  ;;  %v2501_v7 = vld [vmem:[%s3611_s1 + $0x18] sm:$0xff]   ;;  %v2503_v9 = vld [vmem:[%s3611_s1 + $0x20] sm:$0xff]   ;;  %v2505_v11 = vld [vmem:[%s3611_s1 + $0x28] sm:$0xff]  }
   0x4   :  { %1369 = vmatprep.subr.bf16.mxu0 %v2726_v0  ;;  %v2502_v8 = vld [vmem:[%s3611_s1 + $0x98] sm:$0xff]   ;;  %v2504_v10 = vld [vmem:[%s3611_s1 + $0xa0] sm:$0xff]   ;;  %v2506_v12 = vld [vmem:[%s3611_s1 + $0xa8] sm:$0xff]  }
   0x5   :  { %v2507_v13 = vld [vmem:[%s3611_s1 + $0x30] sm:$0xff]   ;;  %v2509_v15 = vld [vmem:[%s3611_s1 + $0x38] sm:$0xff]   ;;  %v2511_v17 = vld [vmem:[%s3611_s1 + $0x40] sm:$0xff]  }
   0x6   :  { %1073 = vmatpush1.bf16.msra.mxu1 %v2497_v3  ;;  %v2508_v14 = vld [vmem:[%s3611_s1 + $0xb0] sm:$0xff]   ;;  %v2510_v16 = vld [vmem:[%s3611_s1 + $0xb8] sm:$0xff]   ;;  %v2512_v18 = vld [vmem:[%s3611_s1 + $0xc0] sm:$0xff]  }
   0x7   :  { %1370 = vmatpush1.bf16.msra.mxu0 %v2498_v4  ;;  %1074 = vmatprep.subr.bf16.mxu1 %v2726_v0  ;;  %v2529_v19 = vld [vmem:[%s3612_s0 + $0x4] ss:$16 sps:$4 sm:$0xff]   ;;  %v2513_v20 = vld [vmem:[%s3611_s1 + $0x48] sm:$0xff]   ;;  %v2517_v25 = vld [vmem:[%s3611_s1 + $0x58] sm:$0xff]  }
   0x8   :  { %1371 = vmatprep.subr.bf16.mxu0 %v2726_v0  ;;  %v2532_v21 = vld [vmem:[%s3612_s0 + $0xc] ss:$16 sps:$4 sm:$0xff]   ;;  %1102 = vmatprep.mubr.bf16.mxu1 %v2529_v19  ;;  %v2515_v23 = vld [vmem:[%s3611_s1 + $0x50] sm:$0xff]   ;;  %v2519_v27 = vld [vmem:[%s3611_s1 + $0x60] sm:$0xff]  }
   0x9   :  { %v2514_v22 = vld [vmem:[%s3611_s1 + $0xc8] sm:$0xff]   ;;  %1399 = vmatprep.mubr.bf16.mxu0 %v2532_v21  ;;  %v2516_v24 = vld [vmem:[%s3611_s1 + $0xd0] sm:$0xff]   ;;  %v2518_v26 = vld [vmem:[%s3611_s1 + $0xd8] sm:$0xff]  }
   0xa   :  { %1075 = vmatpush1.bf16.msra.mxu1 %v2499_v5  ;;  %v2520_v28 = vld [vmem:[%s3611_s1 + $0xe0] sm:$0xff]   ;;  %v2521_v29 = vld [vmem:[%s3611_s1 + $0x68] sm:$0xff]   ;;  %v2523_v31 = vld [vmem:[%s3611_s1 + $0x70] sm:$0xff]  }
   0xb   :  { %1372 = vmatpush1.bf16.msra.mxu0 %v2500_v6  ;;  %1076 = vmatprep.subr.bf16.mxu1 %v2726_v0  ;;  %v2522_v30 = vld [vmem:[%s3611_s1 + $0xe8] sm:$0xff]   ;;  %v2524_v32 = vld [vmem:[%s3611_s1 + $0xf0] sm:$0xff]   ;;  %v2525_v33 = vld [vmem:[%s3611_s1 + $0x78] sm:$0xff]  }
   0xc   :  { %1373 = vmatprep.subr.bf16.mxu0 %v2726_v0  ;;  %v2526_v34 = vld [vmem:[%s3611_s1 + $0xf8] sm:$0xff]   ;;  %v2527_v35 = vld [vmem:[%s3612_s0] ss:$16 sps:$4 sm:$0xff]   ;;  %v2533_v37 = vld [vmem:[%s3612_s0 + $0x24] ss:$16 sps:$4 sm:$0xff]  }
   0xd   :  { %v2530_v36 = vld [vmem:[%s3612_s0 + $0x8] ss:$16 sps:$4 sm:$0xff]   ;;  %v2535_v38 = vld [vmem:[%s3612_s0 + $0x2c] ss:$16 sps:$4 sm:$0xff]   ;;  %v2537_v39 = vld [vmem:[%s3612_s0 + $0x20] ss:$16 sps:$4 sm:$0xff]  }
   0xe   :  { %1077 = vmatpush1.bf16.msra.mxu1 %v2501_v7  ;;  %v2538_v40 = vld [vmem:[%s3612_s0 + $0x28] ss:$16 sps:$4 sm:$0xff]   ;;  %v2539_v41 = vld [vmem:[%s3612_s0 + $0x44] ss:$16 sps:$4 sm:$0xff]   ;;  %v2541_v42 = vld [vmem:[%s3612_s0 + $0x4c] ss:$16 sps:$4 sm:$0xff]  }
   0xf   :  { %1374 = vmatpush1.bf16.msra.mxu0 %v2502_v8  ;;  %1078 = vmatprep.subr.bf16.mxu1 %v2726_v0  ;;  %v2543_v43 = vld [vmem:[%s3612_s0 + $0x40] ss:$16 sps:$4 sm:$0xff]   ;;  %v2544_v44 = vld [vmem:[%s3612_s0 + $0x48] ss:$16 sps:$4 sm:$0xff]   ;;  %v2545_v45 = vld [vmem:[%s3612_s0 + $0x64] ss:$16 sps:$4 sm:$0xff]  }
  0x10   :  { %1375 = vmatprep.subr.bf16.mxu0 %v2726_v0  ;;  %v2547_v46 = vld [vmem:[%s3612_s0 + $0x6c] ss:$16 sps:$4 sm:$0xff]   ;;  %v2549_v47 = vld [vmem:[%s3612_s0 + $0x60] ss:$16 sps:$4 sm:$0xff]   ;;  %v2550_v48 = vld [vmem:[%s3612_s0 + $0x68] ss:$16 sps:$4 sm:$0xff]  }
  0x11   :  { %v2551_v49 = vld [vmem:[%s3612_s0 + $0x84] ss:$16 sps:$4 sm:$0xff]   ;;  %v2553_v50 = vld [vmem:[%s3612_s0 + $0x8c] ss:$16 sps:$4 sm:$0xff]   ;;  %v2555_v51 = vld [vmem:[%s3612_s0 + $0x80] ss:$16 sps:$4 sm:$0xff]  }
  0x12   :  { %1079 = vmatpush1.bf16.msra.mxu1 %v2503_v9  ;;  %v2556_v52 = vld [vmem:[%s3612_s0 + $0x88] ss:$16 sps:$4 sm:$0xff]   ;;  %v2557_v53 = vld [vmem:[%s3612_s0 + $0xa4] ss:$16 sps:$4 sm:$0xff]   ;;  %v2559_v54 = vld [vmem:[%s3612_s0 + $0xac] ss:$16 sps:$4 sm:$0xff]  }
  0x13   :  { %1376 = vmatpush1.bf16.msra.mxu0 %v2504_v10  ;;  %1080 = vmatprep.subr.bf16.mxu1 %v2726_v0  ;;  %v2561_v55 = vld [vmem:[%s3612_s0 + $0xa0] ss:$16 sps:$4 sm:$0xff]   ;;  %v2562_v56 = vld [vmem:[%s3612_s0 + $0xa8] ss:$16 sps:$4 sm:$0xff]   ;;  %v2563_v57 = vld [vmem:[%s3612_s0 + $0xc4] ss:$16 sps:$4 sm:$0xff]  }
  0x14   :  { %1377 = vmatprep.subr.bf16.mxu0 %v2726_v0  ;;  %v2565_v58 = vld [vmem:[%s3612_s0 + $0xcc] ss:$16 sps:$4 sm:$0xff]   ;;  %v2567_v59 = vld [vmem:[%s3612_s0 + $0xc0] ss:$16 sps:$4 sm:$0xff]   ;;  %v2568_v60 = vld [vmem:[%s3612_s0 + $0xc8] ss:$16 sps:$4 sm:$0xff]  }
  0x15   :  { %v2569_v61 = vld [vmem:[%s3612_s0 + $0xe4] ss:$16 sps:$4 sm:$0xff]   ;;  %v2571_v62 = vld [vmem:[%s3612_s0 + $0xec] ss:$16 sps:$4 sm:$0xff]   ;;  %v2573_v63 = vld [vmem:[%s3612_s0 + $0xe0] ss:$16 sps:$4 sm:$0xff]  }
  0x16   :  { %1081 = vmatpush1.bf16.msra.mxu1 %v2505_v11  ;;  %v2575_v1 = vld [vmem:[%s3612_s0 + $0x104] ss:$16 sps:$4 sm:$0xff]   ;;  %v2577_v2 = vld [vmem:[%s3612_s0 + $0x10c] ss:$16 sps:$4 sm:$0xff]   ;;  %v2579_v3 = vld [vmem:[%s3612_s0 + $0x100] ss:$16 sps:$4 sm:$0xff]  }
  0x17   :  { %1378 = vmatpush1.bf16.msra.mxu0 %v2506_v12  ;;  %1082 = vmatprep.subr.bf16.mxu1 %v2726_v0  ;;  %v2580_v4 = vld [vmem:[%s3612_s0 + $0x108] ss:$16 sps:$4 sm:$0xff]   ;;  %v2581_v5 = vld [vmem:[%s3612_s0 + $0x124] ss:$16 sps:$4 sm:$0xff]   ;;  %v2583_v6 = vld [vmem:[%s3612_s0 + $0x12c] ss:$16 sps:$4 sm:$0xff]  }
  0x18   :  { %1379 = vmatprep.subr.bf16.mxu0 %v2726_v0  ;;  %v2585_v7 = vld [vmem:[%s3612_s0 + $0x120] ss:$16 sps:$4 sm:$0xff]   ;;  %v2586_v8 = vld [vmem:[%s3612_s0 + $0x128] ss:$16 sps:$4 sm:$0xff]   ;;  %v2587_v9 = vld [vmem:[%s3612_s0 + $0x144] ss:$16 sps:$4 sm:$0xff]  }
  0x19   :  { %v2589_v10 = vld [vmem:[%s3612_s0 + $0x14c] ss:$16 sps:$4 sm:$0xff]   ;;  %v2591_v11 = vld [vmem:[%s3612_s0 + $0x140] ss:$16 sps:$4 sm:$0xff]   ;;  %v2592_v12 = vld [vmem:[%s3612_s0 + $0x148] ss:$16 sps:$4 sm:$0xff]  }
  0x1a   :  { %1083 = vmatpush1.bf16.msra.mxu1 %v2507_v13  ;;  %v2593_v13 = vld [vmem:[%s3612_s0 + $0x164] ss:$16 sps:$4 sm:$0xff]   ;;  %v2603_v19 = vld [vmem:[%s3612_s0 + $0x180] ss:$16 sps:$4 sm:$0xff]  }
  0x1b   :  { %1380 = vmatpush1.bf16.msra.mxu0 %v2508_v14  ;;  %1084 = vmatprep.subr.bf16.mxu1 %v2726_v0  ;;  %v2595_v14 = vld [vmem:[%s3612_s0 + $0x16c] ss:$16 sps:$4 sm:$0xff]   ;;  %v2605_v21 = vld [vmem:[%s3612_s0 + $0x1a4] ss:$16 sps:$4 sm:$0xff]  }
  0x1c   :  { %1381 = vmatprep.subr.bf16.mxu0 %v2726_v0 }
  0x1e   :  { %1085 = vmatpush1.bf16.msra.mxu1 %v2509_v15  ;;  %v2597_v15 = vld [vmem:[%s3612_s0 + $0x160] ss:$16 sps:$4 sm:$0xff]  }
  0x1f   :  { %1382 = vmatpush1.bf16.msra.mxu0 %v2510_v16  ;;  %1086 = vmatprep.subr.bf16.mxu1 %v2726_v0  ;;  %v2598_v16 = vld [vmem:[%s3612_s0 + $0x168] ss:$16 sps:$4 sm:$0xff]  }
  0x20   :  { %1383 = vmatprep.subr.bf16.mxu0 %v2726_v0 }
  0x22   :  { %1087 = vmatpush1.bf16.msra.mxu1 %v2511_v17  ;;  %v2599_v17 = vld [vmem:[%s3612_s0 + $0x184] ss:$16 sps:$4 sm:$0xff]  }
  0x23   :  { %1384 = vmatpush1.bf16.msra.mxu0 %v2512_v18  ;;  %1088 = vmatprep.subr.bf16.mxu1 %v2726_v0  ;;  %v2601_v18 = vld [vmem:[%s3612_s0 + $0x18c] ss:$16 sps:$4 sm:$0xff]  }
  0x24   :  { %1385 = vmatprep.subr.bf16.mxu0 %v2726_v0 }
  0x26   :  { %1089 = vmatpush1.bf16.msra.mxu1 %v2513_v20  ;;  %v2604_v20 = vld [vmem:[%s3612_s0 + $0x188] ss:$16 sps:$4 sm:$0xff]  }
  0x27   :  { %1386 = vmatpush1.bf16.msra.mxu0 %v2514_v22  ;;  %1090 = vmatprep.subr.bf16.mxu1 %v2726_v0  ;;  %v2607_v22 = vld [vmem:[%s3612_s0 + $0x1ac] ss:$16 sps:$4 sm:$0xff]  }
  0x28   :  { %1387 = vmatprep.subr.bf16.mxu0 %v2726_v0 }
  0x2a   :  { %1091 = vmatpush1.bf16.msra.mxu1 %v2515_v23  ;;  %v2609_v23 = vld [vmem:[%s3612_s0 + $0x1a0] ss:$16 sps:$4 sm:$0xff]  }
  0x2b   :  { %1388 = vmatpush1.bf16.msra.mxu0 %v2516_v24  ;;  %1092 = vmatprep.subr.bf16.mxu1 %v2726_v0  ;;  %v2610_v24 = vld [vmem:[%s3612_s0 + $0x1a8] ss:$16 sps:$4 sm:$0xff]  }
  0x2c   :  { %1389 = vmatprep.subr.bf16.mxu0 %v2726_v0 }
  0x2e   :  { %1093 = vmatpush1.bf16.msra.mxu1 %v2517_v25  ;;  %v2611_v25 = vld [vmem:[%s3612_s0 + $0x1c4] ss:$16 sps:$4 sm:$0xff]  }
  0x2f   :  { %1390 = vmatpush1.bf16.msra.mxu0 %v2518_v26  ;;  %1094 = vmatprep.subr.bf16.mxu1 %v2726_v0  ;;  %v2613_v26 = vld [vmem:[%s3612_s0 + $0x1cc] ss:$16 sps:$4 sm:$0xff]  }
  0x30   :  { %1391 = vmatprep.subr.bf16.mxu0 %v2726_v0 }
  0x32   :  { %1095 = vmatpush1.bf16.msra.mxu1 %v2519_v27  ;;  %v2615_v27 = vld [vmem:[%s3612_s0 + $0x1c0] ss:$16 sps:$4 sm:$0xff]  }
  0x33   :  { %1392 = vmatpush1.bf16.msra.mxu0 %v2520_v28  ;;  %1096 = vmatprep.subr.bf16.mxu1 %v2726_v0  ;;  %v2616_v28 = vld [vmem:[%s3612_s0 + $0x1c8] ss:$16 sps:$4 sm:$0xff]  }
  0x34   :  { %1393 = vmatprep.subr.bf16.mxu0 %v2726_v0 }
  0x36   :  { %1097 = vmatpush1.bf16.msra.mxu1 %v2521_v29  ;;  %v2617_v29 = vld [vmem:[%s3612_s0 + $0x1e4] ss:$16 sps:$4 sm:$0xff]  }
  0x37   :  { %1394 = vmatpush1.bf16.msra.mxu0 %v2522_v30  ;;  %1098 = vmatprep.subr.bf16.mxu1 %v2726_v0  ;;  %v2619_v30 = vld [vmem:[%s3612_s0 + $0x1ec] ss:$16 sps:$4 sm:$0xff]  }
  0x38   :  { %1395 = vmatprep.subr.bf16.mxu0 %v2726_v0 }
  0x3a   :  { %1099 = vmatpush1.bf16.msra.mxu1 %v2523_v31  ;;  %v2621_v31 = vld [vmem:[%s3612_s0 + $0x1e0] ss:$16 sps:$4 sm:$0xff]  }
  0x3b   :  { %1396 = vmatpush1.bf16.msra.mxu0 %v2524_v32  ;;  %1100 = vmatprep.subr.bf16.mxu1 %v2726_v0  ;;  %v2622_v32 = vld [vmem:[%s3612_s0 + $0x1e8] ss:$16 sps:$4 sm:$0xff]  }
  0x3c   :  { %1397 = vmatprep.subr.bf16.mxu0 %v2726_v0  ;;  %v2574_v0 = vld [vmem:[%s3612_s0 + $0xe8] ss:$16 sps:$4 sm:$0xff]  }
  0x3e   :  { %1101 = vmatpush1.bf16.msra.mxu1 %v2525_v33  ;;  %v2623_v33 = vld [vmem:[%s3612_s0 + $0x204] ss:$16 sps:$4 sm:$0xff]  }
  0x3f   :  { %1398 = vmatpush1.bf16.msra.mxu0 %v2526_v34  ;;  %v2625_v34 = vld [vmem:[%s3612_s0 + $0x20c] ss:$16 sps:$4 sm:$0xff]  }
  0x41   :  { %1103 = vmatmul.mubr.bf16.vlgmr.msra.gmra.mrb[0].mxu1 %v2527_v35  ;;  %v2627_v35 = vld [vmem:[%s3612_s0 + $0x200] ss:$16 sps:$4 sm:$0xff]  }
  0x42   :  { %1400 = vmatmul.mubr.bf16.vlgmr.msra.gmra.mrb[0].mxu0 %v2530_v36  ;;  %1110 = vmatprep.mubr.bf16.mxu1 %v2533_v37  ;;  %v2628_v36 = vld [vmem:[%s3612_s0 + $0x208] ss:$16 sps:$4 sm:$0xff]   ;;  %v2629_v37 = vld [vmem:[%s3612_s0 + $0x224] ss:$16 sps:$4 sm:$0xff]  }
  0x43   :  { %1407 = vmatprep.mubr.bf16.mxu0 %v2535_v38  ;;  %v2631_v38 = vld [vmem:[%s3612_s0 + $0x22c] ss:$16 sps:$4 sm:$0xff]  }
  0x49   :  { %1111 = vmatmul.mubr.bf16.gmra.mrb[4].mxu1 %v2537_v39  ;;  %v2633_v39 = vld [vmem:[%s3612_s0 + $0x220] ss:$16 sps:$4 sm:$0xff]  }
  0x4a   :  { %1408 = vmatmul.mubr.bf16.gmra.mrb[4].mxu0 %v2538_v40  ;;  %1118 = vmatprep.mubr.bf16.mxu1 %v2539_v41  ;;  %v2634_v40 = vld [vmem:[%s3612_s0 + $0x228] ss:$16 sps:$4 sm:$0xff]   ;;  %v2635_v41 = vld [vmem:[%s3612_s0 + $0x244] ss:$16 sps:$4 sm:$0xff]  }
  0x4b   :  { %1415 = vmatprep.mubr.bf16.mxu0 %v2541_v42  ;;  %v2637_v42 = vld [vmem:[%s3612_s0 + $0x24c] ss:$16 sps:$4 sm:$0xff]  }
  0x51   :  { %1119 = vmatmul.mubr.bf16.gmra.mrb[8].mxu1 %v2543_v43  ;;  %v2639_v43 = vld [vmem:[%s3612_s0 + $0x240] ss:$16 sps:$4 sm:$0xff]  }
  0x52   :  { %1416 = vmatmul.mubr.bf16.gmra.mrb[8].mxu0 %v2544_v44  ;;  %1126 = vmatprep.mubr.bf16.mxu1 %v2545_v45  ;;  %v2640_v44 = vld [vmem:[%s3612_s0 + $0x248] ss:$16 sps:$4 sm:$0xff]   ;;  %v2641_v45 = vld [vmem:[%s3612_s0 + $0x264] ss:$16 sps:$4 sm:$0xff]  }
  0x53   :  { %1423 = vmatprep.mubr.bf16.mxu0 %v2547_v46  ;;  %v2643_v46 = vld [vmem:[%s3612_s0 + $0x26c] ss:$16 sps:$4 sm:$0xff]  }
  0x59   :  { %1127 = vmatmul.mubr.bf16.gmra.mrb[12].mxu1 %v2549_v47  ;;  %v2645_v47 = vld [vmem:[%s3612_s0 + $0x260] ss:$16 sps:$4 sm:$0xff]  }
  0x5a   :  { %1424 = vmatmul.mubr.bf16.gmra.mrb[12].mxu0 %v2550_v48  ;;  %1134 = vmatprep.mubr.bf16.mxu1 %v2551_v49  ;;  %v2646_v48 = vld [vmem:[%s3612_s0 + $0x268] ss:$16 sps:$4 sm:$0xff]   ;;  %v2647_v49 = vld [vmem:[%s3612_s0 + $0x284] ss:$16 sps:$4 sm:$0xff]  }
  0x5b   :  { %1431 = vmatprep.mubr.bf16.mxu0 %v2553_v50  ;;  %v2649_v50 = vld [vmem:[%s3612_s0 + $0x28c] ss:$16 sps:$4 sm:$0xff]  }
  0x61   :  { %1135 = vmatmul.mubr.bf16.gmra.mrb[16].mxu1 %v2555_v51  ;;  %v2651_v51 = vld [vmem:[%s3612_s0 + $0x280] ss:$16 sps:$4 sm:$0xff]  }
  0x62   :  { %1432 = vmatmul.mubr.bf16.gmra.mrb[16].mxu0 %v2556_v52  ;;  %1142 = vmatprep.mubr.bf16.mxu1 %v2557_v53  ;;  %v2652_v52 = vld [vmem:[%s3612_s0 + $0x288] ss:$16 sps:$4 sm:$0xff]   ;;  %v2653_v53 = vld [vmem:[%s3612_s0 + $0x2a4] ss:$16 sps:$4 sm:$0xff]  }
  0x63   :  { %1439 = vmatprep.mubr.bf16.mxu0 %v2559_v54  ;;  %v2655_v54 = vld [vmem:[%s3612_s0 + $0x2ac] ss:$16 sps:$4 sm:$0xff]  }
  0x69   :  { %1143 = vmatmul.mubr.bf16.gmra.mrb[20].mxu1 %v2561_v55  ;;  %v2657_v55 = vld [vmem:[%s3612_s0 + $0x2a0] ss:$16 sps:$4 sm:$0xff]  }
  0x6a   :  { %1440 = vmatmul.mubr.bf16.gmra.mrb[20].mxu0 %v2562_v56  ;;  %1150 = vmatprep.mubr.bf16.mxu1 %v2563_v57  ;;  %v2658_v56 = vld [vmem:[%s3612_s0 + $0x2a8] ss:$16 sps:$4 sm:$0xff]   ;;  %v2659_v57 = vld [vmem:[%s3612_s0 + $0x2c4] ss:$16 sps:$4 sm:$0xff]  }
  0x6b   :  { %1447 = vmatprep.mubr.bf16.mxu0 %v2565_v58  ;;  %v2661_v58 = vld [vmem:[%s3612_s0 + $0x2cc] ss:$16 sps:$4 sm:$0xff]  }
  0x71   :  { %1151 = vmatmul.mubr.bf16.gmra.mrb[24].mxu1 %v2567_v59  ;;  %v2663_v59 = vld [vmem:[%s3612_s0 + $0x2c0] ss:$16 sps:$4 sm:$0xff]  }
  0x72   :  { %1448 = vmatmul.mubr.bf16.gmra.mrb[24].mxu0 %v2568_v60  ;;  %1158 = vmatprep.mubr.bf16.mxu1 %v2569_v61  ;;  %v2664_v60 = vld [vmem:[%s3612_s0 + $0x2c8] ss:$16 sps:$4 sm:$0xff]   ;;  %v2665_v61 = vld [vmem:[%s3612_s0 + $0x2e4] ss:$16 sps:$4 sm:$0xff]  }
  0x73   :  { %1455 = vmatprep.mubr.bf16.mxu0 %v2571_v62  ;;  %v2667_v62 = vld [vmem:[%s3612_s0 + $0x2ec] ss:$16 sps:$4 sm:$0xff]  }
  0x79   :  { %1159 = vmatmul.mubr.bf16.gmra.mrb[28].mxu1 %v2573_v63  ;;  %v2669_v63 = vld [vmem:[%s3612_s0 + $0x2e0] ss:$16 sps:$4 sm:$0xff]  }
  0x7a   :  { %1456 = vmatmul.mubr.bf16.gmra.mrb[28].mxu0 %v2574_v0  ;;  %1166 = vmatprep.mubr.bf16.mxu1 %v2575_v1  ;;  %v2670_v0 = vld [vmem:[%s3612_s0 + $0x2e8] ss:$16 sps:$4 sm:$0xff]   ;;  %v2671_v1 = vld [vmem:[%s3612_s0 + $0x304] ss:$16 sps:$4 sm:$0xff]  }
  0x7b   :  { %1463 = vmatprep.mubr.bf16.mxu0 %v2577_v2  ;;  %v2673_v2 = vld [vmem:[%s3612_s0 + $0x30c] ss:$16 sps:$4 sm:$0xff]  }
  0x81   :  { %1167 = vmatmul.mubr.bf16.gmra.mrb[32].mxu1 %v2579_v3  ;;  %v2675_v3 = vld [vmem:[%s3612_s0 + $0x300] ss:$16 sps:$4 sm:$0xff]  }
  0x82   :  { %1464 = vmatmul.mubr.bf16.gmra.mrb[32].mxu0 %v2580_v4  ;;  %1174 = vmatprep.mubr.bf16.mxu1 %v2581_v5  ;;  %v2676_v4 = vld [vmem:[%s3612_s0 + $0x308] ss:$16 sps:$4 sm:$0xff]   ;;  %v2677_v5 = vld [vmem:[%s3612_s0 + $0x324] ss:$16 sps:$4 sm:$0xff]  }
  0x83   :  { %1471 = vmatprep.mubr.bf16.mxu0 %v2583_v6  ;;  %v2679_v6 = vld [vmem:[%s3612_s0 + $0x32c] ss:$16 sps:$4 sm:$0xff]  }
  0x89   :  { %1175 = vmatmul.mubr.bf16.gmra.mrb[36].mxu1 %v2585_v7  ;;  %v2681_v7 = vld [vmem:[%s3612_s0 + $0x320] ss:$16 sps:$4 sm:$0xff]  }
  0x8a   :  { %1472 = vmatmul.mubr.bf16.gmra.mrb[36].mxu0 %v2586_v8  ;;  %1182 = vmatprep.mubr.bf16.mxu1 %v2587_v9  ;;  %v2682_v8 = vld [vmem:[%s3612_s0 + $0x328] ss:$16 sps:$4 sm:$0xff]   ;;  %v2683_v9 = vld [vmem:[%s3612_s0 + $0x344] ss:$16 sps:$4 sm:$0xff]  }
  0x8b   :  { %1479 = vmatprep.mubr.bf16.mxu0 %v2589_v10  ;;  %v2685_v10 = vld [vmem:[%s3612_s0 + $0x34c] ss:$16 sps:$4 sm:$0xff]  }
  0x91   :  { %1183 = vmatmul.mubr.bf16.gmra.mrb[40].mxu1 %v2591_v11  ;;  %v2687_v11 = vld [vmem:[%s3612_s0 + $0x340] ss:$16 sps:$4 sm:$0xff]  }
  0x92   :  { %1480 = vmatmul.mubr.bf16.gmra.mrb[40].mxu0 %v2592_v12  ;;  %1190 = vmatprep.mubr.bf16.mxu1 %v2593_v13  ;;  %v2688_v12 = vld [vmem:[%s3612_s0 + $0x348] ss:$16 sps:$4 sm:$0xff]   ;;  %v2689_v13 = vld [vmem:[%s3612_s0 + $0x364] ss:$16 sps:$4 sm:$0xff]  }
  0x93   :  { %1487 = vmatprep.mubr.bf16.mxu0 %v2595_v14  ;;  %v2691_v14 = vld [vmem:[%s3612_s0 + $0x36c] ss:$16 sps:$4 sm:$0xff]  }
  0x99   :  { %1191 = vmatmul.mubr.bf16.gmra.mrb[44].mxu1 %v2597_v15  ;;  %v3208_v15 = vld [vmem:[%s3613_s2] ss:$0 sm:$0xff] }
  0x9a   :  { %1488 = vmatmul.mubr.bf16.gmra.mrb[44].mxu0 %v2598_v16  ;;  %1198 = vmatprep.mubr.bf16.mxu1 %v2599_v17 }
  0x9b   :  { %1495 = vmatprep.mubr.bf16.mxu0 %v2601_v18 }
  0xa1   :  { %1199 = vmatmul.mubr.bf16.gmra.mrb[48].mxu1 %v2603_v19 }
  0xa2   :  { %1496 = vmatmul.mubr.bf16.gmra.mrb[48].mxu0 %v2604_v20  ;;  %1206 = vmatprep.mubr.bf16.mxu1 %v2605_v21  ;;  %v2693_v20 = vld [vmem:[%s3612_s0 + $0x360] ss:$16 sps:$4 sm:$0xff]  }
  0xa3   :  { %1503 = vmatprep.mubr.bf16.mxu0 %v2607_v22 }
  0xa9   :  { %1207 = vmatmul.mubr.bf16.gmra.mrb[52].mxu1 %v2609_v23  ;;  %v2694_v23 = vld [vmem:[%s3612_s0 + $0x368] ss:$16 sps:$4 sm:$0xff]  }
  0xaa   :  { %1504 = vmatmul.mubr.bf16.gmra.mrb[52].mxu0 %v2610_v24  ;;  %1214 = vmatprep.mubr.bf16.mxu1 %v2611_v25  ;;  %v2695_v24 = vld [vmem:[%s3612_s0 + $0x384] ss:$16 sps:$4 sm:$0xff]  }
  0xab   :  { %1511 = vmatprep.mubr.bf16.mxu0 %v2613_v26 }
  0xb1   :  { %1215 = vmatmul.mubr.bf16.gmra.mrb[56].mxu1 %v2615_v27 }
  0xb2   :  { %1512 = vmatmul.mubr.bf16.gmra.mrb[56].mxu0 %v2616_v28  ;;  %1222 = vmatprep.mubr.bf16.mxu1 %v2617_v29  ;;  %v2697_v29 = vld [vmem:[%s3612_s0 + $0x38c] ss:$16 sps:$4 sm:$0xff]  }
  0xb3   :  { %1519 = vmatprep.mubr.bf16.mxu0 %v2619_v30 }
  0xb9   :  { %1223 = vmatmul.mubr.bf16.gmra.mrb[60].mxu1 %v2621_v31 }
  0xba   :  { %1520 = vmatmul.mubr.bf16.gmra.mrb[60].mxu0 %v2622_v32  ;;  %1230 = vmatprep.mubr.bf16.mxu1 %v2623_v33 }
  0xbb   :  { %1527 = vmatprep.mubr.bf16.mxu0 %v2625_v34 }
  0xc1   :  { %1231 = vmatmul.mubr.bf16.gmra.mrb[64].mxu1 %v2627_v35 }
  0xc2   :  { %1528 = vmatmul.mubr.bf16.gmra.mrb[64].mxu0 %v2628_v36  ;;  %1238 = vmatprep.mubr.bf16.mxu1 %v2629_v37 }
  0xc3   :  { %1535 = vmatprep.mubr.bf16.mxu0 %v2631_v38 }
  0xc9   :  { %1239 = vmatmul.mubr.bf16.gmra.mrb[68].mxu1 %v2633_v39 }
  0xca   :  { %1536 = vmatmul.mubr.bf16.gmra.mrb[68].mxu0 %v2634_v40  ;;  %1246 = vmatprep.mubr.bf16.mxu1 %v2635_v41  ;;  %v2699_v40 = vld [vmem:[%s3612_s0 + $0x380] ss:$16 sps:$4 sm:$0xff]  }
  0xcb   :  { %1543 = vmatprep.mubr.bf16.mxu0 %v2637_v42 }
  0xd1   :  { %1247 = vmatmul.mubr.bf16.gmra.mrb[72].mxu1 %v2639_v43  ;;  %v2700_v43 = vld [vmem:[%s3612_s0 + $0x388] ss:$16 sps:$4 sm:$0xff]  }
  0xd2   :  { %1544 = vmatmul.mubr.bf16.gmra.mrb[72].mxu0 %v2640_v44  ;;  %1254 = vmatprep.mubr.bf16.mxu1 %v2641_v45  ;;  %v2701_v44 = vld [vmem:[%s3612_s0 + $0x3a4] ss:$16 sps:$4 sm:$0xff]  }
  0xd3   :  { %1551 = vmatprep.mubr.bf16.mxu0 %v2643_v46 }
  0xd9   :  { %1255 = vmatmul.mubr.bf16.gmra.mrb[76].mxu1 %v2645_v47 }
  0xda   :  { %1552 = vmatmul.mubr.bf16.gmra.mrb[76].mxu0 %v2646_v48  ;;  %1262 = vmatprep.mubr.bf16.mxu1 %v2647_v49  ;;  %v2703_v49 = vld [vmem:[%s3612_s0 + $0x3ac] ss:$16 sps:$4 sm:$0xff]  }
  0xdb   :  { %1559 = vmatprep.mubr.bf16.mxu0 %v2649_v50 }
  0xe1   :  { %1263 = vmatmul.mubr.bf16.gmra.mrb[80].mxu1 %v2651_v51 }
  0xe2   :  { %1560 = vmatmul.mubr.bf16.gmra.mrb[80].mxu0 %v2652_v52  ;;  %1270 = vmatprep.mubr.bf16.mxu1 %v2653_v53 }
  0xe3   :  { %1567 = vmatprep.mubr.bf16.mxu0 %v2655_v54 }
  0xe9   :  { %1271 = vmatmul.mubr.bf16.gmra.mrb[84].mxu1 %v2657_v55 }
  0xea   :  { %1568 = vmatmul.mubr.bf16.gmra.mrb[84].mxu0 %v2658_v56  ;;  %1278 = vmatprep.mubr.bf16.mxu1 %v2659_v57 }
  0xeb   :  { %1575 = vmatprep.mubr.bf16.mxu0 %v2661_v58 }
  0xf1   :  { %1279 = vmatmul.mubr.bf16.gmra.mrb[88].mxu1 %v2663_v59 }
  0xf2   :  { %1576 = vmatmul.mubr.bf16.gmra.mrb[88].mxu0 %v2664_v60  ;;  %1286 = vmatprep.mubr.bf16.mxu1 %v2665_v61  ;;  %v2705_v60 = vld [vmem:[%s3612_s0 + $0x3a0] ss:$16 sps:$4 sm:$0xff]  }
  0xf3   :  { %1583 = vmatprep.mubr.bf16.mxu0 %v2667_v62 }
  0xf9   :  { %1287 = vmatmul.mubr.bf16.gmra.mrb[92].mxu1 %v2669_v63  ;;  %v2706_v63 = vld [vmem:[%s3612_s0 + $0x3a8] ss:$16 sps:$4 sm:$0xff]  }
  0xfa   :  { %1584 = vmatmul.mubr.bf16.gmra.mrb[92].mxu0 %v2670_v0  ;;  %1294 = vmatprep.mubr.bf16.mxu1 %v2671_v1  ;;  %v2707_v0 = vld [vmem:[%s3612_s0 + $0x3c4] ss:$16 sps:$4 sm:$0xff]  }
  0xfb   :  { %1591 = vmatprep.mubr.bf16.mxu0 %v2673_v2 }
 0x101   :  { %1295 = vmatmul.mubr.bf16.gmra.mrb[96].mxu1 %v2675_v3 }
 0x102   :  { %1592 = vmatmul.mubr.bf16.gmra.mrb[96].mxu0 %v2676_v4  ;;  %1302 = vmatprep.mubr.bf16.mxu1 %v2677_v5  ;;  %v2709_v5 = vld [vmem:[%s3612_s0 + $0x3cc] ss:$16 sps:$4 sm:$0xff]  }
 0x103   :  { %1599 = vmatprep.mubr.bf16.mxu0 %v2679_v6 }
 0x109   :  { %1303 = vmatmul.mubr.bf16.gmra.mrb[100].mxu1 %v2681_v7 }
 0x10a   :  { %1600 = vmatmul.mubr.bf16.gmra.mrb[100].mxu0 %v2682_v8  ;;  %1310 = vmatprep.mubr.bf16.mxu1 %v2683_v9 }
 0x10b   :  { %1607 = vmatprep.mubr.bf16.mxu0 %v2685_v10 }
 0x111   :  { %1311 = vmatmul.mubr.bf16.gmra.mrb[104].mxu1 %v2687_v11 }
 0x112   :  { %1608 = vmatmul.mubr.bf16.gmra.mrb[104].mxu0 %v2688_v12  ;;  %1318 = vmatprep.mubr.bf16.mxu1 %v2689_v13 }
 0x113   :  { %1615 = vmatprep.mubr.bf16.mxu0 %v2691_v14 }
 0x114   :  { %v1104_v16 = vpop.f32.mrb[0].mxu1 }
 0x115   :  { %v1105_v17 = vadd.f32 %v3208_v15, %v1104_v16  ;;  %v1401_v18 = vpop.f32.mrb[0].mxu0  ;;  %v1106_v19 = vpop.f32.mrb[1].mxu1 }
 0x116   :  { %v1403_v21 = vpop.f32.mrb[1].mxu0  ;;  %v1107_v22 = vpop.f32.mrb[2].mxu1 }
 0x117   :  { %v1402_v25 = vadd.f32 %v1401_v18, %v1105_v17  ;;  %v1108_v26 = vadd.f32 %v3208_v15, %v1107_v22  ;;  %v1404_v27 = vpop.f32.mrb[2].mxu0  ;;  %v1109_v28 = vpop.f32.mrb[3].mxu1  ;;  %v2711_v17 = vld [vmem:[%s3612_s0 + $0x3c0] ss:$16 sps:$4 sm:$0xff]   ;;  %v2713_v21 = vld [vmem:[%s3612_s0 + $0x3e4] ss:$16 sps:$4 sm:$0xff]  }
 0x118   :  { %v1406_v30 = vpop.f32.mrb[3].mxu0 }
 0x119   :  { %v1664_v31 = vmax.f32 %v1402_v25, 0.0  ;;  %v1405_v32 = vadd.f32 %v1404_v27, %v1108_v26  ;;  %1319 = vmatmul.mubr.bf16.gmra.mrb[108].mxu1 %v2693_v20  ;;  %v2712_v20 = vld [vmem:[%s3612_s0 + $0x3c8] ss:$16 sps:$4 sm:$0xff]   ;;  %v2715_v26 = vld [vmem:[%s3612_s0 + $0x3ec] ss:$16 sps:$4 sm:$0xff]  }
 0x11a   :  { %1616 = vmatmul.mubr.bf16.gmra.mrb[108].mxu0 %v2694_v23  ;;  %1326 = vmatprep.mubr.bf16.mxu1 %v2695_v24 }
 0x11b   :  { %v2296_v33 = vpack.c.bf16 %v1664_v31, %v1664_v31  ;;  %v1665_v34 = vmax.f32 %v1405_v32, 0.0  ;;  %1623 = vmatprep.mubr.bf16.mxu0 %v2697_v29 }
 0x11c   :  { %v1112_v35 = vpop.f32.mrb[4].mxu1 }
 0x11d   :  { %1995 = vst.msk [vmem:[%s3614_s3] sm:$0xf] %vm1994_vm0, %v2296_v33  ;;  %v2297_v36 = vpack.c.bf16 %v1665_v34, %v1665_v34  ;;  %v1113_v37 = vadd.f32 %v3208_v15, %v1112_v35  ;;  %v1409_v38 = vpop.f32.mrb[4].mxu0  ;;  %v1114_v39 = vpop.f32.mrb[5].mxu1 }
 0x11e   :  { %v1411_v41 = vpop.f32.mrb[5].mxu0  ;;  %v1115_v42 = vpop.f32.mrb[6].mxu1 }
 0x11f   :  { %1996 = vst.msk [vmem:[%s3614_s3 + $0x4] sm:$0xf] %vm1994_vm0, %v2297_v36  ;;  %v1410_v45 = vadd.f32 %v1409_v38, %v1113_v37  ;;  %v1116_v46 = vadd.f32 %v3208_v15, %v1115_v42  ;;  %v1412_v47 = vpop.f32.mrb[6].mxu0  ;;  %v1117_v48 = vpop.f32.mrb[7].mxu1  ;;  %v2717_v37 = vld [vmem:[%s3612_s0 + $0x3e0] ss:$16 sps:$4 sm:$0xff]  }
 0x120   :  { %v1414_v50 = vpop.f32.mrb[7].mxu0  ;;  %v2719_v41 = vld [vmem:[%s3612_s0 + $0x404] ss:$16 sps:$4 sm:$0xff]  }
 0x121   :  { %v1666_v51 = vmax.f32 %v1410_v45, 0.0  ;;  %v1413_v52 = vadd.f32 %v1412_v47, %v1116_v46  ;;  %1327 = vmatmul.mubr.bf16.gmra.mrb[112].mxu1 %v2699_v40  ;;  %v2718_v40 = vld [vmem:[%s3612_s0 + $0x3e8] ss:$16 sps:$4 sm:$0xff]   ;;  %v2721_v46 = vld [vmem:[%s3612_s0 + $0x40c] ss:$16 sps:$4 sm:$0xff]  }
 0x122   :  { %1624 = vmatmul.mubr.bf16.gmra.mrb[112].mxu0 %v2700_v43  ;;  %1334 = vmatprep.mubr.bf16.mxu1 %v2701_v44 }
 0x123   :  { %v2298_v53 = vpack.c.bf16 %v1666_v51, %v1666_v51  ;;  %v1667_v54 = vmax.f32 %v1413_v52, 0.0  ;;  %1631 = vmatprep.mubr.bf16.mxu0 %v2703_v49 }
 0x124   :  { %v1120_v55 = vpop.f32.mrb[8].mxu1 }
 0x125   :  { %1997 = vst.msk [vmem:[%s3614_s3 + $0x8] sm:$0xf] %vm1994_vm0, %v2298_v53  ;;  %v2299_v56 = vpack.c.bf16 %v1667_v54, %v1667_v54  ;;  %v1121_v57 = vadd.f32 %v3208_v15, %v1120_v55  ;;  %v1417_v58 = vpop.f32.mrb[8].mxu0  ;;  %v1122_v59 = vpop.f32.mrb[9].mxu1 }
 0x126   :  { %v1419_v61 = vpop.f32.mrb[9].mxu0  ;;  %v1123_v62 = vpop.f32.mrb[10].mxu1 }
 0x127   :  { %1998 = vst.msk [vmem:[%s3614_s3 + $0xc] sm:$0xf] %vm1994_vm0, %v2299_v56  ;;  %v1418_v1 = vadd.f32 %v1417_v58, %v1121_v57  ;;  %v1124_v2 = vadd.f32 %v3208_v15, %v1123_v62  ;;  %v1420_v3 = vpop.f32.mrb[10].mxu0  ;;  %v1125_v4 = vpop.f32.mrb[11].mxu1  ;;  %v2723_v57 = vld [vmem:[%s3612_s0 + $0x400] ss:$16 sps:$4 sm:$0xff]  }
 0x128   :  { %v1422_v6 = vpop.f32.mrb[11].mxu0 }
 0x129   :  { %v1668_v7 = vmax.f32 %v1418_v1, 0.0  ;;  %v1421_v8 = vadd.f32 %v1420_v3, %v1124_v2  ;;  %1335 = vmatmul.mubr.bf16.gmra.mrb[116].mxu1 %v2705_v60  ;;  %v2724_v60 = vld [vmem:[%s3612_s0 + $0x408] ss:$16 sps:$4 sm:$0xff]  }
 0x12a   :  { %1632 = vmatmul.mubr.bf16.gmra.mrb[116].mxu0 %v2706_v63  ;;  %1342 = vmatprep.mubr.bf16.mxu1 %v2707_v0 }
 0x12b   :  { %v2300_v9 = vpack.c.bf16 %v1668_v7, %v1668_v7  ;;  %v1669_v10 = vmax.f32 %v1421_v8, 0.0  ;;  %1639 = vmatprep.mubr.bf16.mxu0 %v2709_v5 }
 0x12c   :  { %v1128_v11 = vpop.f32.mrb[12].mxu1 }
 0x12d   :  { %1999 = vst.msk [vmem:[%s3614_s3 + $0x10] sm:$0xf] %vm1994_vm0, %v2300_v9  ;;  %v2301_v12 = vpack.c.bf16 %v1669_v10, %v1669_v10  ;;  %v1129_v13 = vadd.f32 %v3208_v15, %v1128_v11  ;;  %v1425_v14 = vpop.f32.mrb[12].mxu0  ;;  %v1130_v16 = vpop.f32.mrb[13].mxu1 }
 0x12e   :  { %v1427_v18 = vpop.f32.mrb[13].mxu0  ;;  %v1131_v19 = vpop.f32.mrb[14].mxu1 }
 0x12f   :  { %2000 = vst.msk [vmem:[%s3614_s3 + $0x14] sm:$0xf] %vm1994_vm0, %v2301_v12  ;;  %v1426_v22 = vadd.f32 %v1425_v14, %v1129_v13  ;;  %v1132_v23 = vadd.f32 %v3208_v15, %v1131_v19  ;;  %v1428_v24 = vpop.f32.mrb[14].mxu0  ;;  %v1133_v25 = vpop.f32.mrb[15].mxu1 }
 0x130   :  { %v1430_v27 = vpop.f32.mrb[15].mxu0 }
 0x131   :  { %v1670_v28 = vmax.f32 %v1426_v22, 0.0  ;;  %v1429_v29 = vadd.f32 %v1428_v24, %v1132_v23  ;;  %1343 = vmatmul.mubr.bf16.gmra.mrb[120].mxu1 %v2711_v17 }
 0x132   :  { %1640 = vmatmul.mubr.bf16.gmra.mrb[120].mxu0 %v2712_v20  ;;  %1350 = vmatprep.mubr.bf16.mxu1 %v2713_v21 }
 0x133   :  { %v2302_v30 = vpack.c.bf16 %v1670_v28, %v1670_v28  ;;  %v1671_v31 = vmax.f32 %v1429_v29, 0.0  ;;  %1647 = vmatprep.mubr.bf16.mxu0 %v2715_v26 }
 0x134   :  { %v1136_v32 = vpop.f32.mrb[16].mxu1 }
 0x135   :  { %2001 = vst.msk [vmem:[%s3614_s3 + $0x18] sm:$0xf] %vm1994_vm0, %v2302_v30  ;;  %v2303_v33 = vpack.c.bf16 %v1671_v31, %v1671_v31  ;;  %v1137_v34 = vadd.f32 %v3208_v15, %v1136_v32  ;;  %v1433_v35 = vpop.f32.mrb[16].mxu0  ;;  %v1138_v36 = vpop.f32.mrb[17].mxu1 }
 0x136   :  { %v1435_v38 = vpop.f32.mrb[17].mxu0  ;;  %v1139_v39 = vpop.f32.mrb[18].mxu1 }
 0x137   :  { %2002 = vst.msk [vmem:[%s3614_s3 + $0x1c] sm:$0xf] %vm1994_vm0, %v2303_v33  ;;  %v1434_v42 = vadd.f32 %v1433_v35, %v1137_v34  ;;  %v1140_v43 = vadd.f32 %v3208_v15, %v1139_v39  ;;  %v1436_v44 = vpop.f32.mrb[18].mxu0  ;;  %v1141_v45 = vpop.f32.mrb[19].mxu1 }
 0x138   :  { %v1438_v47 = vpop.f32.mrb[19].mxu0 }
 0x139   :  { %v1672_v48 = vmax.f32 %v1434_v42, 0.0  ;;  %v1437_v49 = vadd.f32 %v1436_v44, %v1140_v43  ;;  %1351 = vmatmul.mubr.bf16.gmra.mrb[124].mxu1 %v2717_v37 }
 0x13a   :  { %1648 = vmatmul.mubr.bf16.gmra.mrb[124].mxu0 %v2718_v40  ;;  %1358 = vmatprep.mubr.bf16.mxu1 %v2719_v41 }
 0x13b   :  { %v2304_v50 = vpack.c.bf16 %v1672_v48, %v1672_v48  ;;  %v1673_v51 = vmax.f32 %v1437_v49, 0.0  ;;  %1655 = vmatprep.mubr.bf16.mxu0 %v2721_v46 }
 0x13c   :  { %v1144_v52 = vpop.f32.mrb[20].mxu1 }
 0x13d   :  { %2003 = vst.msk [vmem:[%s3614_s3 + $0x20] sm:$0xf] %vm1994_vm0, %v2304_v50  ;;  %v2305_v53 = vpack.c.bf16 %v1673_v51, %v1673_v51  ;;  %v1145_v54 = vadd.f32 %v3208_v15, %v1144_v52  ;;  %v1441_v55 = vpop.f32.mrb[20].mxu0  ;;  %v1146_v56 = vpop.f32.mrb[21].mxu1 }
 0x13e   :  { %v1443_v58 = vpop.f32.mrb[21].mxu0  ;;  %v1147_v59 = vpop.f32.mrb[22].mxu1 }
 0x13f   :  { %2004 = vst.msk [vmem:[%s3614_s3 + $0x24] sm:$0xf] %vm1994_vm0, %v2305_v53  ;;  %v1442_v61 = vadd.f32 %v1441_v55, %v1145_v54  ;;  %v1148_v62 = vadd.f32 %v3208_v15, %v1147_v59  ;;  %v1444_v63 = vpop.f32.mrb[22].mxu0  ;;  %v1149_v0 = vpop.f32.mrb[23].mxu1 }
 0x140   :  { %v1446_v1 = vpop.f32.mrb[23].mxu0 }
 0x141   :  { %v1674_v2 = vmax.f32 %v1442_v61, 0.0  ;;  %v1445_v3 = vadd.f32 %v1444_v63, %v1148_v62  ;;  %1359 = vmatmul.mubr.bf16.gmra.mrb[128].mxu1 %v2723_v57 }
 0x142   :  { %1656 = vmatmul.mubr.bf16.gmra.mrb[128].mxu0 %v2724_v60 }
 0x143   :  { %v2306_v4 = vpack.c.bf16 %v1674_v2, %v1674_v2  ;;  %v1675_v5 = vmax.f32 %v1445_v3, 0.0 }
 0x144   :  { %v1152_v6 = vpop.f32.mrb[24].mxu1 }
 0x145   :  { %2005 = vst.msk [vmem:[%s3614_s3 + $0x28] sm:$0xf] %vm1994_vm0, %v2306_v4  ;;  %v2307_v7 = vpack.c.bf16 %v1675_v5, %v1675_v5  ;;  %v1153_v8 = vadd.f32 %v3208_v15, %v1152_v6  ;;  %v1449_v9 = vpop.f32.mrb[24].mxu0  ;;  %v1154_v10 = vpop.f32.mrb[25].mxu1 }
 0x146   :  { %v1451_v11 = vpop.f32.mrb[25].mxu0  ;;  %v1155_v12 = vpop.f32.mrb[26].mxu1 }
 0x147   :  { %2006 = vst.msk [vmem:[%s3614_s3 + $0x2c] sm:$0xf] %vm1994_vm0, %v2307_v7  ;;  %v1450_v13 = vadd.f32 %v1449_v9, %v1153_v8  ;;  %v1156_v14 = vadd.f32 %v3208_v15, %v1155_v12  ;;  %v1452_v16 = vpop.f32.mrb[26].mxu0  ;;  %v1157_v17 = vpop.f32.mrb[27].mxu1 }
 0x148   :  { %v1454_v18 = vpop.f32.mrb[27].mxu0 }
 0x149   :  { %v1676_v19 = vmax.f32 %v1450_v13, 0.0  ;;  %v1453_v20 = vadd.f32 %v1452_v16, %v1156_v14 }
 0x14b   :  { %v2308_v21 = vpack.c.bf16 %v1676_v19, %v1676_v19  ;;  %v1677_v22 = vmax.f32 %v1453_v20, 0.0 }
 0x14c   :  { %v1160_v23 = vpop.f32.mrb[28].mxu1 }
 0x14d   :  { %2007 = vst.msk [vmem:[%s3614_s3 + $0x30] sm:$0xf] %vm1994_vm0, %v2308_v21  ;;  %v2309_v24 = vpack.c.bf16 %v1677_v22, %v1677_v22  ;;  %v1161_v25 = vadd.f32 %v3208_v15, %v1160_v23  ;;  %v1457_v26 = vpop.f32.mrb[28].mxu0  ;;  %v1162_v27 = vpop.f32.mrb[29].mxu1 }
 0x14e   :  { %v1459_v28 = vpop.f32.mrb[29].mxu0  ;;  %v1163_v29 = vpop.f32.mrb[30].mxu1 }
 0x14f   :  { %2008 = vst.msk [vmem:[%s3614_s3 + $0x34] sm:$0xf] %vm1994_vm0, %v2309_v24  ;;  %v1458_v30 = vadd.f32 %v1457_v26, %v1161_v25  ;;  %v1164_v31 = vadd.f32 %v3208_v15, %v1163_v29  ;;  %v1460_v32 = vpop.f32.mrb[30].mxu0  ;;  %v1165_v33 = vpop.f32.mrb[31].mxu1 }
 0x150   :  { %v1462_v34 = vpop.f32.mrb[31].mxu0 }
 0x151   :  { %v1678_v35 = vmax.f32 %v1458_v30, 0.0  ;;  %v1461_v36 = vadd.f32 %v1460_v32, %v1164_v31 }
 0x153   :  { %v2310_v37 = vpack.c.bf16 %v1678_v35, %v1678_v35  ;;  %v1679_v38 = vmax.f32 %v1461_v36, 0.0 }
 0x154   :  { %v1168_v39 = vpop.f32.mrb[32].mxu1 }
 0x155   :  { %2009 = vst.msk [vmem:[%s3614_s3 + $0x38] sm:$0xf] %vm1994_vm0, %v2310_v37  ;;  %v2311_v40 = vpack.c.bf16 %v1679_v38, %v1679_v38  ;;  %v1169_v41 = vadd.f32 %v3208_v15, %v1168_v39  ;;  %v1465_v42 = vpop.f32.mrb[32].mxu0  ;;  %v1170_v43 = vpop.f32.mrb[33].mxu1 }
 0x156   :  { %v1467_v44 = vpop.f32.mrb[33].mxu0  ;;  %v1171_v45 = vpop.f32.mrb[34].mxu1 }
 0x157   :  { %2010 = vst.msk [vmem:[%s3614_s3 + $0x3c] sm:$0xf] %vm1994_vm0, %v2311_v40  ;;  %v1466_v46 = vadd.f32 %v1465_v42, %v1169_v41  ;;  %v1172_v47 = vadd.f32 %v3208_v15, %v1171_v45  ;;  %v1468_v48 = vpop.f32.mrb[34].mxu0  ;;  %v1173_v49 = vpop.f32.mrb[35].mxu1 }
 0x158   :  { %v1470_v50 = vpop.f32.mrb[35].mxu0 }
 0x159   :  { %v1680_v51 = vmax.f32 %v1466_v46, 0.0  ;;  %v1469_v52 = vadd.f32 %v1468_v48, %v1172_v47 }
 0x15b   :  { %v2312_v53 = vpack.c.bf16 %v1680_v51, %v1680_v51  ;;  %v1681_v54 = vmax.f32 %v1469_v52, 0.0 }
 0x15c   :  { %v1176_v55 = vpop.f32.mrb[36].mxu1 }
 0x15d   :  { %2011 = vst.msk [vmem:[%s3614_s3 + $0x40] sm:$0xf] %vm1994_vm0, %v2312_v53  ;;  %v2313_v56 = vpack.c.bf16 %v1681_v54, %v1681_v54  ;;  %v1177_v57 = vadd.f32 %v3208_v15, %v1176_v55  ;;  %v1473_v58 = vpop.f32.mrb[36].mxu0  ;;  %v1178_v59 = vpop.f32.mrb[37].mxu1 }
 0x15e   :  { %v1475_v60 = vpop.f32.mrb[37].mxu0  ;;  %v1179_v61 = vpop.f32.mrb[38].mxu1 }
 0x15f   :  { %2012 = vst.msk [vmem:[%s3614_s3 + $0x44] sm:$0xf] %vm1994_vm0, %v2313_v56  ;;  %v1474_v62 = vadd.f32 %v1473_v58, %v1177_v57  ;;  %v1180_v63 = vadd.f32 %v3208_v15, %v1179_v61  ;;  %v1476_v0 = vpop.f32.mrb[38].mxu0  ;;  %v1181_v1 = vpop.f32.mrb[39].mxu1 }
 0x160   :  { %v1478_v2 = vpop.f32.mrb[39].mxu0 }
 0x161   :  { %v1682_v3 = vmax.f32 %v1474_v62, 0.0  ;;  %v1477_v4 = vadd.f32 %v1476_v0, %v1180_v63 }
 0x163   :  { %v2314_v5 = vpack.c.bf16 %v1682_v3, %v1682_v3  ;;  %v1683_v6 = vmax.f32 %v1477_v4, 0.0 }
 0x164   :  { %v1184_v7 = vpop.f32.mrb[40].mxu1 }
 0x165   :  { %2013 = vst.msk [vmem:[%s3614_s3 + $0x48] sm:$0xf] %vm1994_vm0, %v2314_v5  ;;  %v2315_v8 = vpack.c.bf16 %v1683_v6, %v1683_v6  ;;  %v1185_v9 = vadd.f32 %v3208_v15, %v1184_v7  ;;  %v1481_v10 = vpop.f32.mrb[40].mxu0  ;;  %v1186_v11 = vpop.f32.mrb[41].mxu1 }
 0x166   :  { %v1483_v12 = vpop.f32.mrb[41].mxu0  ;;  %v1187_v13 = vpop.f32.mrb[42].mxu1 }
 0x167   :  { %2014 = vst.msk [vmem:[%s3614_s3 + $0x4c] sm:$0xf] %vm1994_vm0, %v2315_v8  ;;  %v1482_v14 = vadd.f32 %v1481_v10, %v1185_v9  ;;  %v1188_v16 = vadd.f32 %v3208_v15, %v1187_v13  ;;  %v1484_v17 = vpop.f32.mrb[42].mxu0  ;;  %v1189_v18 = vpop.f32.mrb[43].mxu1 }
 0x168   :  { %v1486_v19 = vpop.f32.mrb[43].mxu0 }
 0x169   :  { %v1684_v20 = vmax.f32 %v1482_v14, 0.0  ;;  %v1485_v21 = vadd.f32 %v1484_v17, %v1188_v16 }
 0x16b   :  { %v2316_v22 = vpack.c.bf16 %v1684_v20, %v1684_v20  ;;  %v1685_v23 = vmax.f32 %v1485_v21, 0.0 }
 0x16c   :  { %v1192_v24 = vpop.f32.mrb[44].mxu1 }
 0x16d   :  { %2015 = vst.msk [vmem:[%s3614_s3 + $0x50] sm:$0xf] %vm1994_vm0, %v2316_v22  ;;  %v2317_v25 = vpack.c.bf16 %v1685_v23, %v1685_v23  ;;  %v1193_v26 = vadd.f32 %v3208_v15, %v1192_v24  ;;  %v1489_v27 = vpop.f32.mrb[44].mxu0  ;;  %v1194_v28 = vpop.f32.mrb[45].mxu1 }
 0x16e   :  { %v1491_v29 = vpop.f32.mrb[45].mxu0  ;;  %v1195_v30 = vpop.f32.mrb[46].mxu1 }
 0x16f   :  { %2016 = vst.msk [vmem:[%s3614_s3 + $0x54] sm:$0xf] %vm1994_vm0, %v2317_v25  ;;  %v1490_v31 = vadd.f32 %v1489_v27, %v1193_v26  ;;  %v1196_v32 = vadd.f32 %v3208_v15, %v1195_v30  ;;  %v1492_v33 = vpop.f32.mrb[46].mxu0  ;;  %v1197_v34 = vpop.f32.mrb[47].mxu1 }
 0x170   :  { %v1494_v35 = vpop.f32.mrb[47].mxu0 }
 0x171   :  { %v1686_v36 = vmax.f32 %v1490_v31, 0.0  ;;  %v1493_v37 = vadd.f32 %v1492_v33, %v1196_v32 }
 0x173   :  { %v2318_v38 = vpack.c.bf16 %v1686_v36, %v1686_v36  ;;  %v1687_v39 = vmax.f32 %v1493_v37, 0.0 }
 0x174   :  { %v1200_v40 = vpop.f32.mrb[48].mxu1 }
 0x175   :  { %2017 = vst.msk [vmem:[%s3614_s3 + $0x58] sm:$0xf] %vm1994_vm0, %v2318_v38  ;;  %v2319_v41 = vpack.c.bf16 %v1687_v39, %v1687_v39  ;;  %v1201_v42 = vadd.f32 %v3208_v15, %v1200_v40  ;;  %v1497_v43 = vpop.f32.mrb[48].mxu0  ;;  %v1202_v44 = vpop.f32.mrb[49].mxu1 }
 0x176   :  { %v1499_v45 = vpop.f32.mrb[49].mxu0  ;;  %v1203_v46 = vpop.f32.mrb[50].mxu1 }
 0x177   :  { %2018 = vst.msk [vmem:[%s3614_s3 + $0x5c] sm:$0xf] %vm1994_vm0, %v2319_v41  ;;  %v1498_v47 = vadd.f32 %v1497_v43, %v1201_v42  ;;  %v1204_v48 = vadd.f32 %v3208_v15, %v1203_v46  ;;  %v1500_v49 = vpop.f32.mrb[50].mxu0  ;;  %v1205_v50 = vpop.f32.mrb[51].mxu1 }
 0x178   :  { %v1502_v51 = vpop.f32.mrb[51].mxu0 }
 0x179   :  { %v1688_v52 = vmax.f32 %v1498_v47, 0.0  ;;  %v1501_v53 = vadd.f32 %v1500_v49, %v1204_v48 }
 0x17b   :  { %v2320_v54 = vpack.c.bf16 %v1688_v52, %v1688_v52  ;;  %v1689_v55 = vmax.f32 %v1501_v53, 0.0 }
 0x17c   :  { %v1208_v56 = vpop.f32.mrb[52].mxu1 }
 0x17d   :  { %2019 = vst.msk [vmem:[%s3614_s3 + $0x60] sm:$0xf] %vm1994_vm0, %v2320_v54  ;;  %v2321_v57 = vpack.c.bf16 %v1689_v55, %v1689_v55  ;;  %v1209_v58 = vadd.f32 %v3208_v15, %v1208_v56  ;;  %v1505_v59 = vpop.f32.mrb[52].mxu0  ;;  %v1210_v60 = vpop.f32.mrb[53].mxu1 }
 0x17e   :  { %v1507_v61 = vpop.f32.mrb[53].mxu0  ;;  %v1211_v62 = vpop.f32.mrb[54].mxu1 }
 0x17f   :  { %2020 = vst.msk [vmem:[%s3614_s3 + $0x64] sm:$0xf] %vm1994_vm0, %v2321_v57  ;;  %v1506_v63 = vadd.f32 %v1505_v59, %v1209_v58  ;;  %v1212_v0 = vadd.f32 %v3208_v15, %v1211_v62  ;;  %v1508_v1 = vpop.f32.mrb[54].mxu0  ;;  %v1213_v2 = vpop.f32.mrb[55].mxu1 }
 0x180   :  { %v1510_v3 = vpop.f32.mrb[55].mxu0 }
 0x181   :  { %v1690_v4 = vmax.f32 %v1506_v63, 0.0  ;;  %v1509_v5 = vadd.f32 %v1508_v1, %v1212_v0 }
 0x183   :  { %v2322_v6 = vpack.c.bf16 %v1690_v4, %v1690_v4  ;;  %v1691_v7 = vmax.f32 %v1509_v5, 0.0 }
 0x184   :  { %v1216_v8 = vpop.f32.mrb[56].mxu1 }
 0x185   :  { %2021 = vst.msk [vmem:[%s3614_s3 + $0x68] sm:$0xf] %vm1994_vm0, %v2322_v6  ;;  %v2323_v9 = vpack.c.bf16 %v1691_v7, %v1691_v7  ;;  %v1217_v10 = vadd.f32 %v3208_v15, %v1216_v8  ;;  %v1513_v11 = vpop.f32.mrb[56].mxu0  ;;  %v1218_v12 = vpop.f32.mrb[57].mxu1 }
 0x186   :  { %v1515_v13 = vpop.f32.mrb[57].mxu0  ;;  %v1219_v14 = vpop.f32.mrb[58].mxu1 }
 0x187   :  { %2022 = vst.msk [vmem:[%s3614_s3 + $0x6c] sm:$0xf] %vm1994_vm0, %v2323_v9  ;;  %v1514_v16 = vadd.f32 %v1513_v11, %v1217_v10  ;;  %v1220_v17 = vadd.f32 %v3208_v15, %v1219_v14  ;;  %v1516_v18 = vpop.f32.mrb[58].mxu0  ;;  %v1221_v19 = vpop.f32.mrb[59].mxu1 }
 0x188   :  { %v1518_v20 = vpop.f32.mrb[59].mxu0 }
 0x189   :  { %v1692_v21 = vmax.f32 %v1514_v16, 0.0  ;;  %v1517_v22 = vadd.f32 %v1516_v18, %v1220_v17 }
 0x18b   :  { %v2324_v23 = vpack.c.bf16 %v1692_v21, %v1692_v21  ;;  %v1693_v24 = vmax.f32 %v1517_v22, 0.0 }
 0x18c   :  { %v1224_v25 = vpop.f32.mrb[60].mxu1 }
 0x18d   :  { %2023 = vst.msk [vmem:[%s3614_s3 + $0x70] sm:$0xf] %vm1994_vm0, %v2324_v23  ;;  %v2325_v26 = vpack.c.bf16 %v1693_v24, %v1693_v24  ;;  %v1225_v27 = vadd.f32 %v3208_v15, %v1224_v25  ;;  %v1521_v28 = vpop.f32.mrb[60].mxu0  ;;  %v1226_v29 = vpop.f32.mrb[61].mxu1 }
 0x18e   :  { %v1523_v30 = vpop.f32.mrb[61].mxu0  ;;  %v1227_v31 = vpop.f32.mrb[62].mxu1 }
 0x18f   :  { %2024 = vst.msk [vmem:[%s3614_s3 + $0x74] sm:$0xf] %vm1994_vm0, %v2325_v26  ;;  %v1522_v32 = vadd.f32 %v1521_v28, %v1225_v27  ;;  %v1228_v33 = vadd.f32 %v3208_v15, %v1227_v31  ;;  %v1524_v34 = vpop.f32.mrb[62].mxu0  ;;  %v1229_v35 = vpop.f32.mrb[63].mxu1 }
 0x190   :  { %v1526_v36 = vpop.f32.mrb[63].mxu0 }
 0x191   :  { %v1694_v37 = vmax.f32 %v1522_v32, 0.0  ;;  %v1525_v38 = vadd.f32 %v1524_v34, %v1228_v33 }
 0x193   :  { %v2326_v39 = vpack.c.bf16 %v1694_v37, %v1694_v37  ;;  %v1695_v40 = vmax.f32 %v1525_v38, 0.0 }
 0x194   :  { %v1232_v41 = vpop.f32.mrb[64].mxu1 }
 0x195   :  { %2025 = vst.msk [vmem:[%s3614_s3 + $0x78] sm:$0xf] %vm1994_vm0, %v2326_v39  ;;  %v2327_v42 = vpack.c.bf16 %v1695_v40, %v1695_v40  ;;  %v1233_v43 = vadd.f32 %v3208_v15, %v1232_v41  ;;  %v1529_v44 = vpop.f32.mrb[64].mxu0  ;;  %v1234_v45 = vpop.f32.mrb[65].mxu1 }
 0x196   :  { %v1531_v46 = vpop.f32.mrb[65].mxu0  ;;  %v1235_v47 = vpop.f32.mrb[66].mxu1 }
 0x197   :  { %2026 = vst.msk [vmem:[%s3614_s3 + $0x7c] sm:$0xf] %vm1994_vm0, %v2327_v42  ;;  %v1530_v48 = vadd.f32 %v1529_v44, %v1233_v43  ;;  %v1236_v49 = vadd.f32 %v3208_v15, %v1235_v47  ;;  %v1532_v50 = vpop.f32.mrb[66].mxu0  ;;  %v1237_v51 = vpop.f32.mrb[67].mxu1 }
 0x198   :  { %v1534_v52 = vpop.f32.mrb[67].mxu0 }
 0x199   :  { %v1696_v53 = vmax.f32 %v1530_v48, 0.0  ;;  %v1533_v54 = vadd.f32 %v1532_v50, %v1236_v49 }
 0x19b   :  { %v2328_v55 = vpack.c.bf16 %v1696_v53, %v1696_v53  ;;  %v1697_v56 = vmax.f32 %v1533_v54, 0.0 }
 0x19c   :  { %v1240_v57 = vpop.f32.mrb[68].mxu1 }
 0x19d   :  { %2027 = vst.msk [vmem:[%s3614_s3 + $0x80] sm:$0xf] %vm1994_vm0, %v2328_v55  ;;  %v2329_v58 = vpack.c.bf16 %v1697_v56, %v1697_v56  ;;  %v1241_v59 = vadd.f32 %v3208_v15, %v1240_v57  ;;  %v1537_v60 = vpop.f32.mrb[68].mxu0  ;;  %v1242_v61 = vpop.f32.mrb[69].mxu1 }
 0x19e   :  { %v1539_v62 = vpop.f32.mrb[69].mxu0  ;;  %v1243_v63 = vpop.f32.mrb[70].mxu1 }
 0x19f   :  { %2028 = vst.msk [vmem:[%s3614_s3 + $0x84] sm:$0xf] %vm1994_vm0, %v2329_v58  ;;  %v1538_v0 = vadd.f32 %v1537_v60, %v1241_v59  ;;  %v1244_v1 = vadd.f32 %v3208_v15, %v1243_v63  ;;  %v1540_v2 = vpop.f32.mrb[70].mxu0  ;;  %v1245_v3 = vpop.f32.mrb[71].mxu1 }
 0x1a0   :  { %v1542_v4 = vpop.f32.mrb[71].mxu0 }
 0x1a1   :  { %v1698_v5 = vmax.f32 %v1538_v0, 0.0  ;;  %v1541_v6 = vadd.f32 %v1540_v2, %v1244_v1 }
 0x1a3   :  { %v2330_v7 = vpack.c.bf16 %v1698_v5, %v1698_v5  ;;  %v1699_v8 = vmax.f32 %v1541_v6, 0.0 }
 0x1a4   :  { %v1248_v9 = vpop.f32.mrb[72].mxu1 }
 0x1a5   :  { %2029 = vst.msk [vmem:[%s3614_s3 + $0x88] sm:$0xf] %vm1994_vm0, %v2330_v7  ;;  %v2331_v10 = vpack.c.bf16 %v1699_v8, %v1699_v8  ;;  %v1249_v11 = vadd.f32 %v3208_v15, %v1248_v9  ;;  %v1545_v12 = vpop.f32.mrb[72].mxu0  ;;  %v1250_v13 = vpop.f32.mrb[73].mxu1 }
 0x1a6   :  { %v1547_v14 = vpop.f32.mrb[73].mxu0  ;;  %v1251_v16 = vpop.f32.mrb[74].mxu1 }
 0x1a7   :  { %2030 = vst.msk [vmem:[%s3614_s3 + $0x8c] sm:$0xf] %vm1994_vm0, %v2331_v10  ;;  %v1546_v17 = vadd.f32 %v1545_v12, %v1249_v11  ;;  %v1252_v18 = vadd.f32 %v3208_v15, %v1251_v16  ;;  %v1548_v19 = vpop.f32.mrb[74].mxu0  ;;  %v1253_v20 = vpop.f32.mrb[75].mxu1 }
 0x1a8   :  { %v1550_v21 = vpop.f32.mrb[75].mxu0 }
 0x1a9   :  { %v1700_v22 = vmax.f32 %v1546_v17, 0.0  ;;  %v1549_v23 = vadd.f32 %v1548_v19, %v1252_v18 }
 0x1ab   :  { %v2332_v24 = vpack.c.bf16 %v1700_v22, %v1700_v22  ;;  %v1701_v25 = vmax.f32 %v1549_v23, 0.0 }
 0x1ac   :  { %v1256_v26 = vpop.f32.mrb[76].mxu1 }
 0x1ad   :  { %2031 = vst.msk [vmem:[%s3614_s3 + $0x90] sm:$0xf] %vm1994_vm0, %v2332_v24  ;;  %v2333_v27 = vpack.c.bf16 %v1701_v25, %v1701_v25  ;;  %v1257_v28 = vadd.f32 %v3208_v15, %v1256_v26  ;;  %v1553_v29 = vpop.f32.mrb[76].mxu0  ;;  %v1258_v30 = vpop.f32.mrb[77].mxu1 }
 0x1ae   :  { %v1555_v31 = vpop.f32.mrb[77].mxu0  ;;  %v1259_v32 = vpop.f32.mrb[78].mxu1 }
 0x1af   :  { %2032 = vst.msk [vmem:[%s3614_s3 + $0x94] sm:$0xf] %vm1994_vm0, %v2333_v27  ;;  %v1554_v33 = vadd.f32 %v1553_v29, %v1257_v28  ;;  %v1260_v34 = vadd.f32 %v3208_v15, %v1259_v32  ;;  %v1556_v35 = vpop.f32.mrb[78].mxu0  ;;  %v1261_v36 = vpop.f32.mrb[79].mxu1 }
 0x1b0   :  { %v1558_v37 = vpop.f32.mrb[79].mxu0 }
 0x1b1   :  { %v1702_v38 = vmax.f32 %v1554_v33, 0.0  ;;  %v1557_v39 = vadd.f32 %v1556_v35, %v1260_v34 }
 0x1b3   :  { %v2334_v40 = vpack.c.bf16 %v1702_v38, %v1702_v38  ;;  %v1703_v41 = vmax.f32 %v1557_v39, 0.0 }
 0x1b4   :  { %v1264_v42 = vpop.f32.mrb[80].mxu1 }
 0x1b5   :  { %2033 = vst.msk [vmem:[%s3614_s3 + $0x98] sm:$0xf] %vm1994_vm0, %v2334_v40  ;;  %v2335_v43 = vpack.c.bf16 %v1703_v41, %v1703_v41  ;;  %v1265_v44 = vadd.f32 %v3208_v15, %v1264_v42  ;;  %v1561_v45 = vpop.f32.mrb[80].mxu0  ;;  %v1266_v46 = vpop.f32.mrb[81].mxu1 }
 0x1b6   :  { %v1563_v47 = vpop.f32.mrb[81].mxu0  ;;  %v1267_v48 = vpop.f32.mrb[82].mxu1 }
 0x1b7   :  { %2034 = vst.msk [vmem:[%s3614_s3 + $0x9c] sm:$0xf] %vm1994_vm0, %v2335_v43  ;;  %v1562_v49 = vadd.f32 %v1561_v45, %v1265_v44  ;;  %v1268_v50 = vadd.f32 %v3208_v15, %v1267_v48  ;;  %v1564_v51 = vpop.f32.mrb[82].mxu0  ;;  %v1269_v52 = vpop.f32.mrb[83].mxu1 }
 0x1b8   :  { %v1566_v53 = vpop.f32.mrb[83].mxu0 }
 0x1b9   :  { %v1704_v54 = vmax.f32 %v1562_v49, 0.0  ;;  %v1565_v55 = vadd.f32 %v1564_v51, %v1268_v50 }
 0x1bb   :  { %v2336_v56 = vpack.c.bf16 %v1704_v54, %v1704_v54  ;;  %v1705_v57 = vmax.f32 %v1565_v55, 0.0 }
 0x1bc   :  { %v1272_v58 = vpop.f32.mrb[84].mxu1 }
 0x1bd   :  { %2035 = vst.msk [vmem:[%s3614_s3 + $0xa0] sm:$0xf] %vm1994_vm0, %v2336_v56  ;;  %v2337_v59 = vpack.c.bf16 %v1705_v57, %v1705_v57  ;;  %v1273_v60 = vadd.f32 %v3208_v15, %v1272_v58  ;;  %v1569_v61 = vpop.f32.mrb[84].mxu0  ;;  %v1274_v62 = vpop.f32.mrb[85].mxu1 }
 0x1be   :  { %v1571_v63 = vpop.f32.mrb[85].mxu0  ;;  %v1275_v0 = vpop.f32.mrb[86].mxu1 }
 0x1bf   :  { %2036 = vst.msk [vmem:[%s3614_s3 + $0xa4] sm:$0xf] %vm1994_vm0, %v2337_v59  ;;  %v1570_v1 = vadd.f32 %v1569_v61, %v1273_v60  ;;  %v1276_v2 = vadd.f32 %v3208_v15, %v1275_v0  ;;  %v1572_v3 = vpop.f32.mrb[86].mxu0  ;;  %v1277_v4 = vpop.f32.mrb[87].mxu1 }
 0x1c0   :  { %v1574_v5 = vpop.f32.mrb[87].mxu0 }
 0x1c1   :  { %v1706_v6 = vmax.f32 %v1570_v1, 0.0  ;;  %v1573_v7 = vadd.f32 %v1572_v3, %v1276_v2 }
 0x1c3   :  { %v2338_v8 = vpack.c.bf16 %v1706_v6, %v1706_v6  ;;  %v1707_v9 = vmax.f32 %v1573_v7, 0.0 }
 0x1c4   :  { %v1280_v10 = vpop.f32.mrb[88].mxu1 }
 0x1c5   :  { %2037 = vst.msk [vmem:[%s3614_s3 + $0xa8] sm:$0xf] %vm1994_vm0, %v2338_v8  ;;  %v2339_v11 = vpack.c.bf16 %v1707_v9, %v1707_v9  ;;  %v1281_v12 = vadd.f32 %v3208_v15, %v1280_v10  ;;  %v1577_v13 = vpop.f32.mrb[88].mxu0  ;;  %v1282_v14 = vpop.f32.mrb[89].mxu1 }
 0x1c6   :  { %v1579_v16 = vpop.f32.mrb[89].mxu0  ;;  %v1283_v17 = vpop.f32.mrb[90].mxu1 }
 0x1c7   :  { %2038 = vst.msk [vmem:[%s3614_s3 + $0xac] sm:$0xf] %vm1994_vm0, %v2339_v11  ;;  %v1578_v18 = vadd.f32 %v1577_v13, %v1281_v12  ;;  %v1284_v19 = vadd.f32 %v3208_v15, %v1283_v17  ;;  %v1580_v20 = vpop.f32.mrb[90].mxu0  ;;  %v1285_v21 = vpop.f32.mrb[91].mxu1  ;;  %v3535_v13 = vld [vmem:[%s3613_s2] ss:$0 sm:$0xff] }
 0x1c8   :  { %v1582_v22 = vpop.f32.mrb[91].mxu0 }
 0x1c9   :  { %v1708_v23 = vmax.f32 %v1578_v18, 0.0  ;;  %v1581_v24 = vadd.f32 %v1580_v20, %v1284_v19 }
 0x1cb   :  { %v2340_v25 = vpack.c.bf16 %v1708_v23, %v1708_v23  ;;  %v1709_v26 = vmax.f32 %v1581_v24, 0.0 }
 0x1cc   :  { %v1288_v27 = vpop.f32.mrb[92].mxu1 }
 0x1cd   :  { %2039 = vst.msk [vmem:[%s3614_s3 + $0xb0] sm:$0xf] %vm1994_vm0, %v2340_v25  ;;  %v2341_v28 = vpack.c.bf16 %v1709_v26, %v1709_v26  ;;  %v1289_v29 = vadd.f32 %v3208_v15, %v1288_v27  ;;  %v1585_v30 = vpop.f32.mrb[92].mxu0  ;;  %v1290_v31 = vpop.f32.mrb[93].mxu1 }
 0x1ce   :  { %v1587_v32 = vpop.f32.mrb[93].mxu0  ;;  %v1291_v33 = vpop.f32.mrb[94].mxu1 }
 0x1cf   :  { %2040 = vst.msk [vmem:[%s3614_s3 + $0xb4] sm:$0xf] %vm1994_vm0, %v2341_v28  ;;  %v1586_v34 = vadd.f32 %v1585_v30, %v1289_v29  ;;  %v1292_v35 = vadd.f32 %v3208_v15, %v1291_v33  ;;  %v1588_v36 = vpop.f32.mrb[94].mxu0  ;;  %v1293_v37 = vpop.f32.mrb[95].mxu1 }
 0x1d0   :  { %v1590_v38 = vpop.f32.mrb[95].mxu0 }
 0x1d1   :  { %v1710_v39 = vmax.f32 %v1586_v34, 0.0  ;;  %v1589_v40 = vadd.f32 %v1588_v36, %v1292_v35 }
 0x1d3   :  { %v2342_v41 = vpack.c.bf16 %v1710_v39, %v1710_v39  ;;  %v1711_v42 = vmax.f32 %v1589_v40, 0.0 }
 0x1d4   :  { %v1296_v43 = vpop.f32.mrb[96].mxu1 }
 0x1d5   :  { %2041 = vst.msk [vmem:[%s3614_s3 + $0xb8] sm:$0xf] %vm1994_vm0, %v2342_v41  ;;  %v2343_v44 = vpack.c.bf16 %v1711_v42, %v1711_v42  ;;  %v1297_v45 = vadd.f32 %v3208_v15, %v1296_v43  ;;  %v1593_v46 = vpop.f32.mrb[96].mxu0  ;;  %v1298_v47 = vpop.f32.mrb[97].mxu1 }
 0x1d6   :  { %v1595_v48 = vpop.f32.mrb[97].mxu0  ;;  %v1299_v49 = vpop.f32.mrb[98].mxu1 }
 0x1d7   :  { %2042 = vst.msk [vmem:[%s3614_s3 + $0xbc] sm:$0xf] %vm1994_vm0, %v2343_v44  ;;  %v1594_v50 = vadd.f32 %v1593_v46, %v1297_v45  ;;  %v1300_v51 = vadd.f32 %v3208_v15, %v1299_v49  ;;  %v1596_v52 = vpop.f32.mrb[98].mxu0  ;;  %v1301_v53 = vpop.f32.mrb[99].mxu1 }
 0x1d8   :  { %v1598_v54 = vpop.f32.mrb[99].mxu0 }
 0x1d9   :  { %v1712_v55 = vmax.f32 %v1594_v50, 0.0  ;;  %v1597_v56 = vadd.f32 %v1596_v52, %v1300_v51 }
 0x1db   :  { %v2344_v57 = vpack.c.bf16 %v1712_v55, %v1712_v55  ;;  %v1713_v58 = vmax.f32 %v1597_v56, 0.0 }
 0x1dc   :  { %v1304_v59 = vpop.f32.mrb[100].mxu1 }
 0x1dd   :  { %2043 = vst.msk [vmem:[%s3614_s3 + $0xc0] sm:$0xf] %vm1994_vm0, %v2344_v57  ;;  %v2345_v60 = vpack.c.bf16 %v1713_v58, %v1713_v58  ;;  %v1305_v61 = vadd.f32 %v3208_v15, %v1304_v59  ;;  %v1601_v62 = vpop.f32.mrb[100].mxu0  ;;  %v1306_v63 = vpop.f32.mrb[101].mxu1 }
 0x1de   :  { %v1603_v0 = vpop.f32.mrb[101].mxu0  ;;  %v1307_v1 = vpop.f32.mrb[102].mxu1 }
 0x1df   :  { %2044 = vst.msk [vmem:[%s3614_s3 + $0xc4] sm:$0xf] %vm1994_vm0, %v2345_v60  ;;  %v1602_v2 = vadd.f32 %v1601_v62, %v1305_v61  ;;  %v1308_v3 = vadd.f32 %v3208_v15, %v1307_v1  ;;  %v1604_v4 = vpop.f32.mrb[102].mxu0  ;;  %v1309_v5 = vpop.f32.mrb[103].mxu1 }
 0x1e0   :  { %v1606_v6 = vpop.f32.mrb[103].mxu0 }
 0x1e1   :  { %v1714_v7 = vmax.f32 %v1602_v2, 0.0  ;;  %v1605_v8 = vadd.f32 %v1604_v4, %v1308_v3 }
 0x1e3   :  { %v2346_v9 = vpack.c.bf16 %v1714_v7, %v1714_v7  ;;  %v1715_v10 = vmax.f32 %v1605_v8, 0.0 }
 0x1e4   :  { %v1312_v11 = vpop.f32.mrb[104].mxu1 }
 0x1e5   :  { %2045 = vst.msk [vmem:[%s3614_s3 + $0xc8] sm:$0xf] %vm1994_vm0, %v2346_v9  ;;  %v2347_v12 = vpack.c.bf16 %v1715_v10, %v1715_v10  ;;  %v1313_v15 = vadd.f32 %v3535_v13, %v1312_v11  ;;  %v1609_v14 = vpop.f32.mrb[104].mxu0  ;;  %v1314_v16 = vpop.f32.mrb[105].mxu1 }
 0x1e6   :  { %v1611_v17 = vpop.f32.mrb[105].mxu0  ;;  %v1315_v18 = vpop.f32.mrb[106].mxu1 }
 0x1e7   :  { %2046 = vst.msk [vmem:[%s3614_s3 + $0xcc] sm:$0xf] %vm1994_vm0, %v2347_v12  ;;  %v1610_v19 = vadd.f32 %v1609_v14, %v1313_v15  ;;  %v1316_v20 = vadd.f32 %v3535_v13, %v1315_v18  ;;  %v1612_v21 = vpop.f32.mrb[106].mxu0  ;;  %v1317_v22 = vpop.f32.mrb[107].mxu1 }
 0x1e8   :  { %v1614_v23 = vpop.f32.mrb[107].mxu0 }
 0x1e9   :  { %v1716_v24 = vmax.f32 %v1610_v19, 0.0  ;;  %v1613_v25 = vadd.f32 %v1612_v21, %v1316_v20 }
 0x1eb   :  { %v2348_v26 = vpack.c.bf16 %v1716_v24, %v1716_v24  ;;  %v1717_v27 = vmax.f32 %v1613_v25, 0.0 }
 0x1ec   :  { %v1320_v28 = vpop.f32.mrb[108].mxu1 }
 0x1ed   :  { %2047 = vst.msk [vmem:[%s3614_s3 + $0xd0] sm:$0xf] %vm1994_vm0, %v2348_v26  ;;  %v2349_v29 = vpack.c.bf16 %v1717_v27, %v1717_v27  ;;  %v1321_v30 = vadd.f32 %v3535_v13, %v1320_v28  ;;  %v1617_v31 = vpop.f32.mrb[108].mxu0  ;;  %v1322_v32 = vpop.f32.mrb[109].mxu1 }
 0x1ee   :  { %v1619_v33 = vpop.f32.mrb[109].mxu0  ;;  %v1323_v34 = vpop.f32.mrb[110].mxu1 }
 0x1ef   :  { %2048 = vst.msk [vmem:[%s3614_s3 + $0xd4] sm:$0xf] %vm1994_vm0, %v2349_v29  ;;  %v1618_v35 = vadd.f32 %v1617_v31, %v1321_v30  ;;  %v1324_v36 = vadd.f32 %v3535_v13, %v1323_v34  ;;  %v1620_v37 = vpop.f32.mrb[110].mxu0  ;;  %v1325_v38 = vpop.f32.mrb[111].mxu1 }
 0x1f0   :  { %v1622_v39 = vpop.f32.mrb[111].mxu0 }
 0x1f1   :  { %v1718_v40 = vmax.f32 %v1618_v35, 0.0  ;;  %v1621_v41 = vadd.f32 %v1620_v37, %v1324_v36 }
 0x1f3   :  { %v2350_v42 = vpack.c.bf16 %v1718_v40, %v1718_v40  ;;  %v1719_v43 = vmax.f32 %v1621_v41, 0.0 }
 0x1f4   :  { %v1328_v44 = vpop.f32.mrb[112].mxu1 }
 0x1f5   :  { %2049 = vst.msk [vmem:[%s3614_s3 + $0xd8] sm:$0xf] %vm1994_vm0, %v2350_v42  ;;  %v2351_v45 = vpack.c.bf16 %v1719_v43, %v1719_v43  ;;  %v1329_v46 = vadd.f32 %v3535_v13, %v1328_v44  ;;  %v1625_v47 = vpop.f32.mrb[112].mxu0  ;;  %v1330_v48 = vpop.f32.mrb[113].mxu1 }
 0x1f6   :  { %v1627_v49 = vpop.f32.mrb[113].mxu0  ;;  %v1331_v50 = vpop.f32.mrb[114].mxu1 }
 0x1f7   :  { %2050 = vst.msk [vmem:[%s3614_s3 + $0xdc] sm:$0xf] %vm1994_vm0, %v2351_v45  ;;  %v1626_v51 = vadd.f32 %v1625_v47, %v1329_v46  ;;  %v1332_v52 = vadd.f32 %v3535_v13, %v1331_v50  ;;  %v1628_v53 = vpop.f32.mrb[114].mxu0  ;;  %v1333_v54 = vpop.f32.mrb[115].mxu1 }
 0x1f8   :  { %v1630_v55 = vpop.f32.mrb[115].mxu0 }
 0x1f9   :  { %v1720_v56 = vmax.f32 %v1626_v51, 0.0  ;;  %v1629_v57 = vadd.f32 %v1628_v53, %v1332_v52 }
 0x1fb   :  { %v2352_v58 = vpack.c.bf16 %v1720_v56, %v1720_v56  ;;  %v1721_v59 = vmax.f32 %v1629_v57, 0.0 }
 0x1fc   :  { %v1336_v60 = vpop.f32.mrb[116].mxu1 }
 0x1fd   :  { %2051 = vst.msk [vmem:[%s3614_s3 + $0xe0] sm:$0xf] %vm1994_vm0, %v2352_v58  ;;  %v2353_v61 = vpack.c.bf16 %v1721_v59, %v1721_v59  ;;  %v1337_v62 = vadd.f32 %v3535_v13, %v1336_v60  ;;  %v1633_v63 = vpop.f32.mrb[116].mxu0  ;;  %v1338_v0 = vpop.f32.mrb[117].mxu1 }
 0x1fe   :  { %v1635_v1 = vpop.f32.mrb[117].mxu0  ;;  %v1339_v2 = vpop.f32.mrb[118].mxu1 }
 0x1ff   :  { %2052 = vst.msk [vmem:[%s3614_s3 + $0xe4] sm:$0xf] %vm1994_vm0, %v2353_v61  ;;  %v1634_v3 = vadd.f32 %v1633_v63, %v1337_v62  ;;  %v1340_v4 = vadd.f32 %v3535_v13, %v1339_v2  ;;  %v1636_v5 = vpop.f32.mrb[118].mxu0  ;;  %v1341_v6 = vpop.f32.mrb[119].mxu1 }
 0x200   :  { %v1638_v7 = vpop.f32.mrb[119].mxu0 }
 0x201   :  { %v1722_v8 = vmax.f32 %v1634_v3, 0.0  ;;  %v1637_v9 = vadd.f32 %v1636_v5, %v1340_v4 }
 0x203   :  { %v2354_v10 = vpack.c.bf16 %v1722_v8, %v1722_v8  ;;  %v1723_v11 = vmax.f32 %v1637_v9, 0.0 }
 0x204   :  { %v1344_v12 = vpop.f32.mrb[120].mxu1 }
 0x205   :  { %2053 = vst.msk [vmem:[%s3614_s3 + $0xe8] sm:$0xf] %vm1994_vm0, %v2354_v10  ;;  %v2355_v15 = vpack.c.bf16 %v1723_v11, %v1723_v11  ;;  %v1345_v14 = vadd.f32 %v3535_v13, %v1344_v12  ;;  %v1641_v16 = vpop.f32.mrb[120].mxu0  ;;  %v1346_v17 = vpop.f32.mrb[121].mxu1 }
 0x206   :  { %v1643_v18 = vpop.f32.mrb[121].mxu0  ;;  %v1347_v19 = vpop.f32.mrb[122].mxu1 }
 0x207   :  { %2054 = vst.msk [vmem:[%s3614_s3 + $0xec] sm:$0xf] %vm1994_vm0, %v2355_v15  ;;  %v1642_v20 = vadd.f32 %v1641_v16, %v1345_v14  ;;  %v1348_v21 = vadd.f32 %v3535_v13, %v1347_v19  ;;  %v1644_v22 = vpop.f32.mrb[122].mxu0  ;;  %v1349_v23 = vpop.f32.mrb[123].mxu1 }
 0x208   :  { %v1646_v24 = vpop.f32.mrb[123].mxu0 }
 0x209   :  { %v1724_v25 = vmax.f32 %v1642_v20, 0.0  ;;  %v1645_v26 = vadd.f32 %v1644_v22, %v1348_v21 }
 0x20b   :  { %v2356_v27 = vpack.c.bf16 %v1724_v25, %v1724_v25  ;;  %v1725_v28 = vmax.f32 %v1645_v26, 0.0 }
 0x20c   :  { %v1352_v29 = vpop.f32.mrb[124].mxu1 }
 0x20d   :  { %2055 = vst.msk [vmem:[%s3614_s3 + $0xf0] sm:$0xf] %vm1994_vm0, %v2356_v27  ;;  %v2357_v30 = vpack.c.bf16 %v1725_v28, %v1725_v28  ;;  %v1353_v31 = vadd.f32 %v3535_v13, %v1352_v29  ;;  %v1649_v32 = vpop.f32.mrb[124].mxu0  ;;  %v1354_v33 = vpop.f32.mrb[125].mxu1 }
 0x20e   :  { %v1651_v34 = vpop.f32.mrb[125].mxu0  ;;  %v1355_v35 = vpop.f32.mrb[126].mxu1 }
 0x20f   :  { %2056 = vst.msk [vmem:[%s3614_s3 + $0xf4] sm:$0xf] %vm1994_vm0, %v2357_v30  ;;  %v1650_v36 = vadd.f32 %v1649_v32, %v1353_v31  ;;  %v1356_v37 = vadd.f32 %v3535_v13, %v1355_v35  ;;  %v1652_v38 = vpop.f32.mrb[126].mxu0  ;;  %v1357_v39 = vpop.f32.mrb[127].mxu1 }
 0x210   :  { %v1654_v40 = vpop.f32.mrb[127].mxu0 }
 0x211   :  { %v1726_v41 = vmax.f32 %v1650_v36, 0.0  ;;  %v1653_v42 = vadd.f32 %v1652_v38, %v1356_v37 }
 0x213   :  { %v2358_v43 = vpack.c.bf16 %v1726_v41, %v1726_v41  ;;  %v1727_v44 = vmax.f32 %v1653_v42, 0.0 }
 0x214   :  { %v1360_v45 = vpop.f32.mrb[128].mxu1 }
 0x215   :  { %2057 = vst.msk [vmem:[%s3614_s3 + $0xf8] sm:$0xf] %vm1994_vm0, %v2358_v43  ;;  %v2359_v46 = vpack.c.bf16 %v1727_v44, %v1727_v44  ;;  %v1361_v47 = vadd.f32 %v3535_v13, %v1360_v45  ;;  %v1657_v48 = vpop.f32.mrb[128].mxu0  ;;  %v1362_v49 = vpop.f32.mrb[129].mxu1 }
 0x216   :  { %v1659_v50 = vpop.f32.mrb[129].mxu0  ;;  %v1363_v51 = vpop.f32.mrb[130].mxu1 }
 0x217   :  { %2058 = vst.msk [vmem:[%s3614_s3 + $0xfc] sm:$0xf] %vm1994_vm0, %v2359_v46  ;;  %v1658_v52 = vadd.f32 %v1657_v48, %v1361_v47  ;;  %v1364_v53 = vadd.f32 %v3535_v13, %v1363_v51  ;;  %v1660_v54 = vpop.f32.mrb[130].mxu0  ;;  %v1365_v55 = vpop.f32.mrb[131].mxu1 }
 0x218   :  { %v1662_v56 = vpop.f32.mrb[131].mxu0 }
 0x219   :  { %v1728_v57 = vmax.f32 %v1658_v52, 0.0  ;;  %v1661_v58 = vadd.f32 %v1660_v54, %v1364_v53 }
 0x21b   :  { %v2360_v59 = vpack.c.bf16 %v1728_v57, %v1728_v57  ;;  %v1729_v60 = vmax.f32 %v1661_v58, 0.0 }
 0x21d   :  { %2059 = vst.msk [vmem:[%s3614_s3 + $0x100] sm:$0xf] %vm1994_vm0, %v2360_v59  ;;  %v2361_v61 = vpack.c.bf16 %v1729_v60, %v1729_v60 }
 0x21f   :  { %2060 = vst.msk [vmem:[%s3614_s3 + $0x104] sm:$0xf] %vm1994_vm0, %v2361_v61 }

// kernel: value_network_forward.7
= control target key start
LH: loop header
LB: loop body
LE: loop exit
PB: predicated region body
PF: predicated region fallthrough
CT: control target
= control target key end

     0   :  { %v3035_v0 = vmov 0   ;;  %v3036_v39 = vmov 0.0   ;;  %vm3037_vm0 = vmmov 0   ;;  %vm1085_vm1 = vcmask 523264   ;;  %s4065_s1 = inlined_call_operand.vmem [shape: bf16[576,64], index: 1, kind: input, shape index: {}]   ;;  %s4066_s0 = inlined_call_operand.vmem [shape: bf16[400,576], index: 0, kind: input, shape index: {}]   ;;  %s4067_s2 = inlined_call_operand.vmem [shape: f32[1,64], index: 2, kind: input, shape index: {}]   ;;  %s4068_s3 = inlined_call_operand.vmem [shape: bf16[400,64], index: 3, kind: output, shape index: {}]  }
   0x1   :  { %1161 = vmatprep.subr.bf16.mxu1 %v3035_v0  ;;  %1394 = vmatprep.subr.bf16.mxu0 %v3035_v0  ;;  %v2824_v1 = vld [vmem:[%s4065_s1] sm:$0xff]   ;;  %v2826_v3 = vld [vmem:[%s4065_s1 + $0x8] sm:$0xff]   ;;  %v2828_v5 = vld [vmem:[%s4065_s1 + $0x10] sm:$0xff]   ;;  %vm2110_vm2 = vcmask 519168  }
   0x2   :  { %v3066_v2 = vld [vmem:[%s4065_s1 + $0x80] sm:$0xff]   ;;  %1162 = vmatpush1.bf16.msra.mxu1 %v2824_v1  ;;  %v3076_v4 = vld [vmem:[%s4065_s1 + $0x88] sm:$0xff]   ;;  %v3087_v6 = vld [vmem:[%s4065_s1 + $0x90] sm:$0xff]  }
   0x3   :  { %1395 = vmatpush1.bf16.msra.mxu0 %v3066_v2  ;;  %1163 = vmatprep.subr.bf16.mxu1 %v3035_v0  ;;  %v2830_v7 = vld [vmem:[%s4065_s1 + $0x18] sm:$0xff]   ;;  %v2832_v9 = vld [vmem:[%s4065_s1 + $0x20] sm:$0xff]   ;;  %v2834_v11 = vld [vmem:[%s4065_s1 + $0x28] sm:$0xff]  }
   0x4   :  { %1396 = vmatprep.subr.bf16.mxu0 %v3035_v0  ;;  %v3098_v8 = vld [vmem:[%s4065_s1 + $0x98] sm:$0xff]   ;;  %v3109_v10 = vld [vmem:[%s4065_s1 + $0xa0] sm:$0xff]   ;;  %v3120_v12 = vld [vmem:[%s4065_s1 + $0xa8] sm:$0xff]  }
   0x5   :  { %v2836_v13 = vld [vmem:[%s4065_s1 + $0x30] sm:$0xff]   ;;  %v2838_v15 = vld [vmem:[%s4065_s1 + $0x38] sm:$0xff]   ;;  %v2840_v17 = vld [vmem:[%s4065_s1 + $0x40] sm:$0xff]  }
   0x6   :  { %1164 = vmatpush1.bf16.msra.mxu1 %v2826_v3  ;;  %v3131_v14 = vld [vmem:[%s4065_s1 + $0xb0] sm:$0xff]   ;;  %v3142_v16 = vld [vmem:[%s4065_s1 + $0xb8] sm:$0xff]   ;;  %v3153_v18 = vld [vmem:[%s4065_s1 + $0xc0] sm:$0xff]  }
   0x7   :  { %1397 = vmatpush1.bf16.msra.mxu0 %v3076_v4  ;;  %1165 = vmatprep.subr.bf16.mxu1 %v3035_v0  ;;  %v2858_v19 = vld [vmem:[%s4066_s0 + $0x4] ss:$20 sps:$4 sm:$0xff]   ;;  %v2842_v20 = vld [vmem:[%s4065_s1 + $0x48] sm:$0xff]   ;;  %v2844_v23 = vld [vmem:[%s4065_s1 + $0x50] sm:$0xff]  }
   0x8   :  { %1398 = vmatprep.subr.bf16.mxu0 %v3035_v0  ;;  %v2861_v21 = vld [vmem:[%s4066_s0 + $0xc] ss:$20 sps:$4 sm:$0xff]   ;;  %1193 = vmatprep.mubr.bf16.mxu1 %v2858_v19  ;;  %v3181_v24 = vld [vmem:[%s4065_s1 + $0xd0] sm:$0xff]   ;;  %v2846_v25 = vld [vmem:[%s4065_s1 + $0x58] sm:$0xff]  }
   0x9   :  { %v3170_v22 = vld [vmem:[%s4065_s1 + $0xc8] sm:$0xff]   ;;  %1426 = vmatprep.mubr.bf16.mxu0 %v2861_v21  ;;  %v3192_v26 = vld [vmem:[%s4065_s1 + $0xd8] sm:$0xff]   ;;  %v2848_v27 = vld [vmem:[%s4065_s1 + $0x60] sm:$0xff]  }
   0xa   :  { %1166 = vmatpush1.bf16.msra.mxu1 %v2828_v5  ;;  %v3203_v28 = vld [vmem:[%s4065_s1 + $0xe0] sm:$0xff]   ;;  %v2850_v29 = vld [vmem:[%s4065_s1 + $0x68] sm:$0xff]   ;;  %v2852_v31 = vld [vmem:[%s4065_s1 + $0x70] sm:$0xff]  }
   0xb   :  { %1399 = vmatpush1.bf16.msra.mxu0 %v3087_v6  ;;  %1167 = vmatprep.subr.bf16.mxu1 %v3035_v0  ;;  %v3214_v30 = vld [vmem:[%s4065_s1 + $0xe8] sm:$0xff]   ;;  %v3225_v32 = vld [vmem:[%s4065_s1 + $0xf0] sm:$0xff]   ;;  %v2854_v33 = vld [vmem:[%s4065_s1 + $0x78] sm:$0xff]  }
   0xc   :  { %1400 = vmatprep.subr.bf16.mxu0 %v3035_v0  ;;  %v3236_v34 = vld [vmem:[%s4065_s1 + $0xf8] sm:$0xff]   ;;  %v2856_v35 = vld [vmem:[%s4066_s0] ss:$20 sps:$4 sm:$0xff]   ;;  %v2881_v41 = vld [vmem:[%s4065_s1 + $0x108] sm:$0xff]  }
   0xd   :  { %v2859_v36 = vld [vmem:[%s4066_s0 + $0x8] ss:$20 sps:$4 sm:$0xff]   ;;  %v2863_v37 = vld [vmem:[%s4066_s0 + $0x2c] ss:$20 sps:$4 sm:$0xff]   ;;  %v2868_v43 = vld [vmem:[%s4066_s0 + $0x30] ss:$20 sps:$4 sm:$0xff]  }
   0xe   :  { %1168 = vmatpush1.bf16.msra.mxu1 %v2830_v7  ;;  %v2862_v38 = vld [vmem:[%s4065_s1 + $0x100] sm:$0xff]   ;;  %v2865_v40 = vld [vmem:[%s4066_s0 + $0x34] ss:$20 sps:$4 sm:$0xff]   ;;  %v2871_v45 = vld [vmem:[%s4066_s0 + $0x5c] ss:$20 sps:$4 sm:$0xff]  }
   0xf   :  { %1401 = vmatpush1.bf16.msra.mxu0 %v3098_v8  ;;  %1169 = vmatprep.subr.bf16.mxu1 %v3035_v0  ;;  %v2867_v42 = vld [vmem:[%s4066_s0 + $0x28] ss:$20 sps:$4 sm:$0xff]   ;;  %v2900_v46 = vld [vmem:[%s4065_s1 + $0x110] sm:$0xff]   ;;  %v2874_v49 = vld [vmem:[%s4066_s0 + $0x58] ss:$20 sps:$4 sm:$0xff]  }
  0x10   :  { %1402 = vmatprep.subr.bf16.mxu0 %v3035_v0  ;;  %v2869_v44 = vld [vmem:[%s4066_s0 + $0x54] ss:$20 sps:$4 sm:$0xff]   ;;  %v2923_v47 = vld [vmem:[%s4065_s1 + $0x118] sm:$0xff]   ;;  %v2873_v48 = vld [vmem:[%s4066_s0 + $0x50] ss:$20 sps:$4 sm:$0xff]  }
  0x11   :  { %v2875_v50 = vld [vmem:[%s4066_s0 + $0x7c] ss:$20 sps:$4 sm:$0xff]   ;;  %v2877_v51 = vld [vmem:[%s4066_s0 + $0x84] ss:$20 sps:$4 sm:$0xff]   ;;  %v2880_v53 = vld [vmem:[%s4066_s0 + $0x80] ss:$20 sps:$4 sm:$0xff]  }
  0x12   :  { %1170 = vmatpush1.bf16.msra.mxu1 %v2832_v9  ;;  %v2879_v52 = vld [vmem:[%s4066_s0 + $0x78] ss:$20 sps:$4 sm:$0xff]   ;;  %v2886_v56 = vld [vmem:[%s4066_s0 + $0xa0] ss:$20 sps:$4 sm:$0xff]   ;;  %v2887_v57 = vld [vmem:[%s4066_s0 + $0xa8] ss:$20 sps:$4 sm:$0xff]  }
  0x13   :  { %1403 = vmatpush1.bf16.msra.mxu0 %v3109_v10  ;;  %1171 = vmatprep.subr.bf16.mxu1 %v3035_v0  ;;  %v2882_v54 = vld [vmem:[%s4066_s0 + $0xa4] ss:$20 sps:$4 sm:$0xff]   ;;  %v2884_v55 = vld [vmem:[%s4066_s0 + $0xac] ss:$20 sps:$4 sm:$0xff]   ;;  %v2890_v59 = vld [vmem:[%s4066_s0 + $0xd4] ss:$20 sps:$4 sm:$0xff]  }
  0x14   :  { %1404 = vmatprep.subr.bf16.mxu0 %v3035_v0  ;;  %v2888_v58 = vld [vmem:[%s4066_s0 + $0xcc] ss:$20 sps:$4 sm:$0xff]   ;;  %v2892_v60 = vld [vmem:[%s4066_s0 + $0xc8] ss:$20 sps:$4 sm:$0xff]   ;;  %v2893_v61 = vld [vmem:[%s4066_s0 + $0xd0] ss:$20 sps:$4 sm:$0xff]  }
  0x15   :  { %v2894_v62 = vld [vmem:[%s4066_s0 + $0xf4] ss:$20 sps:$4 sm:$0xff]   ;;  %v2896_v63 = vld [vmem:[%s4066_s0 + $0xfc] ss:$20 sps:$4 sm:$0xff]   ;;  %v2905_v5 = vld [vmem:[%s4066_s0 + $0x118] ss:$20 sps:$4 sm:$0xff]  }
  0x16   :  { %1172 = vmatpush1.bf16.msra.mxu1 %v2834_v11  ;;  %v2898_v1 = vld [vmem:[%s4066_s0 + $0xf0] ss:$20 sps:$4 sm:$0xff]   ;;  %v2911_v9 = vld [vmem:[%s4066_s0 + $0x140] ss:$20 sps:$4 sm:$0xff]  }
  0x17   :  { %1405 = vmatpush1.bf16.msra.mxu0 %v3120_v12  ;;  %1173 = vmatprep.subr.bf16.mxu1 %v3035_v0  ;;  %v2901_v3 = vld [vmem:[%s4066_s0 + $0x11c] ss:$20 sps:$4 sm:$0xff]   ;;  %v2907_v7 = vld [vmem:[%s4066_s0 + $0x144] ss:$20 sps:$4 sm:$0xff]   ;;  %v2913_v11 = vld [vmem:[%s4066_s0 + $0x16c] ss:$20 sps:$4 sm:$0xff]  }
  0x18   :  { %1406 = vmatprep.subr.bf16.mxu0 %v3035_v0  ;;  %v2928_v19 = vld [vmem:[%s4066_s0 + $0x1c4] ss:$20 sps:$4 sm:$0xff]   ;;  %v2931_v21 = vld [vmem:[%s4066_s0 + $0x1c0] ss:$20 sps:$4 sm:$0xff]  }
  0x1a   :  { %1174 = vmatpush1.bf16.msra.mxu1 %v2836_v13  ;;  %v2918_v13 = vld [vmem:[%s4066_s0 + $0x170] ss:$20 sps:$4 sm:$0xff]  }
  0x1b   :  { %1407 = vmatpush1.bf16.msra.mxu0 %v3131_v14  ;;  %1175 = vmatprep.subr.bf16.mxu1 %v3035_v0 }
  0x1c   :  { %1408 = vmatprep.subr.bf16.mxu0 %v3035_v0 }
  0x1e   :  { %1176 = vmatpush1.bf16.msra.mxu1 %v2838_v15  ;;  %v2921_v15 = vld [vmem:[%s4066_s0 + $0x19c] ss:$20 sps:$4 sm:$0xff]  }
  0x1f   :  { %1409 = vmatpush1.bf16.msra.mxu0 %v3142_v16  ;;  %1177 = vmatprep.subr.bf16.mxu1 %v3035_v0 }
  0x20   :  { %1410 = vmatprep.subr.bf16.mxu0 %v3035_v0 }
  0x22   :  { %1178 = vmatpush1.bf16.msra.mxu1 %v2840_v17  ;;  %v2925_v17 = vld [vmem:[%s4066_s0 + $0x198] ss:$20 sps:$4 sm:$0xff]  }
  0x23   :  { %1411 = vmatpush1.bf16.msra.mxu0 %v3153_v18  ;;  %1179 = vmatprep.subr.bf16.mxu1 %v3035_v0 }
  0x24   :  { %1412 = vmatprep.subr.bf16.mxu0 %v3035_v0 }
  0x26   :  { %1180 = vmatpush1.bf16.msra.mxu1 %v2842_v20  ;;  %v2930_v20 = vld [vmem:[%s4066_s0 + $0x1b8] ss:$20 sps:$4 sm:$0xff]  }
  0x27   :  { %1413 = vmatpush1.bf16.msra.mxu0 %v3170_v22  ;;  %1181 = vmatprep.subr.bf16.mxu1 %v3035_v0 }
  0x28   :  { %1414 = vmatprep.subr.bf16.mxu0 %v3035_v0 }
  0x2a   :  { %1182 = vmatpush1.bf16.msra.mxu1 %v2844_v23  ;;  %v2934_v23 = vld [vmem:[%s4066_s0 + $0x1ec] ss:$20 sps:$4 sm:$0xff]  }
  0x2b   :  { %1415 = vmatpush1.bf16.msra.mxu0 %v3181_v24  ;;  %1183 = vmatprep.subr.bf16.mxu1 %v3035_v0 }
  0x2c   :  { %1416 = vmatprep.subr.bf16.mxu0 %v3035_v0 }
  0x2e   :  { %1184 = vmatpush1.bf16.msra.mxu1 %v2846_v25  ;;  %v2937_v25 = vld [vmem:[%s4066_s0 + $0x1e8] ss:$20 sps:$4 sm:$0xff]  }
  0x2f   :  { %1417 = vmatpush1.bf16.msra.mxu0 %v3192_v26  ;;  %1185 = vmatprep.subr.bf16.mxu1 %v3035_v0 }
  0x30   :  { %1418 = vmatprep.subr.bf16.mxu0 %v3035_v0 }
  0x32   :  { %1186 = vmatpush1.bf16.msra.mxu1 %v2848_v27  ;;  %v2940_v27 = vld [vmem:[%s4066_s0 + $0x208] ss:$20 sps:$4 sm:$0xff]  }
  0x33   :  { %1419 = vmatpush1.bf16.msra.mxu0 %v3203_v28  ;;  %1187 = vmatprep.subr.bf16.mxu1 %v3035_v0 }
  0x34   :  { %1420 = vmatprep.subr.bf16.mxu0 %v3035_v0 }
  0x36   :  { %1188 = vmatpush1.bf16.msra.mxu1 %v2850_v29  ;;  %v2942_v29 = vld [vmem:[%s4066_s0 + $0x234] ss:$20 sps:$4 sm:$0xff]  }
  0x37   :  { %1421 = vmatpush1.bf16.msra.mxu0 %v3214_v30  ;;  %1189 = vmatprep.subr.bf16.mxu1 %v3035_v0 }
  0x38   :  { %1422 = vmatprep.subr.bf16.mxu0 %v3035_v0 }
  0x3a   :  { %1190 = vmatpush1.bf16.msra.mxu1 %v2852_v31  ;;  %v2945_v31 = vld [vmem:[%s4066_s0 + $0x38] ss:$20 sps:$4 sm:$0xff]  }
  0x3b   :  { %1423 = vmatpush1.bf16.msra.mxu0 %v3225_v32  ;;  %1191 = vmatprep.subr.bf16.mxu1 %v3035_v0 }
  0x3c   :  { %1424 = vmatprep.subr.bf16.mxu0 %v3035_v0 }
  0x3e   :  { %1192 = vmatpush1.bf16.msra.mxu1 %v2854_v33  ;;  %v2948_v33 = vld [vmem:[%s4066_s0 + $0x258] ss:$20 sps:$4 sm:$0xff]  }
  0x3f   :  { %1425 = vmatpush1.bf16.msra.mxu0 %v3236_v34  ;;  %2589 = vmatprep.subr.bf16.mxu1 %v3035_v0 }
  0x40   :  { %2481 = vmatprep.subr.bf16.mxu0 %v3036_v39 }
  0x41   :  { %1194 = vmatmul.mubr.bf16.vlgmr.msra.gmra.mrb[0].mxu1 %v2856_v35  ;;  %v2950_v35 = vld [vmem:[%s4066_s0 + $0x284] ss:$20 sps:$4 sm:$0xff]  }
  0x42   :  { %1427 = vmatmul.mubr.bf16.vlgmr.msra.gmra.mrb[0].mxu0 %v2859_v36  ;;  %1201 = vmatprep.mubr.bf16.mxu1 %v2863_v37  ;;  %v2952_v36 = vld [vmem:[%s4066_s0 + $0x280] ss:$20 sps:$4 sm:$0xff]   ;;  %v2953_v37 = vld [vmem:[%s4066_s0 + $0x88] ss:$20 sps:$4 sm:$0xff]  }
  0x43   :  { %2482 = vmatpush3.bf16.msra.mxu0 %v2862_v38  ;;  %2605 = vmatpush1.bf16.msra.mxu1 %v3066_v2  ;;  %v2899_v2 = vld [vmem:[%s4066_s0 + $0xf8] ss:$20 sps:$4 sm:$0xff]  }
  0x44   :  { %1434 = vmatprep.mubr.bf16.mxu0 %v2865_v40  ;;  %2590 = vmatprep.subr.bf16.mxu1 %v3035_v0  ;;  %v2954_v38 = vld [vmem:[%s4066_s0 + $0x2ac] ss:$20 sps:$4 sm:$0xff]   ;;  %v2956_v40 = vld [vmem:[%s4066_s0 + $0x2a8] ss:$20 sps:$4 sm:$0xff]  }
  0x45   :  { %2483 = vmatprep.subr.bf16.mxu0 %v3036_v39 }
  0x47   :  { %2606 = vmatpush1.bf16.msra.mxu1 %v3076_v4  ;;  %2484 = vmatpush3.bf16.msra.mxu0 %v2881_v41  ;;  %v2903_v4 = vld [vmem:[%s4066_s0 + $0x124] ss:$20 sps:$4 sm:$0xff]  }
  0x48   :  { %2591 = vmatprep.subr.bf16.mxu1 %v3035_v0  ;;  %2485 = vmatprep.subr.bf16.mxu0 %v3036_v39  ;;  %v2957_v41 = vld [vmem:[%s4066_s0 + $0xb0] ss:$20 sps:$4 sm:$0xff]  }
  0x49   :  { %1202 = vmatmul.mubr.bf16.gmra.mrb[4].mxu1 %v2867_v42  ;;  %v2958_v42 = vld [vmem:[%s4066_s0 + $0x2d4] ss:$20 sps:$4 sm:$0xff]  }
  0x4a   :  { %1435 = vmatmul.mubr.bf16.gmra.mrb[4].mxu0 %v2868_v43  ;;  %1209 = vmatprep.mubr.bf16.mxu1 %v2869_v44  ;;  %v2960_v43 = vld [vmem:[%s4066_s0 + $0x2d0] ss:$20 sps:$4 sm:$0xff]   ;;  %v2961_v44 = vld [vmem:[%s4066_s0 + $0xd8] ss:$20 sps:$4 sm:$0xff]  }
  0x4b   :  { %1442 = vmatprep.mubr.bf16.mxu0 %v2871_v45  ;;  %2607 = vmatpush1.bf16.msra.mxu1 %v3087_v6  ;;  %v2906_v6 = vld [vmem:[%s4066_s0 + $0x120] ss:$20 sps:$4 sm:$0xff]   ;;  %v2962_v45 = vld [vmem:[%s4066_s0 + $0x2fc] ss:$20 sps:$4 sm:$0xff]  }
  0x4c   :  { %2592 = vmatprep.subr.bf16.mxu1 %v3035_v0  ;;  %2486 = vmatpush3.bf16.msra.mxu0 %v2900_v46  ;;  %v2964_v46 = vld [vmem:[%s4066_s0 + $0x2f8] ss:$20 sps:$4 sm:$0xff]  }
  0x4d   :  { %2487 = vmatprep.subr.bf16.mxu0 %v3036_v39 }
  0x4f   :  { %2608 = vmatpush1.bf16.msra.mxu1 %v3098_v8  ;;  %v2909_v8 = vld [vmem:[%s4066_s0 + $0x14c] ss:$20 sps:$4 sm:$0xff]  }
  0x50   :  { %2593 = vmatprep.subr.bf16.mxu1 %v3035_v0  ;;  %2488 = vmatpush3.bf16.msra.mxu0 %v2923_v47  ;;  %v2965_v47 = vld [vmem:[%s4066_s0 + $0x100] ss:$20 sps:$4 sm:$0xff]  }
  0x51   :  { %1210 = vmatmul.mubr.bf16.gmra.mrb[8].mxu1 %v2873_v48  ;;  %v2966_v48 = vld [vmem:[%s4066_s0 + $0x324] ss:$20 sps:$4 sm:$0xff]  }
  0x52   :  { %1443 = vmatmul.mubr.bf16.gmra.mrb[8].mxu0 %v2874_v49  ;;  %1217 = vmatprep.mubr.bf16.mxu1 %v2875_v50  ;;  %v2968_v49 = vld [vmem:[%s4066_s0 + $0x320] ss:$20 sps:$4 sm:$0xff]   ;;  %v2969_v50 = vld [vmem:[%s4066_s0 + $0x128] ss:$20 sps:$4 sm:$0xff]  }
  0x53   :  { %1450 = vmatprep.mubr.bf16.mxu0 %v2877_v51  ;;  %2609 = vmatpush1.bf16.msra.mxu1 %v3109_v10  ;;  %v2912_v10 = vld [vmem:[%s4066_s0 + $0x148] ss:$20 sps:$4 sm:$0xff]   ;;  %v2970_v51 = vld [vmem:[%s4066_s0 + $0x34c] ss:$20 sps:$4 sm:$0xff]  }
  0x54   :  { %2594 = vmatprep.subr.bf16.mxu1 %v3035_v0 }
  0x57   :  { %2610 = vmatpush1.bf16.msra.mxu1 %v3120_v12  ;;  %v2915_v12 = vld [vmem:[%s4066_s0 + $0x174] ss:$20 sps:$4 sm:$0xff]  }
  0x58   :  { %2595 = vmatprep.subr.bf16.mxu1 %v3035_v0 }
  0x59   :  { %1218 = vmatmul.mubr.bf16.gmra.mrb[12].mxu1 %v2879_v52  ;;  %v2972_v52 = vld [vmem:[%s4066_s0 + $0x348] ss:$20 sps:$4 sm:$0xff]  }
  0x5a   :  { %1451 = vmatmul.mubr.bf16.gmra.mrb[12].mxu0 %v2880_v53  ;;  %1225 = vmatprep.mubr.bf16.mxu1 %v2882_v54  ;;  %v2973_v53 = vld [vmem:[%s4066_s0 + $0x150] ss:$20 sps:$4 sm:$0xff]   ;;  %v2974_v54 = vld [vmem:[%s4066_s0 + $0x374] ss:$20 sps:$4 sm:$0xff]  }
  0x5b   :  { %1458 = vmatprep.mubr.bf16.mxu0 %v2884_v55  ;;  %2611 = vmatpush1.bf16.msra.mxu1 %v3131_v14  ;;  %v2919_v14 = vld [vmem:[%s4066_s0 + $0x194] ss:$20 sps:$4 sm:$0xff]   ;;  %v2976_v55 = vld [vmem:[%s4066_s0 + $0x370] ss:$20 sps:$4 sm:$0xff]  }
  0x5c   :  { %2596 = vmatprep.subr.bf16.mxu1 %v3035_v0 }
  0x5f   :  { %2612 = vmatpush1.bf16.msra.mxu1 %v3142_v16  ;;  %v2924_v16 = vld [vmem:[%s4066_s0 + $0x190] ss:$20 sps:$4 sm:$0xff]  }
  0x60   :  { %2597 = vmatprep.subr.bf16.mxu1 %v3035_v0 }
  0x61   :  { %1226 = vmatmul.mubr.bf16.gmra.mrb[16].mxu1 %v2886_v56  ;;  %v2977_v56 = vld [vmem:[%s4066_s0 + $0x178] ss:$20 sps:$4 sm:$0xff]  }
  0x62   :  { %1459 = vmatmul.mubr.bf16.gmra.mrb[16].mxu0 %v2887_v57  ;;  %1233 = vmatprep.mubr.bf16.mxu1 %v2888_v58  ;;  %v2978_v57 = vld [vmem:[%s4066_s0 + $0x39c] ss:$20 sps:$4 sm:$0xff]   ;;  %v2980_v58 = vld [vmem:[%s4066_s0 + $0x398] ss:$20 sps:$4 sm:$0xff]  }
  0x63   :  { %1466 = vmatprep.mubr.bf16.mxu0 %v2890_v59  ;;  %2613 = vmatpush1.bf16.msra.mxu1 %v3153_v18  ;;  %v2926_v18 = vld [vmem:[%s4066_s0 + $0x1bc] ss:$20 sps:$4 sm:$0xff]   ;;  %v2981_v59 = vld [vmem:[%s4066_s0 + $0x1a0] ss:$20 sps:$4 sm:$0xff]  }
  0x64   :  { %2598 = vmatprep.subr.bf16.mxu1 %v3035_v0 }
  0x67   :  { %2614 = vmatpush1.bf16.msra.mxu1 %v3170_v22  ;;  %v2932_v22 = vld [vmem:[%s4066_s0 + $0x1e4] ss:$20 sps:$4 sm:$0xff]  }
  0x68   :  { %2599 = vmatprep.subr.bf16.mxu1 %v3035_v0 }
  0x69   :  { %1234 = vmatmul.mubr.bf16.gmra.mrb[20].mxu1 %v2892_v60  ;;  %v2982_v60 = vld [vmem:[%s4066_s0 + $0x3c4] ss:$20 sps:$4 sm:$0xff]  }
  0x6a   :  { %1467 = vmatmul.mubr.bf16.gmra.mrb[20].mxu0 %v2893_v61  ;;  %1241 = vmatprep.mubr.bf16.mxu1 %v2894_v62  ;;  %v2984_v61 = vld [vmem:[%s4066_s0 + $0x3c0] ss:$20 sps:$4 sm:$0xff]   ;;  %v2985_v62 = vld [vmem:[%s4066_s0 + $0x1c8] ss:$20 sps:$4 sm:$0xff]  }
  0x6b   :  { %1474 = vmatprep.mubr.bf16.mxu0 %v2896_v63  ;;  %2615 = vmatpush1.bf16.msra.mxu1 %v3181_v24  ;;  %v2936_v24 = vld [vmem:[%s4066_s0 + $0x1e0] ss:$20 sps:$4 sm:$0xff]  }
  0x6c   :  { %2600 = vmatprep.subr.bf16.mxu1 %v3035_v0  ;;  %v2988_v63 = vld [vmem:[%s4066_s0 + $0x214] ss:$20 sps:$4 sm:$0xff]  }
  0x6f   :  { %2616 = vmatpush1.bf16.msra.mxu1 %v3192_v26  ;;  %v2938_v26 = vld [vmem:[%s4066_s0 + $0x20c] ss:$20 sps:$4 sm:$0xff]  }
  0x70   :  { %2601 = vmatprep.subr.bf16.mxu1 %v3035_v0 }
  0x71   :  { %1242 = vmatmul.mubr.bf16.gmra.mrb[24].mxu1 %v2898_v1  ;;  %v2986_v1 = vld [vmem:[%s4066_s0 + $0x210] ss:$20 sps:$4 sm:$0xff]  }
  0x72   :  { %1475 = vmatmul.mubr.bf16.gmra.mrb[24].mxu0 %v2899_v2  ;;  %1249 = vmatprep.mubr.bf16.mxu1 %v2901_v3  ;;  %v2989_v2 = vld [vmem:[%s4066_s0 + $0x1f0] ss:$20 sps:$4 sm:$0xff]  }
  0x73   :  { %1482 = vmatprep.mubr.bf16.mxu0 %v2903_v4  ;;  %2617 = vmatpush1.bf16.msra.mxu1 %v3203_v28  ;;  %v2941_v28 = vld [vmem:[%s4066_s0 + $0x10] ss:$20 sps:$4 sm:$0xff]   ;;  %v2992_v4 = vld [vmem:[%s4066_s0 + $0x238] ss:$20 sps:$4 sm:$0xff]  }
  0x74   :  { %2602 = vmatprep.subr.bf16.mxu1 %v3035_v0  ;;  %v2990_v3 = vld [vmem:[%s4066_s0 + $0x23c] ss:$20 sps:$4 sm:$0xff]  }
  0x77   :  { %2618 = vmatpush1.bf16.msra.mxu1 %v3214_v30  ;;  %v2944_v30 = vld [vmem:[%s4066_s0 + $0x230] ss:$20 sps:$4 sm:$0xff]  }
  0x78   :  { %2603 = vmatprep.subr.bf16.mxu1 %v3035_v0 }
  0x79   :  { %1250 = vmatmul.mubr.bf16.gmra.mrb[28].mxu1 %v2905_v5  ;;  %v2993_v5 = vld [vmem:[%s4066_s0 + $0x218] ss:$20 sps:$4 sm:$0xff]  }
  0x7a   :  { %1483 = vmatmul.mubr.bf16.gmra.mrb[28].mxu0 %v2906_v6  ;;  %1257 = vmatprep.mubr.bf16.mxu1 %v2907_v7  ;;  %v2994_v6 = vld [vmem:[%s4066_s0 + $0x264] ss:$20 sps:$4 sm:$0xff]  }
  0x7b   :  { %1490 = vmatprep.mubr.bf16.mxu0 %v2909_v8  ;;  %2619 = vmatpush1.bf16.msra.mxu1 %v3225_v32  ;;  %v2946_v32 = vld [vmem:[%s4066_s0 + $0x25c] ss:$20 sps:$4 sm:$0xff]  }
  0x7c   :  { %2604 = vmatprep.subr.bf16.mxu1 %v3035_v0  ;;  %v2917_v0 = vld [vmem:[%s4066_s0 + $0x168] ss:$20 sps:$4 sm:$0xff]  }
  0x7f   :  { %2620 = vmatpush1.bf16.msra.mxu1 %v3236_v34  ;;  %v2949_v34 = vld [vmem:[%s4066_s0 + $0x60] ss:$20 sps:$4 sm:$0xff]  }
  0x81   :  { %1258 = vmatmul.mubr.bf16.gmra.mrb[32].mxu1 %v2911_v9  ;;  %v2996_v9 = vld [vmem:[%s4066_s0 + $0x260] ss:$20 sps:$4 sm:$0xff]  }
  0x82   :  { %1491 = vmatmul.mubr.bf16.gmra.mrb[32].mxu0 %v2912_v10  ;;  %1265 = vmatprep.mubr.bf16.mxu1 %v2913_v11  ;;  %v2997_v10 = vld [vmem:[%s4066_s0 + $0x240] ss:$20 sps:$4 sm:$0xff]  }
  0x83   :  { %1498 = vmatprep.mubr.bf16.mxu0 %v2915_v12  ;;  %v2998_v12 = vld [vmem:[%s4066_s0 + $0x28c] ss:$20 sps:$4 sm:$0xff]  }
  0x89   :  { %1266 = vmatmul.mubr.bf16.gmra.mrb[36].mxu1 %v2917_v0 }
  0x8a   :  { %1499 = vmatmul.mubr.bf16.gmra.mrb[36].mxu0 %v2918_v13  ;;  %1273 = vmatprep.mubr.bf16.mxu1 %v2919_v14 }
  0x8b   :  { %1506 = vmatprep.mubr.bf16.mxu0 %v2921_v15  ;;  %v3000_v15 = vld [vmem:[%s4066_s0 + $0x288] ss:$20 sps:$4 sm:$0xff]  }
  0x91   :  { %1274 = vmatmul.mubr.bf16.gmra.mrb[40].mxu1 %v2924_v16  ;;  %v3001_v16 = vld [vmem:[%s4066_s0 + $0x268] ss:$20 sps:$4 sm:$0xff]  }
  0x92   :  { %1507 = vmatmul.mubr.bf16.gmra.mrb[40].mxu0 %v2925_v17  ;;  %1281 = vmatprep.mubr.bf16.mxu1 %v2926_v18  ;;  %v3002_v18 = vld [vmem:[%s4066_s0 + $0x2b4] ss:$20 sps:$4 sm:$0xff]  }
  0x93   :  { %1514 = vmatprep.mubr.bf16.mxu0 %v2928_v19 }
  0x99   :  { %1282 = vmatmul.mubr.bf16.gmra.mrb[44].mxu1 %v2930_v20 }
  0x9a   :  { %1515 = vmatmul.mubr.bf16.gmra.mrb[44].mxu0 %v2931_v21  ;;  %1289 = vmatprep.mubr.bf16.mxu1 %v2932_v22  ;;  %v3004_v22 = vld [vmem:[%s4066_s0 + $0x2b0] ss:$20 sps:$4 sm:$0xff]  }
  0x9b   :  { %1522 = vmatprep.mubr.bf16.mxu0 %v2934_v23  ;;  %v3005_v23 = vld [vmem:[%s4066_s0 + $0x290] ss:$20 sps:$4 sm:$0xff]  }
  0xa1   :  { %1290 = vmatmul.mubr.bf16.gmra.mrb[48].mxu1 %v2936_v24 }
  0xa2   :  { %1523 = vmatmul.mubr.bf16.gmra.mrb[48].mxu0 %v2937_v25  ;;  %1297 = vmatprep.mubr.bf16.mxu1 %v2938_v26  ;;  %v3006_v25 = vld [vmem:[%s4066_s0 + $0x2dc] ss:$20 sps:$4 sm:$0xff]  }
  0xa3   :  { %2489 = vmatprep.mubr.msk.bf16.mxu0 %vm3037_vm0, %v3036_v39 }
  0xa9   :  { %1298 = vmatmul.mubr.bf16.gmra.mrb[52].mxu1 %v2940_v27 }
  0xaa   :  { %2490 = vmatmul.mubr.msk.bf16.vlgmr.msra.gmra.mrb[0].mxu0 %vm1085_vm1, %v2941_v28  ;;  %1305 = vmatprep.mubr.bf16.mxu1 %v2942_v29  ;;  %v3008_v29 = vld [vmem:[%s4066_s0 + $0x2d8] ss:$20 sps:$4 sm:$0xff]  }
  0xab   :  { %2493 = vmatprep.mubr.msk.bf16.mxu0 %vm3037_vm0, %v3036_v39 }
  0xb1   :  { %1306 = vmatmul.mubr.bf16.gmra.mrb[56].mxu1 %v2944_v30  ;;  %v3009_v30 = vld [vmem:[%s4066_s0 + $0x2b8] ss:$20 sps:$4 sm:$0xff]  }
  0xb2   :  { %2494 = vmatmul.mubr.msk.bf16.gmra.mrb[4].mxu0 %vm1085_vm1, %v2945_v31  ;;  %1313 = vmatprep.mubr.bf16.mxu1 %v2946_v32  ;;  %v3010_v32 = vld [vmem:[%s4066_s0 + $0x304] ss:$20 sps:$4 sm:$0xff]  }
  0xb3   :  { %2497 = vmatprep.mubr.msk.bf16.mxu0 %vm3037_vm0, %v3036_v39 }
  0xb9   :  { %1314 = vmatmul.mubr.bf16.gmra.mrb[60].mxu1 %v2948_v33 }
  0xba   :  { %2498 = vmatmul.mubr.msk.bf16.gmra.mrb[8].mxu0 %vm1085_vm1, %v2949_v34  ;;  %1321 = vmatprep.mubr.bf16.mxu1 %v2950_v35 }
  0xbb   :  { %2501 = vmatprep.mubr.msk.bf16.mxu0 %vm3037_vm0, %v3036_v39 }
  0xc1   :  { %1322 = vmatmul.mubr.bf16.gmra.mrb[64].mxu1 %v2952_v36  ;;  %v3012_v36 = vld [vmem:[%s4066_s0 + $0x300] ss:$20 sps:$4 sm:$0xff]  }
  0xc2   :  { %2502 = vmatmul.mubr.msk.bf16.gmra.mrb[12].mxu0 %vm1085_vm1, %v2953_v37  ;;  %1329 = vmatprep.mubr.bf16.mxu1 %v2954_v38  ;;  %v3013_v37 = vld [vmem:[%s4066_s0 + $0x2e0] ss:$20 sps:$4 sm:$0xff]  }
  0xc3   :  { %2505 = vmatprep.mubr.msk.bf16.mxu0 %vm3037_vm0, %v3036_v39 }
  0xc9   :  { %1330 = vmatmul.mubr.bf16.gmra.mrb[68].mxu1 %v2956_v40  ;;  %v3014_v40 = vld [vmem:[%s4066_s0 + $0x32c] ss:$20 sps:$4 sm:$0xff]  }
  0xca   :  { %2506 = vmatmul.mubr.msk.bf16.gmra.mrb[16].mxu0 %vm1085_vm1, %v2957_v41  ;;  %1337 = vmatprep.mubr.bf16.mxu1 %v2958_v42 }
  0xcb   :  { %2509 = vmatprep.mubr.msk.bf16.mxu0 %vm3037_vm0, %v3036_v39 }
  0xd1   :  { %1338 = vmatmul.mubr.bf16.gmra.mrb[72].mxu1 %v2960_v43 }
  0xd2   :  { %2510 = vmatmul.mubr.msk.bf16.gmra.mrb[20].mxu0 %vm1085_vm1, %v2961_v44  ;;  %1345 = vmatprep.mubr.bf16.mxu1 %v2962_v45  ;;  %v3016_v44 = vld [vmem:[%s4066_s0 + $0x328] ss:$20 sps:$4 sm:$0xff]  }
  0xd3   :  { %2513 = vmatprep.mubr.msk.bf16.mxu0 %vm3037_vm0, %v3036_v39  ;;  %v3017_v45 = vld [vmem:[%s4066_s0 + $0x308] ss:$20 sps:$4 sm:$0xff]  }
  0xd9   :  { %1346 = vmatmul.mubr.bf16.gmra.mrb[76].mxu1 %v2964_v46 }
  0xda   :  { %2514 = vmatmul.mubr.msk.bf16.gmra.mrb[24].mxu0 %vm1085_vm1, %v2965_v47  ;;  %1353 = vmatprep.mubr.bf16.mxu1 %v2966_v48  ;;  %v3018_v47 = vld [vmem:[%s4066_s0 + $0x354] ss:$20 sps:$4 sm:$0xff]  }
  0xdb   :  { %2517 = vmatprep.mubr.msk.bf16.mxu0 %vm3037_vm0, %v3036_v39 }
  0xe1   :  { %1354 = vmatmul.mubr.bf16.gmra.mrb[80].mxu1 %v2968_v49 }
  0xe2   :  { %2518 = vmatmul.mubr.msk.bf16.gmra.mrb[28].mxu0 %vm1085_vm1, %v2969_v50  ;;  %1361 = vmatprep.mubr.bf16.mxu1 %v2970_v51  ;;  %v3020_v51 = vld [vmem:[%s4066_s0 + $0x350] ss:$20 sps:$4 sm:$0xff]  }
  0xe3   :  { %2521 = vmatprep.mubr.msk.bf16.mxu0 %vm3037_vm0, %v3036_v39 }
  0xe9   :  { %1362 = vmatmul.mubr.bf16.gmra.mrb[84].mxu1 %v2972_v52  ;;  %v3021_v52 = vld [vmem:[%s4066_s0 + $0x330] ss:$20 sps:$4 sm:$0xff]  }
  0xea   :  { %2522 = vmatmul.mubr.msk.bf16.gmra.mrb[32].mxu0 %vm1085_vm1, %v2973_v53  ;;  %1369 = vmatprep.mubr.bf16.mxu1 %v2974_v54  ;;  %v3022_v54 = vld [vmem:[%s4066_s0 + $0x37c] ss:$20 sps:$4 sm:$0xff]  }
  0xeb   :  { %2525 = vmatprep.mubr.msk.bf16.mxu0 %vm3037_vm0, %v3036_v39 }
  0xf1   :  { %1370 = vmatmul.mubr.bf16.gmra.mrb[88].mxu1 %v2976_v55 }
  0xf2   :  { %2526 = vmatmul.mubr.msk.bf16.gmra.mrb[36].mxu0 %vm1085_vm1, %v2977_v56  ;;  %1377 = vmatprep.mubr.bf16.mxu1 %v2978_v57 }
  0xf3   :  { %2529 = vmatprep.mubr.msk.bf16.mxu0 %vm3037_vm0, %v3036_v39 }
  0xf9   :  { %1378 = vmatmul.mubr.bf16.gmra.mrb[92].mxu1 %v2980_v58  ;;  %v3024_v58 = vld [vmem:[%s4066_s0 + $0x378] ss:$20 sps:$4 sm:$0xff]  }
  0xfa   :  { %2530 = vmatmul.mubr.msk.bf16.gmra.mrb[40].mxu0 %vm1085_vm1, %v2981_v59  ;;  %1385 = vmatprep.mubr.bf16.mxu1 %v2982_v60  ;;  %v3025_v59 = vld [vmem:[%s4066_s0 + $0x358] ss:$20 sps:$4 sm:$0xff]  }
  0xfb   :  { %2533 = vmatprep.mubr.msk.bf16.mxu0 %vm3037_vm0, %v3036_v39 }
 0x101   :  { %1386 = vmatmul.mubr.bf16.gmra.mrb[96].mxu1 %v2984_v61  ;;  %v3026_v61 = vld [vmem:[%s4066_s0 + $0x3a4] ss:$20 sps:$4 sm:$0xff]  }
 0x102   :  { %2534 = vmatmul.mubr.msk.bf16.gmra.mrb[44].mxu0 %vm1085_vm1, %v2985_v62  ;;  %1530 = vmatprep.mubr.bf16.mxu1 %v2988_v63 }
 0x103   :  { %2537 = vmatprep.mubr.msk.bf16.mxu0 %vm3037_vm0, %v3036_v39 }
 0x109   :  { %1531 = vmatmul.mubr.bf16.vlgmr.msra.gmra.mrb[52].mxu1 %v2986_v1 }
 0x10a   :  { %2538 = vmatmul.mubr.msk.bf16.gmra.mrb[48].mxu0 %vm1085_vm1, %v2989_v2  ;;  %1538 = vmatprep.mubr.bf16.mxu1 %v2990_v3  ;;  %v3028_v2 = vld [vmem:[%s4066_s0 + $0x3a0] ss:$20 sps:$4 sm:$0xff]  }
 0x10b   :  { %2541 = vmatprep.mubr.msk.bf16.mxu0 %vm3037_vm0, %v3036_v39  ;;  %v3029_v3 = vld [vmem:[%s4066_s0 + $0x380] ss:$20 sps:$4 sm:$0xff]  }
 0x111   :  { %1539 = vmatmul.mubr.bf16.gmra.mrb[56].mxu1 %v2992_v4 }
 0x112   :  { %2542 = vmatmul.mubr.msk.bf16.gmra.mrb[52].mxu0 %vm1085_vm1, %v2993_v5  ;;  %1546 = vmatprep.mubr.bf16.mxu1 %v2994_v6  ;;  %v3030_v5 = vld [vmem:[%s4066_s0 + $0x3cc] ss:$20 sps:$4 sm:$0xff]  }
 0x113   :  { %2545 = vmatprep.mubr.msk.bf16.mxu0 %vm3037_vm0, %v3036_v39 }
 0x114   :  { %v3611_v7 = vpop.f32.mrb[0].mxu1 }
 0x115   :  { %v1197_v8 = vpop.f32.mrb[1].mxu1 }
 0x116   :  { %v3619_v11 = vpop.f32.mrb[2].mxu1 }
 0x117   :  { %v1200_v0 = vpop.f32.mrb[3].mxu1 }
 0x119   :  { %1547 = vmatmul.mubr.bf16.gmra.mrb[60].mxu1 %v2996_v9 }
 0x11a   :  { %2546 = vmatmul.mubr.msk.bf16.gmra.mrb[56].mxu0 %vm1085_vm1, %v2997_v10  ;;  %1554 = vmatprep.mubr.bf16.mxu1 %v2998_v12  ;;  %v3032_v10 = vld [vmem:[%s4066_s0 + $0x3c8] ss:$20 sps:$4 sm:$0xff]  }
 0x11b   :  { %2549 = vmatprep.mubr.msk.bf16.mxu0 %vm3037_vm0, %v3036_v39  ;;  %v3033_v12 = vld [vmem:[%s4066_s0 + $0x3a8] ss:$20 sps:$4 sm:$0xff]  }
 0x11c   :  { %v3627_v13 = vpop.f32.mrb[4].mxu1 }
 0x11d   :  { %v1205_v14 = vpop.f32.mrb[5].mxu1 }
 0x11e   :  { %v3635_v17 = vpop.f32.mrb[6].mxu1 }
 0x11f   :  { %v1208_v19 = vpop.f32.mrb[7].mxu1 }
 0x121   :  { %1555 = vmatmul.mubr.bf16.gmra.mrb[64].mxu1 %v3000_v15 }
 0x122   :  { %2550 = vmatmul.mubr.msk.bf16.gmra.mrb[60].mxu0 %vm1085_vm1, %v3001_v16  ;;  %1562 = vmatprep.mubr.bf16.mxu1 %v3002_v18  ;;  %v3034_v18 = vld [vmem:[%s4066_s0 + $0x3d0] ss:$20 sps:$4 sm:$0xff]  }
 0x123   :  { %2553 = vmatprep.mubr.msk.bf16.mxu0 %vm3037_vm0, %v3036_v39 }
 0x124   :  { %v3643_v20 = vpop.f32.mrb[8].mxu1 }
 0x125   :  { %v1213_v21 = vpop.f32.mrb[9].mxu1 }
 0x126   :  { %v3651_v24 = vpop.f32.mrb[10].mxu1 }
 0x127   :  { %v1216_v26 = vpop.f32.mrb[11].mxu1 }
 0x129   :  { %1563 = vmatmul.mubr.bf16.gmra.mrb[68].mxu1 %v3004_v22 }
 0x12a   :  { %2554 = vmatmul.mubr.msk.bf16.gmra.mrb[64].mxu0 %vm1085_vm1, %v3005_v23  ;;  %1570 = vmatprep.mubr.bf16.mxu1 %v3006_v25 }
 0x12b   :  { %2557 = vmatprep.mubr.msk.bf16.mxu0 %vm3037_vm0, %v3036_v39 }
 0x12c   :  { %v3659_v27 = vpop.f32.mrb[12].mxu1 }
 0x12d   :  { %v1221_v28 = vpop.f32.mrb[13].mxu1 }
 0x12e   :  { %v3667_v31 = vpop.f32.mrb[14].mxu1 }
 0x12f   :  { %v1224_v33 = vpop.f32.mrb[15].mxu1 }
 0x131   :  { %1571 = vmatmul.mubr.bf16.gmra.mrb[72].mxu1 %v3008_v29 }
 0x132   :  { %2558 = vmatmul.mubr.msk.bf16.gmra.mrb[68].mxu0 %vm1085_vm1, %v3009_v30  ;;  %1578 = vmatprep.mubr.bf16.mxu1 %v3010_v32  ;;  %v3787_v32 = vld [vmem:[%s4067_s2] ss:$0 sm:$0xff] }
 0x133   :  { %2561 = vmatprep.mubr.msk.bf16.mxu0 %vm3037_vm0, %v3036_v39  ;;  %v1196_v33 = vadd.f32 %v3787_v32, %v3611_v7 }
 0x134   :  { %v3675_v34 = vpop.f32.mrb[16].mxu1 }
 0x135   :  { %v1229_v35 = vpop.f32.mrb[17].mxu1 }
 0x136   :  { %v3683_v38 = vpop.f32.mrb[18].mxu1 }
 0x137   :  { %v1232_v41 = vpop.f32.mrb[19].mxu1 }
 0x139   :  { %1579 = vmatmul.mubr.bf16.gmra.mrb[76].mxu1 %v3012_v36  ;;  %v1199_v36 = vadd.f32 %v3787_v32, %v3619_v11  ;;  %v1207_v11 = vadd.f32 %v3787_v32, %v3635_v17 }
 0x13a   :  { %2562 = vmatmul.mubr.msk.bf16.gmra.mrb[72].mxu0 %vm1085_vm1, %v3013_v37  ;;  %1586 = vmatprep.mubr.bf16.mxu1 %v3014_v40 }
 0x13b   :  { %2565 = vmatprep.mubr.msk.bf16.mxu0 %vm3037_vm0, %v3036_v39 }
 0x13c   :  { %v3691_v42 = vpop.f32.mrb[20].mxu1 }
 0x13d   :  { %v1237_v43 = vpop.f32.mrb[21].mxu1 }
 0x13e   :  { %v3699_v46 = vpop.f32.mrb[22].mxu1 }
 0x13f   :  { %v1240_v48 = vpop.f32.mrb[23].mxu1 }
 0x141   :  { %1587 = vmatmul.mubr.bf16.gmra.mrb[80].mxu1 %v3016_v44 }
 0x142   :  { %2566 = vmatmul.mubr.msk.bf16.gmra.mrb[76].mxu0 %vm1085_vm1, %v3017_v45  ;;  %1594 = vmatprep.mubr.bf16.mxu1 %v3018_v47 }
 0x143   :  { %2569 = vmatprep.mubr.msk.bf16.mxu0 %vm3037_vm0, %v3036_v39 }
 0x144   :  { %v3707_v49 = vpop.f32.mrb[24].mxu1 }
 0x145   :  { %v1245_v50 = vpop.f32.mrb[25].mxu1 }
 0x146   :  { %v3715_v53 = vpop.f32.mrb[26].mxu1  ;;  %v1204_v50 = vadd.f32 %v3787_v32, %v3627_v13 }
 0x147   :  { %v1248_v55 = vpop.f32.mrb[27].mxu1 }
 0x149   :  { %1595 = vmatmul.mubr.bf16.gmra.mrb[84].mxu1 %v3020_v51 }
 0x14a   :  { %2570 = vmatmul.mubr.msk.bf16.gmra.mrb[80].mxu0 %vm1085_vm1, %v3021_v52  ;;  %1602 = vmatprep.mubr.bf16.mxu1 %v3022_v54 }
 0x14b   :  { %2573 = vmatprep.mubr.msk.bf16.mxu0 %vm3037_vm0, %v3036_v39 }
 0x14c   :  { %v3723_v56 = vpop.f32.mrb[28].mxu1 }
 0x14d   :  { %v1253_v57 = vpop.f32.mrb[29].mxu1 }
 0x14e   :  { %v3731_v60 = vpop.f32.mrb[30].mxu1 }
 0x14f   :  { %v1256_v62 = vpop.f32.mrb[31].mxu1 }
 0x150   :  { %v1212_v62 = vadd.f32 %v3787_v32, %v3643_v20 }
 0x151   :  { %1603 = vmatmul.mubr.bf16.gmra.mrb[88].mxu1 %v3024_v58 }
 0x152   :  { %2574 = vmatmul.mubr.msk.bf16.gmra.mrb[84].mxu0 %vm1085_vm1, %v3025_v59  ;;  %1610 = vmatprep.mubr.bf16.mxu1 %v3026_v61 }
 0x153   :  { %2577 = vmatprep.mubr.msk.bf16.mxu0 %vm3037_vm0, %v3036_v39 }
 0x154   :  { %v3739_v63 = vpop.f32.mrb[32].mxu1 }
 0x155   :  { %v1261_v1 = vpop.f32.mrb[33].mxu1 }
 0x156   :  { %v3747_v4 = vpop.f32.mrb[34].mxu1 }
 0x157   :  { %v1264_v6 = vpop.f32.mrb[35].mxu1 }
 0x159   :  { %1611 = vmatmul.mubr.bf16.gmra.mrb[92].mxu1 %v3028_v2  ;;  %v1215_v2 = vadd.f32 %v3787_v32, %v3651_v24 }
 0x15a   :  { %2578 = vmatmul.mubr.msk.bf16.gmra.mrb[88].mxu0 %vm1085_vm1, %v3029_v3  ;;  %1618 = vmatprep.mubr.bf16.mxu1 %v3030_v5 }
 0x15b   :  { %2581 = vmatprep.mubr.msk.bf16.mxu0 %vm3037_vm0, %v3036_v39 }
 0x15c   :  { %v3755_v8 = vpop.f32.mrb[36].mxu1 }
 0x15d   :  { %v1269_v9 = vpop.f32.mrb[37].mxu1 }
 0x15e   :  { %v3763_v0 = vpop.f32.mrb[38].mxu1 }
 0x15f   :  { %v1272_v14 = vpop.f32.mrb[39].mxu1 }
 0x161   :  { %1619 = vmatmul.mubr.bf16.gmra.mrb[96].mxu1 %v3032_v10 }
 0x162   :  { %2582 = vmatmul.mubr.msk.bf16.gmra.mrb[92].mxu0 %vm1085_vm1, %v3033_v12 }
 0x163   :  { %2585 = vmatprep.mubr.msk.bf16.mxu0 %vm3037_vm0, %v3036_v39 }
 0x164   :  { %v3768_v15 = vpop.f32.mrb[40].mxu1 }
 0x165   :  { %v1277_v16 = vpop.f32.mrb[41].mxu1 }
 0x166   :  { %v3773_v19 = vpop.f32.mrb[42].mxu1  ;;  %v1220_v16 = vadd.f32 %v3787_v32, %v3659_v27 }
 0x167   :  { %v1280_v21 = vpop.f32.mrb[43].mxu1 }
 0x168   :  { %v1223_v21 = vadd.f32 %v3787_v32, %v3667_v31 }
 0x16a   :  { %2586 = vmatmul.mubr.msk.bf16.gmra.mrb[96].mxu0 %vm1085_vm1, %v3034_v18 }
 0x16c   :  { %v3776_v22 = vpop.f32.mrb[44].mxu1 }
 0x16d   :  { %v1285_v23 = vpop.f32.mrb[45].mxu1 }
 0x16e   :  { %v3778_v25 = vpop.f32.mrb[46].mxu1 }
 0x16f   :  { %v1288_v26 = vpop.f32.mrb[47].mxu1 }
 0x174   :  { %v3780_v28 = vpop.f32.mrb[48].mxu1 }
 0x175   :  { %v1293_v39 = vpop.f32.mrb[49].mxu1 }
 0x176   :  { %v3782_v29 = vpop.f32.mrb[50].mxu1 }
 0x177   :  { %v1296_v30 = vpop.f32.mrb[51].mxu1 }
 0x17d   :  { %v1661_v35 = vpop.f32.mrb[0].mxu0 }
 0x17e   :  { %v2622_v37 = vadd.f32 %v1661_v35, %v1196_v33  ;;  %v2491_v40 = vpop.f32.mrb[1].mxu0 }
 0x17f   :  { %v1664_v41 = vpop.f32.mrb[2].mxu0 }
 0x180   :  { %v1860_v43 = vmax.f32 %v2622_v37, 0.0  ;;  %v2624_v44 = vadd.f32 %v1664_v41, %v1199_v36  ;;  %v2492_v45 = vpop.f32.mrb[3].mxu0  ;;  %v1228_v37 = vadd.f32 %v3787_v32, %v3675_v34  ;;  %v1231_v41 = vadd.f32 %v3787_v32, %v3683_v38 }
 0x182   :  { %v2402_v47 = vpack.c.bf16 %v1860_v43, %v1860_v43  ;;  %v1861_v48 = vmax.f32 %v2624_v44, 0.0 }
 0x184   :  { %2111 = vst.msk [vmem:[%s4068_s3] sm:$0xf] %vm2110_vm2, %v2402_v47  ;;  %v2403_v7 = vpack.c.bf16 %v1861_v48, %v1861_v48 }
 0x185   :  { %v1669_v51 = vpop.f32.mrb[4].mxu0 }
 0x186   :  { %2112 = vst.msk [vmem:[%s4068_s3 + $0x4] sm:$0xf] %vm2110_vm2, %v2403_v7  ;;  %v2626_v52 = vadd.f32 %v1669_v51, %v1204_v50  ;;  %v2495_v54 = vpop.f32.mrb[5].mxu0  ;;  %v1236_v51 = vadd.f32 %v3787_v32, %v3691_v42 }
 0x187   :  { %v1672_v55 = vpop.f32.mrb[6].mxu0 }
 0x188   :  { %v1862_v57 = vmax.f32 %v2626_v52, 0.0  ;;  %v2628_v13 = vadd.f32 %v1672_v55, %v1207_v11  ;;  %v2496_v58 = vpop.f32.mrb[7].mxu0  ;;  %v1239_v52 = vadd.f32 %v3787_v32, %v3699_v46 }
 0x18a   :  { %v2404_v59 = vpack.c.bf16 %v1862_v57, %v1862_v57  ;;  %v1863_v61 = vmax.f32 %v2628_v13, 0.0 }
 0x18c   :  { %2113 = vst.msk [vmem:[%s4068_s3 + $0x8] sm:$0xf] %vm2110_vm2, %v2404_v59  ;;  %v2405_v17 = vpack.c.bf16 %v1863_v61, %v1863_v61 }
 0x18d   :  { %v1677_v1 = vpop.f32.mrb[8].mxu0 }
 0x18e   :  { %2114 = vst.msk [vmem:[%s4068_s3 + $0xc] sm:$0xf] %vm2110_vm2, %v2405_v17  ;;  %v2630_v3 = vadd.f32 %v1677_v1, %v1212_v62  ;;  %v2499_v5 = vpop.f32.mrb[9].mxu0  ;;  %v1244_v62 = vadd.f32 %v3787_v32, %v3707_v49  ;;  %v1247_v1 = vadd.f32 %v3787_v32, %v3715_v53 }
 0x18f   :  { %v1680_v6 = vpop.f32.mrb[10].mxu0 }
 0x190   :  { %v1864_v9 = vmax.f32 %v2630_v3, 0.0  ;;  %v2632_v20 = vadd.f32 %v1680_v6, %v1215_v2  ;;  %v2500_v10 = vpop.f32.mrb[11].mxu0 }
 0x192   :  { %v2406_v12 = vpack.c.bf16 %v1864_v9, %v1864_v9  ;;  %v1865_v14 = vmax.f32 %v2632_v20, 0.0 }
 0x194   :  { %2115 = vst.msk [vmem:[%s4068_s3 + $0x10] sm:$0xf] %vm2110_vm2, %v2406_v12  ;;  %v2407_v24 = vpack.c.bf16 %v1865_v14, %v1865_v14  ;;  %v1252_v12 = vadd.f32 %v3787_v32, %v3723_v56 }
 0x195   :  { %v1685_v18 = vpop.f32.mrb[12].mxu0 }
 0x196   :  { %2116 = vst.msk [vmem:[%s4068_s3 + $0x14] sm:$0xf] %vm2110_vm2, %v2407_v24  ;;  %v2634_v23 = vadd.f32 %v1685_v18, %v1220_v16  ;;  %v2503_v26 = vpop.f32.mrb[13].mxu0  ;;  %v1255_v16 = vadd.f32 %v3787_v32, %v3731_v60 }
 0x197   :  { %v1688_v39 = vpop.f32.mrb[14].mxu0 }
 0x198   :  { %v1866_v30 = vmax.f32 %v2634_v23, 0.0  ;;  %v2636_v27 = vadd.f32 %v1688_v39, %v1223_v21  ;;  %v2504_v33 = vpop.f32.mrb[15].mxu0 }
 0x19a   :  { %v2408_v35 = vpack.c.bf16 %v1866_v30, %v1866_v30  ;;  %v1867_v36 = vmax.f32 %v2636_v27, 0.0  ;;  %v1260_v27 = vadd.f32 %v3787_v32, %v3739_v63 }
 0x19c   :  { %2117 = vst.msk [vmem:[%s4068_s3 + $0x18] sm:$0xf] %vm2110_vm2, %v2408_v35  ;;  %v2409_v31 = vpack.c.bf16 %v1867_v36, %v1867_v36  ;;  %v1263_v35 = vadd.f32 %v3787_v32, %v3747_v4 }
 0x19d   :  { %v1693_v40 = vpop.f32.mrb[16].mxu0 }
 0x19e   :  { %2118 = vst.msk [vmem:[%s4068_s3 + $0x1c] sm:$0xf] %vm2110_vm2, %v2409_v31  ;;  %v2638_v43 = vadd.f32 %v1693_v40, %v1228_v37  ;;  %v2507_v44 = vpop.f32.mrb[17].mxu0 }
 0x19f   :  { %v1696_v45 = vpop.f32.mrb[18].mxu0 }
 0x1a0   :  { %v1868_v47 = vmax.f32 %v2638_v43, 0.0  ;;  %v2640_v34 = vadd.f32 %v1696_v45, %v1231_v41  ;;  %v2508_v48 = vpop.f32.mrb[19].mxu0  ;;  %v1268_v45 = vadd.f32 %v3787_v32, %v3755_v8 }
 0x1a2   :  { %v2410_v50 = vpack.c.bf16 %v1868_v47, %v1868_v47  ;;  %v1869_v7 = vmax.f32 %v2640_v34, 0.0  ;;  %v1271_v34 = vadd.f32 %v3787_v32, %v3763_v0 }
 0x1a4   :  { %2119 = vst.msk [vmem:[%s4068_s3 + $0x20] sm:$0xf] %vm2110_vm2, %v2410_v50  ;;  %v2411_v38 = vpack.c.bf16 %v1869_v7, %v1869_v7 }
 0x1a5   :  { %v1701_v11 = vpop.f32.mrb[20].mxu0 }
 0x1a6   :  { %2120 = vst.msk [vmem:[%s4068_s3 + $0x24] sm:$0xf] %vm2110_vm2, %v2411_v38  ;;  %v2642_v54 = vadd.f32 %v1701_v11, %v1236_v51  ;;  %v2511_v55 = vpop.f32.mrb[21].mxu0 }
 0x1a7   :  { %v1704_v57 = vpop.f32.mrb[22].mxu0 }
 0x1a8   :  { %v1870_v13 = vmax.f32 %v2642_v54, 0.0  ;;  %v2644_v42 = vadd.f32 %v1704_v57, %v1239_v52  ;;  %v2512_v58 = vpop.f32.mrb[23].mxu0  ;;  %v1276_v54 = vadd.f32 %v3787_v32, %v3768_v15  ;;  %v1279_v57 = vadd.f32 %v3787_v32, %v3773_v19 }
 0x1aa   :  { %v2412_v59 = vpack.c.bf16 %v1870_v13, %v1870_v13  ;;  %v1871_v61 = vmax.f32 %v2644_v42, 0.0 }
 0x1ac   :  { %2121 = vst.msk [vmem:[%s4068_s3 + $0x28] sm:$0xf] %vm2110_vm2, %v2412_v59  ;;  %v2413_v46 = vpack.c.bf16 %v1871_v61, %v1871_v61 }
 0x1ad   :  { %v1709_v17 = vpop.f32.mrb[24].mxu0 }
 0x1ae   :  { %2122 = vst.msk [vmem:[%s4068_s3 + $0x2c] sm:$0xf] %vm2110_vm2, %v2413_v46  ;;  %v2646_v2 = vadd.f32 %v1709_v17, %v1244_v62  ;;  %v2515_v3 = vpop.f32.mrb[25].mxu0  ;;  %v1284_v17 = vadd.f32 %v3787_v32, %v3776_v22 }
 0x1af   :  { %v1712_v5 = vpop.f32.mrb[26].mxu0 }
 0x1b0   :  { %v1872_v6 = vmax.f32 %v2646_v2, 0.0  ;;  %v2648_v49 = vadd.f32 %v1712_v5, %v1247_v1  ;;  %v2516_v9 = vpop.f32.mrb[27].mxu0  ;;  %v1287_v2 = vadd.f32 %v3787_v32, %v3778_v25 }
 0x1b2   :  { %v2414_v20 = vpack.c.bf16 %v1872_v6, %v1872_v6  ;;  %v1873_v10 = vmax.f32 %v2648_v49, 0.0 }
 0x1b4   :  { %2123 = vst.msk [vmem:[%s4068_s3 + $0x30] sm:$0xf] %vm2110_vm2, %v2414_v20  ;;  %v2415_v53 = vpack.c.bf16 %v1873_v10, %v1873_v10 }
 0x1b5   :  { %v1717_v14 = vpop.f32.mrb[28].mxu0 }
 0x1b6   :  { %2124 = vst.msk [vmem:[%s4068_s3 + $0x34] sm:$0xf] %vm2110_vm2, %v2415_v53  ;;  %v2650_v24 = vadd.f32 %v1717_v14, %v1252_v12  ;;  %v2519_v18 = vpop.f32.mrb[29].mxu0  ;;  %v1292_v12 = vadd.f32 %v3787_v32, %v3780_v28 }
 0x1b7   :  { %v1720_v21 = vpop.f32.mrb[30].mxu0 }
 0x1b8   :  { %v1874_v23 = vmax.f32 %v2650_v24, 0.0  ;;  %v2652_v56 = vadd.f32 %v1720_v21, %v1255_v16  ;;  %v2520_v26 = vpop.f32.mrb[31].mxu0  ;;  %v1295_v24 = vadd.f32 %v3787_v32, %v3782_v29 }
 0x1ba   :  { %v2416_v39 = vpack.c.bf16 %v1874_v23, %v1874_v23  ;;  %v1875_v30 = vmax.f32 %v2652_v56, 0.0 }
 0x1bc   :  { %2125 = vst.msk [vmem:[%s4068_s3 + $0x38] sm:$0xf] %vm2110_vm2, %v2416_v39  ;;  %v2417_v60 = vpack.c.bf16 %v1875_v30, %v1875_v30 }
 0x1bd   :  { %v1725_v33 = vpop.f32.mrb[32].mxu0 }
 0x1be   :  { %2126 = vst.msk [vmem:[%s4068_s3 + $0x3c] sm:$0xf] %vm2110_vm2, %v2417_v60  ;;  %v2654_v36 = vadd.f32 %v1725_v33, %v1260_v27  ;;  %v2523_v37 = vpop.f32.mrb[33].mxu0 }
 0x1bf   :  { %v1728_v31 = vpop.f32.mrb[34].mxu0 }
 0x1c0   :  { %v1876_v40 = vmax.f32 %v2654_v36, 0.0  ;;  %v2656_v63 = vadd.f32 %v1728_v31, %v1263_v35  ;;  %v2524_v41 = vpop.f32.mrb[35].mxu0 }
 0x1c2   :  { %v2418_v43 = vpack.c.bf16 %v1876_v40, %v1876_v40  ;;  %v1877_v44 = vmax.f32 %v2656_v63, 0.0 }
 0x1c4   :  { %2127 = vst.msk [vmem:[%s4068_s3 + $0x40] sm:$0xf] %vm2110_vm2, %v2418_v43  ;;  %v2419_v4 = vpack.c.bf16 %v1877_v44, %v1877_v44 }
 0x1c5   :  { %v1733_v47 = vpop.f32.mrb[36].mxu0 }
 0x1c6   :  { %2128 = vst.msk [vmem:[%s4068_s3 + $0x44] sm:$0xf] %vm2110_vm2, %v2419_v4  ;;  %v2658_v48 = vadd.f32 %v1733_v47, %v1268_v45  ;;  %v2527_v50 = vpop.f32.mrb[37].mxu0 }
 0x1c7   :  { %v1736_v7 = vpop.f32.mrb[38].mxu0 }
 0x1c8   :  { %v1878_v51 = vmax.f32 %v2658_v48, 0.0  ;;  %v2660_v8 = vadd.f32 %v1736_v7, %v1271_v34  ;;  %v2528_v38 = vpop.f32.mrb[39].mxu0 }
 0x1ca   :  { %v2420_v11 = vpack.c.bf16 %v1878_v51, %v1878_v51  ;;  %v1879_v52 = vmax.f32 %v2660_v8, 0.0 }
 0x1cc   :  { %2129 = vst.msk [vmem:[%s4068_s3 + $0x48] sm:$0xf] %vm2110_vm2, %v2420_v11  ;;  %v2421_v0 = vpack.c.bf16 %v1879_v52, %v1879_v52 }
 0x1cd   :  { %v1741_v55 = vpop.f32.mrb[40].mxu0 }
 0x1ce   :  { %2130 = vst.msk [vmem:[%s4068_s3 + $0x4c] sm:$0xf] %vm2110_vm2, %v2421_v0  ;;  %v2662_v13 = vadd.f32 %v1741_v55, %v1276_v54  ;;  %v2531_v42 = vpop.f32.mrb[41].mxu0 }
 0x1cf   :  { %v1744_v58 = vpop.f32.mrb[42].mxu0 }
 0x1d0   :  { %v1880_v59 = vmax.f32 %v2662_v13, 0.0  ;;  %v2664_v15 = vadd.f32 %v1744_v58, %v1279_v57  ;;  %v2532_v61 = vpop.f32.mrb[43].mxu0 }
 0x1d2   :  { %v2422_v62 = vpack.c.bf16 %v1880_v59, %v1880_v59  ;;  %v1881_v46 = vmax.f32 %v2664_v15, 0.0 }
 0x1d4   :  { %2131 = vst.msk [vmem:[%s4068_s3 + $0x50] sm:$0xf] %vm2110_vm2, %v2422_v62  ;;  %v2423_v19 = vpack.c.bf16 %v1881_v46, %v1881_v46 }
 0x1d5   :  { %v1749_v1 = vpop.f32.mrb[44].mxu0 }
 0x1d6   :  { %2132 = vst.msk [vmem:[%s4068_s3 + $0x54] sm:$0xf] %vm2110_vm2, %v2423_v19  ;;  %v2666_v3 = vadd.f32 %v1749_v1, %v1284_v17  ;;  %v2535_v5 = vpop.f32.mrb[45].mxu0 }
 0x1d7   :  { %v1752_v6 = vpop.f32.mrb[46].mxu0 }
 0x1d8   :  { %v1882_v49 = vmax.f32 %v2666_v3, 0.0  ;;  %v2668_v22 = vadd.f32 %v1752_v6, %v1287_v2  ;;  %v2536_v9 = vpop.f32.mrb[47].mxu0 }
 0x1da   :  { %v2424_v20 = vpack.c.bf16 %v1882_v49, %v1882_v49  ;;  %v1883_v10 = vmax.f32 %v2668_v22, 0.0 }
 0x1dc   :  { %2133 = vst.msk [vmem:[%s4068_s3 + $0x58] sm:$0xf] %vm2110_vm2, %v2424_v20  ;;  %v2425_v25 = vpack.c.bf16 %v1883_v10, %v1883_v10  ;;  %v1532_v53 = vpop.f32.mrb[52].mxu1 }
 0x1dd   :  { %v1757_v14 = vpop.f32.mrb[48].mxu0  ;;  %v1534_v16 = vpop.f32.mrb[53].mxu1  ;;  %v2673_v33 = vadd.f32 %v3787_v32, %v1532_v53 }
 0x1de   :  { %2134 = vst.msk [vmem:[%s4068_s3 + $0x5c] sm:$0xf] %vm2110_vm2, %v2425_v25  ;;  %v2670_v18 = vadd.f32 %v1757_v14, %v1292_v12  ;;  %v2539_v21 = vpop.f32.mrb[49].mxu0  ;;  %v1535_v28 = vpop.f32.mrb[54].mxu1 }
 0x1df   :  { %v1760_v23 = vpop.f32.mrb[50].mxu0  ;;  %v1537_v56 = vpop.f32.mrb[55].mxu1  ;;  %v2675_v31 = vadd.f32 %v3787_v32, %v1535_v28 }
 0x1e0   :  { %v1884_v26 = vmax.f32 %v2670_v18, 0.0  ;;  %v2672_v39 = vadd.f32 %v1760_v23, %v1295_v24  ;;  %v2540_v30 = vpop.f32.mrb[51].mxu0 }
 0x1e2   :  { %v2426_v27 = vpack.c.bf16 %v1884_v26, %v1884_v26  ;;  %v1885_v60 = vmax.f32 %v2672_v39, 0.0 }
 0x1e4   :  { %2135 = vst.msk [vmem:[%s4068_s3 + $0x60] sm:$0xf] %vm2110_vm2, %v2426_v27  ;;  %v2427_v29 = vpack.c.bf16 %v1885_v60, %v1885_v60  ;;  %v1540_v35 = vpop.f32.mrb[56].mxu1 }
 0x1e5   :  { %v1765_v36 = vpop.f32.mrb[52].mxu0  ;;  %v1542_v37 = vpop.f32.mrb[57].mxu1  ;;  %v2677_v50 = vadd.f32 %v3787_v32, %v1540_v35 }
 0x1e6   :  { %2136 = vst.msk [vmem:[%s4068_s3 + $0x64] sm:$0xf] %vm2110_vm2, %v2427_v29  ;;  %v2674_v40 = vadd.f32 %v2673_v33, %v1765_v36  ;;  %v2543_v63 = vpop.f32.mrb[53].mxu0  ;;  %v1543_v41 = vpop.f32.mrb[58].mxu1 }
 0x1e7   :  { %v1768_v43 = vpop.f32.mrb[54].mxu0  ;;  %v1545_v44 = vpop.f32.mrb[59].mxu1  ;;  %v2679_v11 = vadd.f32 %v3787_v32, %v1543_v41 }
 0x1e8   :  { %v1886_v45 = vmax.f32 %v2674_v40, 0.0  ;;  %v2676_v4 = vadd.f32 %v2675_v31, %v1768_v43  ;;  %v2544_v47 = vpop.f32.mrb[55].mxu0 }
 0x1ea   :  { %v2428_v34 = vpack.c.bf16 %v1886_v45, %v1886_v45  ;;  %v1887_v48 = vmax.f32 %v2676_v4, 0.0 }
 0x1ec   :  { %2137 = vst.msk [vmem:[%s4068_s3 + $0x68] sm:$0xf] %vm2110_vm2, %v2428_v34  ;;  %v2429_v7 = vpack.c.bf16 %v1887_v48, %v1887_v48  ;;  %v1548_v51 = vpop.f32.mrb[60].mxu1 }
 0x1ed   :  { %v1773_v8 = vpop.f32.mrb[56].mxu0  ;;  %v1550_v38 = vpop.f32.mrb[61].mxu1  ;;  %v2681_v61 = vadd.f32 %v3787_v32, %v1548_v51 }
 0x1ee   :  { %2138 = vst.msk [vmem:[%s4068_s3 + $0x6c] sm:$0xf] %vm2110_vm2, %v2429_v7  ;;  %v2678_v52 = vadd.f32 %v2677_v50, %v1773_v8  ;;  %v2547_v54 = vpop.f32.mrb[57].mxu0  ;;  %v1551_v0 = vpop.f32.mrb[62].mxu1 }
 0x1ef   :  { %v1776_v55 = vpop.f32.mrb[58].mxu0  ;;  %v1553_v57 = vpop.f32.mrb[63].mxu1  ;;  %v2683_v1 = vadd.f32 %v3787_v32, %v1551_v0 }
 0x1f0   :  { %v1888_v13 = vmax.f32 %v2678_v52, 0.0  ;;  %v2680_v42 = vadd.f32 %v2679_v11, %v1776_v55  ;;  %v2548_v58 = vpop.f32.mrb[59].mxu0 }
 0x1f2   :  { %v2430_v59 = vpack.c.bf16 %v1888_v13, %v1888_v13  ;;  %v1889_v15 = vmax.f32 %v2680_v42, 0.0 }
 0x1f4   :  { %2139 = vst.msk [vmem:[%s4068_s3 + $0x70] sm:$0xf] %vm2110_vm2, %v2430_v59  ;;  %v2431_v62 = vpack.c.bf16 %v1889_v15, %v1889_v15  ;;  %v1556_v46 = vpop.f32.mrb[64].mxu1 }
 0x1f5   :  { %v1781_v17 = vpop.f32.mrb[60].mxu0  ;;  %v1558_v19 = vpop.f32.mrb[65].mxu1  ;;  %v2685_v25 = vadd.f32 %v3787_v32, %v1556_v46 }
 0x1f6   :  { %2140 = vst.msk [vmem:[%s4068_s3 + $0x74] sm:$0xf] %vm2110_vm2, %v2431_v62  ;;  %v2682_v2 = vadd.f32 %v2681_v61, %v1781_v17  ;;  %v2551_v3 = vpop.f32.mrb[61].mxu0  ;;  %v1559_v5 = vpop.f32.mrb[66].mxu1 }
 0x1f7   :  { %v1784_v6 = vpop.f32.mrb[62].mxu0  ;;  %v1561_v49 = vpop.f32.mrb[67].mxu1  ;;  %v2687_v18 = vadd.f32 %v3787_v32, %v1559_v5 }
 0x1f8   :  { %v1890_v22 = vmax.f32 %v2682_v2, 0.0  ;;  %v2684_v9 = vadd.f32 %v2683_v1, %v1784_v6  ;;  %v2552_v20 = vpop.f32.mrb[63].mxu0 }
 0x1fa   :  { %v2432_v10 = vpack.c.bf16 %v1890_v22, %v1890_v22  ;;  %v1891_v12 = vmax.f32 %v2684_v9, 0.0 }
 0x1fc   :  { %2141 = vst.msk [vmem:[%s4068_s3 + $0x78] sm:$0xf] %vm2110_vm2, %v2432_v10  ;;  %v2433_v53 = vpack.c.bf16 %v1891_v12, %v1891_v12  ;;  %v1564_v14 = vpop.f32.mrb[68].mxu1 }
 0x1fd   :  { %v1789_v16 = vpop.f32.mrb[64].mxu0  ;;  %v1566_v24 = vpop.f32.mrb[69].mxu1  ;;  %v2689_v29 = vadd.f32 %v3787_v32, %v1564_v14 }
 0x1fe   :  { %2142 = vst.msk [vmem:[%s4068_s3 + $0x7c] sm:$0xf] %vm2110_vm2, %v2433_v53  ;;  %v2686_v21 = vadd.f32 %v2685_v25, %v1789_v16  ;;  %v2555_v28 = vpop.f32.mrb[65].mxu0  ;;  %v1567_v23 = vpop.f32.mrb[70].mxu1 }
 0x1ff   :  { %v1792_v56 = vpop.f32.mrb[66].mxu0  ;;  %v1569_v26 = vpop.f32.mrb[71].mxu1  ;;  %v2691_v40 = vadd.f32 %v3787_v32, %v1567_v23 }
 0x200   :  { %v1892_v39 = vmax.f32 %v2686_v21, 0.0  ;;  %v2688_v30 = vadd.f32 %v2687_v18, %v1792_v56  ;;  %v2556_v27 = vpop.f32.mrb[67].mxu0 }
 0x202   :  { %v2434_v60 = vpack.c.bf16 %v1892_v39, %v1892_v39  ;;  %v1893_v33 = vmax.f32 %v2688_v30, 0.0 }
 0x204   :  { %2143 = vst.msk [vmem:[%s4068_s3 + $0x80] sm:$0xf] %vm2110_vm2, %v2434_v60  ;;  %v2435_v35 = vpack.c.bf16 %v1893_v33, %v1893_v33  ;;  %v1572_v36 = vpop.f32.mrb[72].mxu1 }
 0x205   :  { %v1797_v37 = vpop.f32.mrb[68].mxu0  ;;  %v1574_v31 = vpop.f32.mrb[73].mxu1  ;;  %v2693_v7 = vadd.f32 %v3787_v32, %v1572_v36 }
 0x206   :  { %2144 = vst.msk [vmem:[%s4068_s3 + $0x84] sm:$0xf] %vm2110_vm2, %v2435_v35  ;;  %v2690_v63 = vadd.f32 %v2689_v29, %v1797_v37  ;;  %v2559_v41 = vpop.f32.mrb[69].mxu0  ;;  %v1575_v43 = vpop.f32.mrb[74].mxu1 }
 0x207   :  { %v1800_v44 = vpop.f32.mrb[70].mxu0  ;;  %v1577_v45 = vpop.f32.mrb[75].mxu1  ;;  %v2695_v52 = vadd.f32 %v3787_v32, %v1575_v43 }
 0x208   :  { %v1894_v4 = vmax.f32 %v2690_v63, 0.0  ;;  %v2692_v47 = vadd.f32 %v2691_v40, %v1800_v44  ;;  %v2560_v34 = vpop.f32.mrb[71].mxu0 }
 0x20a   :  { %v2436_v48 = vpack.c.bf16 %v1894_v4, %v1894_v4  ;;  %v1895_v50 = vmax.f32 %v2692_v47, 0.0 }
 0x20c   :  { %2145 = vst.msk [vmem:[%s4068_s3 + $0x88] sm:$0xf] %vm2110_vm2, %v2436_v48  ;;  %v2437_v51 = vpack.c.bf16 %v1895_v50, %v1895_v50  ;;  %v1580_v8 = vpop.f32.mrb[76].mxu1 }
 0x20d   :  { %v1805_v38 = vpop.f32.mrb[72].mxu0  ;;  %v1582_v11 = vpop.f32.mrb[77].mxu1  ;;  %v2697_v62 = vadd.f32 %v3787_v32, %v1580_v8 }
 0x20e   :  { %2146 = vst.msk [vmem:[%s4068_s3 + $0x8c] sm:$0xf] %vm2110_vm2, %v2437_v51  ;;  %v2694_v54 = vadd.f32 %v2693_v7, %v1805_v38  ;;  %v2563_v0 = vpop.f32.mrb[73].mxu0  ;;  %v1583_v55 = vpop.f32.mrb[78].mxu1 }
 0x20f   :  { %v1808_v57 = vpop.f32.mrb[74].mxu0  ;;  %v1585_v13 = vpop.f32.mrb[79].mxu1  ;;  %v2699_v2 = vadd.f32 %v3787_v32, %v1583_v55 }
 0x210   :  { %v1896_v42 = vmax.f32 %v2694_v54, 0.0  ;;  %v2696_v58 = vadd.f32 %v2695_v52, %v1808_v57  ;;  %v2564_v59 = vpop.f32.mrb[75].mxu0 }
 0x212   :  { %v2438_v15 = vpack.c.bf16 %v1896_v42, %v1896_v42  ;;  %v1897_v61 = vmax.f32 %v2696_v58, 0.0 }
 0x214   :  { %2147 = vst.msk [vmem:[%s4068_s3 + $0x90] sm:$0xf] %vm2110_vm2, %v2438_v15  ;;  %v2439_v46 = vpack.c.bf16 %v1897_v61, %v1897_v61  ;;  %v1588_v17 = vpop.f32.mrb[80].mxu1 }
 0x215   :  { %v1813_v19 = vpop.f32.mrb[76].mxu0  ;;  %v1590_v1 = vpop.f32.mrb[81].mxu1  ;;  %v2701_v53 = vadd.f32 %v3787_v32, %v1588_v17 }
 0x216   :  { %2148 = vst.msk [vmem:[%s4068_s3 + $0x94] sm:$0xf] %vm2110_vm2, %v2439_v46  ;;  %v2698_v3 = vadd.f32 %v2697_v62, %v1813_v19  ;;  %v2567_v5 = vpop.f32.mrb[77].mxu0  ;;  %v1591_v6 = vpop.f32.mrb[82].mxu1 }
 0x217   :  { %v1816_v49 = vpop.f32.mrb[78].mxu0  ;;  %v1593_v22 = vpop.f32.mrb[83].mxu1  ;;  %v2703_v21 = vadd.f32 %v3787_v32, %v1591_v6 }
 0x218   :  { %v1898_v9 = vmax.f32 %v2698_v3, 0.0  ;;  %v2700_v20 = vadd.f32 %v2699_v2, %v1816_v49  ;;  %v2568_v10 = vpop.f32.mrb[79].mxu0 }
 0x21a   :  { %v2440_v12 = vpack.c.bf16 %v1898_v9, %v1898_v9  ;;  %v1899_v25 = vmax.f32 %v2700_v20, 0.0 }
 0x21c   :  { %2149 = vst.msk [vmem:[%s4068_s3 + $0x98] sm:$0xf] %vm2110_vm2, %v2440_v12  ;;  %v2441_v14 = vpack.c.bf16 %v1899_v25, %v1899_v25  ;;  %v1596_v16 = vpop.f32.mrb[84].mxu1 }
 0x21d   :  { %v1821_v24 = vpop.f32.mrb[80].mxu0  ;;  %v1598_v18 = vpop.f32.mrb[85].mxu1  ;;  %v2705_v35 = vadd.f32 %v3787_v32, %v1596_v16 }
 0x21e   :  { %2150 = vst.msk [vmem:[%s4068_s3 + $0x9c] sm:$0xf] %vm2110_vm2, %v2441_v14  ;;  %v2702_v28 = vadd.f32 %v2701_v53, %v1821_v24  ;;  %v2571_v23 = vpop.f32.mrb[81].mxu0  ;;  %v1599_v56 = vpop.f32.mrb[86].mxu1 }
 0x21f   :  { %v1824_v26 = vpop.f32.mrb[82].mxu0  ;;  %v1601_v39 = vpop.f32.mrb[87].mxu1  ;;  %v2707_v63 = vadd.f32 %v3787_v32, %v1599_v56 }
 0x220   :  { %v1900_v30 = vmax.f32 %v2702_v28, 0.0  ;;  %v2704_v27 = vadd.f32 %v2703_v21, %v1824_v26  ;;  %v2572_v60 = vpop.f32.mrb[83].mxu0 }
 0x222   :  { %v2442_v33 = vpack.c.bf16 %v1900_v30, %v1900_v30  ;;  %v1901_v29 = vmax.f32 %v2704_v27, 0.0 }
 0x224   :  { %2151 = vst.msk [vmem:[%s4068_s3 + $0xa0] sm:$0xf] %vm2110_vm2, %v2442_v33  ;;  %v2443_v36 = vpack.c.bf16 %v1901_v29, %v1901_v29  ;;  %v1604_v37 = vpop.f32.mrb[88].mxu1 }
 0x225   :  { %v1829_v31 = vpop.f32.mrb[84].mxu0  ;;  %v1606_v40 = vpop.f32.mrb[89].mxu1  ;;  %v2709_v51 = vadd.f32 %v3787_v32, %v1604_v37 }
 0x226   :  { %2152 = vst.msk [vmem:[%s4068_s3 + $0xa4] sm:$0xf] %vm2110_vm2, %v2443_v36  ;;  %v2706_v41 = vadd.f32 %v2705_v35, %v1829_v31  ;;  %v2575_v43 = vpop.f32.mrb[85].mxu0  ;;  %v1607_v44 = vpop.f32.mrb[90].mxu1 }
 0x227   :  { %v1832_v45 = vpop.f32.mrb[86].mxu0  ;;  %v1609_v4 = vpop.f32.mrb[91].mxu1  ;;  %v2711_v54 = vadd.f32 %v3787_v32, %v1607_v44 }
 0x228   :  { %v1902_v47 = vmax.f32 %v2706_v41, 0.0  ;;  %v2708_v34 = vadd.f32 %v2707_v63, %v1832_v45  ;;  %v2576_v48 = vpop.f32.mrb[87].mxu0 }
 0x22a   :  { %v2444_v50 = vpack.c.bf16 %v1902_v47, %v1902_v47  ;;  %v1903_v7 = vmax.f32 %v2708_v34, 0.0 }
 0x22c   :  { %2153 = vst.msk [vmem:[%s4068_s3 + $0xa8] sm:$0xf] %vm2110_vm2, %v2444_v50  ;;  %v2445_v8 = vpack.c.bf16 %v1903_v7, %v1903_v7  ;;  %v1612_v38 = vpop.f32.mrb[92].mxu1 }
 0x22d   :  { %v1837_v11 = vpop.f32.mrb[88].mxu0  ;;  %v1614_v52 = vpop.f32.mrb[93].mxu1  ;;  %v2713_v46 = vadd.f32 %v3787_v32, %v1612_v38 }
 0x22e   :  { %2154 = vst.msk [vmem:[%s4068_s3 + $0xac] sm:$0xf] %vm2110_vm2, %v2445_v8  ;;  %v2710_v0 = vadd.f32 %v2709_v51, %v1837_v11  ;;  %v2579_v55 = vpop.f32.mrb[89].mxu0  ;;  %v1615_v57 = vpop.f32.mrb[94].mxu1 }
 0x22f   :  { %v1840_v13 = vpop.f32.mrb[90].mxu0  ;;  %v1617_v42 = vpop.f32.mrb[95].mxu1  ;;  %v2715_v3 = vadd.f32 %v3787_v32, %v1615_v57 }
 0x230   :  { %v1904_v58 = vmax.f32 %v2710_v0, 0.0  ;;  %v2712_v59 = vadd.f32 %v2711_v54, %v1840_v13  ;;  %v2580_v15 = vpop.f32.mrb[91].mxu0 }
 0x232   :  { %v2446_v61 = vpack.c.bf16 %v1904_v58, %v1904_v58  ;;  %v1905_v62 = vmax.f32 %v2712_v59, 0.0 }
 0x234   :  { %2155 = vst.msk [vmem:[%s4068_s3 + $0xb0] sm:$0xf] %vm2110_vm2, %v2446_v61  ;;  %v2447_v17 = vpack.c.bf16 %v1905_v62, %v1905_v62  ;;  %v1620_v19 = vpop.f32.mrb[96].mxu1 }
 0x235   :  { %v1845_v1 = vpop.f32.mrb[92].mxu0  ;;  %v1622_v2 = vpop.f32.mrb[97].mxu1  ;;  %v2717_v14 = vadd.f32 %v3787_v32, %v1620_v19 }
 0x236   :  { %2156 = vst.msk [vmem:[%s4068_s3 + $0xb4] sm:$0xf] %vm2110_vm2, %v2447_v17  ;;  %v2714_v5 = vadd.f32 %v2713_v46, %v1845_v1  ;;  %v2583_v6 = vpop.f32.mrb[93].mxu0  ;;  %v1623_v49 = vpop.f32.mrb[98].mxu1 }
 0x237   :  { %v1848_v22 = vpop.f32.mrb[94].mxu0  ;;  %v1625_v9 = vpop.f32.mrb[99].mxu1  ;;  %v2719_v18 = vadd.f32 %v3787_v32, %v1623_v49 }
 0x238   :  { %v1906_v20 = vmax.f32 %v2714_v5, 0.0  ;;  %v2716_v10 = vadd.f32 %v2715_v3, %v1848_v22  ;;  %v2584_v12 = vpop.f32.mrb[95].mxu0 }
 0x23a   :  { %v2448_v25 = vpack.c.bf16 %v1906_v20, %v1906_v20  ;;  %v1907_v53 = vmax.f32 %v2716_v10, 0.0 }
 0x23c   :  { %2157 = vst.msk [vmem:[%s4068_s3 + $0xb8] sm:$0xf] %vm2110_vm2, %v2448_v25  ;;  %v2449_v16 = vpack.c.bf16 %v1907_v53, %v1907_v53 }
 0x23d   :  { %v1853_v24 = vpop.f32.mrb[96].mxu0 }
 0x23e   :  { %2158 = vst.msk [vmem:[%s4068_s3 + $0xbc] sm:$0xf] %vm2110_vm2, %v2449_v16  ;;  %v2718_v21 = vadd.f32 %v2717_v14, %v1853_v24  ;;  %v2587_v28 = vpop.f32.mrb[97].mxu0 }
 0x23f   :  { %v1856_v23 = vpop.f32.mrb[98].mxu0 }
 0x240   :  { %v1908_v56 = vmax.f32 %v2718_v21, 0.0  ;;  %v2720_v26 = vadd.f32 %v2719_v18, %v1856_v23  ;;  %v2588_v39 = vpop.f32.mrb[99].mxu0 }
 0x242   :  { %v2450_v30 = vpack.c.bf16 %v1908_v56, %v1908_v56  ;;  %v1909_v27 = vmax.f32 %v2720_v26, 0.0 }
 0x244   :  { %2159 = vst.msk [vmem:[%s4068_s3 + $0xc0] sm:$0xf] %vm2110_vm2, %v2450_v30  ;;  %v2451_v60 = vpack.c.bf16 %v1909_v27, %v1909_v27 }
 0x246   :  { %2160 = vst.msk [vmem:[%s4068_s3 + $0xc4] sm:$0xf] %vm2110_vm2, %v2451_v60 }

// kernel: value_network_forward.9
= control target key start
LH: loop header
LB: loop body
LE: loop exit
PB: predicated region body
PF: predicated region fallthrough
CT: control target
= control target key end

     0   :  { %vm1118_vm0 = vmmov 0   ;;  %s1450_s1 = inlined_call_operand.vmem [shape: bf16[512,256], index: 1, kind: input, shape index: {}]   ;;  %s1451_s0 = inlined_call_operand.vmem [shape: bf16[16,512], index: 0, kind: input, shape index: {}]   ;;  %s1452_s3 = inlined_call_operand.vmem [shape: bf16[256,128], index: 3, kind: input, shape index: {}]   ;;  %s1453_s5 = inlined_call_operand.vmem [shape: bf16[128,128], index: 5, kind: input, shape index: {}]   ;;  %s1454_s2 = inlined_call_operand.vmem [shape: f32[1,256], index: 2, kind: input, shape index: {}]   ;;  %s1455_s4 = inlined_call_operand.vmem [shape: f32[1,128], index: 4, kind: input, shape index: {}]   ;;  %s1456_s6 = inlined_call_operand.vmem [shape: f32[1,128], index: 6, kind: input, shape index: {}]   ;;  %s1457_s7 = inlined_call_operand.vmem [shape: f32[16,128], index: 7, kind: output, shape index: {}]  }
   0x1   :  { %v991_v0 = vld [vmem:[%s1450_s1 + $0x4] ss:$8 sps:$4 sm:$0xff]   ;;  %v993_v1 = vld [vmem:[%s1450_s1] ss:$8 sps:$4 sm:$0xff]   ;;  %v994_v2 = vld [vmem:[%s1450_s1 + $0x14] ss:$8 sps:$4 sm:$0xff]  }
   0x2   :  { %447 = vmatprep.subr.bf16.mxu0 %v991_v0  ;;  %v996_v3 = vld [vmem:[%s1450_s1 + $0x10] ss:$8 sps:$4 sm:$0xff]   ;;  %v997_v4 = vld [vmem:[%s1450_s1 + $0x24] ss:$8 sps:$4 sm:$0xff]   ;;  %v999_v5 = vld [vmem:[%s1450_s1 + $0x20] ss:$8 sps:$4 sm:$0xff]  }
   0x3   :  { %448 = vmatpush1.bf16.msra.mxu0 %v993_v1  ;;  %v1000_v6 = vld [vmem:[%s1450_s1 + $0x34] ss:$8 sps:$4 sm:$0xff]   ;;  %v1002_v7 = vld [vmem:[%s1450_s1 + $0x30] ss:$8 sps:$4 sm:$0xff]   ;;  %v1003_v8 = vld [vmem:[%s1450_s1 + $0x44] ss:$8 sps:$4 sm:$0xff]  }
   0x4   :  { %449 = vmatprep.subr.bf16.mxu0 %v994_v2  ;;  %v1005_v9 = vld [vmem:[%s1450_s1 + $0x40] ss:$8 sps:$4 sm:$0xff]   ;;  %v1006_v10 = vld [vmem:[%s1450_s1 + $0x54] ss:$8 sps:$4 sm:$0xff]   ;;  %v1008_v11 = vld [vmem:[%s1450_s1 + $0x50] ss:$8 sps:$4 sm:$0xff]  }
   0x5   :  { %v1009_v12 = vld [vmem:[%s1450_s1 + $0x64] ss:$8 sps:$4 sm:$0xff]   ;;  %v1011_v14 = vld [vmem:[%s1450_s1 + $0x60] ss:$8 sps:$4 sm:$0xff]   ;;  %v1012_v15 = vld [vmem:[%s1450_s1 + $0x74] ss:$8 sps:$4 sm:$0xff]  }
   0x6   :  { %v1041_v13 = vld [vmem:[%s1451_s0 + $0x4] ss:$16 sps:$4 sm:$0xff]   ;;  %v1014_v16 = vld [vmem:[%s1450_s1 + $0x70] ss:$8 sps:$4 sm:$0xff]   ;;  %v1017_v18 = vld [vmem:[%s1450_s1 + $0x80] ss:$8 sps:$4 sm:$0xff]  }
   0x7   :  { %450 = vmatpush1.bf16.msra.mxu0 %v996_v3  ;;  %479 = vmatprep.mubr.bf16.mxu0 %v1041_v13  ;;  %v1015_v17 = vld [vmem:[%s1450_s1 + $0x84] ss:$8 sps:$4 sm:$0xff]   ;;  %v1018_v19 = vld [vmem:[%s1450_s1 + $0x94] ss:$8 sps:$4 sm:$0xff]   ;;  %v1020_v20 = vld [vmem:[%s1450_s1 + $0x90] ss:$8 sps:$4 sm:$0xff]  }
   0x8   :  { %451 = vmatprep.subr.bf16.mxu0 %v997_v4  ;;  %v1021_v21 = vld [vmem:[%s1450_s1 + $0xa4] ss:$8 sps:$4 sm:$0xff]   ;;  %v1023_v22 = vld [vmem:[%s1450_s1 + $0xa0] ss:$8 sps:$4 sm:$0xff]   ;;  %v1024_v23 = vld [vmem:[%s1450_s1 + $0xb4] ss:$8 sps:$4 sm:$0xff]  }
   0x9   :  { %v1026_v24 = vld [vmem:[%s1450_s1 + $0xb0] ss:$8 sps:$4 sm:$0xff]   ;;  %v1027_v25 = vld [vmem:[%s1450_s1 + $0xc4] ss:$8 sps:$4 sm:$0xff]   ;;  %v1029_v26 = vld [vmem:[%s1450_s1 + $0xc0] ss:$8 sps:$4 sm:$0xff]  }
   0xa   :  { %v1030_v27 = vld [vmem:[%s1450_s1 + $0xd4] ss:$8 sps:$4 sm:$0xff]   ;;  %v1093_v28 = vld [vmem:[%s1452_s3 + $0x40] sm:$0xff]   ;;  %v1095_v30 = vld [vmem:[%s1452_s3 + $0x48] sm:$0xff]  }
   0xb   :  { %452 = vmatpush1.bf16.msra.mxu0 %v999_v5  ;;  %v1094_v29 = vld [vmem:[%s1452_s3] sm:$0xff]   ;;  %930 = vmatprep.subr.bf16.mxu1 %v1093_v28  ;;  %v1096_v31 = vld [vmem:[%s1452_s3 + $0x8] sm:$0xff]   ;;  %v1097_v32 = vld [vmem:[%s1452_s3 + $0x50] sm:$0xff]  }
   0xc   :  { %453 = vmatprep.subr.bf16.mxu0 %v1000_v6  ;;  %931 = vmatpush3.bf16.msra.mxu1 %v1094_v29  ;;  %v1032_v33 = vld [vmem:[%s1450_s1 + $0xd0] ss:$8 sps:$4 sm:$0xff]   ;;  %v1033_v34 = vld [vmem:[%s1450_s1 + $0xe4] ss:$8 sps:$4 sm:$0xff]   ;;  %v1035_v35 = vld [vmem:[%s1450_s1 + $0xe0] ss:$8 sps:$4 sm:$0xff]  }
   0xd   :  { %932 = vmatprep.subr.bf16.mxu1 %v1095_v30  ;;  %v1098_v36 = vld [vmem:[%s1452_s3 + $0x10] sm:$0xff]   ;;  %v1099_v37 = vld [vmem:[%s1452_s3 + $0x58] sm:$0xff]   ;;  %v1101_v40 = vld [vmem:[%s1452_s3 + $0x60] sm:$0xff]  }
   0xe   :  { %v1036_v38 = vld [vmem:[%s1450_s1 + $0xf4] ss:$8 sps:$4 sm:$0xff]   ;;  %v1038_v41 = vld [vmem:[%s1450_s1 + $0xf0] ss:$8 sps:$4 sm:$0xff]   ;;  %v1044_v42 = vld [vmem:[%s1450_s1 + $0x104] ss:$8 sps:$4 sm:$0xff]  }
   0xf   :  { %454 = vmatpush1.bf16.msra.mxu0 %v1002_v7  ;;  %v1100_v39 = vld [vmem:[%s1452_s3 + $0x18] sm:$0xff]   ;;  %v1102_v43 = vld [vmem:[%s1452_s3 + $0x20] sm:$0xff]   ;;  %v1103_v45 = vld [vmem:[%s1452_s3 + $0x68] sm:$0xff]  }
  0x10   :  { %455 = vmatprep.subr.bf16.mxu0 %v1003_v8  ;;  %933 = vmatpush3.bf16.msra.mxu1 %v1096_v31  ;;  %v1039_v44 = vld [vmem:[%s1451_s0] ss:$16 sps:$4 sm:$0xff]   ;;  %v1092_v47 = vld [vmem:[%s1451_s0 + $0xc] ss:$16 sps:$4 sm:$0xff]  }
  0x11   :  { %934 = vmatprep.subr.bf16.mxu1 %v1097_v32  ;;  %v1042_v46 = vld [vmem:[%s1450_s1 + $0x100] ss:$8 sps:$4 sm:$0xff]   ;;  %v1047_v48 = vld [vmem:[%s1450_s1 + $0x114] ss:$8 sps:$4 sm:$0xff]   ;;  %v1045_v49 = vld [vmem:[%s1450_s1 + $0x110] ss:$8 sps:$4 sm:$0xff]  }
  0x12   :  { %v1050_v50 = vld [vmem:[%s1450_s1 + $0x124] ss:$8 sps:$4 sm:$0xff]   ;;  %v1048_v51 = vld [vmem:[%s1450_s1 + $0x120] ss:$8 sps:$4 sm:$0xff]   ;;  %v1053_v52 = vld [vmem:[%s1450_s1 + $0x134] ss:$8 sps:$4 sm:$0xff]  }
  0x13   :  { %456 = vmatpush1.bf16.msra.mxu0 %v1005_v9  ;;  %v1051_v53 = vld [vmem:[%s1450_s1 + $0x130] ss:$8 sps:$4 sm:$0xff]   ;;  %v1056_v54 = vld [vmem:[%s1450_s1 + $0x144] ss:$8 sps:$4 sm:$0xff]   ;;  %v1054_v55 = vld [vmem:[%s1450_s1 + $0x140] ss:$8 sps:$4 sm:$0xff]  }
  0x14   :  { %457 = vmatprep.subr.bf16.mxu0 %v1006_v10  ;;  %935 = vmatpush3.bf16.msra.mxu1 %v1098_v36  ;;  %v1059_v56 = vld [vmem:[%s1450_s1 + $0x154] ss:$8 sps:$4 sm:$0xff]   ;;  %v1057_v57 = vld [vmem:[%s1450_s1 + $0x150] ss:$8 sps:$4 sm:$0xff]   ;;  %v1062_v58 = vld [vmem:[%s1450_s1 + $0x164] ss:$8 sps:$4 sm:$0xff]  }
  0x15   :  { %936 = vmatprep.subr.bf16.mxu1 %v1099_v37  ;;  %v1060_v59 = vld [vmem:[%s1450_s1 + $0x160] ss:$8 sps:$4 sm:$0xff]   ;;  %v1065_v60 = vld [vmem:[%s1450_s1 + $0x174] ss:$8 sps:$4 sm:$0xff]   ;;  %v1063_v61 = vld [vmem:[%s1450_s1 + $0x170] ss:$8 sps:$4 sm:$0xff]  }
  0x16   :  { %v1068_v62 = vld [vmem:[%s1450_s1 + $0x184] ss:$8 sps:$4 sm:$0xff]   ;;  %v1066_v63 = vld [vmem:[%s1450_s1 + $0x180] ss:$8 sps:$4 sm:$0xff]   ;;  %v1071_v0 = vld [vmem:[%s1450_s1 + $0x194] ss:$8 sps:$4 sm:$0xff]  }
  0x17   :  { %458 = vmatpush1.bf16.msra.mxu0 %v1008_v11  ;;  %v1069_v1 = vld [vmem:[%s1450_s1 + $0x190] ss:$8 sps:$4 sm:$0xff]   ;;  %v1074_v2 = vld [vmem:[%s1450_s1 + $0x1a4] ss:$8 sps:$4 sm:$0xff]   ;;  %v1072_v3 = vld [vmem:[%s1450_s1 + $0x1a0] ss:$8 sps:$4 sm:$0xff]  }
  0x18   :  { %459 = vmatprep.subr.bf16.mxu0 %v1009_v12  ;;  %937 = vmatpush3.bf16.msra.mxu1 %v1100_v39  ;;  %v1077_v4 = vld [vmem:[%s1450_s1 + $0x1b4] ss:$8 sps:$4 sm:$0xff]   ;;  %v1075_v5 = vld [vmem:[%s1450_s1 + $0x1b0] ss:$8 sps:$4 sm:$0xff]   ;;  %v1080_v6 = vld [vmem:[%s1450_s1 + $0x1c4] ss:$8 sps:$4 sm:$0xff]  }
  0x19   :  { %938 = vmatprep.subr.bf16.mxu1 %v1101_v40  ;;  %v1078_v7 = vld [vmem:[%s1450_s1 + $0x1c0] ss:$8 sps:$4 sm:$0xff]   ;;  %v1083_v8 = vld [vmem:[%s1450_s1 + $0x1d4] ss:$8 sps:$4 sm:$0xff]   ;;  %v1081_v9 = vld [vmem:[%s1450_s1 + $0x1d0] ss:$8 sps:$4 sm:$0xff]  }
  0x1a   :  { %v1086_v10 = vld [vmem:[%s1450_s1 + $0x1e4] ss:$8 sps:$4 sm:$0xff]   ;;  %v1084_v11 = vld [vmem:[%s1450_s1 + $0x1e0] ss:$8 sps:$4 sm:$0xff]   ;;  %v1089_v12 = vld [vmem:[%s1450_s1 + $0x1f4] ss:$8 sps:$4 sm:$0xff]  }
  0x1b   :  { %460 = vmatpush1.bf16.msra.mxu0 %v1011_v14  ;;  %v1087_v13 = vld [vmem:[%s1450_s1 + $0x1f0] ss:$8 sps:$4 sm:$0xff]  }
  0x1c   :  { %461 = vmatprep.subr.bf16.mxu0 %v1012_v15  ;;  %939 = vmatpush3.bf16.msra.mxu1 %v1102_v43  ;;  %v1090_v14 = vld [vmem:[%s1451_s0 + $0x8] ss:$16 sps:$4 sm:$0xff]  }
  0x1d   :  { %940 = vmatprep.subr.bf16.mxu1 %v1103_v45  ;;  %v1104_v15 = vld [vmem:[%s1452_s3 + $0x28] sm:$0xff]   ;;  %v1112_v45 = vld [vmem:[%s1453_s5 + $0x18] sm:$0xff]  }
  0x1e   :  { %v1110_v43 = vld [vmem:[%s1453_s5 + $0x8] sm:$0xff]  }
  0x1f   :  { %462 = vmatpush1.bf16.msra.mxu0 %v1014_v16  ;;  %v1105_v16 = vld [vmem:[%s1452_s3 + $0x70] sm:$0xff]  }
  0x20   :  { %463 = vmatprep.subr.bf16.mxu0 %v1015_v17  ;;  %941 = vmatpush3.bf16.msra.mxu1 %v1104_v15  ;;  %v1106_v17 = vld [vmem:[%s1452_s3 + $0x30] sm:$0xff]  }
  0x21   :  { %942 = vmatprep.subr.bf16.mxu1 %v1105_v16 }
  0x23   :  { %464 = vmatpush1.bf16.msra.mxu0 %v1017_v18  ;;  %v1107_v18 = vld [vmem:[%s1452_s3 + $0x78] sm:$0xff]  }
  0x24   :  { %465 = vmatprep.subr.bf16.mxu0 %v1018_v19  ;;  %943 = vmatpush3.bf16.msra.mxu1 %v1106_v17  ;;  %v1108_v19 = vld [vmem:[%s1452_s3 + $0x38] sm:$0xff]  }
  0x25   :  { %944 = vmatprep.subr.bf16.mxu1 %v1107_v18 }
  0x27   :  { %466 = vmatpush1.bf16.msra.mxu0 %v1020_v20  ;;  %v1117_v20 = vmov 0.0  }
  0x28   :  { %467 = vmatprep.subr.bf16.mxu0 %v1021_v21  ;;  %945 = vmatpush3.bf16.msra.mxu1 %v1108_v19  ;;  %v97_v21 = vlaneseq }
  0x29   :  { %961 = vmatprep.subr.bf16.mxu1 %v1117_v20 }
  0x2b   :  { %468 = vmatpush1.bf16.msra.mxu0 %v1023_v22  ;;  %v98_v22 = vshrl.u32 %v97_v21, 7 }
  0x2c   :  { %469 = vmatprep.subr.bf16.mxu0 %v1024_v23 }
  0x2d   :  { %v99_v23 = vsub.s32 0, %v98_v22 }
  0x2f   :  { %470 = vmatpush1.bf16.msra.mxu0 %v1026_v24  ;;  %v95_v24 = vld [vmem:[%s1454_s2] sm:$0x3] }
  0x30   :  { %471 = vmatprep.subr.bf16.mxu0 %v1027_v25  ;;  %v103_v25 = vsub.s32 1, %v98_v22 }
  0x33   :  { %472 = vmatpush1.bf16.msra.mxu0 %v1029_v26  ;;  %v100_v26 = vrot.slane %v95_v24, %v99_v23 }
  0x34   :  { %473 = vmatprep.subr.bf16.mxu0 %v1030_v27  ;;  %v104_v27 = vrot.slane %v95_v24, %v103_v25 }
  0x37   :  { %474 = vmatpush1.bf16.msra.mxu0 %v1032_v33 }
  0x38   :  { %475 = vmatprep.subr.bf16.mxu0 %v1033_v34 }
  0x3b   :  { %476 = vmatpush1.bf16.msra.mxu0 %v1035_v35 }
  0x3c   :  { %477 = vmatprep.subr.bf16.mxu0 %v1036_v38 }
  0x3f   :  { %478 = vmatpush1.bf16.msra.mxu0 %v1038_v41 }
  0x40   :  { %490 = vmatprep.subr.bf16.mxu0 %v1044_v42  ;;  %v1109_v42 = vld [vmem:[%s1453_s5] sm:$0xff]  }
  0x42   :  { %480 = vmatmul.mubr.bf16.vlgmr.msra.gmra.mrb[0].mxu0 %v1039_v44  ;;  %v1111_v44 = vld [vmem:[%s1453_s5 + $0x10] sm:$0xff]  }
  0x43   :  { %491 = vmatpush1.bf16.msra.mxu0 %v1042_v46  ;;  %522 = vmatprep.mubr.bf16.mxu0 %v1092_v47  ;;  %v1113_v46 = vld [vmem:[%s1453_s5 + $0x20] sm:$0xff]   ;;  %v1114_v47 = vld [vmem:[%s1453_s5 + $0x28] sm:$0xff]  }
  0x44   :  { %492 = vmatprep.subr.bf16.mxu0 %v1047_v48  ;;  %v1115_v48 = vld [vmem:[%s1453_s5 + $0x30] sm:$0xff]  }
  0x47   :  { %493 = vmatpush1.bf16.msra.mxu0 %v1045_v49  ;;  %v1116_v49 = vld [vmem:[%s1453_s5 + $0x38] sm:$0xff]  }
  0x48   :  { %494 = vmatprep.subr.bf16.mxu0 %v1050_v50 }
  0x4b   :  { %495 = vmatpush1.bf16.msra.mxu0 %v1048_v51  ;;  %v904_v51 = vld [vmem:[%s1455_s4] ss:$0 sm:$0xff] }
  0x4c   :  { %496 = vmatprep.subr.bf16.mxu0 %v1053_v52 }
  0x4f   :  { %497 = vmatpush1.bf16.msra.mxu0 %v1051_v53 }
  0x50   :  { %498 = vmatprep.subr.bf16.mxu0 %v1056_v54 }
  0x53   :  { %499 = vmatpush1.bf16.msra.mxu0 %v1054_v55 }
  0x54   :  { %500 = vmatprep.subr.bf16.mxu0 %v1059_v56 }
  0x57   :  { %501 = vmatpush1.bf16.msra.mxu0 %v1057_v57 }
  0x58   :  { %502 = vmatprep.subr.bf16.mxu0 %v1062_v58 }
  0x5b   :  { %503 = vmatpush1.bf16.msra.mxu0 %v1060_v59 }
  0x5c   :  { %504 = vmatprep.subr.bf16.mxu0 %v1065_v60 }
  0x5f   :  { %505 = vmatpush1.bf16.msra.mxu0 %v1063_v61 }
  0x60   :  { %506 = vmatprep.subr.bf16.mxu0 %v1068_v62  ;;  %v921_v62 = vld [vmem:[%s1456_s6] ss:$0 sm:$0xff] }
  0x63   :  { %507 = vmatpush1.bf16.msra.mxu0 %v1066_v63 }
  0x64   :  { %508 = vmatprep.subr.bf16.mxu0 %v1071_v0 }
  0x67   :  { %509 = vmatpush1.bf16.msra.mxu0 %v1069_v1 }
  0x68   :  { %510 = vmatprep.subr.bf16.mxu0 %v1074_v2 }
  0x6b   :  { %511 = vmatpush1.bf16.msra.mxu0 %v1072_v3 }
  0x6c   :  { %512 = vmatprep.subr.bf16.mxu0 %v1077_v4 }
  0x6f   :  { %513 = vmatpush1.bf16.msra.mxu0 %v1075_v5 }
  0x70   :  { %514 = vmatprep.subr.bf16.mxu0 %v1080_v6 }
  0x73   :  { %515 = vmatpush1.bf16.msra.mxu0 %v1078_v7 }
  0x74   :  { %516 = vmatprep.subr.bf16.mxu0 %v1083_v8 }
  0x77   :  { %517 = vmatpush1.bf16.msra.mxu0 %v1081_v9 }
  0x78   :  { %518 = vmatprep.subr.bf16.mxu0 %v1086_v10 }
  0x7b   :  { %519 = vmatpush1.bf16.msra.mxu0 %v1084_v11 }
  0x7c   :  { %520 = vmatprep.subr.bf16.mxu0 %v1089_v12 }
  0x7f   :  { %521 = vmatpush1.bf16.msra.mxu0 %v1087_v13 }
  0x82   :  { %523 = vmatmul.mubr.bf16.vlgmr.msra.gmra.mrb[0].mxu0 %v1090_v14 }
 0x155   :  { %v524_v28 = vpop.f32.mrb[0].mxu0 }
 0x156   :  { %v981_v29 = vadd.f32 %v524_v28, %v100_v26  ;;  %v526_v30 = vpop.f32.mrb[1].mxu0 }
 0x157   :  { %v982_v31 = vadd.f32 %v526_v30, %v104_v27  ;;  %v528_v32 = vpop.f32.mrb[2].mxu0 }
 0x158   :  { %v983_v33 = vadd.f32 %v528_v32, %v100_v26  ;;  %v530_v34 = vpop.f32.mrb[3].mxu0  ;;  %v533_v36 = vmax.f32 %v981_v29, 0.0 }
 0x159   :  { %v984_v35 = vadd.f32 %v530_v34, %v104_v27  ;;  %v534_v38 = vmax.f32 %v982_v31, 0.0 }
 0x15a   :  { %v535_v37 = vmax.f32 %v983_v33, 0.0 }
 0x15b   :  { %v536_v39 = vmax.f32 %v984_v35, 0.0 }
 0x15c   :  { %v537_v40 = vpack.c.bf16 %v535_v37, %v533_v36 }
 0x15d   :  { %v538_v41 = vpack.c.bf16 %v536_v39, %v534_v38 }
 0x15f   :  { %706 = vmatprep.mubr.bf16.mxu1 %v538_v41 }
 0x160   :  { %707 = vmatmul.mubr.bf16.vlgmr.msra.gmra.mrb[0].mxu1 %v537_v40 }
 0x161   :  { %962 = vmatpush3.bf16.msra.mxu1 %v1109_v42  ;;  %977 = vmatprep.mubr.msk.bf16.mxu1 %vm1118_vm0, %v1117_v20 }
 0x162   :  { %963 = vmatprep.subr.bf16.mxu1 %v1117_v20 }
 0x165   :  { %964 = vmatpush3.bf16.msra.mxu1 %v1110_v43 }
 0x166   :  { %965 = vmatprep.subr.bf16.mxu1 %v1117_v20 }
 0x169   :  { %966 = vmatpush3.bf16.msra.mxu1 %v1111_v44 }
 0x16a   :  { %967 = vmatprep.subr.bf16.mxu1 %v1117_v20 }
 0x16d   :  { %968 = vmatpush3.bf16.msra.mxu1 %v1112_v45 }
 0x16e   :  { %969 = vmatprep.subr.bf16.mxu1 %v1117_v20 }
 0x171   :  { %970 = vmatpush3.bf16.msra.mxu1 %v1113_v46 }
 0x172   :  { %971 = vmatprep.subr.bf16.mxu1 %v1117_v20 }
 0x175   :  { %972 = vmatpush3.bf16.msra.mxu1 %v1114_v47 }
 0x176   :  { %973 = vmatprep.subr.bf16.mxu1 %v1117_v20 }
 0x179   :  { %974 = vmatpush3.bf16.msra.mxu1 %v1115_v48 }
 0x17a   :  { %975 = vmatprep.subr.bf16.mxu1 %v1117_v20 }
 0x17d   :  { %976 = vmatpush3.bf16.msra.mxu1 %v1116_v49 }
 0x233   :  { %v946_v50 = vpop.f32.mrb[0].mxu1 }
 0x234   :  { %v947_v52 = vpop.f32.mrb[1].mxu1 }
 0x235   :  { %v948_v53 = vadd.f32 %v947_v52, %v946_v50  ;;  %v949_v54 = vpop.f32.mrb[2].mxu1 }
 0x236   :  { %v950_v55 = vpop.f32.mrb[3].mxu1 }
 0x237   :  { %v709_v56 = vadd.f32 %v948_v53, %v904_v51  ;;  %v951_v57 = vadd.f32 %v950_v55, %v949_v54 }
 0x239   :  { %v712_v58 = vadd.f32 %v951_v57, %v904_v51  ;;  %v715_v59 = vmax.f32 %v709_v56, 0.0 }
 0x23b   :  { %v716_v60 = vmax.f32 %v712_v58, 0.0 }
 0x23d   :  { %v717_v61 = vpack.c.bf16 %v716_v60, %v715_v59 }
 0x23f   :  { %978 = vmatmul.mubr.bf16.vlgmr.msra.gmra.mrb[4].mxu1 %v717_v61 }
 0x312   :  { %v823_v63 = vpop.f32.mrb[4].mxu1 }
 0x313   :  { %v824_v0 = vadd.f32 %v921_v62, %v823_v63  ;;  %v979_v1 = vpop.f32.mrb[5].mxu1 }
 0x314   :  { %v826_v2 = vpop.f32.mrb[6].mxu1 }
 0x315   :  { %830 = vst [vmem:[%s1457_s7] sm:$0xff] %v824_v0  ;;  %v827_v3 = vadd.f32 %v921_v62, %v826_v2  ;;  %v980_v4 = vpop.f32.mrb[7].mxu1 }
 0x317   :  { %831 = vst [vmem:[%s1457_s7 + $0x8] sm:$0xff] %v827_v3 }

// kernel: value_network_forward.8
= control target key start
LH: loop header
LB: loop body
LE: loop exit
PB: predicated region body
PF: predicated region fallthrough
CT: control target
= control target key end

     0   :  { %s8095_s0 = inlined_call_operand.vmem [shape: bf16[16,12800], index: 0, kind: input, shape index: {}]   ;;  %s8096_s1 = inlined_call_operand.vmem [shape: bf16[12800,512], index: 1, kind: input, shape index: {}]   ;;  %s8097_s2 = inlined_call_operand.vmem [shape: f32[1,512], index: 2, kind: input, shape index: {}]   ;;  %s8098_s3 = inlined_call_operand.vmem [shape: bf16[16,512], index: 3, kind: output, shape index: {}]  }
   0x1   :  { %8100 = sst [smem:[#allocation7_spill]] %s8095_s0 }
   0x2   :  { %8101 = sst [smem:[#allocation8_spill]] %s8096_s1 }
   0x3   :  { %s6628_s12 = smov 0   ;;  %s6630_s13 = smov 0  }
   0x4   :  { %s6632_s14 = smov 0   ;;  %s6634_s15 = smov 0  }
   0x5   :  { %s6636_s16 = smov 0   ;;  %s6638_s17 = smov 0  }
   0x6   :  { %s6640_s18 = smov 0   ;;  %s6642_s19 = smov 0  }
   0x7   :  { %s6644_s20 = smov 0   ;;  %s6646_s21 = smov 0  }
   0x8   :  { %s6648_s22 = smov 0  }
   0x9 LB: > { %s5285_s23 = sadd.s32 4294967295, %s6604_s22   ;;  %s25_s24 = sadd.s32 1, %s6596_s20  ;;  %s6604_s22 = sphi %s6648_s22, %s13_s22   ;;  %s6600_s21 = sphi %s6646_s21, %s8118_s21   ;;  %s6596_s20 = sphi %s6644_s20, %s8117_s20   ;;  %s6592_s19 = sphi %s6642_s19, %s8116_s19   ;;  %s6588_s18 = sphi %s6640_s18, %s8115_s18   ;;  %s6584_s17 = sphi %s6638_s17, %s8114_s17   ;;  %s6580_s16 = sphi %s6636_s16, %s8113_s16   ;;  %s6576_s15 = sphi %s6634_s15, %s8112_s15   ;;  %s6572_s14 = sphi %s6632_s14, %s8111_s14   ;;  %s6568_s13 = sphi %s6630_s13, %s8110_s13   ;;  %s6564_s12 = sphi %s6628_s12, %s8109_s12  }
   0xa   : > { %p26_p0 = scmp.ge.s32.totalorder %s25_s24, 4  ;;  %s28_s25 = sadd.s32 1, %s6600_s21 }
   0xb   : > { %s41_s26 = sadd.s32 1, %s6584_s17  ;;  %p48_p1 = scmp.ne.s32.totalorder %s6584_s17, %s6580_s16 }
   0xc   : > { %s8120_s24 = smov (%p26_p0, %s25_s24), 0  ;;  %s8122_s25 = smov (!%p26_p0, %s28_s25), %s6600_s21 }
   0xd   : > { %s37_s27 = ssub.s32 %s6596_s20, %s8120_s24  ;;  %p49_p2 = scmp.eq.s32.totalorder %s6604_s22, 0 }
   0xe   : > { %p30_p3 = scmp.ge.s32.totalorder %s8122_s25, 2  ;;  %p39_p4 = scmp.eq.s32.totalorder %s37_s27, 0 }
   0xf   : > { %p6695_p5 = por %p49_p2, %p48_p1  ;;  %s69_s29 = sadd.s32 1, %s6576_s15 }
  0x10   : > { %s8124_s25 = smov (%p30_p3, %s8122_s25), 0  ;;  %p76_p6 = scmp.ne.s32.totalorder %s6576_s15, %s6572_s14 }
  0x11   : > { %8103 = sst [smem:[#allocation6_spill]] %s8124_s25  ;;  %s65_s4 = ssub.s32 %s6600_s21, %s8124_s25 }
  0x12   : > { %s6703_s30 = scalar_select %p39_p4, %s6584_s17, %s41_s26  }
  0x13   : > { %s66_s5 = sor.u32 %s65_s4, %s37_s27  ;;  %p121_p7 = scmp.eq.s32.totalorder %s65_s4, 0 }
  0x14   : > { %p67_p8 = scmp.eq.s32.totalorder %s66_s5, 0  ;;  %p6709_p9 = por %p76_p6, %p49_p2 }
  0x15   : > { %s123_s7 = sadd.s32 1, %s6568_s13  ;;  %p133_p10 = scmp.ne.s32.totalorder %s6568_s13, %s6564_s12 }
  0x16   : > { %s6717_s8 = scalar_select %p67_p8, %s6576_s15, %s69_s29  }
  0x17   : > { %s6720_s9 = scalar_select %p121_p7, %s6568_s13, %s123_s7  }
  0x18   : > { %p134_p11 = scmp.eq.s32.totalorder %s5285_s23, 7  ;;  %p5288_p13 = scmp.ge.s32.totalorder %s6604_s22, 8 }
  0x1a   : > { %p6722_p12 = por %p134_p11, %p133_p10  ;;  %156 = sbr.rel (%p5288_p13) target bundleno = 265 (0x109), region = 16 }
  0x21   : > { %159 = sbr.rel (!%p6695_p5) target bundleno = 55 (0x37), region = 20  ;;  %s161_s11 = sand.u32 (%p6695_p5), 1, %s6584_s17  }
  0x22   : > { %s5734_s26 = smul.u32 (%p6695_p5), 100, %s6596_s20  ;;  %s8106_s0 = sld [smem:[#allocation7_spill]] (%p6695_p5) }
  0x23   : > { %s5787_s27 = smul.u32 (%p6695_p5), 200, %s161_s11 }
  0x25   : > { %s6739_s23 = scalar_lea.vmem (%p6695_p5), [#allocation3], %s5787_s27 }
  0x28   : > { %s6734_s5 = scalar_lea.vmem %s8106_s0, %s5734_s26 }
  0x29   : > { %v184_v0 = vld [vmem:[%s6734_s5] sm:$0xff]  ;;  %v186_v1 = vld [vmem:[%s6734_s5 + $0x8] sm:$0xff]  ;;  %v188_v2 = vld [vmem:[%s6734_s5 + $0x10] sm:$0xff] }
  0x2a   : > { %185 = vst [vmem:[%s6739_s23] sm:$0xff] %v184_v0  ;;  %187 = vst [vmem:[%s6739_s23 + $0x8] sm:$0xff] %v186_v1  ;;  %v190_v3 = vld [vmem:[%s6734_s5 + $0x18] sm:$0xff]  ;;  %v192_v4 = vld [vmem:[%s6734_s5 + $0x20] sm:$0xff] }
  0x2b   : > { %189 = vst [vmem:[%s6739_s23 + $0x10] sm:$0xff] %v188_v2  ;;  %v194_v5 = vld [vmem:[%s6734_s5 + $0x28] sm:$0xff]  ;;  %191 = vst [vmem:[%s6739_s23 + $0x18] sm:$0xff] %v190_v3  ;;  %v196_v6 = vld [vmem:[%s6734_s5 + $0x30] sm:$0xff] }
  0x2c   : > { %193 = vst [vmem:[%s6739_s23 + $0x20] sm:$0xff] %v192_v4  ;;  %195 = vst [vmem:[%s6739_s23 + $0x28] sm:$0xff] %v194_v5  ;;  %v198_v7 = vld [vmem:[%s6734_s5 + $0x38] sm:$0xff]  ;;  %v200_v8 = vld [vmem:[%s6734_s5 + $0x40] sm:$0xff] }
  0x2d   : > { %197 = vst [vmem:[%s6739_s23 + $0x30] sm:$0xff] %v196_v6  ;;  %199 = vst [vmem:[%s6739_s23 + $0x38] sm:$0xff] %v198_v7  ;;  %v202_v9 = vld [vmem:[%s6734_s5 + $0x48] sm:$0xff]  ;;  %v204_v10 = vld [vmem:[%s6734_s5 + $0x50] sm:$0xff] }
  0x2e   : > { %201 = vst [vmem:[%s6739_s23 + $0x40] sm:$0xff] %v200_v8  ;;  %v206_v11 = vld [vmem:[%s6734_s5 + $0x58] sm:$0xff]  ;;  %203 = vst [vmem:[%s6739_s23 + $0x48] sm:$0xff] %v202_v9  ;;  %v208_v12 = vld [vmem:[%s6734_s5 + $0x190] sm:$0xff] }
  0x2f   : > { %205 = vst [vmem:[%s6739_s23 + $0x50] sm:$0xff] %v204_v10  ;;  %207 = vst [vmem:[%s6739_s23 + $0x58] sm:$0xff] %v206_v11  ;;  %v210_v13 = vld [vmem:[%s6734_s5 + $0x198] sm:$0xff]  ;;  %v212_v14 = vld [vmem:[%s6734_s5 + $0x1a0] sm:$0xff] }
  0x30   : > { %209 = vst [vmem:[%s6739_s23 + $0x64] sm:$0xff] %v208_v12  ;;  %211 = vst [vmem:[%s6739_s23 + $0x6c] sm:$0xff] %v210_v13  ;;  %v214_v15 = vld [vmem:[%s6734_s5 + $0x1a8] sm:$0xff]  ;;  %v216_v16 = vld [vmem:[%s6734_s5 + $0x1b0] sm:$0xff] }
  0x31   : > { %213 = vst [vmem:[%s6739_s23 + $0x74] sm:$0xff] %v212_v14  ;;  %v218_v17 = vld [vmem:[%s6734_s5 + $0x1b8] sm:$0xff]  ;;  %215 = vst [vmem:[%s6739_s23 + $0x7c] sm:$0xff] %v214_v15  ;;  %v220_v18 = vld [vmem:[%s6734_s5 + $0x1c0] sm:$0xff] }
  0x32   : > { %217 = vst [vmem:[%s6739_s23 + $0x84] sm:$0xff] %v216_v16  ;;  %219 = vst [vmem:[%s6739_s23 + $0x8c] sm:$0xff] %v218_v17  ;;  %v222_v19 = vld [vmem:[%s6734_s5 + $0x1c8] sm:$0xff]  ;;  %v224_v20 = vld [vmem:[%s6734_s5 + $0x1d0] sm:$0xff] }
  0x33   : > { %221 = vst [vmem:[%s6739_s23 + $0x94] sm:$0xff] %v220_v18  ;;  %223 = vst [vmem:[%s6739_s23 + $0x9c] sm:$0xff] %v222_v19  ;;  %v226_v21 = vld [vmem:[%s6734_s5 + $0x1d8] sm:$0xff]  ;;  %v228_v22 = vld [vmem:[%s6734_s5 + $0x1e0] sm:$0xff] }
  0x34   : > { %225 = vst [vmem:[%s6739_s23 + $0xa4] sm:$0xff] %v224_v20  ;;  %v230_v23 = vld [vmem:[%s6734_s5 + $0x1e8] sm:$0xff]  ;;  %227 = vst [vmem:[%s6739_s23 + $0xac] sm:$0xff] %v226_v21  ;;  %v5290_v24 = vld [vmem:[%s6734_s5 + $0x60] sm:$0xf] }
  0x35   : > { %229 = vst [vmem:[%s6739_s23 + $0xb4] sm:$0xff] %v228_v22  ;;  %231 = vst [vmem:[%s6739_s23 + $0xbc] sm:$0xff] %v230_v23  ;;  %v5292_v25 = vld [vmem:[%s6734_s5 + $0x1f0] sm:$0xf] }
  0x36   : > { %5291 = vst [vmem:[%s6739_s23 + $0x60] sm:$0xf] %v5290_v24  ;;  %5293 = vst [vmem:[%s6739_s23 + $0xc4] sm:$0xf] %v5292_v25 }
  0x37 PF: > { %248 = sbr.rel (!%p6709_p9) target bundleno = 265 (0x109), region = 46  ;;  %s250_s28 = sand.u32 (%p6709_p9), 1, %s6576_s15  }
  0x38   : > { %s5788_s7 = smul.u32 (%p6709_p9), 3200, %s250_s28  ;;  %s5294_s11 = sshll.u32 (%p6709_p9), %s6600_s21, 1 }
  0x39   : > { %s5735_s26 = smul.u32 (%p6709_p9), 1600, %s6596_s20  ;;  %s8107_s1 = sld [smem:[#allocation8_spill]] (%p6709_p9) }
  0x3a   : > { %s6803_s6 = scalar_lea.vmem (%p6709_p9), [#allocation4], %s5788_s7 }
  0x3b   : > { %s256_s27 = sadd.s32 (%p6709_p9), %s5735_s26, %s5294_s11 }
  0x3c   : > { %s5296_s29 = sshll.u32 (%p6709_p9), %s256_s27, 2 }
  0x3f   : > { %s6798_s25 = scalar_lea.vmem %s8107_s1, %s5296_s29 }
  0x40   : > { %v1084_v26 = vld [vmem:[%s6798_s25] sm:$0xff]  ;;  %v1086_v27 = vld [vmem:[%s6798_s25 + $0x10] sm:$0xff] }
  0x41   : > { %v1088_v28 = vld [vmem:[%s6798_s25 + $0x20] sm:$0xff]  ;;  %1085 = vst [vmem:[%s6803_s6] sm:$0xff] %v1084_v26  ;;  %1087 = vst [vmem:[%s6803_s6 + $0x8] sm:$0xff] %v1086_v27  ;;  %v1090_v29 = vld [vmem:[%s6798_s25 + $0x30] sm:$0xff] }
  0x42   : > { %1089 = vst [vmem:[%s6803_s6 + $0x10] sm:$0xff] %v1088_v28  ;;  %v1092_v30 = vld [vmem:[%s6798_s25 + $0x40] sm:$0xff]  ;;  %v1094_v31 = vld [vmem:[%s6798_s25 + $0x50] sm:$0xff]  ;;  %1091 = vst [vmem:[%s6803_s6 + $0x18] sm:$0xff] %v1090_v29 }
  0x43   : > { %1093 = vst [vmem:[%s6803_s6 + $0x20] sm:$0xff] %v1092_v30  ;;  %1095 = vst [vmem:[%s6803_s6 + $0x28] sm:$0xff] %v1094_v31  ;;  %v1096_v32 = vld [vmem:[%s6798_s25 + $0x60] sm:$0xff]  ;;  %v1098_v33 = vld [vmem:[%s6798_s25 + $0x70] sm:$0xff] }
  0x44   : > { %v1100_v34 = vld [vmem:[%s6798_s25 + $0x80] sm:$0xff]  ;;  %1097 = vst [vmem:[%s6803_s6 + $0x30] sm:$0xff] %v1096_v32  ;;  %1099 = vst [vmem:[%s6803_s6 + $0x38] sm:$0xff] %v1098_v33  ;;  %v1102_v35 = vld [vmem:[%s6798_s25 + $0x90] sm:$0xff] }
  0x45   : > { %1101 = vst [vmem:[%s6803_s6 + $0x40] sm:$0xff] %v1100_v34  ;;  %v1104_v36 = vld [vmem:[%s6798_s25 + $0xa0] sm:$0xff]  ;;  %v1106_v37 = vld [vmem:[%s6798_s25 + $0xb0] sm:$0xff]  ;;  %1103 = vst [vmem:[%s6803_s6 + $0x48] sm:$0xff] %v1102_v35 }
  0x46   : > { %1105 = vst [vmem:[%s6803_s6 + $0x50] sm:$0xff] %v1104_v36  ;;  %1107 = vst [vmem:[%s6803_s6 + $0x58] sm:$0xff] %v1106_v37  ;;  %v1108_v38 = vld [vmem:[%s6798_s25 + $0xc0] sm:$0xff]  ;;  %v1110_v39 = vld [vmem:[%s6798_s25 + $0xd0] sm:$0xff] }
  0x47   : > { %v1112_v40 = vld [vmem:[%s6798_s25 + $0xe0] sm:$0xff]  ;;  %1109 = vst [vmem:[%s6803_s6 + $0x60] sm:$0xff] %v1108_v38  ;;  %1111 = vst [vmem:[%s6803_s6 + $0x68] sm:$0xff] %v1110_v39  ;;  %v1114_v41 = vld [vmem:[%s6798_s25 + $0xf0] sm:$0xff] }
  0x48   : > { %1113 = vst [vmem:[%s6803_s6 + $0x70] sm:$0xff] %v1112_v40  ;;  %v1116_v42 = vld [vmem:[%s6798_s25 + $0x100] sm:$0xff]  ;;  %v1118_v43 = vld [vmem:[%s6798_s25 + $0x110] sm:$0xff]  ;;  %1115 = vst [vmem:[%s6803_s6 + $0x78] sm:$0xff] %v1114_v41 }
  0x49   : > { %1117 = vst [vmem:[%s6803_s6 + $0x80] sm:$0xff] %v1116_v42  ;;  %1119 = vst [vmem:[%s6803_s6 + $0x88] sm:$0xff] %v1118_v43  ;;  %v1120_v44 = vld [vmem:[%s6798_s25 + $0x120] sm:$0xff]  ;;  %v1122_v45 = vld [vmem:[%s6798_s25 + $0x130] sm:$0xff] }
  0x4a   : > { %v1124_v46 = vld [vmem:[%s6798_s25 + $0x140] sm:$0xff]  ;;  %1121 = vst [vmem:[%s6803_s6 + $0x90] sm:$0xff] %v1120_v44  ;;  %1123 = vst [vmem:[%s6803_s6 + $0x98] sm:$0xff] %v1122_v45  ;;  %v1126_v47 = vld [vmem:[%s6798_s25 + $0x150] sm:$0xff] }
  0x4b   : > { %1125 = vst [vmem:[%s6803_s6 + $0xa0] sm:$0xff] %v1124_v46  ;;  %v1128_v48 = vld [vmem:[%s6798_s25 + $0x160] sm:$0xff]  ;;  %v1130_v49 = vld [vmem:[%s6798_s25 + $0x170] sm:$0xff]  ;;  %1127 = vst [vmem:[%s6803_s6 + $0xa8] sm:$0xff] %v1126_v47 }
  0x4c   : > { %1129 = vst [vmem:[%s6803_s6 + $0xb0] sm:$0xff] %v1128_v48  ;;  %1131 = vst [vmem:[%s6803_s6 + $0xb8] sm:$0xff] %v1130_v49  ;;  %v1132_v50 = vld [vmem:[%s6798_s25 + $0x180] sm:$0xff]  ;;  %v1134_v51 = vld [vmem:[%s6798_s25 + $0x190] sm:$0xff] }
  0x4d   : > { %v1136_v52 = vld [vmem:[%s6798_s25 + $0x1a0] sm:$0xff]  ;;  %1133 = vst [vmem:[%s6803_s6 + $0xc0] sm:$0xff] %v1132_v50  ;;  %1135 = vst [vmem:[%s6803_s6 + $0xc8] sm:$0xff] %v1134_v51  ;;  %v1138_v53 = vld [vmem:[%s6798_s25 + $0x1b0] sm:$0xff] }
  0x4e   : > { %1137 = vst [vmem:[%s6803_s6 + $0xd0] sm:$0xff] %v1136_v52  ;;  %v1140_v54 = vld [vmem:[%s6798_s25 + $0x1c0] sm:$0xff]  ;;  %v1142_v55 = vld [vmem:[%s6798_s25 + $0x1d0] sm:$0xff]  ;;  %1139 = vst [vmem:[%s6803_s6 + $0xd8] sm:$0xff] %v1138_v53 }
  0x4f   : > { %1141 = vst [vmem:[%s6803_s6 + $0xe0] sm:$0xff] %v1140_v54  ;;  %1143 = vst [vmem:[%s6803_s6 + $0xe8] sm:$0xff] %v1142_v55  ;;  %v1144_v56 = vld [vmem:[%s6798_s25 + $0x1e0] sm:$0xff]  ;;  %v1146_v57 = vld [vmem:[%s6798_s25 + $0x1f0] sm:$0xff] }
  0x50   : > { %v1148_v58 = vld [vmem:[%s6798_s25 + $0x200] sm:$0xff]  ;;  %1145 = vst [vmem:[%s6803_s6 + $0xf0] sm:$0xff] %v1144_v56  ;;  %1147 = vst [vmem:[%s6803_s6 + $0xf8] sm:$0xff] %v1146_v57  ;;  %v1150_v59 = vld [vmem:[%s6798_s25 + $0x210] sm:$0xff] }
  0x51   : > { %1149 = vst [vmem:[%s6803_s6 + $0x100] sm:$0xff] %v1148_v58  ;;  %v1152_v60 = vld [vmem:[%s6798_s25 + $0x220] sm:$0xff]  ;;  %v1154_v61 = vld [vmem:[%s6798_s25 + $0x230] sm:$0xff]  ;;  %1151 = vst [vmem:[%s6803_s6 + $0x108] sm:$0xff] %v1150_v59 }
  0x52   : > { %1153 = vst [vmem:[%s6803_s6 + $0x110] sm:$0xff] %v1152_v60  ;;  %1155 = vst [vmem:[%s6803_s6 + $0x118] sm:$0xff] %v1154_v61  ;;  %v1156_v62 = vld [vmem:[%s6798_s25 + $0x240] sm:$0xff]  ;;  %v1158_v63 = vld [vmem:[%s6798_s25 + $0x250] sm:$0xff] }
  0x53   : > { %v1160_v0 = vld [vmem:[%s6798_s25 + $0x260] sm:$0xff]  ;;  %1157 = vst [vmem:[%s6803_s6 + $0x120] sm:$0xff] %v1156_v62  ;;  %1159 = vst [vmem:[%s6803_s6 + $0x128] sm:$0xff] %v1158_v63  ;;  %v1162_v1 = vld [vmem:[%s6798_s25 + $0x270] sm:$0xff] }
  0x54   : > { %1161 = vst [vmem:[%s6803_s6 + $0x130] sm:$0xff] %v1160_v0  ;;  %v1164_v2 = vld [vmem:[%s6798_s25 + $0x280] sm:$0xff]  ;;  %v1166_v3 = vld [vmem:[%s6798_s25 + $0x290] sm:$0xff]  ;;  %1163 = vst [vmem:[%s6803_s6 + $0x138] sm:$0xff] %v1162_v1 }
  0x55   : > { %1165 = vst [vmem:[%s6803_s6 + $0x140] sm:$0xff] %v1164_v2  ;;  %1167 = vst [vmem:[%s6803_s6 + $0x148] sm:$0xff] %v1166_v3  ;;  %v1168_v4 = vld [vmem:[%s6798_s25 + $0x2a0] sm:$0xff]  ;;  %v1170_v5 = vld [vmem:[%s6798_s25 + $0x2b0] sm:$0xff] }
  0x56   : > { %v1172_v6 = vld [vmem:[%s6798_s25 + $0x2c0] sm:$0xff]  ;;  %1169 = vst [vmem:[%s6803_s6 + $0x150] sm:$0xff] %v1168_v4  ;;  %1171 = vst [vmem:[%s6803_s6 + $0x158] sm:$0xff] %v1170_v5  ;;  %v1174_v7 = vld [vmem:[%s6798_s25 + $0x2d0] sm:$0xff] }
  0x57   : > { %1173 = vst [vmem:[%s6803_s6 + $0x160] sm:$0xff] %v1172_v6  ;;  %v1176_v8 = vld [vmem:[%s6798_s25 + $0x2e0] sm:$0xff]  ;;  %v1178_v9 = vld [vmem:[%s6798_s25 + $0x2f0] sm:$0xff]  ;;  %1175 = vst [vmem:[%s6803_s6 + $0x168] sm:$0xff] %v1174_v7 }
  0x58   : > { %1177 = vst [vmem:[%s6803_s6 + $0x170] sm:$0xff] %v1176_v8  ;;  %1179 = vst [vmem:[%s6803_s6 + $0x178] sm:$0xff] %v1178_v9  ;;  %v1180_v10 = vld [vmem:[%s6798_s25 + $0x300] sm:$0xff]  ;;  %v1182_v11 = vld [vmem:[%s6798_s25 + $0x310] sm:$0xff] }
  0x59   : > { %v1184_v12 = vld [vmem:[%s6798_s25 + $0x320] sm:$0xff]  ;;  %1181 = vst [vmem:[%s6803_s6 + $0x180] sm:$0xff] %v1180_v10  ;;  %1183 = vst [vmem:[%s6803_s6 + $0x188] sm:$0xff] %v1182_v11  ;;  %v1186_v13 = vld [vmem:[%s6798_s25 + $0x330] sm:$0xff] }
  0x5a   : > { %1185 = vst [vmem:[%s6803_s6 + $0x190] sm:$0xff] %v1184_v12  ;;  %v1188_v14 = vld [vmem:[%s6798_s25 + $0x340] sm:$0xff]  ;;  %v1190_v15 = vld [vmem:[%s6798_s25 + $0x350] sm:$0xff]  ;;  %1187 = vst [vmem:[%s6803_s6 + $0x198] sm:$0xff] %v1186_v13 }
  0x5b   : > { %1189 = vst [vmem:[%s6803_s6 + $0x1a0] sm:$0xff] %v1188_v14  ;;  %1191 = vst [vmem:[%s6803_s6 + $0x1a8] sm:$0xff] %v1190_v15  ;;  %v1192_v16 = vld [vmem:[%s6798_s25 + $0x360] sm:$0xff]  ;;  %v1194_v17 = vld [vmem:[%s6798_s25 + $0x370] sm:$0xff] }
  0x5c   : > { %v1196_v18 = vld [vmem:[%s6798_s25 + $0x380] sm:$0xff]  ;;  %1193 = vst [vmem:[%s6803_s6 + $0x1b0] sm:$0xff] %v1192_v16  ;;  %1195 = vst [vmem:[%s6803_s6 + $0x1b8] sm:$0xff] %v1194_v17  ;;  %v1198_v19 = vld [vmem:[%s6798_s25 + $0x390] sm:$0xff] }
  0x5d   : > { %1197 = vst [vmem:[%s6803_s6 + $0x1c0] sm:$0xff] %v1196_v18  ;;  %v1200_v20 = vld [vmem:[%s6798_s25 + $0x3a0] sm:$0xff]  ;;  %v1202_v21 = vld [vmem:[%s6798_s25 + $0x3b0] sm:$0xff]  ;;  %1199 = vst [vmem:[%s6803_s6 + $0x1c8] sm:$0xff] %v1198_v19 }
  0x5e   : > { %1201 = vst [vmem:[%s6803_s6 + $0x1d0] sm:$0xff] %v1200_v20  ;;  %1203 = vst [vmem:[%s6803_s6 + $0x1d8] sm:$0xff] %v1202_v21  ;;  %v1204_v22 = vld [vmem:[%s6798_s25 + $0x3c0] sm:$0xff]  ;;  %v1206_v23 = vld [vmem:[%s6798_s25 + $0x3d0] sm:$0xff] }
  0x5f   : > { %v1208_v24 = vld [vmem:[%s6798_s25 + $0x3e0] sm:$0xff]  ;;  %1205 = vst [vmem:[%s6803_s6 + $0x1e0] sm:$0xff] %v1204_v22  ;;  %1207 = vst [vmem:[%s6803_s6 + $0x1e8] sm:$0xff] %v1206_v23  ;;  %v1210_v25 = vld [vmem:[%s6798_s25 + $0x3f0] sm:$0xff] }
  0x60   : > { %1209 = vst [vmem:[%s6803_s6 + $0x1f0] sm:$0xff] %v1208_v24  ;;  %v1212_v26 = vld [vmem:[%s6798_s25 + $0x400] sm:$0xff]  ;;  %v1214_v27 = vld [vmem:[%s6798_s25 + $0x410] sm:$0xff]  ;;  %1211 = vst [vmem:[%s6803_s6 + $0x1f8] sm:$0xff] %v1210_v25 }
  0x61   : > { %1213 = vst [vmem:[%s6803_s6 + $0x200] sm:$0xff] %v1212_v26  ;;  %1215 = vst [vmem:[%s6803_s6 + $0x208] sm:$0xff] %v1214_v27  ;;  %v1216_v28 = vld [vmem:[%s6798_s25 + $0x420] sm:$0xff]  ;;  %v1218_v29 = vld [vmem:[%s6798_s25 + $0x430] sm:$0xff] }
  0x62   : > { %v1220_v30 = vld [vmem:[%s6798_s25 + $0x440] sm:$0xff]  ;;  %1217 = vst [vmem:[%s6803_s6 + $0x210] sm:$0xff] %v1216_v28  ;;  %1219 = vst [vmem:[%s6803_s6 + $0x218] sm:$0xff] %v1218_v29  ;;  %v1222_v31 = vld [vmem:[%s6798_s25 + $0x450] sm:$0xff] }
  0x63   : > { %1221 = vst [vmem:[%s6803_s6 + $0x220] sm:$0xff] %v1220_v30  ;;  %v1224_v32 = vld [vmem:[%s6798_s25 + $0x460] sm:$0xff]  ;;  %v1226_v33 = vld [vmem:[%s6798_s25 + $0x470] sm:$0xff]  ;;  %1223 = vst [vmem:[%s6803_s6 + $0x228] sm:$0xff] %v1222_v31 }
  0x64   : > { %1225 = vst [vmem:[%s6803_s6 + $0x230] sm:$0xff] %v1224_v32  ;;  %1227 = vst [vmem:[%s6803_s6 + $0x238] sm:$0xff] %v1226_v33  ;;  %v1228_v34 = vld [vmem:[%s6798_s25 + $0x480] sm:$0xff]  ;;  %v1230_v35 = vld [vmem:[%s6798_s25 + $0x490] sm:$0xff] }
  0x65   : > { %v1232_v36 = vld [vmem:[%s6798_s25 + $0x4a0] sm:$0xff]  ;;  %1229 = vst [vmem:[%s6803_s6 + $0x240] sm:$0xff] %v1228_v34  ;;  %1231 = vst [vmem:[%s6803_s6 + $0x248] sm:$0xff] %v1230_v35  ;;  %v1234_v37 = vld [vmem:[%s6798_s25 + $0x4b0] sm:$0xff] }
  0x66   : > { %1233 = vst [vmem:[%s6803_s6 + $0x250] sm:$0xff] %v1232_v36  ;;  %v1236_v38 = vld [vmem:[%s6798_s25 + $0x4c0] sm:$0xff]  ;;  %v1238_v39 = vld [vmem:[%s6798_s25 + $0x4d0] sm:$0xff]  ;;  %1235 = vst [vmem:[%s6803_s6 + $0x258] sm:$0xff] %v1234_v37 }
  0x67   : > { %1237 = vst [vmem:[%s6803_s6 + $0x260] sm:$0xff] %v1236_v38  ;;  %1239 = vst [vmem:[%s6803_s6 + $0x268] sm:$0xff] %v1238_v39  ;;  %v1240_v40 = vld [vmem:[%s6798_s25 + $0x4e0] sm:$0xff]  ;;  %v1242_v41 = vld [vmem:[%s6798_s25 + $0x4f0] sm:$0xff] }
  0x68   : > { %v1244_v42 = vld [vmem:[%s6798_s25 + $0x500] sm:$0xff]  ;;  %1241 = vst [vmem:[%s6803_s6 + $0x270] sm:$0xff] %v1240_v40  ;;  %1243 = vst [vmem:[%s6803_s6 + $0x278] sm:$0xff] %v1242_v41  ;;  %v1246_v43 = vld [vmem:[%s6798_s25 + $0x510] sm:$0xff] }
  0x69   : > { %1245 = vst [vmem:[%s6803_s6 + $0x280] sm:$0xff] %v1244_v42  ;;  %v1248_v44 = vld [vmem:[%s6798_s25 + $0x520] sm:$0xff]  ;;  %v1250_v45 = vld [vmem:[%s6798_s25 + $0x530] sm:$0xff]  ;;  %1247 = vst [vmem:[%s6803_s6 + $0x288] sm:$0xff] %v1246_v43 }
  0x6a   : > { %1249 = vst [vmem:[%s6803_s6 + $0x290] sm:$0xff] %v1248_v44  ;;  %1251 = vst [vmem:[%s6803_s6 + $0x298] sm:$0xff] %v1250_v45  ;;  %v1252_v46 = vld [vmem:[%s6798_s25 + $0x540] sm:$0xff]  ;;  %v1254_v47 = vld [vmem:[%s6798_s25 + $0x550] sm:$0xff] }
  0x6b   : > { %v1256_v48 = vld [vmem:[%s6798_s25 + $0x560] sm:$0xff]  ;;  %1253 = vst [vmem:[%s6803_s6 + $0x2a0] sm:$0xff] %v1252_v46  ;;  %1255 = vst [vmem:[%s6803_s6 + $0x2a8] sm:$0xff] %v1254_v47  ;;  %v1258_v49 = vld [vmem:[%s6798_s25 + $0x570] sm:$0xff] }
  0x6c   : > { %1257 = vst [vmem:[%s6803_s6 + $0x2b0] sm:$0xff] %v1256_v48  ;;  %v1260_v50 = vld [vmem:[%s6798_s25 + $0x580] sm:$0xff]  ;;  %v1262_v51 = vld [vmem:[%s6798_s25 + $0x590] sm:$0xff]  ;;  %1259 = vst [vmem:[%s6803_s6 + $0x2b8] sm:$0xff] %v1258_v49 }
  0x6d   : > { %1261 = vst [vmem:[%s6803_s6 + $0x2c0] sm:$0xff] %v1260_v50  ;;  %1263 = vst [vmem:[%s6803_s6 + $0x2c8] sm:$0xff] %v1262_v51  ;;  %v1264_v52 = vld [vmem:[%s6798_s25 + $0x5a0] sm:$0xff]  ;;  %v1266_v53 = vld [vmem:[%s6798_s25 + $0x5b0] sm:$0xff] }
  0x6e   : > { %v1268_v54 = vld [vmem:[%s6798_s25 + $0x5c0] sm:$0xff]  ;;  %1265 = vst [vmem:[%s6803_s6 + $0x2d0] sm:$0xff] %v1264_v52  ;;  %1267 = vst [vmem:[%s6803_s6 + $0x2d8] sm:$0xff] %v1266_v53  ;;  %v1270_v55 = vld [vmem:[%s6798_s25 + $0x5d0] sm:$0xff] }
  0x6f   : > { %1269 = vst [vmem:[%s6803_s6 + $0x2e0] sm:$0xff] %v1268_v54  ;;  %v1272_v56 = vld [vmem:[%s6798_s25 + $0x5e0] sm:$0xff]  ;;  %v1274_v57 = vld [vmem:[%s6798_s25 + $0x5f0] sm:$0xff]  ;;  %1271 = vst [vmem:[%s6803_s6 + $0x2e8] sm:$0xff] %v1270_v55 }
  0x70   : > { %1273 = vst [vmem:[%s6803_s6 + $0x2f0] sm:$0xff] %v1272_v56  ;;  %1275 = vst [vmem:[%s6803_s6 + $0x2f8] sm:$0xff] %v1274_v57  ;;  %v1276_v58 = vld [vmem:[%s6798_s25 + $0x600] sm:$0xff]  ;;  %v1278_v59 = vld [vmem:[%s6798_s25 + $0x610] sm:$0xff] }
  0x71   : > { %v1280_v60 = vld [vmem:[%s6798_s25 + $0x620] sm:$0xff]  ;;  %1277 = vst [vmem:[%s6803_s6 + $0x300] sm:$0xff] %v1276_v58  ;;  %1279 = vst [vmem:[%s6803_s6 + $0x308] sm:$0xff] %v1278_v59  ;;  %v1282_v61 = vld [vmem:[%s6798_s25 + $0x630] sm:$0xff] }
  0x72   : > { %1281 = vst [vmem:[%s6803_s6 + $0x310] sm:$0xff] %v1280_v60  ;;  %v1284_v62 = vld [vmem:[%s6798_s25 + $0x640] sm:$0xff]  ;;  %v1286_v63 = vld [vmem:[%s6798_s25 + $0x650] sm:$0xff]  ;;  %1283 = vst [vmem:[%s6803_s6 + $0x318] sm:$0xff] %v1282_v61 }
  0x73   : > { %1285 = vst [vmem:[%s6803_s6 + $0x320] sm:$0xff] %v1284_v62  ;;  %1287 = vst [vmem:[%s6803_s6 + $0x328] sm:$0xff] %v1286_v63  ;;  %v1288_v0 = vld [vmem:[%s6798_s25 + $0x660] sm:$0xff]  ;;  %v1290_v1 = vld [vmem:[%s6798_s25 + $0x670] sm:$0xff] }
  0x74   : > { %v1292_v2 = vld [vmem:[%s6798_s25 + $0x680] sm:$0xff]  ;;  %1289 = vst [vmem:[%s6803_s6 + $0x330] sm:$0xff] %v1288_v0  ;;  %1291 = vst [vmem:[%s6803_s6 + $0x338] sm:$0xff] %v1290_v1  ;;  %v1294_v3 = vld [vmem:[%s6798_s25 + $0x690] sm:$0xff] }
  0x75   : > { %1293 = vst [vmem:[%s6803_s6 + $0x340] sm:$0xff] %v1292_v2  ;;  %v1296_v4 = vld [vmem:[%s6798_s25 + $0x6a0] sm:$0xff]  ;;  %v1298_v5 = vld [vmem:[%s6798_s25 + $0x6b0] sm:$0xff]  ;;  %1295 = vst [vmem:[%s6803_s6 + $0x348] sm:$0xff] %v1294_v3 }
  0x76   : > { %1297 = vst [vmem:[%s6803_s6 + $0x350] sm:$0xff] %v1296_v4  ;;  %1299 = vst [vmem:[%s6803_s6 + $0x358] sm:$0xff] %v1298_v5  ;;  %v1300_v6 = vld [vmem:[%s6798_s25 + $0x6c0] sm:$0xff]  ;;  %v1302_v7 = vld [vmem:[%s6798_s25 + $0x6d0] sm:$0xff] }
  0x77   : > { %v1304_v8 = vld [vmem:[%s6798_s25 + $0x6e0] sm:$0xff]  ;;  %1301 = vst [vmem:[%s6803_s6 + $0x360] sm:$0xff] %v1300_v6  ;;  %1303 = vst [vmem:[%s6803_s6 + $0x368] sm:$0xff] %v1302_v7  ;;  %v1306_v9 = vld [vmem:[%s6798_s25 + $0x6f0] sm:$0xff] }
  0x78   : > { %1305 = vst [vmem:[%s6803_s6 + $0x370] sm:$0xff] %v1304_v8  ;;  %v1308_v10 = vld [vmem:[%s6798_s25 + $0x700] sm:$0xff]  ;;  %v1310_v11 = vld [vmem:[%s6798_s25 + $0x710] sm:$0xff]  ;;  %1307 = vst [vmem:[%s6803_s6 + $0x378] sm:$0xff] %v1306_v9 }
  0x79   : > { %1309 = vst [vmem:[%s6803_s6 + $0x380] sm:$0xff] %v1308_v10  ;;  %1311 = vst [vmem:[%s6803_s6 + $0x388] sm:$0xff] %v1310_v11  ;;  %v1312_v12 = vld [vmem:[%s6798_s25 + $0x720] sm:$0xff]  ;;  %v1314_v13 = vld [vmem:[%s6798_s25 + $0x730] sm:$0xff] }
  0x7a   : > { %v1316_v14 = vld [vmem:[%s6798_s25 + $0x740] sm:$0xff]  ;;  %1313 = vst [vmem:[%s6803_s6 + $0x390] sm:$0xff] %v1312_v12  ;;  %1315 = vst [vmem:[%s6803_s6 + $0x398] sm:$0xff] %v1314_v13  ;;  %v1318_v15 = vld [vmem:[%s6798_s25 + $0x750] sm:$0xff] }
  0x7b   : > { %1317 = vst [vmem:[%s6803_s6 + $0x3a0] sm:$0xff] %v1316_v14  ;;  %v1320_v16 = vld [vmem:[%s6798_s25 + $0x760] sm:$0xff]  ;;  %v1322_v17 = vld [vmem:[%s6798_s25 + $0x770] sm:$0xff]  ;;  %1319 = vst [vmem:[%s6803_s6 + $0x3a8] sm:$0xff] %v1318_v15 }
  0x7c   : > { %1321 = vst [vmem:[%s6803_s6 + $0x3b0] sm:$0xff] %v1320_v16  ;;  %1323 = vst [vmem:[%s6803_s6 + $0x3b8] sm:$0xff] %v1322_v17  ;;  %v1324_v18 = vld [vmem:[%s6798_s25 + $0x780] sm:$0xff]  ;;  %v1326_v19 = vld [vmem:[%s6798_s25 + $0x790] sm:$0xff] }
  0x7d   : > { %v1328_v20 = vld [vmem:[%s6798_s25 + $0x7a0] sm:$0xff]  ;;  %1325 = vst [vmem:[%s6803_s6 + $0x3c0] sm:$0xff] %v1324_v18  ;;  %1327 = vst [vmem:[%s6803_s6 + $0x3c8] sm:$0xff] %v1326_v19  ;;  %v1330_v21 = vld [vmem:[%s6798_s25 + $0x7b0] sm:$0xff] }
  0x7e   : > { %1329 = vst [vmem:[%s6803_s6 + $0x3d0] sm:$0xff] %v1328_v20  ;;  %v1332_v22 = vld [vmem:[%s6798_s25 + $0x7c0] sm:$0xff]  ;;  %v1334_v23 = vld [vmem:[%s6798_s25 + $0x7d0] sm:$0xff]  ;;  %1331 = vst [vmem:[%s6803_s6 + $0x3d8] sm:$0xff] %v1330_v21 }
  0x7f   : > { %1333 = vst [vmem:[%s6803_s6 + $0x3e0] sm:$0xff] %v1332_v22  ;;  %1335 = vst [vmem:[%s6803_s6 + $0x3e8] sm:$0xff] %v1334_v23  ;;  %v1336_v24 = vld [vmem:[%s6798_s25 + $0x7e0] sm:$0xff]  ;;  %v1338_v25 = vld [vmem:[%s6798_s25 + $0x7f0] sm:$0xff] }
  0x80   : > { %v1340_v26 = vld [vmem:[%s6798_s25 + $0x800] sm:$0xff]  ;;  %1337 = vst [vmem:[%s6803_s6 + $0x3f0] sm:$0xff] %v1336_v24  ;;  %1339 = vst [vmem:[%s6803_s6 + $0x3f8] sm:$0xff] %v1338_v25  ;;  %v1342_v27 = vld [vmem:[%s6798_s25 + $0x810] sm:$0xff] }
  0x81   : > { %1341 = vst [vmem:[%s6803_s6 + $0x400] sm:$0xff] %v1340_v26  ;;  %v1344_v28 = vld [vmem:[%s6798_s25 + $0x820] sm:$0xff]  ;;  %v1346_v29 = vld [vmem:[%s6798_s25 + $0x830] sm:$0xff]  ;;  %1343 = vst [vmem:[%s6803_s6 + $0x408] sm:$0xff] %v1342_v27 }
  0x82   : > { %1345 = vst [vmem:[%s6803_s6 + $0x410] sm:$0xff] %v1344_v28  ;;  %1347 = vst [vmem:[%s6803_s6 + $0x418] sm:$0xff] %v1346_v29  ;;  %v1348_v30 = vld [vmem:[%s6798_s25 + $0x840] sm:$0xff]  ;;  %v1350_v31 = vld [vmem:[%s6798_s25 + $0x850] sm:$0xff] }
  0x83   : > { %v1352_v32 = vld [vmem:[%s6798_s25 + $0x860] sm:$0xff]  ;;  %1349 = vst [vmem:[%s6803_s6 + $0x420] sm:$0xff] %v1348_v30  ;;  %1351 = vst [vmem:[%s6803_s6 + $0x428] sm:$0xff] %v1350_v31  ;;  %v1354_v33 = vld [vmem:[%s6798_s25 + $0x870] sm:$0xff] }
  0x84   : > { %1353 = vst [vmem:[%s6803_s6 + $0x430] sm:$0xff] %v1352_v32  ;;  %v1356_v34 = vld [vmem:[%s6798_s25 + $0x880] sm:$0xff]  ;;  %v1358_v35 = vld [vmem:[%s6798_s25 + $0x890] sm:$0xff]  ;;  %1355 = vst [vmem:[%s6803_s6 + $0x438] sm:$0xff] %v1354_v33 }
  0x85   : > { %1357 = vst [vmem:[%s6803_s6 + $0x440] sm:$0xff] %v1356_v34  ;;  %1359 = vst [vmem:[%s6803_s6 + $0x448] sm:$0xff] %v1358_v35  ;;  %v1360_v36 = vld [vmem:[%s6798_s25 + $0x8a0] sm:$0xff]  ;;  %v1362_v37 = vld [vmem:[%s6798_s25 + $0x8b0] sm:$0xff] }
  0x86   : > { %v1364_v38 = vld [vmem:[%s6798_s25 + $0x8c0] sm:$0xff]  ;;  %1361 = vst [vmem:[%s6803_s6 + $0x450] sm:$0xff] %v1360_v36  ;;  %1363 = vst [vmem:[%s6803_s6 + $0x458] sm:$0xff] %v1362_v37  ;;  %v1366_v39 = vld [vmem:[%s6798_s25 + $0x8d0] sm:$0xff] }
  0x87   : > { %1365 = vst [vmem:[%s6803_s6 + $0x460] sm:$0xff] %v1364_v38  ;;  %v1368_v40 = vld [vmem:[%s6798_s25 + $0x8e0] sm:$0xff]  ;;  %v1370_v41 = vld [vmem:[%s6798_s25 + $0x8f0] sm:$0xff]  ;;  %1367 = vst [vmem:[%s6803_s6 + $0x468] sm:$0xff] %v1366_v39 }
  0x88   : > { %1369 = vst [vmem:[%s6803_s6 + $0x470] sm:$0xff] %v1368_v40  ;;  %1371 = vst [vmem:[%s6803_s6 + $0x478] sm:$0xff] %v1370_v41  ;;  %v1372_v42 = vld [vmem:[%s6798_s25 + $0x900] sm:$0xff]  ;;  %v1374_v43 = vld [vmem:[%s6798_s25 + $0x910] sm:$0xff] }
  0x89   : > { %v1376_v44 = vld [vmem:[%s6798_s25 + $0x920] sm:$0xff]  ;;  %1373 = vst [vmem:[%s6803_s6 + $0x480] sm:$0xff] %v1372_v42  ;;  %1375 = vst [vmem:[%s6803_s6 + $0x488] sm:$0xff] %v1374_v43  ;;  %v1378_v45 = vld [vmem:[%s6798_s25 + $0x930] sm:$0xff] }
  0x8a   : > { %1377 = vst [vmem:[%s6803_s6 + $0x490] sm:$0xff] %v1376_v44  ;;  %v1380_v46 = vld [vmem:[%s6798_s25 + $0x940] sm:$0xff]  ;;  %v1382_v47 = vld [vmem:[%s6798_s25 + $0x950] sm:$0xff]  ;;  %1379 = vst [vmem:[%s6803_s6 + $0x498] sm:$0xff] %v1378_v45 }
  0x8b   : > { %1381 = vst [vmem:[%s6803_s6 + $0x4a0] sm:$0xff] %v1380_v46  ;;  %1383 = vst [vmem:[%s6803_s6 + $0x4a8] sm:$0xff] %v1382_v47  ;;  %v1384_v48 = vld [vmem:[%s6798_s25 + $0x960] sm:$0xff]  ;;  %v1386_v49 = vld [vmem:[%s6798_s25 + $0x970] sm:$0xff] }
  0x8c   : > { %v1388_v50 = vld [vmem:[%s6798_s25 + $0x980] sm:$0xff]  ;;  %1385 = vst [vmem:[%s6803_s6 + $0x4b0] sm:$0xff] %v1384_v48  ;;  %1387 = vst [vmem:[%s6803_s6 + $0x4b8] sm:$0xff] %v1386_v49  ;;  %v1390_v51 = vld [vmem:[%s6798_s25 + $0x990] sm:$0xff] }
  0x8d   : > { %1389 = vst [vmem:[%s6803_s6 + $0x4c0] sm:$0xff] %v1388_v50  ;;  %v1392_v52 = vld [vmem:[%s6798_s25 + $0x9a0] sm:$0xff]  ;;  %v1394_v53 = vld [vmem:[%s6798_s25 + $0x9b0] sm:$0xff]  ;;  %1391 = vst [vmem:[%s6803_s6 + $0x4c8] sm:$0xff] %v1390_v51 }
  0x8e   : > { %1393 = vst [vmem:[%s6803_s6 + $0x4d0] sm:$0xff] %v1392_v52  ;;  %1395 = vst [vmem:[%s6803_s6 + $0x4d8] sm:$0xff] %v1394_v53  ;;  %v1396_v54 = vld [vmem:[%s6798_s25 + $0x9c0] sm:$0xff]  ;;  %v1398_v55 = vld [vmem:[%s6798_s25 + $0x9d0] sm:$0xff] }
  0x8f   : > { %v1400_v56 = vld [vmem:[%s6798_s25 + $0x9e0] sm:$0xff]  ;;  %1397 = vst [vmem:[%s6803_s6 + $0x4e0] sm:$0xff] %v1396_v54  ;;  %1399 = vst [vmem:[%s6803_s6 + $0x4e8] sm:$0xff] %v1398_v55  ;;  %v1402_v57 = vld [vmem:[%s6798_s25 + $0x9f0] sm:$0xff] }
  0x90   : > { %1401 = vst [vmem:[%s6803_s6 + $0x4f0] sm:$0xff] %v1400_v56  ;;  %v1404_v58 = vld [vmem:[%s6798_s25 + $0xa00] sm:$0xff]  ;;  %v1406_v59 = vld [vmem:[%s6798_s25 + $0xa10] sm:$0xff]  ;;  %1403 = vst [vmem:[%s6803_s6 + $0x4f8] sm:$0xff] %v1402_v57 }
  0x91   : > { %1405 = vst [vmem:[%s6803_s6 + $0x500] sm:$0xff] %v1404_v58  ;;  %1407 = vst [vmem:[%s6803_s6 + $0x508] sm:$0xff] %v1406_v59  ;;  %v1408_v60 = vld [vmem:[%s6798_s25 + $0xa20] sm:$0xff]  ;;  %v1410_v61 = vld [vmem:[%s6798_s25 + $0xa30] sm:$0xff] }
  0x92   : > { %v1412_v62 = vld [vmem:[%s6798_s25 + $0xa40] sm:$0xff]  ;;  %1409 = vst [vmem:[%s6803_s6 + $0x510] sm:$0xff] %v1408_v60  ;;  %1411 = vst [vmem:[%s6803_s6 + $0x518] sm:$0xff] %v1410_v61  ;;  %v1414_v63 = vld [vmem:[%s6798_s25 + $0xa50] sm:$0xff] }
  0x93   : > { %1413 = vst [vmem:[%s6803_s6 + $0x520] sm:$0xff] %v1412_v62  ;;  %v1416_v0 = vld [vmem:[%s6798_s25 + $0xa60] sm:$0xff]  ;;  %v1418_v1 = vld [vmem:[%s6798_s25 + $0xa70] sm:$0xff]  ;;  %1415 = vst [vmem:[%s6803_s6 + $0x528] sm:$0xff] %v1414_v63 }
  0x94   : > { %1417 = vst [vmem:[%s6803_s6 + $0x530] sm:$0xff] %v1416_v0  ;;  %1419 = vst [vmem:[%s6803_s6 + $0x538] sm:$0xff] %v1418_v1  ;;  %v1420_v2 = vld [vmem:[%s6798_s25 + $0xa80] sm:$0xff]  ;;  %v1422_v3 = vld [vmem:[%s6798_s25 + $0xa90] sm:$0xff] }
  0x95   : > { %v1424_v4 = vld [vmem:[%s6798_s25 + $0xaa0] sm:$0xff]  ;;  %1421 = vst [vmem:[%s6803_s6 + $0x540] sm:$0xff] %v1420_v2  ;;  %1423 = vst [vmem:[%s6803_s6 + $0x548] sm:$0xff] %v1422_v3  ;;  %v1426_v5 = vld [vmem:[%s6798_s25 + $0xab0] sm:$0xff] }
  0x96   : > { %1425 = vst [vmem:[%s6803_s6 + $0x550] sm:$0xff] %v1424_v4  ;;  %v1428_v6 = vld [vmem:[%s6798_s25 + $0xac0] sm:$0xff]  ;;  %v1430_v7 = vld [vmem:[%s6798_s25 + $0xad0] sm:$0xff]  ;;  %1427 = vst [vmem:[%s6803_s6 + $0x558] sm:$0xff] %v1426_v5 }
  0x97   : > { %1429 = vst [vmem:[%s6803_s6 + $0x560] sm:$0xff] %v1428_v6  ;;  %1431 = vst [vmem:[%s6803_s6 + $0x568] sm:$0xff] %v1430_v7  ;;  %v1432_v8 = vld [vmem:[%s6798_s25 + $0xae0] sm:$0xff]  ;;  %v1434_v9 = vld [vmem:[%s6798_s25 + $0xaf0] sm:$0xff] }
  0x98   : > { %v1436_v10 = vld [vmem:[%s6798_s25 + $0xb00] sm:$0xff]  ;;  %1433 = vst [vmem:[%s6803_s6 + $0x570] sm:$0xff] %v1432_v8  ;;  %1435 = vst [vmem:[%s6803_s6 + $0x578] sm:$0xff] %v1434_v9  ;;  %v1438_v11 = vld [vmem:[%s6798_s25 + $0xb10] sm:$0xff] }
  0x99   : > { %1437 = vst [vmem:[%s6803_s6 + $0x580] sm:$0xff] %v1436_v10  ;;  %v1440_v12 = vld [vmem:[%s6798_s25 + $0xb20] sm:$0xff]  ;;  %v1442_v13 = vld [vmem:[%s6798_s25 + $0xb30] sm:$0xff]  ;;  %1439 = vst [vmem:[%s6803_s6 + $0x588] sm:$0xff] %v1438_v11 }
  0x9a   : > { %1441 = vst [vmem:[%s6803_s6 + $0x590] sm:$0xff] %v1440_v12  ;;  %1443 = vst [vmem:[%s6803_s6 + $0x598] sm:$0xff] %v1442_v13  ;;  %v1444_v14 = vld [vmem:[%s6798_s25 + $0xb40] sm:$0xff]  ;;  %v1446_v15 = vld [vmem:[%s6798_s25 + $0xb50] sm:$0xff] }
  0x9b   : > { %v1448_v16 = vld [vmem:[%s6798_s25 + $0xb60] sm:$0xff]  ;;  %1445 = vst [vmem:[%s6803_s6 + $0x5a0] sm:$0xff] %v1444_v14  ;;  %1447 = vst [vmem:[%s6803_s6 + $0x5a8] sm:$0xff] %v1446_v15  ;;  %v1450_v17 = vld [vmem:[%s6798_s25 + $0xb70] sm:$0xff] }
  0x9c   : > { %1449 = vst [vmem:[%s6803_s6 + $0x5b0] sm:$0xff] %v1448_v16  ;;  %v1452_v18 = vld [vmem:[%s6798_s25 + $0xb80] sm:$0xff]  ;;  %v1454_v19 = vld [vmem:[%s6798_s25 + $0xb90] sm:$0xff]  ;;  %1451 = vst [vmem:[%s6803_s6 + $0x5b8] sm:$0xff] %v1450_v17 }
  0x9d   : > { %1453 = vst [vmem:[%s6803_s6 + $0x5c0] sm:$0xff] %v1452_v18  ;;  %1455 = vst [vmem:[%s6803_s6 + $0x5c8] sm:$0xff] %v1454_v19  ;;  %v1456_v20 = vld [vmem:[%s6798_s25 + $0xba0] sm:$0xff]  ;;  %v1458_v21 = vld [vmem:[%s6798_s25 + $0xbb0] sm:$0xff] }
  0x9e   : > { %v1460_v22 = vld [vmem:[%s6798_s25 + $0xbc0] sm:$0xff]  ;;  %1457 = vst [vmem:[%s6803_s6 + $0x5d0] sm:$0xff] %v1456_v20  ;;  %1459 = vst [vmem:[%s6803_s6 + $0x5d8] sm:$0xff] %v1458_v21  ;;  %v1462_v23 = vld [vmem:[%s6798_s25 + $0xbd0] sm:$0xff] }
  0x9f   : > { %1461 = vst [vmem:[%s6803_s6 + $0x5e0] sm:$0xff] %v1460_v22  ;;  %v1464_v24 = vld [vmem:[%s6798_s25 + $0xbe0] sm:$0xff]  ;;  %v1466_v25 = vld [vmem:[%s6798_s25 + $0xbf0] sm:$0xff]  ;;  %1463 = vst [vmem:[%s6803_s6 + $0x5e8] sm:$0xff] %v1462_v23 }
  0xa0   : > { %1465 = vst [vmem:[%s6803_s6 + $0x5f0] sm:$0xff] %v1464_v24  ;;  %1467 = vst [vmem:[%s6803_s6 + $0x5f8] sm:$0xff] %v1466_v25  ;;  %v1468_v26 = vld [vmem:[%s6798_s25 + $0xc00] sm:$0xff]  ;;  %v1470_v27 = vld [vmem:[%s6798_s25 + $0xc10] sm:$0xff] }
  0xa1   : > { %v1472_v28 = vld [vmem:[%s6798_s25 + $0xc20] sm:$0xff]  ;;  %1469 = vst [vmem:[%s6803_s6 + $0x600] sm:$0xff] %v1468_v26  ;;  %1471 = vst [vmem:[%s6803_s6 + $0x608] sm:$0xff] %v1470_v27  ;;  %v1474_v29 = vld [vmem:[%s6798_s25 + $0xc30] sm:$0xff] }
  0xa2   : > { %1473 = vst [vmem:[%s6803_s6 + $0x610] sm:$0xff] %v1472_v28  ;;  %v1476_v30 = vld [vmem:[%s6798_s25 + $0xc40] sm:$0xff]  ;;  %v1478_v31 = vld [vmem:[%s6798_s25 + $0xc50] sm:$0xff]  ;;  %1475 = vst [vmem:[%s6803_s6 + $0x618] sm:$0xff] %v1474_v29 }
  0xa3   : > { %1477 = vst [vmem:[%s6803_s6 + $0x620] sm:$0xff] %v1476_v30  ;;  %1479 = vst [vmem:[%s6803_s6 + $0x628] sm:$0xff] %v1478_v31  ;;  %v1480_v32 = vld [vmem:[%s6798_s25 + $0xc60] sm:$0xff]  ;;  %v1482_v33 = vld [vmem:[%s6798_s25 + $0xc70] sm:$0xff] }
  0xa4   : > { %v1484_v34 = vld [vmem:[%s6798_s25 + $0xc80] sm:$0xff]  ;;  %1481 = vst [vmem:[%s6803_s6 + $0x630] sm:$0xff] %v1480_v32  ;;  %1483 = vst [vmem:[%s6803_s6 + $0x638] sm:$0xff] %v1482_v33  ;;  %v1486_v35 = vld [vmem:[%s6798_s25 + $0xc90] sm:$0xff] }
  0xa5   : > { %1485 = vst [vmem:[%s6803_s6 + $0x640] sm:$0xff] %v1484_v34  ;;  %v1488_v36 = vld [vmem:[%s6798_s25 + $0xca0] sm:$0xff]  ;;  %v1490_v37 = vld [vmem:[%s6798_s25 + $0xcb0] sm:$0xff]  ;;  %1487 = vst [vmem:[%s6803_s6 + $0x648] sm:$0xff] %v1486_v35 }
  0xa6   : > { %1489 = vst [vmem:[%s6803_s6 + $0x650] sm:$0xff] %v1488_v36  ;;  %1491 = vst [vmem:[%s6803_s6 + $0x658] sm:$0xff] %v1490_v37  ;;  %v1492_v38 = vld [vmem:[%s6798_s25 + $0xcc0] sm:$0xff]  ;;  %v1494_v39 = vld [vmem:[%s6798_s25 + $0xcd0] sm:$0xff] }
  0xa7   : > { %v1496_v40 = vld [vmem:[%s6798_s25 + $0xce0] sm:$0xff]  ;;  %1493 = vst [vmem:[%s6803_s6 + $0x660] sm:$0xff] %v1492_v38  ;;  %1495 = vst [vmem:[%s6803_s6 + $0x668] sm:$0xff] %v1494_v39  ;;  %v1498_v41 = vld [vmem:[%s6798_s25 + $0xcf0] sm:$0xff] }
  0xa8   : > { %1497 = vst [vmem:[%s6803_s6 + $0x670] sm:$0xff] %v1496_v40  ;;  %v1500_v42 = vld [vmem:[%s6798_s25 + $0xd00] sm:$0xff]  ;;  %v1502_v43 = vld [vmem:[%s6798_s25 + $0xd10] sm:$0xff]  ;;  %1499 = vst [vmem:[%s6803_s6 + $0x678] sm:$0xff] %v1498_v41 }
  0xa9   : > { %1501 = vst [vmem:[%s6803_s6 + $0x680] sm:$0xff] %v1500_v42  ;;  %1503 = vst [vmem:[%s6803_s6 + $0x688] sm:$0xff] %v1502_v43  ;;  %v1504_v44 = vld [vmem:[%s6798_s25 + $0xd20] sm:$0xff]  ;;  %v1506_v45 = vld [vmem:[%s6798_s25 + $0xd30] sm:$0xff] }
  0xaa   : > { %v1508_v46 = vld [vmem:[%s6798_s25 + $0xd40] sm:$0xff]  ;;  %1505 = vst [vmem:[%s6803_s6 + $0x690] sm:$0xff] %v1504_v44  ;;  %1507 = vst [vmem:[%s6803_s6 + $0x698] sm:$0xff] %v1506_v45  ;;  %v1510_v47 = vld [vmem:[%s6798_s25 + $0xd50] sm:$0xff] }
  0xab   : > { %1509 = vst [vmem:[%s6803_s6 + $0x6a0] sm:$0xff] %v1508_v46  ;;  %v1512_v48 = vld [vmem:[%s6798_s25 + $0xd60] sm:$0xff]  ;;  %v1514_v49 = vld [vmem:[%s6798_s25 + $0xd70] sm:$0xff]  ;;  %1511 = vst [vmem:[%s6803_s6 + $0x6a8] sm:$0xff] %v1510_v47 }
  0xac   : > { %1513 = vst [vmem:[%s6803_s6 + $0x6b0] sm:$0xff] %v1512_v48  ;;  %1515 = vst [vmem:[%s6803_s6 + $0x6b8] sm:$0xff] %v1514_v49  ;;  %v1516_v50 = vld [vmem:[%s6798_s25 + $0xd80] sm:$0xff]  ;;  %v1518_v51 = vld [vmem:[%s6798_s25 + $0xd90] sm:$0xff] }
  0xad   : > { %v1520_v52 = vld [vmem:[%s6798_s25 + $0xda0] sm:$0xff]  ;;  %1517 = vst [vmem:[%s6803_s6 + $0x6c0] sm:$0xff] %v1516_v50  ;;  %1519 = vst [vmem:[%s6803_s6 + $0x6c8] sm:$0xff] %v1518_v51  ;;  %v1522_v53 = vld [vmem:[%s6798_s25 + $0xdb0] sm:$0xff] }
  0xae   : > { %1521 = vst [vmem:[%s6803_s6 + $0x6d0] sm:$0xff] %v1520_v52  ;;  %v1524_v54 = vld [vmem:[%s6798_s25 + $0xdc0] sm:$0xff]  ;;  %v1526_v55 = vld [vmem:[%s6798_s25 + $0xdd0] sm:$0xff]  ;;  %1523 = vst [vmem:[%s6803_s6 + $0x6d8] sm:$0xff] %v1522_v53 }
  0xaf   : > { %1525 = vst [vmem:[%s6803_s6 + $0x6e0] sm:$0xff] %v1524_v54  ;;  %1527 = vst [vmem:[%s6803_s6 + $0x6e8] sm:$0xff] %v1526_v55  ;;  %v1528_v56 = vld [vmem:[%s6798_s25 + $0xde0] sm:$0xff]  ;;  %v1530_v57 = vld [vmem:[%s6798_s25 + $0xdf0] sm:$0xff] }
  0xb0   : > { %v1532_v58 = vld [vmem:[%s6798_s25 + $0xe00] sm:$0xff]  ;;  %1529 = vst [vmem:[%s6803_s6 + $0x6f0] sm:$0xff] %v1528_v56  ;;  %1531 = vst [vmem:[%s6803_s6 + $0x6f8] sm:$0xff] %v1530_v57  ;;  %v1534_v59 = vld [vmem:[%s6798_s25 + $0xe10] sm:$0xff] }
  0xb1   : > { %1533 = vst [vmem:[%s6803_s6 + $0x700] sm:$0xff] %v1532_v58  ;;  %v1536_v60 = vld [vmem:[%s6798_s25 + $0xe20] sm:$0xff]  ;;  %v1538_v61 = vld [vmem:[%s6798_s25 + $0xe30] sm:$0xff]  ;;  %1535 = vst [vmem:[%s6803_s6 + $0x708] sm:$0xff] %v1534_v59 }
  0xb2   : > { %1537 = vst [vmem:[%s6803_s6 + $0x710] sm:$0xff] %v1536_v60  ;;  %1539 = vst [vmem:[%s6803_s6 + $0x718] sm:$0xff] %v1538_v61  ;;  %v1540_v62 = vld [vmem:[%s6798_s25 + $0xe40] sm:$0xff]  ;;  %v1542_v63 = vld [vmem:[%s6798_s25 + $0xe50] sm:$0xff] }
  0xb3   : > { %v1544_v0 = vld [vmem:[%s6798_s25 + $0xe60] sm:$0xff]  ;;  %1541 = vst [vmem:[%s6803_s6 + $0x720] sm:$0xff] %v1540_v62  ;;  %1543 = vst [vmem:[%s6803_s6 + $0x728] sm:$0xff] %v1542_v63  ;;  %v1546_v1 = vld [vmem:[%s6798_s25 + $0xe70] sm:$0xff] }
  0xb4   : > { %1545 = vst [vmem:[%s6803_s6 + $0x730] sm:$0xff] %v1544_v0  ;;  %v1548_v2 = vld [vmem:[%s6798_s25 + $0xe80] sm:$0xff]  ;;  %v1550_v3 = vld [vmem:[%s6798_s25 + $0xe90] sm:$0xff]  ;;  %1547 = vst [vmem:[%s6803_s6 + $0x738] sm:$0xff] %v1546_v1 }
  0xb5   : > { %1549 = vst [vmem:[%s6803_s6 + $0x740] sm:$0xff] %v1548_v2  ;;  %1551 = vst [vmem:[%s6803_s6 + $0x748] sm:$0xff] %v1550_v3  ;;  %v1552_v4 = vld [vmem:[%s6798_s25 + $0xea0] sm:$0xff]  ;;  %v1554_v5 = vld [vmem:[%s6798_s25 + $0xeb0] sm:$0xff] }
  0xb6   : > { %v1556_v6 = vld [vmem:[%s6798_s25 + $0xec0] sm:$0xff]  ;;  %1553 = vst [vmem:[%s6803_s6 + $0x750] sm:$0xff] %v1552_v4  ;;  %1555 = vst [vmem:[%s6803_s6 + $0x758] sm:$0xff] %v1554_v5  ;;  %v1558_v7 = vld [vmem:[%s6798_s25 + $0xed0] sm:$0xff] }
  0xb7   : > { %1557 = vst [vmem:[%s6803_s6 + $0x760] sm:$0xff] %v1556_v6  ;;  %v1560_v8 = vld [vmem:[%s6798_s25 + $0xee0] sm:$0xff]  ;;  %v1562_v9 = vld [vmem:[%s6798_s25 + $0xef0] sm:$0xff]  ;;  %1559 = vst [vmem:[%s6803_s6 + $0x768] sm:$0xff] %v1558_v7 }
  0xb8   : > { %1561 = vst [vmem:[%s6803_s6 + $0x770] sm:$0xff] %v1560_v8  ;;  %1563 = vst [vmem:[%s6803_s6 + $0x778] sm:$0xff] %v1562_v9  ;;  %v1564_v10 = vld [vmem:[%s6798_s25 + $0xf00] sm:$0xff]  ;;  %v1566_v11 = vld [vmem:[%s6798_s25 + $0xf10] sm:$0xff] }
  0xb9   : > { %v1568_v12 = vld [vmem:[%s6798_s25 + $0xf20] sm:$0xff]  ;;  %1565 = vst [vmem:[%s6803_s6 + $0x780] sm:$0xff] %v1564_v10  ;;  %1567 = vst [vmem:[%s6803_s6 + $0x788] sm:$0xff] %v1566_v11  ;;  %v1570_v13 = vld [vmem:[%s6798_s25 + $0xf30] sm:$0xff] }
  0xba   : > { %1569 = vst [vmem:[%s6803_s6 + $0x790] sm:$0xff] %v1568_v12  ;;  %v1572_v14 = vld [vmem:[%s6798_s25 + $0xf40] sm:$0xff]  ;;  %v1574_v15 = vld [vmem:[%s6798_s25 + $0xf50] sm:$0xff]  ;;  %1571 = vst [vmem:[%s6803_s6 + $0x798] sm:$0xff] %v1570_v13 }
  0xbb   : > { %1573 = vst [vmem:[%s6803_s6 + $0x7a0] sm:$0xff] %v1572_v14  ;;  %1575 = vst [vmem:[%s6803_s6 + $0x7a8] sm:$0xff] %v1574_v15  ;;  %v1576_v16 = vld [vmem:[%s6798_s25 + $0xf60] sm:$0xff]  ;;  %v1578_v17 = vld [vmem:[%s6798_s25 + $0xf70] sm:$0xff] }
  0xbc   : > { %v1580_v18 = vld [vmem:[%s6798_s25 + $0xf80] sm:$0xff]  ;;  %1577 = vst [vmem:[%s6803_s6 + $0x7b0] sm:$0xff] %v1576_v16  ;;  %1579 = vst [vmem:[%s6803_s6 + $0x7b8] sm:$0xff] %v1578_v17  ;;  %v1582_v19 = vld [vmem:[%s6798_s25 + $0xf90] sm:$0xff] }
  0xbd   : > { %1581 = vst [vmem:[%s6803_s6 + $0x7c0] sm:$0xff] %v1580_v18  ;;  %v1584_v20 = vld [vmem:[%s6798_s25 + $0xfa0] sm:$0xff]  ;;  %v1586_v21 = vld [vmem:[%s6798_s25 + $0xfb0] sm:$0xff]  ;;  %1583 = vst [vmem:[%s6803_s6 + $0x7c8] sm:$0xff] %v1582_v19 }
  0xbe   : > { %1585 = vst [vmem:[%s6803_s6 + $0x7d0] sm:$0xff] %v1584_v20  ;;  %1587 = vst [vmem:[%s6803_s6 + $0x7d8] sm:$0xff] %v1586_v21  ;;  %v1588_v22 = vld [vmem:[%s6798_s25 + $0xfc0] sm:$0xff]  ;;  %v1590_v23 = vld [vmem:[%s6798_s25 + $0xfd0] sm:$0xff] }
  0xbf   : > { %v1592_v24 = vld [vmem:[%s6798_s25 + $0xfe0] sm:$0xff]  ;;  %1589 = vst [vmem:[%s6803_s6 + $0x7e0] sm:$0xff] %v1588_v22  ;;  %1591 = vst [vmem:[%s6803_s6 + $0x7e8] sm:$0xff] %v1590_v23  ;;  %v1594_v25 = vld [vmem:[%s6798_s25 + $0xff0] sm:$0xff] }
  0xc0   : > { %1593 = vst [vmem:[%s6803_s6 + $0x7f0] sm:$0xff] %v1592_v24  ;;  %v1596_v26 = vld [vmem:[%s6798_s25 + $0x1000] sm:$0xff]  ;;  %v1598_v27 = vld [vmem:[%s6798_s25 + $0x1010] sm:$0xff]  ;;  %1595 = vst [vmem:[%s6803_s6 + $0x7f8] sm:$0xff] %v1594_v25 }
  0xc1   : > { %1597 = vst [vmem:[%s6803_s6 + $0x800] sm:$0xff] %v1596_v26  ;;  %1599 = vst [vmem:[%s6803_s6 + $0x808] sm:$0xff] %v1598_v27  ;;  %v1600_v28 = vld [vmem:[%s6798_s25 + $0x1020] sm:$0xff]  ;;  %v1602_v29 = vld [vmem:[%s6798_s25 + $0x1030] sm:$0xff] }
  0xc2   : > { %v1604_v30 = vld [vmem:[%s6798_s25 + $0x1040] sm:$0xff]  ;;  %1601 = vst [vmem:[%s6803_s6 + $0x810] sm:$0xff] %v1600_v28  ;;  %1603 = vst [vmem:[%s6803_s6 + $0x818] sm:$0xff] %v1602_v29  ;;  %v1606_v31 = vld [vmem:[%s6798_s25 + $0x1050] sm:$0xff] }
  0xc3   : > { %1605 = vst [vmem:[%s6803_s6 + $0x820] sm:$0xff] %v1604_v30  ;;  %v1608_v32 = vld [vmem:[%s6798_s25 + $0x1060] sm:$0xff]  ;;  %v1610_v33 = vld [vmem:[%s6798_s25 + $0x1070] sm:$0xff]  ;;  %1607 = vst [vmem:[%s6803_s6 + $0x828] sm:$0xff] %v1606_v31 }
  0xc4   : > { %1609 = vst [vmem:[%s6803_s6 + $0x830] sm:$0xff] %v1608_v32  ;;  %1611 = vst [vmem:[%s6803_s6 + $0x838] sm:$0xff] %v1610_v33  ;;  %v1612_v34 = vld [vmem:[%s6798_s25 + $0x1080] sm:$0xff]  ;;  %v1614_v35 = vld [vmem:[%s6798_s25 + $0x1090] sm:$0xff] }
  0xc5   : > { %v1616_v36 = vld [vmem:[%s6798_s25 + $0x10a0] sm:$0xff]  ;;  %1613 = vst [vmem:[%s6803_s6 + $0x840] sm:$0xff] %v1612_v34  ;;  %1615 = vst [vmem:[%s6803_s6 + $0x848] sm:$0xff] %v1614_v35  ;;  %v1618_v37 = vld [vmem:[%s6798_s25 + $0x10b0] sm:$0xff] }
  0xc6   : > { %1617 = vst [vmem:[%s6803_s6 + $0x850] sm:$0xff] %v1616_v36  ;;  %v1620_v38 = vld [vmem:[%s6798_s25 + $0x10c0] sm:$0xff]  ;;  %v1622_v39 = vld [vmem:[%s6798_s25 + $0x10d0] sm:$0xff]  ;;  %1619 = vst [vmem:[%s6803_s6 + $0x858] sm:$0xff] %v1618_v37 }
  0xc7   : > { %1621 = vst [vmem:[%s6803_s6 + $0x860] sm:$0xff] %v1620_v38  ;;  %1623 = vst [vmem:[%s6803_s6 + $0x868] sm:$0xff] %v1622_v39  ;;  %v1624_v40 = vld [vmem:[%s6798_s25 + $0x10e0] sm:$0xff]  ;;  %v1626_v41 = vld [vmem:[%s6798_s25 + $0x10f0] sm:$0xff] }
  0xc8   : > { %v1628_v42 = vld [vmem:[%s6798_s25 + $0x1100] sm:$0xff]  ;;  %1625 = vst [vmem:[%s6803_s6 + $0x870] sm:$0xff] %v1624_v40  ;;  %1627 = vst [vmem:[%s6803_s6 + $0x878] sm:$0xff] %v1626_v41  ;;  %v1630_v43 = vld [vmem:[%s6798_s25 + $0x1110] sm:$0xff] }
  0xc9   : > { %1629 = vst [vmem:[%s6803_s6 + $0x880] sm:$0xff] %v1628_v42  ;;  %v1632_v44 = vld [vmem:[%s6798_s25 + $0x1120] sm:$0xff]  ;;  %v1634_v45 = vld [vmem:[%s6798_s25 + $0x1130] sm:$0xff]  ;;  %1631 = vst [vmem:[%s6803_s6 + $0x888] sm:$0xff] %v1630_v43 }
  0xca   : > { %1633 = vst [vmem:[%s6803_s6 + $0x890] sm:$0xff] %v1632_v44  ;;  %1635 = vst [vmem:[%s6803_s6 + $0x898] sm:$0xff] %v1634_v45  ;;  %v1636_v46 = vld [vmem:[%s6798_s25 + $0x1140] sm:$0xff]  ;;  %v1638_v47 = vld [vmem:[%s6798_s25 + $0x1150] sm:$0xff] }
  0xcb   : > { %v1640_v48 = vld [vmem:[%s6798_s25 + $0x1160] sm:$0xff]  ;;  %1637 = vst [vmem:[%s6803_s6 + $0x8a0] sm:$0xff] %v1636_v46  ;;  %1639 = vst [vmem:[%s6803_s6 + $0x8a8] sm:$0xff] %v1638_v47  ;;  %v1642_v49 = vld [vmem:[%s6798_s25 + $0x1170] sm:$0xff] }
  0xcc   : > { %1641 = vst [vmem:[%s6803_s6 + $0x8b0] sm:$0xff] %v1640_v48  ;;  %v1644_v50 = vld [vmem:[%s6798_s25 + $0x1180] sm:$0xff]  ;;  %v1646_v51 = vld [vmem:[%s6798_s25 + $0x1190] sm:$0xff]  ;;  %1643 = vst [vmem:[%s6803_s6 + $0x8b8] sm:$0xff] %v1642_v49 }
  0xcd   : > { %1645 = vst [vmem:[%s6803_s6 + $0x8c0] sm:$0xff] %v1644_v50  ;;  %1647 = vst [vmem:[%s6803_s6 + $0x8c8] sm:$0xff] %v1646_v51  ;;  %v1648_v52 = vld [vmem:[%s6798_s25 + $0x11a0] sm:$0xff]  ;;  %v1650_v53 = vld [vmem:[%s6798_s25 + $0x11b0] sm:$0xff] }
  0xce   : > { %v1652_v54 = vld [vmem:[%s6798_s25 + $0x11c0] sm:$0xff]  ;;  %1649 = vst [vmem:[%s6803_s6 + $0x8d0] sm:$0xff] %v1648_v52  ;;  %1651 = vst [vmem:[%s6803_s6 + $0x8d8] sm:$0xff] %v1650_v53  ;;  %v1654_v55 = vld [vmem:[%s6798_s25 + $0x11d0] sm:$0xff] }
  0xcf   : > { %1653 = vst [vmem:[%s6803_s6 + $0x8e0] sm:$0xff] %v1652_v54  ;;  %v1656_v56 = vld [vmem:[%s6798_s25 + $0x11e0] sm:$0xff]  ;;  %v1658_v57 = vld [vmem:[%s6798_s25 + $0x11f0] sm:$0xff]  ;;  %1655 = vst [vmem:[%s6803_s6 + $0x8e8] sm:$0xff] %v1654_v55 }
  0xd0   : > { %1657 = vst [vmem:[%s6803_s6 + $0x8f0] sm:$0xff] %v1656_v56  ;;  %1659 = vst [vmem:[%s6803_s6 + $0x8f8] sm:$0xff] %v1658_v57  ;;  %v1660_v58 = vld [vmem:[%s6798_s25 + $0x1200] sm:$0xff]  ;;  %v1662_v59 = vld [vmem:[%s6798_s25 + $0x1210] sm:$0xff] }
  0xd1   : > { %v1664_v60 = vld [vmem:[%s6798_s25 + $0x1220] sm:$0xff]  ;;  %1661 = vst [vmem:[%s6803_s6 + $0x900] sm:$0xff] %v1660_v58  ;;  %1663 = vst [vmem:[%s6803_s6 + $0x908] sm:$0xff] %v1662_v59  ;;  %v1666_v61 = vld [vmem:[%s6798_s25 + $0x1230] sm:$0xff] }
  0xd2   : > { %1665 = vst [vmem:[%s6803_s6 + $0x910] sm:$0xff] %v1664_v60  ;;  %v1668_v62 = vld [vmem:[%s6798_s25 + $0x1240] sm:$0xff]  ;;  %v1670_v63 = vld [vmem:[%s6798_s25 + $0x1250] sm:$0xff]  ;;  %1667 = vst [vmem:[%s6803_s6 + $0x918] sm:$0xff] %v1666_v61 }
  0xd3   : > { %1669 = vst [vmem:[%s6803_s6 + $0x920] sm:$0xff] %v1668_v62  ;;  %1671 = vst [vmem:[%s6803_s6 + $0x928] sm:$0xff] %v1670_v63  ;;  %v1672_v0 = vld [vmem:[%s6798_s25 + $0x1260] sm:$0xff]  ;;  %v1674_v1 = vld [vmem:[%s6798_s25 + $0x1270] sm:$0xff] }
  0xd4   : > { %v1676_v2 = vld [vmem:[%s6798_s25 + $0x1280] sm:$0xff]  ;;  %1673 = vst [vmem:[%s6803_s6 + $0x930] sm:$0xff] %v1672_v0  ;;  %1675 = vst [vmem:[%s6803_s6 + $0x938] sm:$0xff] %v1674_v1  ;;  %v1678_v3 = vld [vmem:[%s6798_s25 + $0x1290] sm:$0xff] }
  0xd5   : > { %1677 = vst [vmem:[%s6803_s6 + $0x940] sm:$0xff] %v1676_v2  ;;  %v1680_v4 = vld [vmem:[%s6798_s25 + $0x12a0] sm:$0xff]  ;;  %v1682_v5 = vld [vmem:[%s6798_s25 + $0x12b0] sm:$0xff]  ;;  %1679 = vst [vmem:[%s6803_s6 + $0x948] sm:$0xff] %v1678_v3 }
  0xd6   : > { %1681 = vst [vmem:[%s6803_s6 + $0x950] sm:$0xff] %v1680_v4  ;;  %1683 = vst [vmem:[%s6803_s6 + $0x958] sm:$0xff] %v1682_v5  ;;  %v1684_v6 = vld [vmem:[%s6798_s25 + $0x12c0] sm:$0xff]  ;;  %v1686_v7 = vld [vmem:[%s6798_s25 + $0x12d0] sm:$0xff] }
  0xd7   : > { %v1688_v8 = vld [vmem:[%s6798_s25 + $0x12e0] sm:$0xff]  ;;  %1685 = vst [vmem:[%s6803_s6 + $0x960] sm:$0xff] %v1684_v6  ;;  %1687 = vst [vmem:[%s6803_s6 + $0x968] sm:$0xff] %v1686_v7  ;;  %v1690_v9 = vld [vmem:[%s6798_s25 + $0x12f0] sm:$0xff] }
  0xd8   : > { %1689 = vst [vmem:[%s6803_s6 + $0x970] sm:$0xff] %v1688_v8  ;;  %v1692_v10 = vld [vmem:[%s6798_s25 + $0x1300] sm:$0xff]  ;;  %v1694_v11 = vld [vmem:[%s6798_s25 + $0x1310] sm:$0xff]  ;;  %1691 = vst [vmem:[%s6803_s6 + $0x978] sm:$0xff] %v1690_v9 }
  0xd9   : > { %1693 = vst [vmem:[%s6803_s6 + $0x980] sm:$0xff] %v1692_v10  ;;  %1695 = vst [vmem:[%s6803_s6 + $0x988] sm:$0xff] %v1694_v11  ;;  %v1696_v12 = vld [vmem:[%s6798_s25 + $0x1320] sm:$0xff]  ;;  %v1698_v13 = vld [vmem:[%s6798_s25 + $0x1330] sm:$0xff] }
  0xda   : > { %v1700_v14 = vld [vmem:[%s6798_s25 + $0x1340] sm:$0xff]  ;;  %1697 = vst [vmem:[%s6803_s6 + $0x990] sm:$0xff] %v1696_v12  ;;  %1699 = vst [vmem:[%s6803_s6 + $0x998] sm:$0xff] %v1698_v13  ;;  %v1702_v15 = vld [vmem:[%s6798_s25 + $0x1350] sm:$0xff] }
  0xdb   : > { %1701 = vst [vmem:[%s6803_s6 + $0x9a0] sm:$0xff] %v1700_v14  ;;  %v1704_v16 = vld [vmem:[%s6798_s25 + $0x1360] sm:$0xff]  ;;  %v1706_v17 = vld [vmem:[%s6798_s25 + $0x1370] sm:$0xff]  ;;  %1703 = vst [vmem:[%s6803_s6 + $0x9a8] sm:$0xff] %v1702_v15 }
  0xdc   : > { %1705 = vst [vmem:[%s6803_s6 + $0x9b0] sm:$0xff] %v1704_v16  ;;  %1707 = vst [vmem:[%s6803_s6 + $0x9b8] sm:$0xff] %v1706_v17  ;;  %v1708_v18 = vld [vmem:[%s6798_s25 + $0x1380] sm:$0xff]  ;;  %v1710_v19 = vld [vmem:[%s6798_s25 + $0x1390] sm:$0xff] }
  0xdd   : > { %v1712_v20 = vld [vmem:[%s6798_s25 + $0x13a0] sm:$0xff]  ;;  %1709 = vst [vmem:[%s6803_s6 + $0x9c0] sm:$0xff] %v1708_v18  ;;  %1711 = vst [vmem:[%s6803_s6 + $0x9c8] sm:$0xff] %v1710_v19  ;;  %v1714_v21 = vld [vmem:[%s6798_s25 + $0x13b0] sm:$0xff] }
  0xde   : > { %1713 = vst [vmem:[%s6803_s6 + $0x9d0] sm:$0xff] %v1712_v20  ;;  %v1716_v22 = vld [vmem:[%s6798_s25 + $0x13c0] sm:$0xff]  ;;  %v1718_v23 = vld [vmem:[%s6798_s25 + $0x13d0] sm:$0xff]  ;;  %1715 = vst [vmem:[%s6803_s6 + $0x9d8] sm:$0xff] %v1714_v21 }
  0xdf   : > { %1717 = vst [vmem:[%s6803_s6 + $0x9e0] sm:$0xff] %v1716_v22  ;;  %1719 = vst [vmem:[%s6803_s6 + $0x9e8] sm:$0xff] %v1718_v23  ;;  %v1720_v24 = vld [vmem:[%s6798_s25 + $0x13e0] sm:$0xff]  ;;  %v1722_v25 = vld [vmem:[%s6798_s25 + $0x13f0] sm:$0xff] }
  0xe0   : > { %v1724_v26 = vld [vmem:[%s6798_s25 + $0x1400] sm:$0xff]  ;;  %1721 = vst [vmem:[%s6803_s6 + $0x9f0] sm:$0xff] %v1720_v24  ;;  %1723 = vst [vmem:[%s6803_s6 + $0x9f8] sm:$0xff] %v1722_v25  ;;  %v1726_v27 = vld [vmem:[%s6798_s25 + $0x1410] sm:$0xff] }
  0xe1   : > { %1725 = vst [vmem:[%s6803_s6 + $0xa00] sm:$0xff] %v1724_v26  ;;  %v1728_v28 = vld [vmem:[%s6798_s25 + $0x1420] sm:$0xff]  ;;  %v1730_v29 = vld [vmem:[%s6798_s25 + $0x1430] sm:$0xff]  ;;  %1727 = vst [vmem:[%s6803_s6 + $0xa08] sm:$0xff] %v1726_v27 }
  0xe2   : > { %1729 = vst [vmem:[%s6803_s6 + $0xa10] sm:$0xff] %v1728_v28  ;;  %1731 = vst [vmem:[%s6803_s6 + $0xa18] sm:$0xff] %v1730_v29  ;;  %v1732_v30 = vld [vmem:[%s6798_s25 + $0x1440] sm:$0xff]  ;;  %v1734_v31 = vld [vmem:[%s6798_s25 + $0x1450] sm:$0xff] }
  0xe3   : > { %v1736_v32 = vld [vmem:[%s6798_s25 + $0x1460] sm:$0xff]  ;;  %1733 = vst [vmem:[%s6803_s6 + $0xa20] sm:$0xff] %v1732_v30  ;;  %1735 = vst [vmem:[%s6803_s6 + $0xa28] sm:$0xff] %v1734_v31  ;;  %v1738_v33 = vld [vmem:[%s6798_s25 + $0x1470] sm:$0xff] }
  0xe4   : > { %1737 = vst [vmem:[%s6803_s6 + $0xa30] sm:$0xff] %v1736_v32  ;;  %v1740_v34 = vld [vmem:[%s6798_s25 + $0x1480] sm:$0xff]  ;;  %v1742_v35 = vld [vmem:[%s6798_s25 + $0x1490] sm:$0xff]  ;;  %1739 = vst [vmem:[%s6803_s6 + $0xa38] sm:$0xff] %v1738_v33 }
  0xe5   : > { %1741 = vst [vmem:[%s6803_s6 + $0xa40] sm:$0xff] %v1740_v34  ;;  %1743 = vst [vmem:[%s6803_s6 + $0xa48] sm:$0xff] %v1742_v35  ;;  %v1744_v36 = vld [vmem:[%s6798_s25 + $0x14a0] sm:$0xff]  ;;  %v1746_v37 = vld [vmem:[%s6798_s25 + $0x14b0] sm:$0xff] }
  0xe6   : > { %v1748_v38 = vld [vmem:[%s6798_s25 + $0x14c0] sm:$0xff]  ;;  %1745 = vst [vmem:[%s6803_s6 + $0xa50] sm:$0xff] %v1744_v36  ;;  %1747 = vst [vmem:[%s6803_s6 + $0xa58] sm:$0xff] %v1746_v37  ;;  %v1750_v39 = vld [vmem:[%s6798_s25 + $0x14d0] sm:$0xff] }
  0xe7   : > { %1749 = vst [vmem:[%s6803_s6 + $0xa60] sm:$0xff] %v1748_v38  ;;  %v1752_v40 = vld [vmem:[%s6798_s25 + $0x14e0] sm:$0xff]  ;;  %v1754_v41 = vld [vmem:[%s6798_s25 + $0x14f0] sm:$0xff]  ;;  %1751 = vst [vmem:[%s6803_s6 + $0xa68] sm:$0xff] %v1750_v39 }
  0xe8   : > { %1753 = vst [vmem:[%s6803_s6 + $0xa70] sm:$0xff] %v1752_v40  ;;  %1755 = vst [vmem:[%s6803_s6 + $0xa78] sm:$0xff] %v1754_v41  ;;  %v1756_v42 = vld [vmem:[%s6798_s25 + $0x1500] sm:$0xff]  ;;  %v1758_v43 = vld [vmem:[%s6798_s25 + $0x1510] sm:$0xff] }
  0xe9   : > { %v1760_v44 = vld [vmem:[%s6798_s25 + $0x1520] sm:$0xff]  ;;  %1757 = vst [vmem:[%s6803_s6 + $0xa80] sm:$0xff] %v1756_v42  ;;  %1759 = vst [vmem:[%s6803_s6 + $0xa88] sm:$0xff] %v1758_v43  ;;  %v1762_v45 = vld [vmem:[%s6798_s25 + $0x1530] sm:$0xff] }
  0xea   : > { %1761 = vst [vmem:[%s6803_s6 + $0xa90] sm:$0xff] %v1760_v44  ;;  %v1764_v46 = vld [vmem:[%s6798_s25 + $0x1540] sm:$0xff]  ;;  %v1766_v47 = vld [vmem:[%s6798_s25 + $0x1550] sm:$0xff]  ;;  %1763 = vst [vmem:[%s6803_s6 + $0xa98] sm:$0xff] %v1762_v45 }
  0xeb   : > { %1765 = vst [vmem:[%s6803_s6 + $0xaa0] sm:$0xff] %v1764_v46  ;;  %1767 = vst [vmem:[%s6803_s6 + $0xaa8] sm:$0xff] %v1766_v47  ;;  %v1768_v48 = vld [vmem:[%s6798_s25 + $0x1560] sm:$0xff]  ;;  %v1770_v49 = vld [vmem:[%s6798_s25 + $0x1570] sm:$0xff] }
  0xec   : > { %v1772_v50 = vld [vmem:[%s6798_s25 + $0x1580] sm:$0xff]  ;;  %1769 = vst [vmem:[%s6803_s6 + $0xab0] sm:$0xff] %v1768_v48  ;;  %1771 = vst [vmem:[%s6803_s6 + $0xab8] sm:$0xff] %v1770_v49  ;;  %v1774_v51 = vld [vmem:[%s6798_s25 + $0x1590] sm:$0xff] }
  0xed   : > { %1773 = vst [vmem:[%s6803_s6 + $0xac0] sm:$0xff] %v1772_v50  ;;  %v1776_v52 = vld [vmem:[%s6798_s25 + $0x15a0] sm:$0xff]  ;;  %v1778_v53 = vld [vmem:[%s6798_s25 + $0x15b0] sm:$0xff]  ;;  %1775 = vst [vmem:[%s6803_s6 + $0xac8] sm:$0xff] %v1774_v51 }
  0xee   : > { %1777 = vst [vmem:[%s6803_s6 + $0xad0] sm:$0xff] %v1776_v52  ;;  %1779 = vst [vmem:[%s6803_s6 + $0xad8] sm:$0xff] %v1778_v53  ;;  %v1780_v54 = vld [vmem:[%s6798_s25 + $0x15c0] sm:$0xff]  ;;  %v1782_v55 = vld [vmem:[%s6798_s25 + $0x15d0] sm:$0xff] }
  0xef   : > { %v1784_v56 = vld [vmem:[%s6798_s25 + $0x15e0] sm:$0xff]  ;;  %1781 = vst [vmem:[%s6803_s6 + $0xae0] sm:$0xff] %v1780_v54  ;;  %1783 = vst [vmem:[%s6803_s6 + $0xae8] sm:$0xff] %v1782_v55  ;;  %v1786_v57 = vld [vmem:[%s6798_s25 + $0x15f0] sm:$0xff] }
  0xf0   : > { %1785 = vst [vmem:[%s6803_s6 + $0xaf0] sm:$0xff] %v1784_v56  ;;  %v1788_v58 = vld [vmem:[%s6798_s25 + $0x1600] sm:$0xff]  ;;  %v1790_v59 = vld [vmem:[%s6798_s25 + $0x1610] sm:$0xff]  ;;  %1787 = vst [vmem:[%s6803_s6 + $0xaf8] sm:$0xff] %v1786_v57 }
  0xf1   : > { %1789 = vst [vmem:[%s6803_s6 + $0xb00] sm:$0xff] %v1788_v58  ;;  %1791 = vst [vmem:[%s6803_s6 + $0xb08] sm:$0xff] %v1790_v59  ;;  %v1792_v60 = vld [vmem:[%s6798_s25 + $0x1620] sm:$0xff]  ;;  %v1794_v61 = vld [vmem:[%s6798_s25 + $0x1630] sm:$0xff] }
  0xf2   : > { %v1796_v62 = vld [vmem:[%s6798_s25 + $0x1640] sm:$0xff]  ;;  %1793 = vst [vmem:[%s6803_s6 + $0xb10] sm:$0xff] %v1792_v60  ;;  %1795 = vst [vmem:[%s6803_s6 + $0xb18] sm:$0xff] %v1794_v61  ;;  %v1798_v63 = vld [vmem:[%s6798_s25 + $0x1650] sm:$0xff] }
  0xf3   : > { %1797 = vst [vmem:[%s6803_s6 + $0xb20] sm:$0xff] %v1796_v62  ;;  %v1800_v0 = vld [vmem:[%s6798_s25 + $0x1660] sm:$0xff]  ;;  %v1802_v1 = vld [vmem:[%s6798_s25 + $0x1670] sm:$0xff]  ;;  %1799 = vst [vmem:[%s6803_s6 + $0xb28] sm:$0xff] %v1798_v63 }
  0xf4   : > { %1801 = vst [vmem:[%s6803_s6 + $0xb30] sm:$0xff] %v1800_v0  ;;  %1803 = vst [vmem:[%s6803_s6 + $0xb38] sm:$0xff] %v1802_v1  ;;  %v1804_v2 = vld [vmem:[%s6798_s25 + $0x1680] sm:$0xff]  ;;  %v1806_v3 = vld [vmem:[%s6798_s25 + $0x1690] sm:$0xff] }
  0xf5   : > { %v1808_v4 = vld [vmem:[%s6798_s25 + $0x16a0] sm:$0xff]  ;;  %1805 = vst [vmem:[%s6803_s6 + $0xb40] sm:$0xff] %v1804_v2  ;;  %1807 = vst [vmem:[%s6803_s6 + $0xb48] sm:$0xff] %v1806_v3  ;;  %v1810_v5 = vld [vmem:[%s6798_s25 + $0x16b0] sm:$0xff] }
  0xf6   : > { %1809 = vst [vmem:[%s6803_s6 + $0xb50] sm:$0xff] %v1808_v4  ;;  %v1812_v6 = vld [vmem:[%s6798_s25 + $0x16c0] sm:$0xff]  ;;  %v1814_v7 = vld [vmem:[%s6798_s25 + $0x16d0] sm:$0xff]  ;;  %1811 = vst [vmem:[%s6803_s6 + $0xb58] sm:$0xff] %v1810_v5 }
  0xf7   : > { %1813 = vst [vmem:[%s6803_s6 + $0xb60] sm:$0xff] %v1812_v6  ;;  %1815 = vst [vmem:[%s6803_s6 + $0xb68] sm:$0xff] %v1814_v7  ;;  %v1816_v8 = vld [vmem:[%s6798_s25 + $0x16e0] sm:$0xff]  ;;  %v1818_v9 = vld [vmem:[%s6798_s25 + $0x16f0] sm:$0xff] }
  0xf8   : > { %v1820_v10 = vld [vmem:[%s6798_s25 + $0x1700] sm:$0xff]  ;;  %1817 = vst [vmem:[%s6803_s6 + $0xb70] sm:$0xff] %v1816_v8  ;;  %1819 = vst [vmem:[%s6803_s6 + $0xb78] sm:$0xff] %v1818_v9  ;;  %v1822_v11 = vld [vmem:[%s6798_s25 + $0x1710] sm:$0xff] }
  0xf9   : > { %1821 = vst [vmem:[%s6803_s6 + $0xb80] sm:$0xff] %v1820_v10  ;;  %v1824_v12 = vld [vmem:[%s6798_s25 + $0x1720] sm:$0xff]  ;;  %v1826_v13 = vld [vmem:[%s6798_s25 + $0x1730] sm:$0xff]  ;;  %1823 = vst [vmem:[%s6803_s6 + $0xb88] sm:$0xff] %v1822_v11 }
  0xfa   : > { %1825 = vst [vmem:[%s6803_s6 + $0xb90] sm:$0xff] %v1824_v12  ;;  %1827 = vst [vmem:[%s6803_s6 + $0xb98] sm:$0xff] %v1826_v13  ;;  %v1828_v14 = vld [vmem:[%s6798_s25 + $0x1740] sm:$0xff]  ;;  %v1830_v15 = vld [vmem:[%s6798_s25 + $0x1750] sm:$0xff] }
  0xfb   : > { %v1832_v16 = vld [vmem:[%s6798_s25 + $0x1760] sm:$0xff]  ;;  %1829 = vst [vmem:[%s6803_s6 + $0xba0] sm:$0xff] %v1828_v14  ;;  %1831 = vst [vmem:[%s6803_s6 + $0xba8] sm:$0xff] %v1830_v15  ;;  %v1834_v17 = vld [vmem:[%s6798_s25 + $0x1770] sm:$0xff] }
  0xfc   : > { %1833 = vst [vmem:[%s6803_s6 + $0xbb0] sm:$0xff] %v1832_v16  ;;  %v1836_v18 = vld [vmem:[%s6798_s25 + $0x1780] sm:$0xff]  ;;  %v1838_v19 = vld [vmem:[%s6798_s25 + $0x1790] sm:$0xff]  ;;  %1835 = vst [vmem:[%s6803_s6 + $0xbb8] sm:$0xff] %v1834_v17 }
  0xfd   : > { %1837 = vst [vmem:[%s6803_s6 + $0xbc0] sm:$0xff] %v1836_v18  ;;  %1839 = vst [vmem:[%s6803_s6 + $0xbc8] sm:$0xff] %v1838_v19  ;;  %v1840_v20 = vld [vmem:[%s6798_s25 + $0x17a0] sm:$0xff]  ;;  %v1842_v21 = vld [vmem:[%s6798_s25 + $0x17b0] sm:$0xff] }
  0xfe   : > { %v1844_v22 = vld [vmem:[%s6798_s25 + $0x17c0] sm:$0xff]  ;;  %1841 = vst [vmem:[%s6803_s6 + $0xbd0] sm:$0xff] %v1840_v20  ;;  %1843 = vst [vmem:[%s6803_s6 + $0xbd8] sm:$0xff] %v1842_v21  ;;  %v1846_v23 = vld [vmem:[%s6798_s25 + $0x17d0] sm:$0xff] }
  0xff   : > { %1845 = vst [vmem:[%s6803_s6 + $0xbe0] sm:$0xff] %v1844_v22  ;;  %v1848_v24 = vld [vmem:[%s6798_s25 + $0x17e0] sm:$0xff]  ;;  %v1850_v25 = vld [vmem:[%s6798_s25 + $0x17f0] sm:$0xff]  ;;  %1847 = vst [vmem:[%s6803_s6 + $0xbe8] sm:$0xff] %v1846_v23 }
 0x100   : > { %1849 = vst [vmem:[%s6803_s6 + $0xbf0] sm:$0xff] %v1848_v24  ;;  %1851 = vst [vmem:[%s6803_s6 + $0xbf8] sm:$0xff] %v1850_v25  ;;  %v1852_v26 = vld [vmem:[%s6798_s25 + $0x1800] sm:$0xff]  ;;  %v1854_v27 = vld [vmem:[%s6798_s25 + $0x1810] sm:$0xff] }
 0x101   : > { %v1856_v28 = vld [vmem:[%s6798_s25 + $0x1820] sm:$0xff]  ;;  %1853 = vst [vmem:[%s6803_s6 + $0xc00] sm:$0xff] %v1852_v26  ;;  %1855 = vst [vmem:[%s6803_s6 + $0xc08] sm:$0xff] %v1854_v27  ;;  %v1858_v29 = vld [vmem:[%s6798_s25 + $0x1830] sm:$0xff] }
 0x102   : > { %1857 = vst [vmem:[%s6803_s6 + $0xc10] sm:$0xff] %v1856_v28  ;;  %v1860_v30 = vld [vmem:[%s6798_s25 + $0x1840] sm:$0xff]  ;;  %v1862_v31 = vld [vmem:[%s6798_s25 + $0x1850] sm:$0xff]  ;;  %1859 = vst [vmem:[%s6803_s6 + $0xc18] sm:$0xff] %v1858_v29 }
 0x103   : > { %1861 = vst [vmem:[%s6803_s6 + $0xc20] sm:$0xff] %v1860_v30  ;;  %1863 = vst [vmem:[%s6803_s6 + $0xc28] sm:$0xff] %v1862_v31  ;;  %v1864_v32 = vld [vmem:[%s6798_s25 + $0x1860] sm:$0xff]  ;;  %v1866_v33 = vld [vmem:[%s6798_s25 + $0x1870] sm:$0xff] }
 0x104   : > { %v1868_v34 = vld [vmem:[%s6798_s25 + $0x1880] sm:$0xff]  ;;  %1865 = vst [vmem:[%s6803_s6 + $0xc30] sm:$0xff] %v1864_v32  ;;  %1867 = vst [vmem:[%s6803_s6 + $0xc38] sm:$0xff] %v1866_v33  ;;  %v1870_v35 = vld [vmem:[%s6798_s25 + $0x1890] sm:$0xff] }
 0x105   : > { %1869 = vst [vmem:[%s6803_s6 + $0xc40] sm:$0xff] %v1868_v34  ;;  %v1872_v36 = vld [vmem:[%s6798_s25 + $0x18a0] sm:$0xff]  ;;  %v1874_v37 = vld [vmem:[%s6798_s25 + $0x18b0] sm:$0xff]  ;;  %1871 = vst [vmem:[%s6803_s6 + $0xc48] sm:$0xff] %v1870_v35 }
 0x106   : > { %1873 = vst [vmem:[%s6803_s6 + $0xc50] sm:$0xff] %v1872_v36  ;;  %1875 = vst [vmem:[%s6803_s6 + $0xc58] sm:$0xff] %v1874_v37  ;;  %v1876_v38 = vld [vmem:[%s6798_s25 + $0x18c0] sm:$0xff]  ;;  %v1878_v39 = vld [vmem:[%s6798_s25 + $0x18d0] sm:$0xff] }
 0x107   : > { %v1880_v40 = vld [vmem:[%s6798_s25 + $0x18e0] sm:$0xff]  ;;  %1877 = vst [vmem:[%s6803_s6 + $0xc60] sm:$0xff] %v1876_v38  ;;  %1879 = vst [vmem:[%s6803_s6 + $0xc68] sm:$0xff] %v1878_v39  ;;  %v1882_v41 = vld [vmem:[%s6798_s25 + $0x18f0] sm:$0xff] }
 0x108   : > { %1881 = vst [vmem:[%s6803_s6 + $0xc70] sm:$0xff] %v1880_v40  ;;  %1883 = vst [vmem:[%s6803_s6 + $0xc78] sm:$0xff] %v1882_v41 }
 0x109 PF: > { %p5297_p0 = scmp.ge.s32.totalorder %s6604_s22, 1  ;;  %p1896_p1 = scmp.lt.s32.totalorder %s6604_s22, 9 }
 0x10b   : > { %p1897_p2 = pnand %p5297_p0, %p1896_p1 }
 0x10c   : > { %s1903_s0 = sand.u32 (!%p1897_p2), 1, %s6580_s16   ;;  %s1910_s5 = sand.u32 (!%p1897_p2), 1, %s6572_s14  }
 0x10d   : > { %1900 = sbr.rel (%p1897_p2) target bundleno = 943 (0x3af), region = 88  ;;  %s1937_s28 = sand.u32 (!%p1897_p2), 1, %s6564_s12  }
 0x10e   : > { %s5789_s23 = smul.u32 (!%p1897_p2), 200, %s1903_s0  ;;  %s5298_s11 = sshll.u32 (!%p1897_p2), %s1937_s28, 4 }
 0x10f   : > { %s5790_s7 = smul.u32 (!%p1897_p2), 3200, %s1910_s5  ;;  %s5299_s25 = sshll.u32 (!%p1897_p2), %s6592_s19, 1 }
 0x110   : > { %p1945_p3 = scmp.lt.s32.totalorder (!%p1897_p2), %s5299_s25, 3  ;;  %s7614_s4 = scalar_lea.vmem (!%p1897_p2), [#allocation3], %s5789_s23 }
 0x111   : > { %s7616_s6 = scalar_lea.vmem (!%p1897_p2), [#allocation4], %s5790_s7  ;;  %s7618_s1 = scalar_lea.vmem (!%p1897_p2), [#allocation5], %s5298_s11 }
 0x112   : > { %p5300_p4 = scmp.ne.s32.totalorder (!%p1897_p2), %s6588_s18, 0 }
 0x114   : > { %s8126_s25 = smov (!%p1945_p3, %s5299_s25), 3  ;;  %1955 = sbr.rel (%p5300_p4) target bundleno = 283 (0x11b), region = 100 }
 0x115   : > { %s1947_s29 = scalar_lea.vmem %s8097_s2, %s8126_s25  ;;  %v6606_v42 = vmov (!%p5300_p4), 0.0  }
 0x116   : > { %1956 = vst [vmem:[#allocation2] sm:$0xff] (!%p5300_p4), %v6606_v42  ;;  %1957 = vst [vmem:[#allocation2 + $0x8] sm:$0xff] (!%p5300_p4), %v6606_v42 }
 0x117   : > { %1958 = vst [vmem:[#allocation2 + $0x10] sm:$0xff] (!%p5300_p4), %v6606_v42  ;;  %1959 = vst [vmem:[#allocation2 + $0x18] sm:$0xff] (!%p5300_p4), %v6606_v42 }
 0x11b PF: > { %v5881_v43 = vld [vmem:[%s7616_s6 + $0x4] ss:$8 sps:$4 sm:$0xff]   ;;  %v5885_v45 = vld [vmem:[%s7616_s6] ss:$8 sps:$4 sm:$0xff]   ;;  %v5887_v47 = vld [vmem:[%s7616_s6 + $0x14] ss:$8 sps:$4 sm:$0xff]  }
 0x11c   : > { %v5883_v44 = vld [vmem:[%s7616_s6 + $0x604] ss:$8 sps:$4 sm:$0xff]   ;;  %4516 = vmatprep.subr.bf16.mxu1 %v5881_v43  ;;  %v5886_v46 = vld [vmem:[%s7616_s6 + $0x600] ss:$8 sps:$4 sm:$0xff]   ;;  %v5889_v48 = vld [vmem:[%s7616_s6 + $0x614] ss:$8 sps:$4 sm:$0xff]  }
 0x11d   : > { %4774 = vmatprep.subr.bf16.mxu0 %v5883_v44  ;;  %4517 = vmatpush1.bf16.msra.mxu1 %v5885_v45  ;;  %v5891_v49 = vld [vmem:[%s7616_s6 + $0x10] ss:$8 sps:$4 sm:$0xff]   ;;  %v5893_v51 = vld [vmem:[%s7616_s6 + $0x24] ss:$8 sps:$4 sm:$0xff]   ;;  %v5897_v53 = vld [vmem:[%s7616_s6 + $0x20] ss:$8 sps:$4 sm:$0xff]  }
 0x11e   : > { %4775 = vmatpush1.bf16.msra.mxu0 %v5886_v46  ;;  %4518 = vmatprep.subr.bf16.mxu1 %v5887_v47  ;;  %v5892_v50 = vld [vmem:[%s7616_s6 + $0x610] ss:$8 sps:$4 sm:$0xff]   ;;  %v5895_v52 = vld [vmem:[%s7616_s6 + $0x624] ss:$8 sps:$4 sm:$0xff]   ;;  %v5898_v54 = vld [vmem:[%s7616_s6 + $0x620] ss:$8 sps:$4 sm:$0xff]  }
 0x11f   : > { %4776 = vmatprep.subr.bf16.mxu0 %v5889_v48  ;;  %v5899_v55 = vld [vmem:[%s7616_s6 + $0x34] ss:$8 sps:$4 sm:$0xff]   ;;  %v5903_v57 = vld [vmem:[%s7616_s6 + $0x30] ss:$8 sps:$4 sm:$0xff]   ;;  %v5905_v59 = vld [vmem:[%s7616_s6 + $0x44] ss:$8 sps:$4 sm:$0xff]  }
 0x120   : > { %v5901_v56 = vld [vmem:[%s7616_s6 + $0x634] ss:$8 sps:$4 sm:$0xff]   ;;  %v5904_v58 = vld [vmem:[%s7616_s6 + $0x630] ss:$8 sps:$4 sm:$0xff]   ;;  %v5907_v60 = vld [vmem:[%s7616_s6 + $0x644] ss:$8 sps:$4 sm:$0xff]  }
 0x121   : > { %4519 = vmatpush1.bf16.msra.mxu1 %v5891_v49  ;;  %v5909_v61 = vld [vmem:[%s7616_s6 + $0x40] ss:$8 sps:$4 sm:$0xff]   ;;  %v5911_v63 = vld [vmem:[%s7616_s6 + $0x54] ss:$8 sps:$4 sm:$0xff]   ;;  %v5915_v1 = vld [vmem:[%s7616_s6 + $0x50] ss:$8 sps:$4 sm:$0xff]  }
 0x122   : > { %4777 = vmatpush1.bf16.msra.mxu0 %v5892_v50  ;;  %4520 = vmatprep.subr.bf16.mxu1 %v5893_v51  ;;  %v5910_v62 = vld [vmem:[%s7616_s6 + $0x640] ss:$8 sps:$4 sm:$0xff]   ;;  %v5913_v0 = vld [vmem:[%s7616_s6 + $0x654] ss:$8 sps:$4 sm:$0xff]   ;;  %v5916_v2 = vld [vmem:[%s7616_s6 + $0x650] ss:$8 sps:$4 sm:$0xff]  }
 0x123   : > { %4778 = vmatprep.subr.bf16.mxu0 %v5895_v52  ;;  %v5917_v3 = vld [vmem:[%s7616_s6 + $0x64] ss:$8 sps:$4 sm:$0xff]   ;;  %v5921_v5 = vld [vmem:[%s7616_s6 + $0x60] ss:$8 sps:$4 sm:$0xff]   ;;  %v5923_v7 = vld [vmem:[%s7616_s6 + $0x74] ss:$8 sps:$4 sm:$0xff]  }
 0x124   : > { %v5919_v4 = vld [vmem:[%s7616_s6 + $0x664] ss:$8 sps:$4 sm:$0xff]   ;;  %v5922_v6 = vld [vmem:[%s7616_s6 + $0x660] ss:$8 sps:$4 sm:$0xff]   ;;  %v5925_v8 = vld [vmem:[%s7616_s6 + $0x674] ss:$8 sps:$4 sm:$0xff]  }
 0x125   : > { %4521 = vmatpush1.bf16.msra.mxu1 %v5897_v53  ;;  %v5927_v9 = vld [vmem:[%s7616_s6 + $0x70] ss:$8 sps:$4 sm:$0xff]   ;;  %v5929_v11 = vld [vmem:[%s7616_s6 + $0x84] ss:$8 sps:$4 sm:$0xff]   ;;  %v5933_v13 = vld [vmem:[%s7616_s6 + $0x80] ss:$8 sps:$4 sm:$0xff]  }
 0x126   : > { %4779 = vmatpush1.bf16.msra.mxu0 %v5898_v54  ;;  %4522 = vmatprep.subr.bf16.mxu1 %v5899_v55  ;;  %v5928_v10 = vld [vmem:[%s7616_s6 + $0x670] ss:$8 sps:$4 sm:$0xff]   ;;  %v5931_v12 = vld [vmem:[%s7616_s6 + $0x684] ss:$8 sps:$4 sm:$0xff]   ;;  %v5934_v14 = vld [vmem:[%s7616_s6 + $0x680] ss:$8 sps:$4 sm:$0xff]  }
 0x127   : > { %4780 = vmatprep.subr.bf16.mxu0 %v5901_v56  ;;  %v5935_v15 = vld [vmem:[%s7616_s6 + $0x94] ss:$8 sps:$4 sm:$0xff]   ;;  %v5939_v17 = vld [vmem:[%s7616_s6 + $0x90] ss:$8 sps:$4 sm:$0xff]   ;;  %v5941_v19 = vld [vmem:[%s7616_s6 + $0xa4] ss:$8 sps:$4 sm:$0xff]  }
 0x128   : > { %v5937_v16 = vld [vmem:[%s7616_s6 + $0x694] ss:$8 sps:$4 sm:$0xff]   ;;  %v5940_v18 = vld [vmem:[%s7616_s6 + $0x690] ss:$8 sps:$4 sm:$0xff]   ;;  %v5943_v20 = vld [vmem:[%s7616_s6 + $0x6a4] ss:$8 sps:$4 sm:$0xff]  }
 0x129   : > { %4523 = vmatpush1.bf16.msra.mxu1 %v5903_v57  ;;  %v5945_v21 = vld [vmem:[%s7616_s6 + $0xa0] ss:$8 sps:$4 sm:$0xff]   ;;  %v5947_v23 = vld [vmem:[%s7616_s6 + $0xb4] ss:$8 sps:$4 sm:$0xff]   ;;  %v5951_v25 = vld [vmem:[%s7616_s6 + $0xb0] ss:$8 sps:$4 sm:$0xff]  }
 0x12a   : > { %4781 = vmatpush1.bf16.msra.mxu0 %v5904_v58  ;;  %4524 = vmatprep.subr.bf16.mxu1 %v5905_v59  ;;  %v5946_v22 = vld [vmem:[%s7616_s6 + $0x6a0] ss:$8 sps:$4 sm:$0xff]   ;;  %v5949_v24 = vld [vmem:[%s7616_s6 + $0x6b4] ss:$8 sps:$4 sm:$0xff]   ;;  %v5952_v26 = vld [vmem:[%s7616_s6 + $0x6b0] ss:$8 sps:$4 sm:$0xff]  }
 0x12b   : > { %4782 = vmatprep.subr.bf16.mxu0 %v5907_v60  ;;  %v5979_v27 = vld [vmem:[%s7614_s4 + $0x4] ss:$100 sps:$4 sm:$0xff]   ;;  %v5953_v28 = vld [vmem:[%s7616_s6 + $0xc4] ss:$8 sps:$4 sm:$0xff]   ;;  %p5726_p5 = scmp.ne.s32.totalorder %s6588_s18, 3 }
 0x12c   : > { %v5955_v29 = vld [vmem:[%s7616_s6 + $0x6c4] ss:$8 sps:$4 sm:$0xff]   ;;  %4548 = vmatprep.mubr.bf16.mxu1 %v5979_v27  ;;  %v5957_v31 = vld [vmem:[%s7616_s6 + $0xc0] ss:$8 sps:$4 sm:$0xff]   ;;  %v5959_v33 = vld [vmem:[%s7616_s6 + $0xd4] ss:$8 sps:$4 sm:$0xff]  }
 0x12d   : > { %4525 = vmatpush1.bf16.msra.mxu1 %v5909_v61  ;;  %v5985_v30 = vld [vmem:[%s7614_s4 + $0x34] ss:$100 sps:$4 sm:$0xff]   ;;  %v5961_v34 = vld [vmem:[%s7616_s6 + $0x6d4] ss:$8 sps:$4 sm:$0xff]  }
 0x12e   : > { %4783 = vmatpush1.bf16.msra.mxu0 %v5910_v62  ;;  %4526 = vmatprep.subr.bf16.mxu1 %v5911_v63  ;;  %v5958_v32 = vld [vmem:[%s7616_s6 + $0x6c0] ss:$8 sps:$4 sm:$0xff]   ;;  %v5963_v35 = vld [vmem:[%s7616_s6 + $0xd0] ss:$8 sps:$4 sm:$0xff]   ;;  %v5965_v37 = vld [vmem:[%s7616_s6 + $0xe4] ss:$8 sps:$4 sm:$0xff]  }
 0x12f   : > { %4784 = vmatprep.subr.bf16.mxu0 %v5913_v0  ;;  %4806 = vmatprep.mubr.bf16.mxu0 %v5985_v30  ;;  %v5964_v36 = vld [vmem:[%s7616_s6 + $0x6d0] ss:$8 sps:$4 sm:$0xff]   ;;  %v5967_v38 = vld [vmem:[%s7616_s6 + $0x6e4] ss:$8 sps:$4 sm:$0xff]   ;;  %v5969_v39 = vld [vmem:[%s7616_s6 + $0xe0] ss:$8 sps:$4 sm:$0xff]  }
 0x130   : > { %v5970_v40 = vld [vmem:[%s7616_s6 + $0x6e0] ss:$8 sps:$4 sm:$0xff]   ;;  %v5971_v41 = vld [vmem:[%s7616_s6 + $0xf4] ss:$8 sps:$4 sm:$0xff]   ;;  %v5975_v43 = vld [vmem:[%s7616_s6 + $0xf0] ss:$8 sps:$4 sm:$0xff]  }
 0x131   : > { %4527 = vmatpush1.bf16.msra.mxu1 %v5915_v1  ;;  %v5973_v42 = vld [vmem:[%s7616_s6 + $0x6f4] ss:$8 sps:$4 sm:$0xff]   ;;  %v5976_v44 = vld [vmem:[%s7616_s6 + $0x6f0] ss:$8 sps:$4 sm:$0xff]   ;;  %v5982_v45 = vld [vmem:[%s7616_s6 + $0x104] ss:$8 sps:$4 sm:$0xff]  }
 0x132   : > { %4785 = vmatpush1.bf16.msra.mxu0 %v5916_v2  ;;  %4528 = vmatprep.subr.bf16.mxu1 %v5917_v3  ;;  %v5988_v46 = vld [vmem:[%s7616_s6 + $0x704] ss:$8 sps:$4 sm:$0xff]   ;;  %v5977_v47 = vld [vmem:[%s7614_s4] ss:$100 sps:$4 sm:$0xff]   ;;  %v5980_v48 = vld [vmem:[%s7616_s6 + $0x100] ss:$8 sps:$4 sm:$0xff]  }
 0x133   : > { %4786 = vmatprep.subr.bf16.mxu0 %v5919_v4  ;;  %v5983_v49 = vld [vmem:[%s7614_s4 + $0x30] ss:$100 sps:$4 sm:$0xff]   ;;  %v5991_v51 = vld [vmem:[%s7616_s6 + $0x114] ss:$8 sps:$4 sm:$0xff]   ;;  %v5989_v53 = vld [vmem:[%s7616_s6 + $0x110] ss:$8 sps:$4 sm:$0xff]  }
 0x134   : > { %v5986_v50 = vld [vmem:[%s7616_s6 + $0x700] ss:$8 sps:$4 sm:$0xff]   ;;  %v5994_v52 = vld [vmem:[%s7616_s6 + $0x714] ss:$8 sps:$4 sm:$0xff]   ;;  %v5992_v54 = vld [vmem:[%s7616_s6 + $0x710] ss:$8 sps:$4 sm:$0xff]  }
 0x135   : > { %4529 = vmatpush1.bf16.msra.mxu1 %v5921_v5  ;;  %v5997_v55 = vld [vmem:[%s7616_s6 + $0x124] ss:$8 sps:$4 sm:$0xff]   ;;  %v5995_v57 = vld [vmem:[%s7616_s6 + $0x120] ss:$8 sps:$4 sm:$0xff]   ;;  %v6003_v59 = vld [vmem:[%s7616_s6 + $0x134] ss:$8 sps:$4 sm:$0xff]  }
 0x136   : > { %4787 = vmatpush1.bf16.msra.mxu0 %v5922_v6  ;;  %4530 = vmatprep.subr.bf16.mxu1 %v5923_v7  ;;  %v6000_v56 = vld [vmem:[%s7616_s6 + $0x724] ss:$8 sps:$4 sm:$0xff]   ;;  %v5998_v58 = vld [vmem:[%s7616_s6 + $0x720] ss:$8 sps:$4 sm:$0xff]   ;;  %v6006_v60 = vld [vmem:[%s7616_s6 + $0x734] ss:$8 sps:$4 sm:$0xff]  }
 0x137   : > { %4788 = vmatprep.subr.bf16.mxu0 %v5925_v8  ;;  %v6001_v61 = vld [vmem:[%s7616_s6 + $0x130] ss:$8 sps:$4 sm:$0xff]   ;;  %v6009_v63 = vld [vmem:[%s7616_s6 + $0x144] ss:$8 sps:$4 sm:$0xff]   ;;  %v6007_v1 = vld [vmem:[%s7616_s6 + $0x140] ss:$8 sps:$4 sm:$0xff]  }
 0x138   : > { %v6004_v62 = vld [vmem:[%s7616_s6 + $0x730] ss:$8 sps:$4 sm:$0xff]   ;;  %v6012_v0 = vld [vmem:[%s7616_s6 + $0x744] ss:$8 sps:$4 sm:$0xff]   ;;  %v6010_v2 = vld [vmem:[%s7616_s6 + $0x740] ss:$8 sps:$4 sm:$0xff]  }
 0x139   : > { %4531 = vmatpush1.bf16.msra.mxu1 %v5927_v9  ;;  %v6015_v3 = vld [vmem:[%s7616_s6 + $0x154] ss:$8 sps:$4 sm:$0xff]   ;;  %v6013_v5 = vld [vmem:[%s7616_s6 + $0x150] ss:$8 sps:$4 sm:$0xff]   ;;  %v6021_v7 = vld [vmem:[%s7616_s6 + $0x164] ss:$8 sps:$4 sm:$0xff]  }
 0x13a   : > { %4789 = vmatpush1.bf16.msra.mxu0 %v5928_v10  ;;  %4532 = vmatprep.subr.bf16.mxu1 %v5929_v11  ;;  %v6018_v4 = vld [vmem:[%s7616_s6 + $0x754] ss:$8 sps:$4 sm:$0xff]   ;;  %v6016_v6 = vld [vmem:[%s7616_s6 + $0x750] ss:$8 sps:$4 sm:$0xff]   ;;  %v6024_v8 = vld [vmem:[%s7616_s6 + $0x764] ss:$8 sps:$4 sm:$0xff]  }
 0x13b   : > { %4790 = vmatprep.subr.bf16.mxu0 %v5931_v12  ;;  %v6019_v9 = vld [vmem:[%s7616_s6 + $0x160] ss:$8 sps:$4 sm:$0xff]   ;;  %v6027_v11 = vld [vmem:[%s7616_s6 + $0x174] ss:$8 sps:$4 sm:$0xff]  }
 0x13c   : > { %v6022_v10 = vld [vmem:[%s7616_s6 + $0x760] ss:$8 sps:$4 sm:$0xff]   ;;  %v6030_v12 = vld [vmem:[%s7616_s6 + $0x774] ss:$8 sps:$4 sm:$0xff]  }
 0x13d   : > { %4533 = vmatpush1.bf16.msra.mxu1 %v5933_v13  ;;  %v6081_v13 = vld [vmem:[%s7614_s4 + $0xc] ss:$100 sps:$4 sm:$0xff]  }
 0x13e   : > { %4791 = vmatpush1.bf16.msra.mxu0 %v5934_v14  ;;  %4534 = vmatprep.subr.bf16.mxu1 %v5935_v15  ;;  %v6025_v14 = vld [vmem:[%s7616_s6 + $0x170] ss:$8 sps:$4 sm:$0xff]   ;;  %v6043_v27 = vld [vmem:[%s7616_s6 + $0x1a0] ss:$8 sps:$4 sm:$0xff]   ;;  %v6054_v30 = vld [vmem:[%s7616_s6 + $0x7b4] ss:$8 sps:$4 sm:$0xff]  }
 0x13f   : > { %4792 = vmatprep.subr.bf16.mxu0 %v5937_v16  ;;  %v6028_v15 = vld [vmem:[%s7616_s6 + $0x770] ss:$8 sps:$4 sm:$0xff]  }
 0x140   : > { %v6087_v16 = vld [vmem:[%s7614_s4 + $0x3c] ss:$100 sps:$4 sm:$0xff]  }
 0x141   : > { %4535 = vmatpush1.bf16.msra.mxu1 %v5939_v17  ;;  %v6033_v17 = vld [vmem:[%s7616_s6 + $0x184] ss:$8 sps:$4 sm:$0xff]  }
 0x142   : > { %4793 = vmatpush1.bf16.msra.mxu0 %v5940_v18  ;;  %4536 = vmatprep.subr.bf16.mxu1 %v5941_v19  ;;  %v6036_v18 = vld [vmem:[%s7616_s6 + $0x784] ss:$8 sps:$4 sm:$0xff]   ;;  %v6031_v19 = vld [vmem:[%s7616_s6 + $0x180] ss:$8 sps:$4 sm:$0xff]  }
 0x143   : > { %4794 = vmatprep.subr.bf16.mxu0 %v5943_v20  ;;  %v6034_v20 = vld [vmem:[%s7616_s6 + $0x780] ss:$8 sps:$4 sm:$0xff]  }
 0x145   : > { %4537 = vmatpush1.bf16.msra.mxu1 %v5945_v21  ;;  %v6039_v21 = vld [vmem:[%s7616_s6 + $0x194] ss:$8 sps:$4 sm:$0xff]  }
 0x146   : > { %4795 = vmatpush1.bf16.msra.mxu0 %v5946_v22  ;;  %4538 = vmatprep.subr.bf16.mxu1 %v5947_v23  ;;  %v6042_v22 = vld [vmem:[%s7616_s6 + $0x794] ss:$8 sps:$4 sm:$0xff]   ;;  %v6037_v23 = vld [vmem:[%s7616_s6 + $0x190] ss:$8 sps:$4 sm:$0xff]  }
 0x147   : > { %4796 = vmatprep.subr.bf16.mxu0 %v5949_v24  ;;  %v6040_v24 = vld [vmem:[%s7616_s6 + $0x790] ss:$8 sps:$4 sm:$0xff]  }
 0x149   : > { %4539 = vmatpush1.bf16.msra.mxu1 %v5951_v25  ;;  %v6045_v25 = vld [vmem:[%s7616_s6 + $0x1a4] ss:$8 sps:$4 sm:$0xff]  }
 0x14a   : > { %4797 = vmatpush1.bf16.msra.mxu0 %v5952_v26  ;;  %4540 = vmatprep.subr.bf16.mxu1 %v5953_v28  ;;  %v6048_v26 = vld [vmem:[%s7616_s6 + $0x7a4] ss:$8 sps:$4 sm:$0xff]   ;;  %v6046_v28 = vld [vmem:[%s7616_s6 + $0x7a0] ss:$8 sps:$4 sm:$0xff]  }
 0x14b   : > { %4798 = vmatprep.subr.bf16.mxu0 %v5955_v29  ;;  %v6051_v29 = vld [vmem:[%s7616_s6 + $0x1b4] ss:$8 sps:$4 sm:$0xff]  }
 0x14d   : > { %4541 = vmatpush1.bf16.msra.mxu1 %v5957_v31  ;;  %v6049_v31 = vld [vmem:[%s7616_s6 + $0x1b0] ss:$8 sps:$4 sm:$0xff]  }
 0x14e   : > { %4799 = vmatpush1.bf16.msra.mxu0 %v5958_v32  ;;  %4542 = vmatprep.subr.bf16.mxu1 %v5959_v33  ;;  %v6052_v32 = vld [vmem:[%s7616_s6 + $0x7b0] ss:$8 sps:$4 sm:$0xff]   ;;  %v6057_v33 = vld [vmem:[%s7616_s6 + $0x1c4] ss:$8 sps:$4 sm:$0xff]  }
 0x14f   : > { %4800 = vmatprep.subr.bf16.mxu0 %v5961_v34  ;;  %v6060_v34 = vld [vmem:[%s7616_s6 + $0x7c4] ss:$8 sps:$4 sm:$0xff]  }
 0x151   : > { %4543 = vmatpush1.bf16.msra.mxu1 %v5963_v35  ;;  %v6055_v35 = vld [vmem:[%s7616_s6 + $0x1c0] ss:$8 sps:$4 sm:$0xff]  }
 0x152   : > { %4801 = vmatpush1.bf16.msra.mxu0 %v5964_v36  ;;  %4544 = vmatprep.subr.bf16.mxu1 %v5965_v37  ;;  %v6058_v36 = vld [vmem:[%s7616_s6 + $0x7c0] ss:$8 sps:$4 sm:$0xff]   ;;  %v6063_v37 = vld [vmem:[%s7616_s6 + $0x1d4] ss:$8 sps:$4 sm:$0xff]  }
 0x153   : > { %4802 = vmatprep.subr.bf16.mxu0 %v5967_v38  ;;  %v6066_v38 = vld [vmem:[%s7616_s6 + $0x7d4] ss:$8 sps:$4 sm:$0xff]  }
 0x155   : > { %4545 = vmatpush1.bf16.msra.mxu1 %v5969_v39  ;;  %v6061_v39 = vld [vmem:[%s7616_s6 + $0x1d0] ss:$8 sps:$4 sm:$0xff]  }
 0x156   : > { %4803 = vmatpush1.bf16.msra.mxu0 %v5970_v40  ;;  %4546 = vmatprep.subr.bf16.mxu1 %v5971_v41  ;;  %v6064_v40 = vld [vmem:[%s7616_s6 + $0x7d0] ss:$8 sps:$4 sm:$0xff]   ;;  %v6069_v41 = vld [vmem:[%s7616_s6 + $0x1e4] ss:$8 sps:$4 sm:$0xff]  }
 0x157   : > { %4804 = vmatprep.subr.bf16.mxu0 %v5973_v42  ;;  %v6072_v42 = vld [vmem:[%s7616_s6 + $0x7e4] ss:$8 sps:$4 sm:$0xff]  }
 0x159   : > { %4547 = vmatpush1.bf16.msra.mxu1 %v5975_v43  ;;  %v6067_v43 = vld [vmem:[%s7616_s6 + $0x1e0] ss:$8 sps:$4 sm:$0xff]  }
 0x15a   : > { %4805 = vmatpush1.bf16.msra.mxu0 %v5976_v44  ;;  %4559 = vmatprep.subr.bf16.mxu1 %v5982_v45  ;;  %v6070_v44 = vld [vmem:[%s7616_s6 + $0x7e0] ss:$8 sps:$4 sm:$0xff]   ;;  %v6075_v45 = vld [vmem:[%s7616_s6 + $0x1f4] ss:$8 sps:$4 sm:$0xff]  }
 0x15b   : > { %4817 = vmatprep.subr.bf16.mxu0 %v5988_v46  ;;  %v6078_v46 = vld [vmem:[%s7616_s6 + $0x7f4] ss:$8 sps:$4 sm:$0xff]  }
 0x15c   : > { %4549 = vmatmul.mubr.bf16.vlgmr.msra.gmra.mrb[0].mxu1 %v5977_v47  ;;  %v6073_v47 = vld [vmem:[%s7616_s6 + $0x1f0] ss:$8 sps:$4 sm:$0xff]  }
 0x15d   : > { %4807 = vmatmul.mubr.bf16.vlgmr.msra.gmra.mrb[0].mxu0 %v5983_v49  ;;  %4560 = vmatpush1.bf16.msra.mxu1 %v5980_v48  ;;  %v6076_v48 = vld [vmem:[%s7616_s6 + $0x7f0] ss:$8 sps:$4 sm:$0xff]   ;;  %v6084_v49 = vld [vmem:[%s7616_s6 + $0x204] ss:$8 sps:$4 sm:$0xff]  }
 0x15e   : > { %4818 = vmatpush1.bf16.msra.mxu0 %v5986_v50  ;;  %4561 = vmatprep.subr.bf16.mxu1 %v5991_v51  ;;  %v6090_v50 = vld [vmem:[%s7616_s6 + $0x804] ss:$8 sps:$4 sm:$0xff]  }
 0x15f   : > { %4819 = vmatprep.subr.bf16.mxu0 %v5994_v52  ;;  %4591 = vmatprep.mubr.bf16.mxu1 %v6081_v13  ;;  %v6079_v51 = vld [vmem:[%s7614_s4 + $0x8] ss:$100 sps:$4 sm:$0xff]  }
 0x160   : > { %4849 = vmatprep.mubr.bf16.mxu0 %v6087_v16  ;;  %v6082_v52 = vld [vmem:[%s7616_s6 + $0x200] ss:$8 sps:$4 sm:$0xff]   ;;  %v6123_v13 = vld [vmem:[%s7616_s6 + $0x264] ss:$8 sps:$4 sm:$0xff]  }
 0x161   : > { %4562 = vmatpush1.bf16.msra.mxu1 %v5989_v53  ;;  %v6085_v53 = vld [vmem:[%s7614_s4 + $0x38] ss:$100 sps:$4 sm:$0xff]  }
 0x162   : > { %4820 = vmatpush1.bf16.msra.mxu0 %v5992_v54  ;;  %4563 = vmatprep.subr.bf16.mxu1 %v5997_v55  ;;  %v6088_v54 = vld [vmem:[%s7616_s6 + $0x800] ss:$8 sps:$4 sm:$0xff]   ;;  %v6093_v55 = vld [vmem:[%s7616_s6 + $0x214] ss:$8 sps:$4 sm:$0xff]  }
 0x163   : > { %4821 = vmatprep.subr.bf16.mxu0 %v6000_v56  ;;  %v6096_v56 = vld [vmem:[%s7616_s6 + $0x814] ss:$8 sps:$4 sm:$0xff]   ;;  %v6124_v16 = vld [vmem:[%s7616_s6 + $0x860] ss:$8 sps:$4 sm:$0xff]  }
 0x165   : > { %4564 = vmatpush1.bf16.msra.mxu1 %v5995_v57  ;;  %v6091_v57 = vld [vmem:[%s7616_s6 + $0x210] ss:$8 sps:$4 sm:$0xff]  }
 0x166   : > { %4822 = vmatpush1.bf16.msra.mxu0 %v5998_v58  ;;  %4565 = vmatprep.subr.bf16.mxu1 %v6003_v59  ;;  %v6094_v58 = vld [vmem:[%s7616_s6 + $0x810] ss:$8 sps:$4 sm:$0xff]   ;;  %v6099_v59 = vld [vmem:[%s7616_s6 + $0x224] ss:$8 sps:$4 sm:$0xff]  }
 0x167   : > { %4823 = vmatprep.subr.bf16.mxu0 %v6006_v60  ;;  %v6102_v60 = vld [vmem:[%s7616_s6 + $0x824] ss:$8 sps:$4 sm:$0xff]  }
 0x169   : > { %4566 = vmatpush1.bf16.msra.mxu1 %v6001_v61  ;;  %v6097_v61 = vld [vmem:[%s7616_s6 + $0x220] ss:$8 sps:$4 sm:$0xff]  }
 0x16a   : > { %4824 = vmatpush1.bf16.msra.mxu0 %v6004_v62  ;;  %4567 = vmatprep.subr.bf16.mxu1 %v6009_v63  ;;  %v6183_v62 = vld [vmem:[%s7614_s4 + $0x14] ss:$100 sps:$4 sm:$0xff]  }
 0x16b   : > { %4825 = vmatprep.subr.bf16.mxu0 %v6012_v0  ;;  %v6100_v63 = vld [vmem:[%s7616_s6 + $0x820] ss:$8 sps:$4 sm:$0xff]   ;;  %v6105_v0 = vld [vmem:[%s7616_s6 + $0x234] ss:$8 sps:$4 sm:$0xff]  }
 0x16d   : > { %4568 = vmatpush1.bf16.msra.mxu1 %v6007_v1  ;;  %v6108_v1 = vld [vmem:[%s7616_s6 + $0x834] ss:$8 sps:$4 sm:$0xff]  }
 0x16e   : > { %4826 = vmatpush1.bf16.msra.mxu0 %v6010_v2  ;;  %4569 = vmatprep.subr.bf16.mxu1 %v6015_v3  ;;  %v6189_v2 = vld [vmem:[%s7614_s4 + $0x44] ss:$100 sps:$4 sm:$0xff]  }
 0x16f   : > { %4827 = vmatprep.subr.bf16.mxu0 %v6018_v4  ;;  %v6103_v3 = vld [vmem:[%s7616_s6 + $0x230] ss:$8 sps:$4 sm:$0xff]  }
 0x170   : > { %v6106_v4 = vld [vmem:[%s7616_s6 + $0x830] ss:$8 sps:$4 sm:$0xff]  }
 0x171   : > { %4570 = vmatpush1.bf16.msra.mxu1 %v6013_v5  ;;  %v6111_v5 = vld [vmem:[%s7616_s6 + $0x244] ss:$8 sps:$4 sm:$0xff]  }
 0x172   : > { %4828 = vmatpush1.bf16.msra.mxu0 %v6016_v6  ;;  %4571 = vmatprep.subr.bf16.mxu1 %v6021_v7  ;;  %v6114_v6 = vld [vmem:[%s7616_s6 + $0x844] ss:$8 sps:$4 sm:$0xff]   ;;  %v6109_v7 = vld [vmem:[%s7616_s6 + $0x240] ss:$8 sps:$4 sm:$0xff]  }
 0x173   : > { %4829 = vmatprep.subr.bf16.mxu0 %v6024_v8  ;;  %v6112_v8 = vld [vmem:[%s7616_s6 + $0x840] ss:$8 sps:$4 sm:$0xff]  }
 0x175   : > { %4572 = vmatpush1.bf16.msra.mxu1 %v6019_v9  ;;  %v6117_v9 = vld [vmem:[%s7616_s6 + $0x254] ss:$8 sps:$4 sm:$0xff]  }
 0x176   : > { %4830 = vmatpush1.bf16.msra.mxu0 %v6022_v10  ;;  %4573 = vmatprep.subr.bf16.mxu1 %v6027_v11  ;;  %v6120_v10 = vld [vmem:[%s7616_s6 + $0x854] ss:$8 sps:$4 sm:$0xff]   ;;  %v6115_v11 = vld [vmem:[%s7616_s6 + $0x250] ss:$8 sps:$4 sm:$0xff]  }
 0x177   : > { %4831 = vmatprep.subr.bf16.mxu0 %v6030_v12  ;;  %v6118_v12 = vld [vmem:[%s7616_s6 + $0x850] ss:$8 sps:$4 sm:$0xff]  }
 0x179   : > { %4574 = vmatpush1.bf16.msra.mxu1 %v6025_v14  ;;  %v6126_v14 = vld [vmem:[%s7616_s6 + $0x864] ss:$8 sps:$4 sm:$0xff]  }
 0x17a   : > { %4832 = vmatpush1.bf16.msra.mxu0 %v6028_v15  ;;  %4575 = vmatprep.subr.bf16.mxu1 %v6033_v17  ;;  %v6121_v15 = vld [vmem:[%s7616_s6 + $0x260] ss:$8 sps:$4 sm:$0xff]   ;;  %v6129_v17 = vld [vmem:[%s7616_s6 + $0x274] ss:$8 sps:$4 sm:$0xff]  }
 0x17b   : > { %4833 = vmatprep.subr.bf16.mxu0 %v6036_v18  ;;  %v6132_v18 = vld [vmem:[%s7616_s6 + $0x874] ss:$8 sps:$4 sm:$0xff]  }
 0x17d   : > { %4576 = vmatpush1.bf16.msra.mxu1 %v6031_v19  ;;  %v6127_v19 = vld [vmem:[%s7616_s6 + $0x270] ss:$8 sps:$4 sm:$0xff]  }
 0x17e   : > { %4834 = vmatpush1.bf16.msra.mxu0 %v6034_v20  ;;  %4577 = vmatprep.subr.bf16.mxu1 %v6039_v21  ;;  %v6130_v20 = vld [vmem:[%s7616_s6 + $0x870] ss:$8 sps:$4 sm:$0xff]   ;;  %v6135_v21 = vld [vmem:[%s7616_s6 + $0x284] ss:$8 sps:$4 sm:$0xff]  }
 0x17f   : > { %4835 = vmatprep.subr.bf16.mxu0 %v6042_v22  ;;  %v6138_v22 = vld [vmem:[%s7616_s6 + $0x884] ss:$8 sps:$4 sm:$0xff]  }
 0x181   : > { %4578 = vmatpush1.bf16.msra.mxu1 %v6037_v23  ;;  %v6133_v23 = vld [vmem:[%s7616_s6 + $0x280] ss:$8 sps:$4 sm:$0xff]  }
 0x182   : > { %4836 = vmatpush1.bf16.msra.mxu0 %v6040_v24  ;;  %4579 = vmatprep.subr.bf16.mxu1 %v6045_v25  ;;  %v6136_v24 = vld [vmem:[%s7616_s6 + $0x880] ss:$8 sps:$4 sm:$0xff]   ;;  %v6141_v25 = vld [vmem:[%s7616_s6 + $0x294] ss:$8 sps:$4 sm:$0xff]  }
 0x183   : > { %4837 = vmatprep.subr.bf16.mxu0 %v6048_v26  ;;  %v6144_v26 = vld [vmem:[%s7616_s6 + $0x894] ss:$8 sps:$4 sm:$0xff]  }
 0x185   : > { %4580 = vmatpush1.bf16.msra.mxu1 %v6043_v27  ;;  %v6139_v27 = vld [vmem:[%s7616_s6 + $0x290] ss:$8 sps:$4 sm:$0xff]  }
 0x186   : > { %4838 = vmatpush1.bf16.msra.mxu0 %v6046_v28  ;;  %4581 = vmatprep.subr.bf16.mxu1 %v6051_v29  ;;  %v6142_v28 = vld [vmem:[%s7616_s6 + $0x890] ss:$8 sps:$4 sm:$0xff]   ;;  %v6147_v29 = vld [vmem:[%s7616_s6 + $0x2a4] ss:$8 sps:$4 sm:$0xff]  }
 0x187   : > { %4839 = vmatprep.subr.bf16.mxu0 %v6054_v30  ;;  %v6150_v30 = vld [vmem:[%s7616_s6 + $0x8a4] ss:$8 sps:$4 sm:$0xff]  }
 0x189   : > { %4582 = vmatpush1.bf16.msra.mxu1 %v6049_v31  ;;  %v6145_v31 = vld [vmem:[%s7616_s6 + $0x2a0] ss:$8 sps:$4 sm:$0xff]  }
 0x18a   : > { %4840 = vmatpush1.bf16.msra.mxu0 %v6052_v32  ;;  %4583 = vmatprep.subr.bf16.mxu1 %v6057_v33  ;;  %v6148_v32 = vld [vmem:[%s7616_s6 + $0x8a0] ss:$8 sps:$4 sm:$0xff]   ;;  %v6153_v33 = vld [vmem:[%s7616_s6 + $0x2b4] ss:$8 sps:$4 sm:$0xff]  }
 0x18b   : > { %4841 = vmatprep.subr.bf16.mxu0 %v6060_v34  ;;  %v6156_v34 = vld [vmem:[%s7616_s6 + $0x8b4] ss:$8 sps:$4 sm:$0xff]  }
 0x18d   : > { %4584 = vmatpush1.bf16.msra.mxu1 %v6055_v35  ;;  %v6151_v35 = vld [vmem:[%s7616_s6 + $0x2b0] ss:$8 sps:$4 sm:$0xff]  }
 0x18e   : > { %4842 = vmatpush1.bf16.msra.mxu0 %v6058_v36  ;;  %4585 = vmatprep.subr.bf16.mxu1 %v6063_v37  ;;  %v6154_v36 = vld [vmem:[%s7616_s6 + $0x8b0] ss:$8 sps:$4 sm:$0xff]   ;;  %v6159_v37 = vld [vmem:[%s7616_s6 + $0x2c4] ss:$8 sps:$4 sm:$0xff]  }
 0x18f   : > { %4843 = vmatprep.subr.bf16.mxu0 %v6066_v38  ;;  %v6162_v38 = vld [vmem:[%s7616_s6 + $0x8c4] ss:$8 sps:$4 sm:$0xff]  }
 0x191   : > { %4586 = vmatpush1.bf16.msra.mxu1 %v6061_v39  ;;  %v6157_v39 = vld [vmem:[%s7616_s6 + $0x2c0] ss:$8 sps:$4 sm:$0xff]  }
 0x192   : > { %4844 = vmatpush1.bf16.msra.mxu0 %v6064_v40  ;;  %4587 = vmatprep.subr.bf16.mxu1 %v6069_v41  ;;  %v6160_v40 = vld [vmem:[%s7616_s6 + $0x8c0] ss:$8 sps:$4 sm:$0xff]   ;;  %v6165_v41 = vld [vmem:[%s7616_s6 + $0x2d4] ss:$8 sps:$4 sm:$0xff]  }
 0x193   : > { %4845 = vmatprep.subr.bf16.mxu0 %v6072_v42  ;;  %v6168_v42 = vld [vmem:[%s7616_s6 + $0x8d4] ss:$8 sps:$4 sm:$0xff]  }
 0x195   : > { %4588 = vmatpush1.bf16.msra.mxu1 %v6067_v43  ;;  %v6163_v43 = vld [vmem:[%s7616_s6 + $0x2d0] ss:$8 sps:$4 sm:$0xff]  }
 0x196   : > { %4846 = vmatpush1.bf16.msra.mxu0 %v6070_v44  ;;  %4589 = vmatprep.subr.bf16.mxu1 %v6075_v45  ;;  %v6166_v44 = vld [vmem:[%s7616_s6 + $0x8d0] ss:$8 sps:$4 sm:$0xff]   ;;  %v6171_v45 = vld [vmem:[%s7616_s6 + $0x2e4] ss:$8 sps:$4 sm:$0xff]  }
 0x197   : > { %4847 = vmatprep.subr.bf16.mxu0 %v6078_v46  ;;  %v6174_v46 = vld [vmem:[%s7616_s6 + $0x8e4] ss:$8 sps:$4 sm:$0xff]  }
 0x199   : > { %4590 = vmatpush1.bf16.msra.mxu1 %v6073_v47  ;;  %v6169_v47 = vld [vmem:[%s7616_s6 + $0x2e0] ss:$8 sps:$4 sm:$0xff]  }
 0x19a   : > { %4848 = vmatpush1.bf16.msra.mxu0 %v6076_v48  ;;  %4602 = vmatprep.subr.bf16.mxu1 %v6084_v49  ;;  %v6172_v48 = vld [vmem:[%s7616_s6 + $0x8e0] ss:$8 sps:$4 sm:$0xff]   ;;  %v6177_v49 = vld [vmem:[%s7616_s6 + $0x2f4] ss:$8 sps:$4 sm:$0xff]  }
 0x19b   : > { %4860 = vmatprep.subr.bf16.mxu0 %v6090_v50  ;;  %v6180_v50 = vld [vmem:[%s7616_s6 + $0x8f4] ss:$8 sps:$4 sm:$0xff]  }
 0x19c   : > { %4592 = vmatmul.mubr.bf16.vlgmr.msra.gmra.mrb[0].mxu1 %v6079_v51  ;;  %v6175_v51 = vld [vmem:[%s7616_s6 + $0x2f0] ss:$8 sps:$4 sm:$0xff]  }
 0x19d   : > { %4850 = vmatmul.mubr.bf16.vlgmr.msra.gmra.mrb[0].mxu0 %v6085_v53  ;;  %4603 = vmatpush1.bf16.msra.mxu1 %v6082_v52  ;;  %v6178_v52 = vld [vmem:[%s7616_s6 + $0x8f0] ss:$8 sps:$4 sm:$0xff]   ;;  %v6186_v53 = vld [vmem:[%s7616_s6 + $0x304] ss:$8 sps:$4 sm:$0xff]  }
 0x19e   : > { %4861 = vmatpush1.bf16.msra.mxu0 %v6088_v54  ;;  %4604 = vmatprep.subr.bf16.mxu1 %v6093_v55  ;;  %v6192_v54 = vld [vmem:[%s7616_s6 + $0x904] ss:$8 sps:$4 sm:$0xff]  }
 0x19f   : > { %4862 = vmatprep.subr.bf16.mxu0 %v6096_v56  ;;  %4634 = vmatprep.mubr.bf16.mxu1 %v6183_v62  ;;  %v6181_v55 = vld [vmem:[%s7614_s4 + $0x10] ss:$100 sps:$4 sm:$0xff]  }
 0x1a0   : > { %4892 = vmatprep.mubr.bf16.mxu0 %v6189_v2  ;;  %v6184_v56 = vld [vmem:[%s7616_s6 + $0x300] ss:$8 sps:$4 sm:$0xff]   ;;  %v6204_v2 = vld [vmem:[%s7616_s6 + $0x924] ss:$8 sps:$4 sm:$0xff]  }
 0x1a1   : > { %4605 = vmatpush1.bf16.msra.mxu1 %v6091_v57  ;;  %v6187_v57 = vld [vmem:[%s7614_s4 + $0x40] ss:$100 sps:$4 sm:$0xff]   ;;  %v6291_v62 = vld [vmem:[%s7614_s4 + $0x4c] ss:$100 sps:$4 sm:$0xff]  }
 0x1a2   : > { %4863 = vmatpush1.bf16.msra.mxu0 %v6094_v58  ;;  %4606 = vmatprep.subr.bf16.mxu1 %v6099_v59  ;;  %v6190_v58 = vld [vmem:[%s7616_s6 + $0x900] ss:$8 sps:$4 sm:$0xff]   ;;  %v6195_v59 = vld [vmem:[%s7616_s6 + $0x314] ss:$8 sps:$4 sm:$0xff]  }
 0x1a3   : > { %4864 = vmatprep.subr.bf16.mxu0 %v6102_v60  ;;  %v6198_v60 = vld [vmem:[%s7616_s6 + $0x914] ss:$8 sps:$4 sm:$0xff]  }
 0x1a5   : > { %4607 = vmatpush1.bf16.msra.mxu1 %v6097_v61  ;;  %v6285_v61 = vld [vmem:[%s7614_s4 + $0x1c] ss:$100 sps:$4 sm:$0xff]  }
 0x1a6   : > { %4865 = vmatpush1.bf16.msra.mxu0 %v6100_v63  ;;  %4608 = vmatprep.subr.bf16.mxu1 %v6105_v0  ;;  %v6193_v63 = vld [vmem:[%s7616_s6 + $0x310] ss:$8 sps:$4 sm:$0xff]  }
 0x1a7   : > { %4866 = vmatprep.subr.bf16.mxu0 %v6108_v1  ;;  %v6196_v0 = vld [vmem:[%s7616_s6 + $0x910] ss:$8 sps:$4 sm:$0xff]   ;;  %v6201_v1 = vld [vmem:[%s7616_s6 + $0x324] ss:$8 sps:$4 sm:$0xff]  }
 0x1a9   : > { %4609 = vmatpush1.bf16.msra.mxu1 %v6103_v3  ;;  %v6199_v3 = vld [vmem:[%s7616_s6 + $0x320] ss:$8 sps:$4 sm:$0xff]  }
 0x1aa   : > { %4867 = vmatpush1.bf16.msra.mxu0 %v6106_v4  ;;  %4610 = vmatprep.subr.bf16.mxu1 %v6111_v5  ;;  %v6202_v4 = vld [vmem:[%s7616_s6 + $0x920] ss:$8 sps:$4 sm:$0xff]   ;;  %v6207_v5 = vld [vmem:[%s7616_s6 + $0x334] ss:$8 sps:$4 sm:$0xff]  }
 0x1ab   : > { %4868 = vmatprep.subr.bf16.mxu0 %v6114_v6  ;;  %v6210_v6 = vld [vmem:[%s7616_s6 + $0x934] ss:$8 sps:$4 sm:$0xff]  }
 0x1ad   : > { %4611 = vmatpush1.bf16.msra.mxu1 %v6109_v7  ;;  %v6205_v7 = vld [vmem:[%s7616_s6 + $0x330] ss:$8 sps:$4 sm:$0xff]  }
 0x1ae   : > { %4869 = vmatpush1.bf16.msra.mxu0 %v6112_v8  ;;  %4612 = vmatprep.subr.bf16.mxu1 %v6117_v9  ;;  %v6208_v8 = vld [vmem:[%s7616_s6 + $0x930] ss:$8 sps:$4 sm:$0xff]   ;;  %v6213_v9 = vld [vmem:[%s7616_s6 + $0x344] ss:$8 sps:$4 sm:$0xff]  }
 0x1af   : > { %4870 = vmatprep.subr.bf16.mxu0 %v6120_v10  ;;  %v6216_v10 = vld [vmem:[%s7616_s6 + $0x944] ss:$8 sps:$4 sm:$0xff]  }
 0x1b1   : > { %4613 = vmatpush1.bf16.msra.mxu1 %v6115_v11  ;;  %v6211_v11 = vld [vmem:[%s7616_s6 + $0x340] ss:$8 sps:$4 sm:$0xff]  }
 0x1b2   : > { %4871 = vmatpush1.bf16.msra.mxu0 %v6118_v12  ;;  %4614 = vmatprep.subr.bf16.mxu1 %v6123_v13  ;;  %v6214_v12 = vld [vmem:[%s7616_s6 + $0x940] ss:$8 sps:$4 sm:$0xff]   ;;  %v6219_v13 = vld [vmem:[%s7616_s6 + $0x354] ss:$8 sps:$4 sm:$0xff]  }
 0x1b3   : > { %4872 = vmatprep.subr.bf16.mxu0 %v6126_v14  ;;  %v6222_v14 = vld [vmem:[%s7616_s6 + $0x954] ss:$8 sps:$4 sm:$0xff]  }
 0x1b5   : > { %4615 = vmatpush1.bf16.msra.mxu1 %v6121_v15  ;;  %v6217_v15 = vld [vmem:[%s7616_s6 + $0x350] ss:$8 sps:$4 sm:$0xff]  }
 0x1b6   : > { %4873 = vmatpush1.bf16.msra.mxu0 %v6124_v16  ;;  %4616 = vmatprep.subr.bf16.mxu1 %v6129_v17  ;;  %v6220_v16 = vld [vmem:[%s7616_s6 + $0x950] ss:$8 sps:$4 sm:$0xff]   ;;  %v6225_v17 = vld [vmem:[%s7616_s6 + $0x364] ss:$8 sps:$4 sm:$0xff]  }
 0x1b7   : > { %4874 = vmatprep.subr.bf16.mxu0 %v6132_v18  ;;  %v6228_v18 = vld [vmem:[%s7616_s6 + $0x964] ss:$8 sps:$4 sm:$0xff]  }
 0x1b9   : > { %4617 = vmatpush1.bf16.msra.mxu1 %v6127_v19  ;;  %v6223_v19 = vld [vmem:[%s7616_s6 + $0x360] ss:$8 sps:$4 sm:$0xff]  }
 0x1ba   : > { %4875 = vmatpush1.bf16.msra.mxu0 %v6130_v20  ;;  %4618 = vmatprep.subr.bf16.mxu1 %v6135_v21  ;;  %v6226_v20 = vld [vmem:[%s7616_s6 + $0x960] ss:$8 sps:$4 sm:$0xff]   ;;  %v6231_v21 = vld [vmem:[%s7616_s6 + $0x374] ss:$8 sps:$4 sm:$0xff]  }
 0x1bb   : > { %4876 = vmatprep.subr.bf16.mxu0 %v6138_v22  ;;  %v6234_v22 = vld [vmem:[%s7616_s6 + $0x974] ss:$8 sps:$4 sm:$0xff]  }
 0x1bd   : > { %4619 = vmatpush1.bf16.msra.mxu1 %v6133_v23  ;;  %v6229_v23 = vld [vmem:[%s7616_s6 + $0x370] ss:$8 sps:$4 sm:$0xff]  }
 0x1be   : > { %4877 = vmatpush1.bf16.msra.mxu0 %v6136_v24  ;;  %4620 = vmatprep.subr.bf16.mxu1 %v6141_v25  ;;  %v6232_v24 = vld [vmem:[%s7616_s6 + $0x970] ss:$8 sps:$4 sm:$0xff]   ;;  %v6237_v25 = vld [vmem:[%s7616_s6 + $0x384] ss:$8 sps:$4 sm:$0xff]  }
 0x1bf   : > { %4878 = vmatprep.subr.bf16.mxu0 %v6144_v26  ;;  %v6240_v26 = vld [vmem:[%s7616_s6 + $0x984] ss:$8 sps:$4 sm:$0xff]  }
 0x1c1   : > { %4621 = vmatpush1.bf16.msra.mxu1 %v6139_v27  ;;  %v6235_v27 = vld [vmem:[%s7616_s6 + $0x380] ss:$8 sps:$4 sm:$0xff]  }
 0x1c2   : > { %4879 = vmatpush1.bf16.msra.mxu0 %v6142_v28  ;;  %4622 = vmatprep.subr.bf16.mxu1 %v6147_v29  ;;  %v6238_v28 = vld [vmem:[%s7616_s6 + $0x980] ss:$8 sps:$4 sm:$0xff]   ;;  %v6243_v29 = vld [vmem:[%s7616_s6 + $0x394] ss:$8 sps:$4 sm:$0xff]  }
 0x1c3   : > { %4880 = vmatprep.subr.bf16.mxu0 %v6150_v30  ;;  %v6246_v30 = vld [vmem:[%s7616_s6 + $0x994] ss:$8 sps:$4 sm:$0xff]  }
 0x1c5   : > { %4623 = vmatpush1.bf16.msra.mxu1 %v6145_v31  ;;  %v6241_v31 = vld [vmem:[%s7616_s6 + $0x390] ss:$8 sps:$4 sm:$0xff]  }
 0x1c6   : > { %4881 = vmatpush1.bf16.msra.mxu0 %v6148_v32  ;;  %4624 = vmatprep.subr.bf16.mxu1 %v6153_v33  ;;  %v6244_v32 = vld [vmem:[%s7616_s6 + $0x990] ss:$8 sps:$4 sm:$0xff]   ;;  %v6249_v33 = vld [vmem:[%s7616_s6 + $0x3a4] ss:$8 sps:$4 sm:$0xff]  }
 0x1c7   : > { %4882 = vmatprep.subr.bf16.mxu0 %v6156_v34  ;;  %v6252_v34 = vld [vmem:[%s7616_s6 + $0x9a4] ss:$8 sps:$4 sm:$0xff]  }
 0x1c9   : > { %4625 = vmatpush1.bf16.msra.mxu1 %v6151_v35  ;;  %v6247_v35 = vld [vmem:[%s7616_s6 + $0x3a0] ss:$8 sps:$4 sm:$0xff]  }
 0x1ca   : > { %4883 = vmatpush1.bf16.msra.mxu0 %v6154_v36  ;;  %4626 = vmatprep.subr.bf16.mxu1 %v6159_v37  ;;  %v6250_v36 = vld [vmem:[%s7616_s6 + $0x9a0] ss:$8 sps:$4 sm:$0xff]   ;;  %v6255_v37 = vld [vmem:[%s7616_s6 + $0x3b4] ss:$8 sps:$4 sm:$0xff]  }
 0x1cb   : > { %4884 = vmatprep.subr.bf16.mxu0 %v6162_v38  ;;  %v6258_v38 = vld [vmem:[%s7616_s6 + $0x9b4] ss:$8 sps:$4 sm:$0xff]  }
 0x1cd   : > { %4627 = vmatpush1.bf16.msra.mxu1 %v6157_v39  ;;  %v6253_v39 = vld [vmem:[%s7616_s6 + $0x3b0] ss:$8 sps:$4 sm:$0xff]  }
 0x1ce   : > { %4885 = vmatpush1.bf16.msra.mxu0 %v6160_v40  ;;  %4628 = vmatprep.subr.bf16.mxu1 %v6165_v41  ;;  %v6256_v40 = vld [vmem:[%s7616_s6 + $0x9b0] ss:$8 sps:$4 sm:$0xff]   ;;  %v6261_v41 = vld [vmem:[%s7616_s6 + $0x3c4] ss:$8 sps:$4 sm:$0xff]  }
 0x1cf   : > { %4886 = vmatprep.subr.bf16.mxu0 %v6168_v42  ;;  %v6264_v42 = vld [vmem:[%s7616_s6 + $0x9c4] ss:$8 sps:$4 sm:$0xff]  }
 0x1d1   : > { %4629 = vmatpush1.bf16.msra.mxu1 %v6163_v43  ;;  %v6259_v43 = vld [vmem:[%s7616_s6 + $0x3c0] ss:$8 sps:$4 sm:$0xff]  }
 0x1d2   : > { %4887 = vmatpush1.bf16.msra.mxu0 %v6166_v44  ;;  %4630 = vmatprep.subr.bf16.mxu1 %v6171_v45  ;;  %v6262_v44 = vld [vmem:[%s7616_s6 + $0x9c0] ss:$8 sps:$4 sm:$0xff]   ;;  %v6267_v45 = vld [vmem:[%s7616_s6 + $0x3d4] ss:$8 sps:$4 sm:$0xff]  }
 0x1d3   : > { %4888 = vmatprep.subr.bf16.mxu0 %v6174_v46  ;;  %v6270_v46 = vld [vmem:[%s7616_s6 + $0x9d4] ss:$8 sps:$4 sm:$0xff]  }
 0x1d5   : > { %4631 = vmatpush1.bf16.msra.mxu1 %v6169_v47  ;;  %v6265_v47 = vld [vmem:[%s7616_s6 + $0x3d0] ss:$8 sps:$4 sm:$0xff]  }
 0x1d6   : > { %4889 = vmatpush1.bf16.msra.mxu0 %v6172_v48  ;;  %4632 = vmatprep.subr.bf16.mxu1 %v6177_v49  ;;  %v6268_v48 = vld [vmem:[%s7616_s6 + $0x9d0] ss:$8 sps:$4 sm:$0xff]   ;;  %v6273_v49 = vld [vmem:[%s7616_s6 + $0x3e4] ss:$8 sps:$4 sm:$0xff]  }
 0x1d7   : > { %4890 = vmatprep.subr.bf16.mxu0 %v6180_v50  ;;  %v6276_v50 = vld [vmem:[%s7616_s6 + $0x9e4] ss:$8 sps:$4 sm:$0xff]  }
 0x1d9   : > { %4633 = vmatpush1.bf16.msra.mxu1 %v6175_v51  ;;  %v6271_v51 = vld [vmem:[%s7616_s6 + $0x3e0] ss:$8 sps:$4 sm:$0xff]  }
 0x1da   : > { %4891 = vmatpush1.bf16.msra.mxu0 %v6178_v52  ;;  %4645 = vmatprep.subr.bf16.mxu1 %v6186_v53  ;;  %v6274_v52 = vld [vmem:[%s7616_s6 + $0x9e0] ss:$8 sps:$4 sm:$0xff]   ;;  %v6279_v53 = vld [vmem:[%s7616_s6 + $0x3f4] ss:$8 sps:$4 sm:$0xff]  }
 0x1db   : > { %4903 = vmatprep.subr.bf16.mxu0 %v6192_v54  ;;  %v6282_v54 = vld [vmem:[%s7616_s6 + $0x9f4] ss:$8 sps:$4 sm:$0xff]  }
 0x1dc   : > { %4635 = vmatmul.mubr.bf16.vlgmr.msra.gmra.mrb[0].mxu1 %v6181_v55  ;;  %v6277_v55 = vld [vmem:[%s7616_s6 + $0x3f0] ss:$8 sps:$4 sm:$0xff]  }
 0x1dd   : > { %4893 = vmatmul.mubr.bf16.vlgmr.msra.gmra.mrb[0].mxu0 %v6187_v57  ;;  %4646 = vmatpush1.bf16.msra.mxu1 %v6184_v56  ;;  %v6280_v56 = vld [vmem:[%s7616_s6 + $0x9f0] ss:$8 sps:$4 sm:$0xff]   ;;  %v6288_v57 = vld [vmem:[%s7616_s6 + $0x404] ss:$8 sps:$4 sm:$0xff]  }
 0x1de   : > { %4904 = vmatpush1.bf16.msra.mxu0 %v6190_v58  ;;  %4647 = vmatprep.subr.bf16.mxu1 %v6195_v59  ;;  %v6294_v58 = vld [vmem:[%s7616_s6 + $0xa04] ss:$8 sps:$4 sm:$0xff]  }
 0x1df   : > { %4905 = vmatprep.subr.bf16.mxu0 %v6198_v60  ;;  %4677 = vmatprep.mubr.bf16.mxu1 %v6285_v61  ;;  %v6283_v59 = vld [vmem:[%s7614_s4 + $0x18] ss:$100 sps:$4 sm:$0xff]   ;;  %v6289_v61 = vld [vmem:[%s7614_s4 + $0x48] ss:$100 sps:$4 sm:$0xff]  }
 0x1e0   : > { %4935 = vmatprep.mubr.bf16.mxu0 %v6291_v62  ;;  %v6286_v60 = vld [vmem:[%s7616_s6 + $0x400] ss:$8 sps:$4 sm:$0xff]  }
 0x1e1   : > { %4648 = vmatpush1.bf16.msra.mxu1 %v6193_v63  ;;  %v6292_v62 = vld [vmem:[%s7616_s6 + $0xa00] ss:$8 sps:$4 sm:$0xff]   ;;  %v6297_v63 = vld [vmem:[%s7616_s6 + $0x414] ss:$8 sps:$4 sm:$0xff]  }
 0x1e2   : > { %4906 = vmatpush1.bf16.msra.mxu0 %v6196_v0  ;;  %4649 = vmatprep.subr.bf16.mxu1 %v6201_v1  ;;  %v6300_v0 = vld [vmem:[%s7616_s6 + $0xa14] ss:$8 sps:$4 sm:$0xff]  }
 0x1e3   : > { %4907 = vmatprep.subr.bf16.mxu0 %v6204_v2  ;;  %v6387_v1 = vld [vmem:[%s7614_s4 + $0x24] ss:$100 sps:$4 sm:$0xff]   ;;  %v6393_v2 = vld [vmem:[%s7614_s4 + $0x54] ss:$100 sps:$4 sm:$0xff]  }
 0x1e5   : > { %4650 = vmatpush1.bf16.msra.mxu1 %v6199_v3  ;;  %v6295_v3 = vld [vmem:[%s7616_s6 + $0x410] ss:$8 sps:$4 sm:$0xff]  }
 0x1e6   : > { %4908 = vmatpush1.bf16.msra.mxu0 %v6202_v4  ;;  %4651 = vmatprep.subr.bf16.mxu1 %v6207_v5  ;;  %v6298_v4 = vld [vmem:[%s7616_s6 + $0xa10] ss:$8 sps:$4 sm:$0xff]   ;;  %v6303_v5 = vld [vmem:[%s7616_s6 + $0x424] ss:$8 sps:$4 sm:$0xff]  }
 0x1e7   : > { %4909 = vmatprep.subr.bf16.mxu0 %v6210_v6  ;;  %v6306_v6 = vld [vmem:[%s7616_s6 + $0xa24] ss:$8 sps:$4 sm:$0xff]  }
 0x1e9   : > { %4652 = vmatpush1.bf16.msra.mxu1 %v6205_v7  ;;  %v6301_v7 = vld [vmem:[%s7616_s6 + $0x420] ss:$8 sps:$4 sm:$0xff]  }
 0x1ea   : > { %4910 = vmatpush1.bf16.msra.mxu0 %v6208_v8  ;;  %4653 = vmatprep.subr.bf16.mxu1 %v6213_v9  ;;  %v6304_v8 = vld [vmem:[%s7616_s6 + $0xa20] ss:$8 sps:$4 sm:$0xff]   ;;  %v6309_v9 = vld [vmem:[%s7616_s6 + $0x434] ss:$8 sps:$4 sm:$0xff]  }
 0x1eb   : > { %4911 = vmatprep.subr.bf16.mxu0 %v6216_v10  ;;  %v6312_v10 = vld [vmem:[%s7616_s6 + $0xa34] ss:$8 sps:$4 sm:$0xff]  }
 0x1ed   : > { %4654 = vmatpush1.bf16.msra.mxu1 %v6211_v11  ;;  %v6307_v11 = vld [vmem:[%s7616_s6 + $0x430] ss:$8 sps:$4 sm:$0xff]  }
 0x1ee   : > { %4912 = vmatpush1.bf16.msra.mxu0 %v6214_v12  ;;  %4655 = vmatprep.subr.bf16.mxu1 %v6219_v13  ;;  %v6310_v12 = vld [vmem:[%s7616_s6 + $0xa30] ss:$8 sps:$4 sm:$0xff]   ;;  %v6315_v13 = vld [vmem:[%s7616_s6 + $0x444] ss:$8 sps:$4 sm:$0xff]  }
 0x1ef   : > { %4913 = vmatprep.subr.bf16.mxu0 %v6222_v14  ;;  %v6318_v14 = vld [vmem:[%s7616_s6 + $0xa44] ss:$8 sps:$4 sm:$0xff]  }
 0x1f1   : > { %4656 = vmatpush1.bf16.msra.mxu1 %v6217_v15  ;;  %v6313_v15 = vld [vmem:[%s7616_s6 + $0x440] ss:$8 sps:$4 sm:$0xff]  }
 0x1f2   : > { %4914 = vmatpush1.bf16.msra.mxu0 %v6220_v16  ;;  %4657 = vmatprep.subr.bf16.mxu1 %v6225_v17  ;;  %v6316_v16 = vld [vmem:[%s7616_s6 + $0xa40] ss:$8 sps:$4 sm:$0xff]   ;;  %v6321_v17 = vld [vmem:[%s7616_s6 + $0x454] ss:$8 sps:$4 sm:$0xff]  }
 0x1f3   : > { %4915 = vmatprep.subr.bf16.mxu0 %v6228_v18  ;;  %v6324_v18 = vld [vmem:[%s7616_s6 + $0xa54] ss:$8 sps:$4 sm:$0xff]  }
 0x1f5   : > { %4658 = vmatpush1.bf16.msra.mxu1 %v6223_v19  ;;  %v6319_v19 = vld [vmem:[%s7616_s6 + $0x450] ss:$8 sps:$4 sm:$0xff]  }
 0x1f6   : > { %4916 = vmatpush1.bf16.msra.mxu0 %v6226_v20  ;;  %4659 = vmatprep.subr.bf16.mxu1 %v6231_v21  ;;  %v6322_v20 = vld [vmem:[%s7616_s6 + $0xa50] ss:$8 sps:$4 sm:$0xff]   ;;  %v6327_v21 = vld [vmem:[%s7616_s6 + $0x464] ss:$8 sps:$4 sm:$0xff]  }
 0x1f7   : > { %4917 = vmatprep.subr.bf16.mxu0 %v6234_v22  ;;  %v6330_v22 = vld [vmem:[%s7616_s6 + $0xa64] ss:$8 sps:$4 sm:$0xff]  }
 0x1f9   : > { %4660 = vmatpush1.bf16.msra.mxu1 %v6229_v23  ;;  %v6325_v23 = vld [vmem:[%s7616_s6 + $0x460] ss:$8 sps:$4 sm:$0xff]  }
 0x1fa   : > { %4918 = vmatpush1.bf16.msra.mxu0 %v6232_v24  ;;  %4661 = vmatprep.subr.bf16.mxu1 %v6237_v25  ;;  %v6328_v24 = vld [vmem:[%s7616_s6 + $0xa60] ss:$8 sps:$4 sm:$0xff]   ;;  %v6333_v25 = vld [vmem:[%s7616_s6 + $0x474] ss:$8 sps:$4 sm:$0xff]  }
 0x1fb   : > { %4919 = vmatprep.subr.bf16.mxu0 %v6240_v26  ;;  %v6336_v26 = vld [vmem:[%s7616_s6 + $0xa74] ss:$8 sps:$4 sm:$0xff]  }
 0x1fd   : > { %4662 = vmatpush1.bf16.msra.mxu1 %v6235_v27  ;;  %v6331_v27 = vld [vmem:[%s7616_s6 + $0x470] ss:$8 sps:$4 sm:$0xff]  }
 0x1fe   : > { %4920 = vmatpush1.bf16.msra.mxu0 %v6238_v28  ;;  %4663 = vmatprep.subr.bf16.mxu1 %v6243_v29  ;;  %v6334_v28 = vld [vmem:[%s7616_s6 + $0xa70] ss:$8 sps:$4 sm:$0xff]   ;;  %v6339_v29 = vld [vmem:[%s7616_s6 + $0x484] ss:$8 sps:$4 sm:$0xff]  }
 0x1ff   : > { %4921 = vmatprep.subr.bf16.mxu0 %v6246_v30  ;;  %v6342_v30 = vld [vmem:[%s7616_s6 + $0xa84] ss:$8 sps:$4 sm:$0xff]  }
 0x201   : > { %4664 = vmatpush1.bf16.msra.mxu1 %v6241_v31  ;;  %v6337_v31 = vld [vmem:[%s7616_s6 + $0x480] ss:$8 sps:$4 sm:$0xff]  }
 0x202   : > { %4922 = vmatpush1.bf16.msra.mxu0 %v6244_v32  ;;  %4665 = vmatprep.subr.bf16.mxu1 %v6249_v33  ;;  %v6340_v32 = vld [vmem:[%s7616_s6 + $0xa80] ss:$8 sps:$4 sm:$0xff]   ;;  %v6345_v33 = vld [vmem:[%s7616_s6 + $0x494] ss:$8 sps:$4 sm:$0xff]  }
 0x203   : > { %4923 = vmatprep.subr.bf16.mxu0 %v6252_v34  ;;  %v6348_v34 = vld [vmem:[%s7616_s6 + $0xa94] ss:$8 sps:$4 sm:$0xff]  }
 0x205   : > { %4666 = vmatpush1.bf16.msra.mxu1 %v6247_v35  ;;  %v6343_v35 = vld [vmem:[%s7616_s6 + $0x490] ss:$8 sps:$4 sm:$0xff]  }
 0x206   : > { %4924 = vmatpush1.bf16.msra.mxu0 %v6250_v36  ;;  %4667 = vmatprep.subr.bf16.mxu1 %v6255_v37  ;;  %v6346_v36 = vld [vmem:[%s7616_s6 + $0xa90] ss:$8 sps:$4 sm:$0xff]   ;;  %v6351_v37 = vld [vmem:[%s7616_s6 + $0x4a4] ss:$8 sps:$4 sm:$0xff]  }
 0x207   : > { %4925 = vmatprep.subr.bf16.mxu0 %v6258_v38  ;;  %v6354_v38 = vld [vmem:[%s7616_s6 + $0xaa4] ss:$8 sps:$4 sm:$0xff]  }
 0x209   : > { %4668 = vmatpush1.bf16.msra.mxu1 %v6253_v39  ;;  %v6349_v39 = vld [vmem:[%s7616_s6 + $0x4a0] ss:$8 sps:$4 sm:$0xff]  }
 0x20a   : > { %4926 = vmatpush1.bf16.msra.mxu0 %v6256_v40  ;;  %4669 = vmatprep.subr.bf16.mxu1 %v6261_v41  ;;  %v6352_v40 = vld [vmem:[%s7616_s6 + $0xaa0] ss:$8 sps:$4 sm:$0xff]   ;;  %v6357_v41 = vld [vmem:[%s7616_s6 + $0x4b4] ss:$8 sps:$4 sm:$0xff]  }
 0x20b   : > { %4927 = vmatprep.subr.bf16.mxu0 %v6264_v42  ;;  %v6360_v42 = vld [vmem:[%s7616_s6 + $0xab4] ss:$8 sps:$4 sm:$0xff]  }
 0x20d   : > { %4670 = vmatpush1.bf16.msra.mxu1 %v6259_v43  ;;  %v6355_v43 = vld [vmem:[%s7616_s6 + $0x4b0] ss:$8 sps:$4 sm:$0xff]  }
 0x20e   : > { %4928 = vmatpush1.bf16.msra.mxu0 %v6262_v44  ;;  %4671 = vmatprep.subr.bf16.mxu1 %v6267_v45  ;;  %v6358_v44 = vld [vmem:[%s7616_s6 + $0xab0] ss:$8 sps:$4 sm:$0xff]   ;;  %v6363_v45 = vld [vmem:[%s7616_s6 + $0x4c4] ss:$8 sps:$4 sm:$0xff]  }
 0x20f   : > { %4929 = vmatprep.subr.bf16.mxu0 %v6270_v46  ;;  %v6366_v46 = vld [vmem:[%s7616_s6 + $0xac4] ss:$8 sps:$4 sm:$0xff]  }
 0x211   : > { %4672 = vmatpush1.bf16.msra.mxu1 %v6265_v47  ;;  %v6361_v47 = vld [vmem:[%s7616_s6 + $0x4c0] ss:$8 sps:$4 sm:$0xff]  }
 0x212   : > { %4930 = vmatpush1.bf16.msra.mxu0 %v6268_v48  ;;  %4673 = vmatprep.subr.bf16.mxu1 %v6273_v49  ;;  %v6364_v48 = vld [vmem:[%s7616_s6 + $0xac0] ss:$8 sps:$4 sm:$0xff]   ;;  %v6369_v49 = vld [vmem:[%s7616_s6 + $0x4d4] ss:$8 sps:$4 sm:$0xff]  }
 0x213   : > { %4931 = vmatprep.subr.bf16.mxu0 %v6276_v50  ;;  %v6372_v50 = vld [vmem:[%s7616_s6 + $0xad4] ss:$8 sps:$4 sm:$0xff]  }
 0x215   : > { %4674 = vmatpush1.bf16.msra.mxu1 %v6271_v51  ;;  %v6367_v51 = vld [vmem:[%s7616_s6 + $0x4d0] ss:$8 sps:$4 sm:$0xff]  }
 0x216   : > { %4932 = vmatpush1.bf16.msra.mxu0 %v6274_v52  ;;  %4675 = vmatprep.subr.bf16.mxu1 %v6279_v53  ;;  %v6370_v52 = vld [vmem:[%s7616_s6 + $0xad0] ss:$8 sps:$4 sm:$0xff]   ;;  %v6375_v53 = vld [vmem:[%s7616_s6 + $0x4e4] ss:$8 sps:$4 sm:$0xff]  }
 0x217   : > { %4933 = vmatprep.subr.bf16.mxu0 %v6282_v54  ;;  %v6378_v54 = vld [vmem:[%s7616_s6 + $0xae4] ss:$8 sps:$4 sm:$0xff]  }
 0x219   : > { %4676 = vmatpush1.bf16.msra.mxu1 %v6277_v55  ;;  %v6373_v55 = vld [vmem:[%s7616_s6 + $0x4e0] ss:$8 sps:$4 sm:$0xff]  }
 0x21a   : > { %4934 = vmatpush1.bf16.msra.mxu0 %v6280_v56  ;;  %4688 = vmatprep.subr.bf16.mxu1 %v6288_v57  ;;  %v6376_v56 = vld [vmem:[%s7616_s6 + $0xae0] ss:$8 sps:$4 sm:$0xff]   ;;  %v6381_v57 = vld [vmem:[%s7616_s6 + $0x4f4] ss:$8 sps:$4 sm:$0xff]  }
 0x21b   : > { %4946 = vmatprep.subr.bf16.mxu0 %v6294_v58  ;;  %v6384_v58 = vld [vmem:[%s7616_s6 + $0xaf4] ss:$8 sps:$4 sm:$0xff]  }
 0x21c   : > { %4678 = vmatmul.mubr.bf16.vlgmr.msra.gmra.mrb[0].mxu1 %v6283_v59  ;;  %v6379_v59 = vld [vmem:[%s7616_s6 + $0x4f0] ss:$8 sps:$4 sm:$0xff]  }
 0x21d   : > { %4936 = vmatmul.mubr.bf16.vlgmr.msra.gmra.mrb[0].mxu0 %v6289_v61  ;;  %4689 = vmatpush1.bf16.msra.mxu1 %v6286_v60  ;;  %v6382_v60 = vld [vmem:[%s7616_s6 + $0xaf0] ss:$8 sps:$4 sm:$0xff]   ;;  %v6390_v61 = vld [vmem:[%s7616_s6 + $0x504] ss:$8 sps:$4 sm:$0xff]  }
 0x21e   : > { %4947 = vmatpush1.bf16.msra.mxu0 %v6292_v62  ;;  %4690 = vmatprep.subr.bf16.mxu1 %v6297_v63  ;;  %v6396_v62 = vld [vmem:[%s7616_s6 + $0xb04] ss:$8 sps:$4 sm:$0xff]   ;;  %v6385_v63 = vld [vmem:[%s7614_s4 + $0x20] ss:$100 sps:$4 sm:$0xff]  }
 0x21f   : > { %4948 = vmatprep.subr.bf16.mxu0 %v6300_v0  ;;  %4720 = vmatprep.mubr.bf16.mxu1 %v6387_v1  ;;  %v6391_v0 = vld [vmem:[%s7614_s4 + $0x50] ss:$100 sps:$4 sm:$0xff]  }
 0x220   : > { %4978 = vmatprep.mubr.bf16.mxu0 %v6393_v2  ;;  %v6388_v1 = vld [vmem:[%s7616_s6 + $0x500] ss:$8 sps:$4 sm:$0xff]  }
 0x221   : > { %4691 = vmatpush1.bf16.msra.mxu1 %v6295_v3  ;;  %v6394_v2 = vld [vmem:[%s7616_s6 + $0xb00] ss:$8 sps:$4 sm:$0xff]   ;;  %v6399_v3 = vld [vmem:[%s7616_s6 + $0x514] ss:$8 sps:$4 sm:$0xff]  }
 0x222   : > { %4949 = vmatpush1.bf16.msra.mxu0 %v6298_v4  ;;  %4692 = vmatprep.subr.bf16.mxu1 %v6303_v5  ;;  %v6402_v4 = vld [vmem:[%s7616_s6 + $0xb14] ss:$8 sps:$4 sm:$0xff]  }
 0x223   : > { %4950 = vmatprep.subr.bf16.mxu0 %v6306_v6  ;;  %v6489_v5 = vld [vmem:[%s7614_s4 + $0x2c] ss:$100 sps:$4 sm:$0xff]   ;;  %v6492_v6 = vld [vmem:[%s7614_s4 + $0x5c] ss:$100 sps:$4 sm:$0xff]  }
 0x225   : > { %4693 = vmatpush1.bf16.msra.mxu1 %v6301_v7  ;;  %v6397_v7 = vld [vmem:[%s7616_s6 + $0x510] ss:$8 sps:$4 sm:$0xff]  }
 0x226   : > { %4951 = vmatpush1.bf16.msra.mxu0 %v6304_v8  ;;  %4694 = vmatprep.subr.bf16.mxu1 %v6309_v9  ;;  %v6400_v8 = vld [vmem:[%s7616_s6 + $0xb10] ss:$8 sps:$4 sm:$0xff]   ;;  %v6405_v9 = vld [vmem:[%s7616_s6 + $0x524] ss:$8 sps:$4 sm:$0xff]  }
 0x227   : > { %4952 = vmatprep.subr.bf16.mxu0 %v6312_v10  ;;  %v6408_v10 = vld [vmem:[%s7616_s6 + $0xb24] ss:$8 sps:$4 sm:$0xff]  }
 0x229   : > { %4695 = vmatpush1.bf16.msra.mxu1 %v6307_v11  ;;  %v6403_v11 = vld [vmem:[%s7616_s6 + $0x520] ss:$8 sps:$4 sm:$0xff]  }
 0x22a   : > { %4953 = vmatpush1.bf16.msra.mxu0 %v6310_v12  ;;  %4696 = vmatprep.subr.bf16.mxu1 %v6315_v13  ;;  %v6406_v12 = vld [vmem:[%s7616_s6 + $0xb20] ss:$8 sps:$4 sm:$0xff]   ;;  %v6411_v13 = vld [vmem:[%s7616_s6 + $0x534] ss:$8 sps:$4 sm:$0xff]  }
 0x22b   : > { %4954 = vmatprep.subr.bf16.mxu0 %v6318_v14  ;;  %v6414_v14 = vld [vmem:[%s7616_s6 + $0xb34] ss:$8 sps:$4 sm:$0xff]  }
 0x22d   : > { %4697 = vmatpush1.bf16.msra.mxu1 %v6313_v15  ;;  %v6409_v15 = vld [vmem:[%s7616_s6 + $0x530] ss:$8 sps:$4 sm:$0xff]  }
 0x22e   : > { %4955 = vmatpush1.bf16.msra.mxu0 %v6316_v16  ;;  %4698 = vmatprep.subr.bf16.mxu1 %v6321_v17  ;;  %v6412_v16 = vld [vmem:[%s7616_s6 + $0xb30] ss:$8 sps:$4 sm:$0xff]   ;;  %v6417_v17 = vld [vmem:[%s7616_s6 + $0x544] ss:$8 sps:$4 sm:$0xff]  }
 0x22f   : > { %4956 = vmatprep.subr.bf16.mxu0 %v6324_v18  ;;  %v6420_v18 = vld [vmem:[%s7616_s6 + $0xb44] ss:$8 sps:$4 sm:$0xff]  }
 0x231   : > { %4699 = vmatpush1.bf16.msra.mxu1 %v6319_v19  ;;  %v6415_v19 = vld [vmem:[%s7616_s6 + $0x540] ss:$8 sps:$4 sm:$0xff]  }
 0x232   : > { %4957 = vmatpush1.bf16.msra.mxu0 %v6322_v20  ;;  %4700 = vmatprep.subr.bf16.mxu1 %v6327_v21  ;;  %v6418_v20 = vld [vmem:[%s7616_s6 + $0xb40] ss:$8 sps:$4 sm:$0xff]   ;;  %v6423_v21 = vld [vmem:[%s7616_s6 + $0x554] ss:$8 sps:$4 sm:$0xff]  }
 0x233   : > { %4958 = vmatprep.subr.bf16.mxu0 %v6330_v22  ;;  %v6426_v22 = vld [vmem:[%s7616_s6 + $0xb54] ss:$8 sps:$4 sm:$0xff]  }
 0x235   : > { %4701 = vmatpush1.bf16.msra.mxu1 %v6325_v23  ;;  %v6421_v23 = vld [vmem:[%s7616_s6 + $0x550] ss:$8 sps:$4 sm:$0xff]  }
 0x236   : > { %4959 = vmatpush1.bf16.msra.mxu0 %v6328_v24  ;;  %4702 = vmatprep.subr.bf16.mxu1 %v6333_v25  ;;  %v6424_v24 = vld [vmem:[%s7616_s6 + $0xb50] ss:$8 sps:$4 sm:$0xff]   ;;  %v6429_v25 = vld [vmem:[%s7616_s6 + $0x564] ss:$8 sps:$4 sm:$0xff]  }
 0x237   : > { %4960 = vmatprep.subr.bf16.mxu0 %v6336_v26  ;;  %v6432_v26 = vld [vmem:[%s7616_s6 + $0xb64] ss:$8 sps:$4 sm:$0xff]  }
 0x239   : > { %4703 = vmatpush1.bf16.msra.mxu1 %v6331_v27  ;;  %v6427_v27 = vld [vmem:[%s7616_s6 + $0x560] ss:$8 sps:$4 sm:$0xff]  }
 0x23a   : > { %4961 = vmatpush1.bf16.msra.mxu0 %v6334_v28  ;;  %4704 = vmatprep.subr.bf16.mxu1 %v6339_v29  ;;  %v6430_v28 = vld [vmem:[%s7616_s6 + $0xb60] ss:$8 sps:$4 sm:$0xff]   ;;  %v6435_v29 = vld [vmem:[%s7616_s6 + $0x574] ss:$8 sps:$4 sm:$0xff]  }
 0x23b   : > { %4962 = vmatprep.subr.bf16.mxu0 %v6342_v30  ;;  %v6438_v30 = vld [vmem:[%s7616_s6 + $0xb74] ss:$8 sps:$4 sm:$0xff]  }
 0x23d   : > { %4705 = vmatpush1.bf16.msra.mxu1 %v6337_v31  ;;  %v6433_v31 = vld [vmem:[%s7616_s6 + $0x570] ss:$8 sps:$4 sm:$0xff]  }
 0x23e   : > { %4963 = vmatpush1.bf16.msra.mxu0 %v6340_v32  ;;  %4706 = vmatprep.subr.bf16.mxu1 %v6345_v33  ;;  %v6436_v32 = vld [vmem:[%s7616_s6 + $0xb70] ss:$8 sps:$4 sm:$0xff]   ;;  %v6441_v33 = vld [vmem:[%s7616_s6 + $0x584] ss:$8 sps:$4 sm:$0xff]  }
 0x23f   : > { %4964 = vmatprep.subr.bf16.mxu0 %v6348_v34  ;;  %v6444_v34 = vld [vmem:[%s7616_s6 + $0xb84] ss:$8 sps:$4 sm:$0xff]  }
 0x241   : > { %4707 = vmatpush1.bf16.msra.mxu1 %v6343_v35  ;;  %v6439_v35 = vld [vmem:[%s7616_s6 + $0x580] ss:$8 sps:$4 sm:$0xff]  }
 0x242   : > { %4965 = vmatpush1.bf16.msra.mxu0 %v6346_v36  ;;  %4708 = vmatprep.subr.bf16.mxu1 %v6351_v37  ;;  %v6442_v36 = vld [vmem:[%s7616_s6 + $0xb80] ss:$8 sps:$4 sm:$0xff]   ;;  %v6447_v37 = vld [vmem:[%s7616_s6 + $0x594] ss:$8 sps:$4 sm:$0xff]  }
 0x243   : > { %4966 = vmatprep.subr.bf16.mxu0 %v6354_v38  ;;  %v6450_v38 = vld [vmem:[%s7616_s6 + $0xb94] ss:$8 sps:$4 sm:$0xff]  }
 0x245   : > { %4709 = vmatpush1.bf16.msra.mxu1 %v6349_v39  ;;  %v6445_v39 = vld [vmem:[%s7616_s6 + $0x590] ss:$8 sps:$4 sm:$0xff]  }
 0x246   : > { %4967 = vmatpush1.bf16.msra.mxu0 %v6352_v40  ;;  %4710 = vmatprep.subr.bf16.mxu1 %v6357_v41  ;;  %v6448_v40 = vld [vmem:[%s7616_s6 + $0xb90] ss:$8 sps:$4 sm:$0xff]   ;;  %v6453_v41 = vld [vmem:[%s7616_s6 + $0x5a4] ss:$8 sps:$4 sm:$0xff]  }
 0x247   : > { %4968 = vmatprep.subr.bf16.mxu0 %v6360_v42  ;;  %v6456_v42 = vld [vmem:[%s7616_s6 + $0xba4] ss:$8 sps:$4 sm:$0xff]  }
 0x249   : > { %4711 = vmatpush1.bf16.msra.mxu1 %v6355_v43  ;;  %v6451_v43 = vld [vmem:[%s7616_s6 + $0x5a0] ss:$8 sps:$4 sm:$0xff]  }
 0x24a   : > { %4969 = vmatpush1.bf16.msra.mxu0 %v6358_v44  ;;  %4712 = vmatprep.subr.bf16.mxu1 %v6363_v45  ;;  %v6454_v44 = vld [vmem:[%s7616_s6 + $0xba0] ss:$8 sps:$4 sm:$0xff]   ;;  %v6459_v45 = vld [vmem:[%s7616_s6 + $0x5b4] ss:$8 sps:$4 sm:$0xff]  }
 0x24b   : > { %4970 = vmatprep.subr.bf16.mxu0 %v6366_v46  ;;  %v6462_v46 = vld [vmem:[%s7616_s6 + $0xbb4] ss:$8 sps:$4 sm:$0xff]  }
 0x24d   : > { %4713 = vmatpush1.bf16.msra.mxu1 %v6361_v47  ;;  %v6457_v47 = vld [vmem:[%s7616_s6 + $0x5b0] ss:$8 sps:$4 sm:$0xff]  }
 0x24e   : > { %4971 = vmatpush1.bf16.msra.mxu0 %v6364_v48  ;;  %4714 = vmatprep.subr.bf16.mxu1 %v6369_v49  ;;  %v6460_v48 = vld [vmem:[%s7616_s6 + $0xbb0] ss:$8 sps:$4 sm:$0xff]   ;;  %v6465_v49 = vld [vmem:[%s7616_s6 + $0x5c4] ss:$8 sps:$4 sm:$0xff]  }
 0x24f   : > { %4972 = vmatprep.subr.bf16.mxu0 %v6372_v50  ;;  %v6468_v50 = vld [vmem:[%s7616_s6 + $0xbc4] ss:$8 sps:$4 sm:$0xff]  }
 0x251   : > { %4715 = vmatpush1.bf16.msra.mxu1 %v6367_v51  ;;  %v6463_v51 = vld [vmem:[%s7616_s6 + $0x5c0] ss:$8 sps:$4 sm:$0xff]  }
 0x252   : > { %4973 = vmatpush1.bf16.msra.mxu0 %v6370_v52  ;;  %4716 = vmatprep.subr.bf16.mxu1 %v6375_v53  ;;  %v6466_v52 = vld [vmem:[%s7616_s6 + $0xbc0] ss:$8 sps:$4 sm:$0xff]   ;;  %v6471_v53 = vld [vmem:[%s7616_s6 + $0x5d4] ss:$8 sps:$4 sm:$0xff]  }
 0x253   : > { %4974 = vmatprep.subr.bf16.mxu0 %v6378_v54  ;;  %v6474_v54 = vld [vmem:[%s7616_s6 + $0xbd4] ss:$8 sps:$4 sm:$0xff]  }
 0x255   : > { %4717 = vmatpush1.bf16.msra.mxu1 %v6373_v55  ;;  %v6469_v55 = vld [vmem:[%s7616_s6 + $0x5d0] ss:$8 sps:$4 sm:$0xff]  }
 0x256   : > { %4975 = vmatpush1.bf16.msra.mxu0 %v6376_v56  ;;  %4718 = vmatprep.subr.bf16.mxu1 %v6381_v57  ;;  %v6472_v56 = vld [vmem:[%s7616_s6 + $0xbd0] ss:$8 sps:$4 sm:$0xff]   ;;  %v6477_v57 = vld [vmem:[%s7616_s6 + $0x5e4] ss:$8 sps:$4 sm:$0xff]  }
 0x257   : > { %4976 = vmatprep.subr.bf16.mxu0 %v6384_v58  ;;  %v6480_v58 = vld [vmem:[%s7616_s6 + $0xbe4] ss:$8 sps:$4 sm:$0xff]  }
 0x259   : > { %4719 = vmatpush1.bf16.msra.mxu1 %v6379_v59  ;;  %v6475_v59 = vld [vmem:[%s7616_s6 + $0x5e0] ss:$8 sps:$4 sm:$0xff]  }
 0x25a   : > { %4977 = vmatpush1.bf16.msra.mxu0 %v6382_v60  ;;  %4731 = vmatprep.subr.bf16.mxu1 %v6390_v61  ;;  %v6478_v60 = vld [vmem:[%s7616_s6 + $0xbe0] ss:$8 sps:$4 sm:$0xff]   ;;  %v6483_v61 = vld [vmem:[%s7616_s6 + $0x5f4] ss:$8 sps:$4 sm:$0xff]  }
 0x25b   : > { %4989 = vmatprep.subr.bf16.mxu0 %v6396_v62  ;;  %v6486_v62 = vld [vmem:[%s7616_s6 + $0xbf4] ss:$8 sps:$4 sm:$0xff]  }
 0x25c   : > { %4721 = vmatmul.mubr.bf16.vlgmr.msra.gmra.mrb[0].mxu1 %v6385_v63  ;;  %v6481_v63 = vld [vmem:[%s7616_s6 + $0x5f0] ss:$8 sps:$4 sm:$0xff]  }
 0x25d   : > { %4979 = vmatmul.mubr.bf16.vlgmr.msra.gmra.mrb[0].mxu0 %v6391_v0  ;;  %4732 = vmatpush1.bf16.msra.mxu1 %v6388_v1  ;;  %v6484_v0 = vld [vmem:[%s7616_s6 + $0xbf0] ss:$8 sps:$4 sm:$0xff]   ;;  %v6495_v1 = vld [vmem:[%s7616_s6 + $0xc04] ss:$8 sps:$4 sm:$0xff]  }
 0x25e   : > { %4990 = vmatpush1.bf16.msra.mxu0 %v6394_v2  ;;  %4733 = vmatprep.subr.bf16.mxu1 %v6399_v3  ;;  %v6487_v2 = vld [vmem:[%s7614_s4 + $0x28] ss:$100 sps:$4 sm:$0xff]   ;;  %v6490_v3 = vld [vmem:[%s7614_s4 + $0x58] ss:$100 sps:$4 sm:$0xff]  }
 0x25f   : > { %4991 = vmatprep.subr.bf16.mxu0 %v6402_v4  ;;  %4763 = vmatprep.mubr.bf16.mxu1 %v6489_v5  ;;  %v6493_v4 = vld [vmem:[%s7616_s6 + $0xc00] ss:$8 sps:$4 sm:$0xff]   ;;  %v6498_v5 = vld [vmem:[%s7616_s6 + $0xc14] ss:$8 sps:$4 sm:$0xff]  }
 0x260   : > { %5021 = vmatprep.mubr.bf16.mxu0 %v6492_v6  ;;  %v6496_v6 = vld [vmem:[%s7616_s6 + $0xc10] ss:$8 sps:$4 sm:$0xff]  }
 0x261   : > { %4734 = vmatpush1.bf16.msra.mxu1 %v6397_v7  ;;  %v6607_v7 = vmov 0  }
 0x262   : > { %4992 = vmatpush1.bf16.msra.mxu0 %v6400_v8  ;;  %4735 = vmatprep.subr.bf16.mxu1 %v6405_v9  ;;  %v6501_v8 = vld [vmem:[%s7616_s6 + $0xc24] ss:$8 sps:$4 sm:$0xff]   ;;  %v6499_v9 = vld [vmem:[%s7616_s6 + $0xc20] ss:$8 sps:$4 sm:$0xff]  }
 0x263   : > { %4993 = vmatprep.subr.bf16.mxu0 %v6408_v10  ;;  %v6504_v10 = vld [vmem:[%s7616_s6 + $0xc34] ss:$8 sps:$4 sm:$0xff]  }
 0x265   : > { %4736 = vmatpush1.bf16.msra.mxu1 %v6403_v11  ;;  %v6502_v11 = vld [vmem:[%s7616_s6 + $0xc30] ss:$8 sps:$4 sm:$0xff]  }
 0x266   : > { %4994 = vmatpush1.bf16.msra.mxu0 %v6406_v12  ;;  %4737 = vmatprep.subr.bf16.mxu1 %v6411_v13  ;;  %v6507_v12 = vld [vmem:[%s7616_s6 + $0xc44] ss:$8 sps:$4 sm:$0xff]   ;;  %v6505_v13 = vld [vmem:[%s7616_s6 + $0xc40] ss:$8 sps:$4 sm:$0xff]  }
 0x267   : > { %4995 = vmatprep.subr.bf16.mxu0 %v6414_v14  ;;  %v6510_v14 = vld [vmem:[%s7616_s6 + $0xc54] ss:$8 sps:$4 sm:$0xff]  }
 0x269   : > { %4738 = vmatpush1.bf16.msra.mxu1 %v6409_v15  ;;  %v6508_v15 = vld [vmem:[%s7616_s6 + $0xc50] ss:$8 sps:$4 sm:$0xff]  }
 0x26a   : > { %4996 = vmatpush1.bf16.msra.mxu0 %v6412_v16  ;;  %4739 = vmatprep.subr.bf16.mxu1 %v6417_v17  ;;  %v6513_v16 = vld [vmem:[%s7616_s6 + $0xc64] ss:$8 sps:$4 sm:$0xff]   ;;  %v6511_v17 = vld [vmem:[%s7616_s6 + $0xc60] ss:$8 sps:$4 sm:$0xff]  }
 0x26b   : > { %4997 = vmatprep.subr.bf16.mxu0 %v6420_v18  ;;  %v6516_v18 = vld [vmem:[%s7616_s6 + $0xc74] ss:$8 sps:$4 sm:$0xff]  }
 0x26d   : > { %4740 = vmatpush1.bf16.msra.mxu1 %v6415_v19  ;;  %v6514_v19 = vld [vmem:[%s7616_s6 + $0xc70] ss:$8 sps:$4 sm:$0xff]  }
 0x26e   : > { %4998 = vmatpush1.bf16.msra.mxu0 %v6418_v20  ;;  %4741 = vmatprep.subr.bf16.mxu1 %v6423_v21  ;;  %v6517_v20 = vld [vmem:[%s7614_s4 + $0x60] ss:$100 sps:$4 sm:$0xff]  }
 0x26f   : > { %4999 = vmatprep.subr.bf16.mxu0 %v6426_v22 }
 0x271   : > { %4742 = vmatpush1.bf16.msra.mxu1 %v6421_v23 }
 0x272   : > { %5000 = vmatpush1.bf16.msra.mxu0 %v6424_v24  ;;  %4743 = vmatprep.subr.bf16.mxu1 %v6429_v25  ;;  %v1960_v25 = vld [vmem:[#allocation2] sm:$0xff] }
 0x273   : > { %5001 = vmatprep.subr.bf16.mxu0 %v6432_v26 }
 0x275   : > { %4744 = vmatpush1.bf16.msra.mxu1 %v6427_v27 }
 0x276   : > { %5002 = vmatpush1.bf16.msra.mxu0 %v6430_v28  ;;  %4745 = vmatprep.subr.bf16.mxu1 %v6435_v29  ;;  %v1961_v28 = vld [vmem:[#allocation2 + $0x8] sm:$0xff] }
 0x277   : > { %5003 = vmatprep.subr.bf16.mxu0 %v6438_v30 }
 0x279   : > { %4746 = vmatpush1.bf16.msra.mxu1 %v6433_v31  ;;  %v1962_v31 = vld [vmem:[#allocation2 + $0x10] sm:$0xff] }
 0x27a   : > { %5004 = vmatpush1.bf16.msra.mxu0 %v6436_v32  ;;  %4747 = vmatprep.subr.bf16.mxu1 %v6441_v33 }
 0x27b   : > { %5005 = vmatprep.subr.bf16.mxu0 %v6444_v34 }
 0x27d   : > { %4748 = vmatpush1.bf16.msra.mxu1 %v6439_v35  ;;  %v1963_v35 = vld [vmem:[#allocation2 + $0x18] sm:$0xff] }
 0x27e   : > { %5006 = vmatpush1.bf16.msra.mxu0 %v6442_v36  ;;  %4749 = vmatprep.subr.bf16.mxu1 %v6447_v37 }
 0x27f   : > { %5007 = vmatprep.subr.bf16.mxu0 %v6450_v38 }
 0x281   : > { %4750 = vmatpush1.bf16.msra.mxu1 %v6445_v39 }
 0x282   : > { %5008 = vmatpush1.bf16.msra.mxu0 %v6448_v40  ;;  %4751 = vmatprep.subr.bf16.mxu1 %v6453_v41  ;;  %v5093_v41 = vlaneseq (!%p5726_p5) }
 0x283   : > { %5009 = vmatprep.subr.bf16.mxu0 %v6456_v42 }
 0x284   : > { %v5094_v42 = vshrl.u32 (!%p5726_p5), %v5093_v41, 7 }
 0x285   : > { %4752 = vmatpush1.bf16.msra.mxu1 %v6451_v43  ;;  %v5091_v43 = vld [vmem:[%s1947_s29] sm:$0x3] (!%p5726_p5) }
 0x286   : > { %5010 = vmatpush1.bf16.msra.mxu0 %v6454_v44  ;;  %4753 = vmatprep.subr.bf16.mxu1 %v6459_v45  ;;  %v5095_v45 = vsub.s32 (!%p5726_p5), 0, %v5094_v42 }
 0x287   : > { %5011 = vmatprep.subr.bf16.mxu0 %v6462_v46  ;;  %v5099_v46 = vsub.s32 (!%p5726_p5), 1, %v5094_v42 }
 0x289   : > { %4754 = vmatpush1.bf16.msra.mxu1 %v6457_v47 }
 0x28a   : > { %5012 = vmatpush1.bf16.msra.mxu0 %v6460_v48  ;;  %4755 = vmatprep.subr.bf16.mxu1 %v6465_v49 }
 0x28b   : > { %5013 = vmatprep.subr.bf16.mxu0 %v6468_v50  ;;  %v5096_v50 = vrot.slane (!%p5726_p5), %v5091_v43, %v5095_v45 }
 0x28d   : > { %4756 = vmatpush1.bf16.msra.mxu1 %v6463_v51  ;;  %v5100_v51 = vrot.slane (!%p5726_p5), %v5091_v43, %v5099_v46 }
 0x28e   : > { %5014 = vmatpush1.bf16.msra.mxu0 %v6466_v52  ;;  %4757 = vmatprep.subr.bf16.mxu1 %v6471_v53 }
 0x28f   : > { %5015 = vmatprep.subr.bf16.mxu0 %v6474_v54 }
 0x291   : > { %4758 = vmatpush1.bf16.msra.mxu1 %v6469_v55 }
 0x292   : > { %5016 = vmatpush1.bf16.msra.mxu0 %v6472_v56  ;;  %4759 = vmatprep.subr.bf16.mxu1 %v6477_v57 }
 0x293   : > { %5017 = vmatprep.subr.bf16.mxu0 %v6480_v58 }
 0x295   : > { %4760 = vmatpush1.bf16.msra.mxu1 %v6475_v59 }
 0x296   : > { %5018 = vmatpush1.bf16.msra.mxu0 %v6478_v60  ;;  %4761 = vmatprep.subr.bf16.mxu1 %v6483_v61 }
 0x297   : > { %5019 = vmatprep.subr.bf16.mxu0 %v6486_v62 }
 0x299   : > { %4762 = vmatpush1.bf16.msra.mxu1 %v6481_v63 }
 0x29a   : > { %5020 = vmatpush1.bf16.msra.mxu0 %v6484_v0 }
 0x29b   : > { %5032 = vmatprep.subr.bf16.mxu0 %v6495_v1 }
 0x29c   : > { %4764 = vmatmul.mubr.bf16.vlgmr.msra.gmra.mrb[0].mxu1 %v6487_v2 }
 0x29d   : > { %5022 = vmatmul.mubr.bf16.vlgmr.msra.gmra.mrb[0].mxu0 %v6490_v3 }
 0x29e   : > { %5033 = vmatpush1.bf16.msra.mxu0 %v6493_v4  ;;  %5064 = vmatprep.mubr.bf16.mxu0 %v6607_v7 }
 0x29f   : > { %5034 = vmatprep.subr.bf16.mxu0 %v6498_v5 }
 0x2a2   : > { %5035 = vmatpush1.bf16.msra.mxu0 %v6496_v6 }
 0x2a3   : > { %5036 = vmatprep.subr.bf16.mxu0 %v6501_v8 }
 0x2a6   : > { %5037 = vmatpush1.bf16.msra.mxu0 %v6499_v9 }
 0x2a7   : > { %5038 = vmatprep.subr.bf16.mxu0 %v6504_v10 }
 0x2aa   : > { %5039 = vmatpush1.bf16.msra.mxu0 %v6502_v11 }
 0x2ab   : > { %5040 = vmatprep.subr.bf16.mxu0 %v6507_v12 }
 0x2ae   : > { %5041 = vmatpush1.bf16.msra.mxu0 %v6505_v13 }
 0x2af   : > { %5042 = vmatprep.subr.bf16.mxu0 %v6510_v14 }
 0x2b2   : > { %5043 = vmatpush1.bf16.msra.mxu0 %v6508_v15 }
 0x2b3   : > { %5044 = vmatprep.subr.bf16.mxu0 %v6513_v16 }
 0x2b6   : > { %5045 = vmatpush1.bf16.msra.mxu0 %v6511_v17 }
 0x2b7   : > { %5046 = vmatprep.subr.bf16.mxu0 %v6516_v18 }
 0x2ba   : > { %5047 = vmatpush1.bf16.msra.mxu0 %v6514_v19 }
 0x2bd   : > { %5065 = vmatmul.mubr.bf16.vlgmr.msra.gmra.mrb[0].mxu0 %v6517_v20 }
 0x36f   : > { %v4765_v21 = vpop.f32.mrb[0].mxu1 }
 0x370   : > { %v4767_v22 = vpop.f32.mrb[1].mxu1 }
 0x371   : > { %v4769_v23 = vpop.f32.mrb[2].mxu1 }
 0x372   : > { %v4771_v24 = vpop.f32.mrb[3].mxu1 }
 0x390   : > { %v5066_v26 = vpop.f32.mrb[0].mxu0 }
 0x391   : > { %v5739_v27 = vadd.f32 %v5066_v26, %v4765_v21  ;;  %v5068_v29 = vpop.f32.mrb[1].mxu0 }
 0x392   : > { %v5740_v30 = vadd.f32 %v5068_v29, %v4767_v22  ;;  %v5070_v32 = vpop.f32.mrb[2].mxu0  ;;  %5086 = sbr.rel (%p5726_p5) target bundleno = 935 (0x3a7), region = 104 }
 0x393   : > { %v5075_v33 = vadd.f32 %v5739_v27, %v1960_v25  ;;  %v5741_v34 = vadd.f32 %v5070_v32, %v4769_v23  ;;  %v5072_v36 = vpop.f32.mrb[3].mxu0 }
 0x394   : > { %v5076_v37 = vadd.f32 %v5740_v30, %v1961_v28  ;;  %v5742_v38 = vadd.f32 %v5072_v36, %v4771_v24 }
 0x395   : > { %5079 = vst [vmem:[#allocation2] sm:$0xff] %v5075_v33  ;;  %v5077_v39 = vadd.f32 %v5741_v34, %v1962_v31 }
 0x396   : > { %5080 = vst [vmem:[#allocation2 + $0x8] sm:$0xff] %v5076_v37  ;;  %v5078_v40 = vadd.f32 %v5742_v38, %v1963_v35 }
 0x397   : > { %5081 = vst [vmem:[#allocation2 + $0x10] sm:$0xff] %v5077_v39 }
 0x398   : > { %5082 = vst [vmem:[#allocation2 + $0x18] sm:$0xff] %v5078_v40 }
 0x39c   : > { %v5087_v44 = vld [vmem:[#allocation2] sm:$0xff] }
 0x39d   : > { %v5088_v47 = vld [vmem:[#allocation2 + $0x8] sm:$0xff]  ;;  %v5103_v52 = vadd.f32 %v5096_v50, %v5087_v44 }
 0x39e   : > { %v5089_v48 = vld [vmem:[#allocation2 + $0x10] sm:$0xff]  ;;  %v5104_v53 = vadd.f32 %v5100_v51, %v5088_v47 }
 0x39f   : > { %v5090_v49 = vld [vmem:[#allocation2 + $0x18] sm:$0xff]  ;;  %v5105_v54 = vadd.f32 %v5096_v50, %v5089_v48  ;;  %v5107_v56 = vmax.f32 %v5103_v52, 0.0 }
 0x3a0   : > { %v5106_v55 = vadd.f32 %v5100_v51, %v5090_v49  ;;  %v5108_v57 = vmax.f32 %v5104_v53, 0.0 }
 0x3a1   : > { %v5109_v58 = vmax.f32 %v5105_v54, 0.0 }
 0x3a2   : > { %v5110_v59 = vmax.f32 %v5106_v55, 0.0  ;;  %v5736_v60 = vpack.c.bf16 %v5108_v57, %v5107_v56 }
 0x3a4   : > { %v5737_v61 = vpack.c.bf16 %v5110_v59, %v5109_v58  ;;  %5123 = vst [vmem:[%s7618_s1] sm:$0xff] %v5736_v60 }
 0x3a6   : > { %5124 = vst [vmem:[%s7618_s1 + $0x8] sm:$0xff] %v5737_v61 }
 0x3a7 PF: > { %5131 = sbr.rel (!%p6722_p12) target bundleno = 943 (0x3af), region = 108  ;;  %s5738_s16 = sshll.u32 (%p6722_p12), %s6592_s19, 3 }
 0x3a8   : > { %s5137_s5 = scalar_lea.vmem (%p6722_p12), %s8098_s3, %s5738_s16 }
 0x3ab   : > { %v5167_v62 = vld [vmem:[%s7618_s1] sm:$0xff] (%p6722_p12) }
 0x3ac   : > { %5168 = vst [vmem:[%s5137_s5] sm:$0xff] (%p6722_p12), %v5167_v62 }
 0x3ad   : > { %v5169_v63 = vld [vmem:[%s7618_s1 + $0x8] sm:$0xff] (%p6722_p12) }
 0x3ae   : > { %5170 = vst [vmem:[%s5137_s5 + $0x10] sm:$0xff] %v5169_v63 }
 0x3af PF: > { %s13_s22 = sadd.s32 1, %s6604_s22   ;;  %s8108_s1 = sld [smem:[#allocation6_spill]] }
 0x3b0   : > { %p10_p6 = scmp.ge.s32.totalorder %s13_s22, 10   ;;  %s8109_s12 = smov %s6568_s13 }
 0x3b1   : > { %s8110_s13 = smov %s6720_s9  ;;  %s8111_s14 = smov %s6576_s15 }
 0x3b2   : > { %s8112_s15 = smov %s6717_s8  ;;  %s8113_s16 = smov %s6584_s17 }
 0x3b3   : > { %s8114_s17 = smov %s6703_s30  ;;  %s8115_s18 = smov %s6596_s20 }
 0x3b4   : > { %s8116_s19 = smov %s6600_s21  ;;  %s8117_s20 = smov %s8120_s24 }
 0x3b5   : > { %s8118_s21 = smov %s8108_s1  ;;  %12 = sbr.rel (!%p10_p6) target bundleno = 9 (0x9), region = 194 }

</bundles_post_ra>
